<compile_context>
chip_gen: v7x
topology: tpu7x:2x2x1
jax: 0.10.0
libtpu: 0.0.40
codegen_flags: <defaults>
</compile_context>

<pallas_src>
from collections import OrderedDict
import functools

import jax
import jax.numpy as jnp
import numpy as np
from jax import lax
from jax.experimental import pallas as pl
from jax.experimental.pallas import tpu as pltpu

OUT_CH = 256
BN_EPS = 1e-5


# ------------------------------ fused kernel ------------------------------

def _fpn_fused_kernel(dims,
                      x0_ref, x1_ref, x2_ref,
                      w1_0_ref, w1_1_ref, w1_2_ref,
                      b1_ref, w3_ref, b3_ref,
                      up0_ref, up1_ref, psel_ref,
                      res0_ref, res1_ref, res2_ref, pool_ref,
                      a0_ref, a1_ref, a2_ref):
    """One grid step = one batch element of the full FPN forward pass.

    dims = ((H0, W0), (H1, W1), (H2, W2)) -- static spatial sizes per level.
    Level slots 0/1/2 correspond to FPN inner/layer blocks 0/1/3 (the blocks
    the 3-input torchvision forward actually touches).
    """
    (H0, W0), (H1, W1), (H2, W2) = dims
    C = OUT_CH
    f32 = jnp.float32

    def run_level(lvl, x_ref, w1_ref, a_ref, H, W, top):
        HW = H * W
        # ---- 1x1 conv (BN scale folded into w) + BN bias + top-down add ----
        inner = jnp.dot(x_ref[0], w1_ref[...], preferred_element_type=f32)
        inner = inner + b1_ref[lvl]
        if top is not None:
            inner = inner + top

        # ---- build the 3x3 tap matrix in a VMEM scratch --------------------
        # a_ref has (H+2)*W rows and 3*C lanes.  Row r*W + w of lane block dx
        # holds padded_input[r, w + dx, :], so the 3x3 conv collapses to three
        # K=3C matmuls (one per dy) using only leading-row slices of a_ref.
        # Zero the two border row bands (everything the data stores below do
        # not overwrite), then store `inner` three times, shifted by one row
        # per dx, masking the column that would wrap across a row boundary.
        zero_band = jnp.zeros((W + 1, 3 * C), f32)
        a_ref[0:W + 1, :] = zero_band
        a_ref[HW + W - 1:HW + 2 * W, :] = zero_band

        col = lax.broadcasted_iota(jnp.int32, (HW, C), 0) % W
        zeros = jnp.zeros_like(inner)
        a_ref[W + 1:W + 1 + HW, 0:C] = jnp.where(col == W - 1, zeros, inner)
        a_ref[W:W + HW, C:2 * C] = inner
        a_ref[W - 1:W - 1 + HW, 2 * C:3 * C] = jnp.where(col == 0, zeros, inner)

        # ---- 3x3 conv (BN scale folded) as 3 bf16 matmuls over dy ----------
        acc = jnp.zeros((HW, C), f32)
        for dy in range(3):
            a_dy = a_ref[dy * W:dy * W + HW, :].astype(jnp.bfloat16)
            acc = acc + jnp.dot(a_dy, w3_ref[lvl, dy],
                                preferred_element_type=f32)
        return inner, acc + b3_ref[lvl]

    # ---- top level: feat2 (FPN block index 3) ------------------------------
    inner2, r2 = run_level(2, x2_ref, w1_2_ref, a2_ref, H2, W2, None)
    res2_ref[0] = r2.astype(res2_ref.dtype)

    # LastLevelMaxPool(kernel_size=1, stride=2) == strided subsample; realized
    # as a tiny 0/1 selection matmul (exact in f32) so it stays fused.
    pool_full = jnp.dot(psel_ref[...], r2, preferred_element_type=f32)
    pool_ref[0] = pool_full[0:pool_ref.shape[1]].astype(pool_ref.dtype)

    # ---- middle level: feat1 (block 1); nearest-2x upsample via matmul -----
    top1 = jnp.dot(up1_ref[...], inner2.astype(jnp.bfloat16),
                   preferred_element_type=f32)
    inner1, r1 = run_level(1, x1_ref, w1_1_ref, a1_ref, H1, W1, top1)
    res1_ref[0] = r1.astype(res1_ref.dtype)

    # ---- bottom level: feat0 (block 0) --------------------------------------
    top0 = jnp.dot(up0_ref[...], inner1.astype(jnp.bfloat16),
                   preferred_element_type=f32)
    _, r0 = run_level(0, x0_ref, w1_0_ref, a0_ref, H0, W0, top0)
    res0_ref[0] = r0.astype(res0_ref.dtype)


# ------------------------- selection-matrix helpers ------------------------

def _upsample_matrix(Hc, Wc):
    """0/1 matrix U with U @ x_flat == nearest-2x upsample of x (row-major HW)."""
    Hf, Wf = 2 * Hc, 2 * Wc
    idx = np.arange(Hf * Wf)
    src = (idx // Wf // 2) * Wc + (idx % Wf) // 2
    m = (src[:, None] == np.arange(Hc * Wc)[None, :]).astype(np.float32)
    return jnp.asarray(m, dtype=jnp.bfloat16)


def _pool_select_matrix(H, W, min_rows=8):
    """0/1 matrix P with P @ x_flat == x[::2, ::2] flat; rows padded to >= 8."""
    Ho, Wo = (H + 1) // 2, (W + 1) // 2
    idx = np.arange(Ho * Wo)
    src = (idx // Wo) * (2 * W) + (idx % Wo) * 2
    m = (src[:, None] == np.arange(H * W)[None, :]).astype(np.float32)
    if m.shape[0] < min_rows:
        m = np.pad(m, ((0, min_rows - m.shape[0]), (0, 0)))
    return jnp.asarray(m), Ho, Wo


# ----------------------- parameters & weight folding -----------------------

def fold_bn(gamma, beta, mean, var, eps=BN_EPS):
    scale = gamma / jnp.sqrt(var + eps)
    bias = beta - mean * scale
    return scale.reshape(1, -1), bias.reshape(1, -1)


def init_params(key):
    # TODO(synk): the real module loads FasterRCNN_ResNet50_FPN_V2_Weights.DEFAULT;
    # no file/network access here, so weights are randomly initialized instead.
    in_ch = {0: 256, 1: 512, 3: 2048}   # inner/layer blocks used by a 3-input forward
    params = {}
    kiter = iter(jax.random.split(key, 64))

    def bn_params():
        g = 1.0 + 0.1 * jax.random.normal(next(kiter), (OUT_CH,), jnp.float32)
        b = 0.1 * jax.random.normal(next(kiter), (OUT_CH,), jnp.float32)
        m = 0.1 * jax.random.normal(next(kiter), (OUT_CH,), jnp.float32)
        v = jax.random.uniform(next(kiter), (OUT_CH,), jnp.float32, 0.5, 1.5)
        return fold_bn(g, b, m, v)

    for idx, cin in in_ch.items():
        params[f"inner{idx}_w"] = 0.02 * jax.random.normal(
            next(kiter), (cin, OUT_CH), jnp.float32)           # (Cin, Cout)   [1x1]
        params[f"inner{idx}_scale"], params[f"inner{idx}_bias"] = bn_params()
        params[f"layer{idx}_w"] = 0.02 * jax.random.normal(
            next(kiter), (3, 3, OUT_CH, OUT_CH), jnp.float32)  # HWIO          [3x3]
        params[f"layer{idx}_scale"], params[f"layer{idx}_bias"] = bn_params()
    return params


def _prepare_kernel_params(params):
    """Fold BN scale into conv weights, reshape 3x3 weights to the dx-concat
    tap layout [dy, dx*Cin + ci, co], cast MXU operands to bf16."""
    def w1(idx):
        return (params[f"inner{idx}_w"] * params[f"inner{idx}_scale"]
                ).astype(jnp.bfloat16)

    def w3(idx):
        w = params[f"layer{idx}_w"] * params[f"layer{idx}_scale"].reshape(
            1, 1, 1, OUT_CH)
        cin = w.shape[2]
        return w.reshape(3, 3 * cin, OUT_CH).astype(jnp.bfloat16)

    w1_0, w1_1, w1_2 = w1(0), w1(1), w1(3)
    w3_all = jnp.stack([w3(0), w3(1), w3(3)])                    # (3, 3, 768, 256)
    b1_all = jnp.stack([params["inner0_bias"], params["inner1_bias"],
                        params["inner3_bias"]])                  # (3, 1, 256) f32
    b3_all = jnp.stack([params["layer0_bias"], params["layer1_bias"],
                        params["layer3_bias"]])                  # (3, 1, 256) f32
    return w1_0, w1_1, w1_2, b1_all, w3_all, b3_all


# ------------------------------- forward pass ------------------------------

def fpn_forward(params, feat0, feat1, feat2):
    N, C0, H0, W0 = feat0.shape
    _, C1, H1, W1 = feat1.shape
    _, C2, H2, W2 = feat2.shape
    C = OUT_CH
    # TODO(synk): torchvision interpolates the top-down path to the lateral's
    # actual size; this kernel assumes the exact 2x pyramid the backbone emits.
    assert (H0, W0) == (2 * H1, 2 * W1) and (H1, W1) == (2 * H2, 2 * W2)

    w1_0, w1_1, w1_2, b1_all, w3_all, b3_all = _prepare_kernel_params(params)

    # NCHW -> (N, H*W, C) row matrices (bf16 MXU operands).
    def to_rows(x):
        n, c, h, w = x.shape
        return jnp.transpose(x, (0, 2, 3, 1)).reshape(n, h * w, c).astype(
            jnp.bfloat16)

    x0, x1, x2 = to_rows(feat0), to_rows(feat1), to_rows(feat2)

    up0 = _upsample_matrix(H1, W1)                  # (H0*W0, H1*W1) bf16
    up1 = _upsample_matrix(H2, W2)                  # (H1*W1, H2*W2) bf16
    psel, Hp, Wp = _pool_select_matrix(H2, W2)      # (>=8, H2*W2)   f32

    kernel = functools.partial(
        _fpn_fused_kernel, ((H0, W0), (H1, W1), (H2, W2)))

    def per_batch(shape):
        nd = len(shape)
        return pl.BlockSpec((1,) + tuple(shape), lambda n: (n,) + (0,) * nd)

    def const(arr):
        nd = arr.ndim
        return pl.BlockSpec(arr.shape, lambda n: (0,) * nd)

    grid_spec = pltpu.PrefetchScalarGridSpec(
        num_scalar_prefetch=0,
        grid=(N,),
        in_specs=[
            per_batch((H0 * W0, C0)),
            per_batch((H1 * W1, C1)),
            per_batch((H2 * W2, C2)),
            const(w1_0), const(w1_1), const(w1_2),
            const(b1_all), const(w3_all), const(b3_all),
            const(up0), const(up1), const(psel),
        ],
        out_specs=(
            per_batch((H0 * W0, C)),
            per_batch((H1 * W1, C)),
            per_batch((H2 * W2, C)),
            per_batch((Hp * Wp, C)),
        ),
        scratch_shapes=[
            pltpu.VMEM(((H0 + 2) * W0, 3 * C), jnp.float32),
            pltpu.VMEM(((H1 + 2) * W1, 3 * C), jnp.float32),
            pltpu.VMEM(((H2 + 2) * W2, 3 * C), jnp.float32),
        ],
    )

    r0, r1, r2, pool = pl.pallas_call(
        kernel,
        out_shape=(
            jax.ShapeDtypeStruct((N, H0 * W0, C), jnp.float32),
            jax.ShapeDtypeStruct((N, H1 * W1, C), jnp.float32),
            jax.ShapeDtypeStruct((N, H2 * W2, C), jnp.float32),
            jax.ShapeDtypeStruct((N, Hp * Wp, C), jnp.float32),
        ),
        grid_spec=grid_spec,
        compiler_params=pltpu.CompilerParams(
            dimension_semantics=("parallel",),
            vmem_limit_bytes=48 * 1024 * 1024),
    )(x0, x1, x2, w1_0, w1_1, w1_2, b1_all, w3_all, b3_all, up0, up1, psel)

    def to_nchw(y, h, w):
        return jnp.transpose(y.reshape(N, h, w, C), (0, 3, 1, 2))

    return OrderedDict([
        ("feat0", to_nchw(r0, H0, W0)),
        ("feat1", to_nchw(r1, H1, W1)),
        ("feat2", to_nchw(r2, H2, W2)),
        ("pool", to_nchw(pool, Hp, Wp)),
    ])


# --------------------------- pure-JAX f32 reference ------------------------

def nearest_up2(x):
    return jnp.repeat(jnp.repeat(x, 2, axis=1), 2, axis=2)


def fpn_forward_ref(params, feat0, feat1, feat2):
    def conv1(x, idx, top):
        y = jnp.einsum("nhwc,cd->nhwd", x, params[f"inner{idx}_w"])
        y = y * params[f"inner{idx}_scale"][0] + params[f"inner{idx}_bias"][0]
        return y + top

    def conv3(x, idx):
        y = lax.conv_general_dilated(
            x, params[f"layer{idx}_w"], (1, 1), "SAME",
            dimension_numbers=("NHWC", "HWIO", "NHWC"))
        return y * params[f"layer{idx}_scale"][0] + params[f"layer{idx}_bias"][0]

    x0, x1, x2 = (jnp.transpose(f, (0, 2, 3, 1)) for f in (feat0, feat1, feat2))
    inner2 = conv1(x2, 3, 0.0)
    res2 = conv3(inner2, 3)
    inner1 = conv1(x1, 1, nearest_up2(inner2))
    res1 = conv3(inner1, 1)
    inner0 = conv1(x0, 0, nearest_up2(inner1))
    res0 = conv3(inner0, 0)
    pool = res2[:, ::2, ::2, :]
    to_nchw = lambda t: jnp.transpose(t, (0, 3, 1, 2))
    return OrderedDict([("feat0", to_nchw(res0)), ("feat1", to_nchw(res1)),
                        ("feat2", to_nchw(res2)), ("pool", to_nchw(pool))])


# --------------------------------- main ------------------------------------

if __name__ == "__main__":
    key = jax.random.PRNGKey(0)
    kp, k0, k1, k2 = jax.random.split(key, 4)
    params = init_params(kp)

    # NCHW inputs (PyTorch convention): real FPN channel counts, small spatial.
    feat0 = jax.random.normal(k0, (2, 256, 16, 16), jnp.float32)
    feat1 = jax.random.normal(k1, (2, 512, 8, 8), jnp.float32)
    feat2 = jax.random.normal(k2, (2, 2048, 4, 4), jnp.float32)

    out = jax.block_until_ready(
        jax.jit(fpn_forward)(params, feat0, feat1, feat2))
    ref = jax.block_until_ready(
        jax.jit(fpn_forward_ref)(params, feat0, feat1, feat2))

    assert list(out.keys()) == ["feat0", "feat1", "feat2", "pool"]
    for k in out:
        assert out[k].shape == ref[k].shape, (k, out[k].shape, ref[k].shape)
        np.testing.assert_allclose(np.asarray(out[k]), np.asarray(ref[k]),
                                   rtol=5e-2, atol=5e-2)
    print("KERNEL_OK")
</pallas_src>

<mosaic_0001>
module attributes {stable_mosaic.version = 11 : i64} {
  func.func @_fpn_fused_kernel(%arg0: i32, %arg1: memref<1x256x256xbf16, #tpu.memory_space<vmem>>, %arg2: memref<1x64x512xbf16, #tpu.memory_space<vmem>>, %arg3: memref<1x16x2048xbf16, #tpu.memory_space<vmem>>, %arg4: memref<256x256xbf16, #tpu.memory_space<vmem>>, %arg5: memref<512x256xbf16, #tpu.memory_space<vmem>>, %arg6: memref<2048x256xbf16, #tpu.memory_space<vmem>>, %arg7: memref<3x1x256xf32, #tpu.memory_space<vmem>>, %arg8: memref<3x3x768x256xbf16, #tpu.memory_space<vmem>>, %arg9: memref<3x1x256xf32, #tpu.memory_space<vmem>>, %arg10: memref<256x64xbf16, #tpu.memory_space<vmem>>, %arg11: memref<64x16xbf16, #tpu.memory_space<vmem>>, %arg12: memref<8x16xf32, #tpu.memory_space<vmem>>, %arg13: memref<1x256x256xf32, #tpu.memory_space<vmem>>, %arg14: memref<1x64x256xf32, #tpu.memory_space<vmem>>, %arg15: memref<1x16x256xf32, #tpu.memory_space<vmem>>, %arg16: memref<1x4x256xf32, #tpu.memory_space<vmem>>, %arg17: memref<288x768xf32, #tpu.memory_space<vmem>>, %arg18: memref<80x768xf32, #tpu.memory_space<vmem>>, %arg19: memref<24x768xf32, #tpu.memory_space<vmem>>) attributes {dimension_semantics = [#tpu.dimension_semantics<parallel>], iteration_bounds = array<i64: 2>, scalar_prefetch = 0 : i64, scratch_operands = 3 : i64, tpu.core_type = #tpu.core_type<tc>, window_params = [{transform_indices = @transform_0, window_bounds = array<i64: 1, 256, 256>}, {transform_indices = @transform_1, window_bounds = array<i64: 1, 64, 512>}, {transform_indices = @transform_2, window_bounds = array<i64: 1, 16, 2048>}, {pipeline_mode = #tpu.pipeline_mode<synchronous>, transform_indices = @transform_3, window_bounds = array<i64: 256, 256>}, {pipeline_mode = #tpu.pipeline_mode<synchronous>, transform_indices = @transform_4, window_bounds = array<i64: 512, 256>}, {pipeline_mode = #tpu.pipeline_mode<synchronous>, transform_indices = @transform_5, window_bounds = array<i64: 2048, 256>}, {pipeline_mode = #tpu.pipeline_mode<synchronous>, transform_indices = @transform_6, window_bounds = array<i64: 3, 1, 256>}, {pipeline_mode = #tpu.pipeline_mode<synchronous>, transform_indices = @transform_7, window_bounds = array<i64: 3, 3, 768, 256>}, {pipeline_mode = #tpu.pipeline_mode<synchronous>, transform_indices = @transform_8, window_bounds = array<i64: 3, 1, 256>}, {pipeline_mode = #tpu.pipeline_mode<synchronous>, transform_indices = @transform_9, window_bounds = array<i64: 256, 64>}, {pipeline_mode = #tpu.pipeline_mode<synchronous>, transform_indices = @transform_10, window_bounds = array<i64: 64, 16>}, {pipeline_mode = #tpu.pipeline_mode<synchronous>, transform_indices = @transform_11, window_bounds = array<i64: 8, 16>}, {transform_indices = @transform_12, window_bounds = array<i64: 1, 256, 256>}, {transform_indices = @transform_13, window_bounds = array<i64: 1, 64, 256>}, {transform_indices = @transform_14, window_bounds = array<i64: 1, 16, 256>}, {transform_indices = @transform_15, window_bounds = array<i64: 1, 4, 256>}]} {
    %c0 = arith.constant 0 : index
    %c0_0 = arith.constant 0 : index
    %c0_1 = arith.constant 0 : index
    %0 = vector.load %arg3[%c0, %c0_0, %c0_1] : memref<1x16x2048xbf16, #tpu.memory_space<vmem>>, vector<1x16x2048xbf16>
    %1 = vector.shape_cast %0 : vector<1x16x2048xbf16> to vector<16x2048xbf16>
    %c0_2 = arith.constant 0 : index
    %c0_3 = arith.constant 0 : index
    %2 = vector.load %arg6[%c0_2, %c0_3] : memref<2048x256xbf16, #tpu.memory_space<vmem>>, vector<2048x256xbf16>
    %cst = arith.constant dense<0.000000e+00> : vector<16x256xf32>
    %3 = tpu.matmul %1, %2, %cst {dimension_numbers = #tpu.dot_dimension_numbers<[1], [0], [0], [1], [0, 0, 1, 1], [], []>} : vector<16x2048xbf16>, vector<2048x256xbf16>, vector<16x256xf32> -> vector<16x256xf32>
    %c2 = arith.constant 2 : index
    %c0_4 = arith.constant 0 : index
    %c0_5 = arith.constant 0 : index
    %4 = vector.load %arg7[%c2, %c0_4, %c0_5] : memref<3x1x256xf32, #tpu.memory_space<vmem>>, vector<1x1x256xf32>
    %5 = vector.shape_cast %4 : vector<1x1x256xf32> to vector<1x256xf32>
    %6 = vector.broadcast %5 : vector<1x256xf32> to vector<16x256xf32>
    %7 = arith.addf %3, %6 : vector<16x256xf32>
    %cst_6 = arith.constant 0.000000e+00 : f32
    %8 = vector.broadcast %cst_6 : f32 to vector<5x768xf32>
    %c0_7 = arith.constant 0 : index
    %c0_8 = arith.constant 0 : index
    %9 = vector.load %arg19[%c0_7, %c0_8] : memref<24x768xf32, #tpu.memory_space<vmem>>, vector<5x768xf32>
    tpu.vector_store %arg19[%c0_7, %c0_8], %8 {strides = array<i32>} : memref<24x768xf32, #tpu.memory_space<vmem>>, vector<5x768xf32>,
    %c19 = arith.constant 19 : index
    %c0_9 = arith.constant 0 : index
    %10 = vector.load %arg19[%c19, %c0_9] : memref<24x768xf32, #tpu.memory_space<vmem>>, vector<5x768xf32>
    tpu.vector_store %arg19[%c19, %c0_9], %8 {strides = array<i32>} : memref<24x768xf32, #tpu.memory_space<vmem>>, vector<5x768xf32>,
    %11 = tpu.iota {dimensions = array<i32: 0>} : vector<16x256xi32>
    %c4_i32 = arith.constant 4 : i32
    %c0_i32 = arith.constant 0 : i32
    %12 = arith.cmpi eq, %c4_i32, %c0_i32 : i32
    %c1_i32 = arith.constant 1 : i32
    %13 = arith.select %12, %c1_i32, %c4_i32 : i32
    %14 = vector.broadcast %13 : i32 to vector<16x256xi32>
    %15 = arith.remsi %11, %14 : vector<16x256xi32>
    %c0_i32_10 = arith.constant 0 : i32
    %16 = vector.broadcast %c0_i32_10 : i32 to vector<16x256xi32>
    %17 = arith.cmpi ne, %15, %16 : vector<16x256xi32>
    %c0_i32_11 = arith.constant 0 : i32
    %18 = vector.broadcast %c0_i32_11 : i32 to vector<16x256xi32>
    %19 = arith.cmpi slt, %15, %18 : vector<16x256xi32>
    %c0_i32_12 = arith.constant 0 : i32
    %20 = arith.cmpi slt, %13, %c0_i32_12 : i32
    %21 = vector.broadcast %20 : i1 to vector<16x256xi1>
    %22 = vector.broadcast %21 : vector<16x256xi1> to vector<16x256xi1>
    %23 = arith.xori %19, %22 : vector<16x256xi1>
    %24 = arith.andi %23, %17 : vector<16x256xi1>
    %25 = vector.broadcast %13 : i32 to vector<16x256xi32>
    %26 = arith.addi %15, %25 : vector<16x256xi32>
    %27 = arith.select %24, %26, %15 : vector<16x256xi1>, vector<16x256xi32>
    %cst_13 = arith.constant 0.000000e+00 : f32
    %28 = vector.broadcast %cst_13 : f32 to vector<16x256xf32>
    %c3_i32 = arith.constant 3 : i32
    %29 = vector.broadcast %c3_i32 : i32 to vector<16x256xi32>
    %30 = arith.cmpi eq, %27, %29 : vector<16x256xi32>
    %31 = arith.select %30, %28, %7 : vector<16x256xi1>, vector<16x256xf32>
    %c5 = arith.constant 5 : index
    %c0_14 = arith.constant 0 : index
    %32 = vector.load %arg19[%c5, %c0_14] : memref<24x768xf32, #tpu.memory_space<vmem>>, vector<16x256xf32>
    tpu.vector_store %arg19[%c5, %c0_14], %31 {strides = array<i32>} : memref<24x768xf32, #tpu.memory_space<vmem>>, vector<16x256xf32>,
    %c4 = arith.constant 4 : index
    %c256 = arith.constant 256 : index
    %33 = vector.load %arg19[%c4, %c256] : memref<24x768xf32, #tpu.memory_space<vmem>>, vector<16x256xf32>
    tpu.vector_store %arg19[%c4, %c256], %7 {strides = array<i32>} : memref<24x768xf32, #tpu.memory_space<vmem>>, vector<16x256xf32>,
    %c0_i32_15 = arith.constant 0 : i32
    %34 = vector.broadcast %c0_i32_15 : i32 to vector<16x256xi32>
    %35 = arith.cmpi eq, %27, %34 : vector<16x256xi32>
    %36 = arith.select %35, %28, %7 : vector<16x256xi1>, vector<16x256xf32>
    %c3 = arith.constant 3 : index
    %c512 = arith.constant 512 : index
    %37 = vector.load %arg19[%c3, %c512] : memref<24x768xf32, #tpu.memory_space<vmem>>, vector<16x256xf32>
    tpu.vector_store %arg19[%c3, %c512], %36 {strides = array<i32>} : memref<24x768xf32, #tpu.memory_space<vmem>>, vector<16x256xf32>,
    %cst_16 = arith.constant 0.000000e+00 : f32
    %38 = vector.broadcast %cst_16 : f32 to vector<16x256xf32>
    %c0_17 = arith.constant 0 : index
    %c0_18 = arith.constant 0 : index
    %39 = vector.load %arg19[%c0_17, %c0_18] : memref<24x768xf32, #tpu.memory_space<vmem>>, vector<16x768xf32>
    %40 = arith.truncf %39 : vector<16x768xf32> to vector<16x768xbf16>
    %c2_19 = arith.constant 2 : index
    %c0_20 = arith.constant 0 : index
    %c0_21 = arith.constant 0 : index
    %c0_22 = arith.constant 0 : index
    %41 = vector.load %arg8[%c2_19, %c0_20, %c0_21, %c0_22] : memref<3x3x768x256xbf16, #tpu.memory_space<vmem>>, vector<1x1x768x256xbf16>
    %42 = vector.shape_cast %41 : vector<1x1x768x256xbf16> to vector<768x256xbf16>
    %cst_23 = arith.constant dense<0.000000e+00> : vector<16x256xf32>
    %43 = tpu.matmul %40, %42, %cst_23 {dimension_numbers = #tpu.dot_dimension_numbers<[1], [0], [0], [1], [0, 0, 1, 1], [], []>} : vector<16x768xbf16>, vector<768x256xbf16>, vector<16x256xf32> -> vector<16x256xf32>
    %44 = arith.addf %38, %43 : vector<16x256xf32>
    %c4_24 = arith.constant 4 : index
    %c0_25 = arith.constant 0 : index
    %45 = vector.load %arg19[%c4_24, %c0_25] : memref<24x768xf32, #tpu.memory_space<vmem>>, vector<16x768xf32>
    %46 = arith.truncf %45 : vector<16x768xf32> to vector<16x768xbf16>
    %c2_26 = arith.constant 2 : index
    %c1 = arith.constant 1 : index
    %c0_27 = arith.constant 0 : index
    %c0_28 = arith.constant 0 : index
    %47 = vector.load %arg8[%c2_26, %c1, %c0_27, %c0_28] : memref<3x3x768x256xbf16, #tpu.memory_space<vmem>>, vector<1x1x768x256xbf16>
    %48 = vector.shape_cast %47 : vector<1x1x768x256xbf16> to vector<768x256xbf16>
    %cst_29 = arith.constant dense<0.000000e+00> : vector<16x256xf32>
    %49 = tpu.matmul %46, %48, %cst_29 {dimension_numbers = #tpu.dot_dimension_numbers<[1], [0], [0], [1], [0, 0, 1, 1], [], []>} : vector<16x768xbf16>, vector<768x256xbf16>, vector<16x256xf32> -> vector<16x256xf32>
    %50 = arith.addf %44, %49 : vector<16x256xf32>
    %c8 = arith.constant 8 : index
    %c0_30 = arith.constant 0 : index
    %51 = vector.load %arg19[%c8, %c0_30] : memref<24x768xf32, #tpu.memory_space<vmem>>, vector<16x768xf32>
    %52 = arith.truncf %51 : vector<16x768xf32> to vector<16x768xbf16>
    %c2_31 = arith.constant 2 : index
    %c2_32 = arith.constant 2 : index
    %c0_33 = arith.constant 0 : index
    %c0_34 = arith.constant 0 : index
    %53 = vector.load %arg8[%c2_31, %c2_32, %c0_33, %c0_34] : memref<3x3x768x256xbf16, #tpu.memory_space<vmem>>, vector<1x1x768x256xbf16>
    %54 = vector.shape_cast %53 : vector<1x1x768x256xbf16> to vector<768x256xbf16>
    %cst_35 = arith.constant dense<0.000000e+00> : vector<16x256xf32>
    %55 = tpu.matmul %52, %54, %cst_35 {dimension_numbers = #tpu.dot_dimension_numbers<[1], [0], [0], [1], [0, 0, 1, 1], [], []>} : vector<16x768xbf16>, vector<768x256xbf16>, vector<16x256xf32> -> vector<16x256xf32>
    %56 = arith.addf %50, %55 : vector<16x256xf32>
    %c2_36 = arith.constant 2 : index
    %c0_37 = arith.constant 0 : index
    %c0_38 = arith.constant 0 : index
    %57 = vector.load %arg9[%c2_36, %c0_37, %c0_38] : memref<3x1x256xf32, #tpu.memory_space<vmem>>, vector<1x1x256xf32>
    %58 = vector.shape_cast %57 : vector<1x1x256xf32> to vector<1x256xf32>
    %59 = vector.broadcast %58 : vector<1x256xf32> to vector<16x256xf32>
    %60 = arith.addf %56, %59 : vector<16x256xf32>
    %c0_39 = arith.constant 0 : index
    %c0_40 = arith.constant 0 : index
    %c0_41 = arith.constant 0 : index
    %61 = vector.load %arg15[%c0_39, %c0_40, %c0_41] : memref<1x16x256xf32, #tpu.memory_space<vmem>>, vector<1x16x256xf32>
    %62 = vector.shape_cast %61 : vector<1x16x256xf32> to vector<16x256xf32>
    %63 = vector.shape_cast %60 : vector<16x256xf32> to vector<1x16x256xf32>
    tpu.vector_store %arg15[%c0_39, %c0_40, %c0_41], %63 {strides = array<i32>} : memref<1x16x256xf32, #tpu.memory_space<vmem>>, vector<1x16x256xf32>,
    %c0_42 = arith.constant 0 : index
    %c0_43 = arith.constant 0 : index
    %64 = vector.load %arg12[%c0_42, %c0_43] : memref<8x16xf32, #tpu.memory_space<vmem>>, vector<8x16xf32>
    %cst_44 = arith.constant dense<0.000000e+00> : vector<8x256xf32>
    %65 = tpu.matmul %64, %60, %cst_44 {dimension_numbers = #tpu.dot_dimension_numbers<[1], [0], [0], [1], [0, 0, 1, 1], [], []>} : vector<8x16xf32>, vector<16x256xf32>, vector<8x256xf32> -> vector<8x256xf32>
    %66 = vector.extract_strided_slice %65 {offsets = [0, 0], sizes = [4, 256], strides = [1, 1]} : vector<8x256xf32> to vector<4x256xf32>
    %c0_45 = arith.constant 0 : index
    %c0_46 = arith.constant 0 : index
    %c0_47 = arith.constant 0 : index
    %67 = vector.load %arg16[%c0_45, %c0_46, %c0_47] : memref<1x4x256xf32, #tpu.memory_space<vmem>>, vector<1x4x256xf32>
    %68 = vector.shape_cast %67 : vector<1x4x256xf32> to vector<4x256xf32>
    %69 = vector.shape_cast %66 : vector<4x256xf32> to vector<1x4x256xf32>
    tpu.vector_store %arg16[%c0_45, %c0_46, %c0_47], %69 {strides = array<i32>} : memref<1x4x256xf32, #tpu.memory_space<vmem>>, vector<1x4x256xf32>,
    %c0_48 = arith.constant 0 : index
    %c0_49 = arith.constant 0 : index
    %70 = vector.load %arg11[%c0_48, %c0_49] : memref<64x16xbf16, #tpu.memory_space<vmem>>, vector<64x16xbf16>
    %71 = arith.truncf %7 : vector<16x256xf32> to vector<16x256xbf16>
    %cst_50 = arith.constant dense<0.000000e+00> : vector<64x256xf32>
    %72 = tpu.matmul %70, %71, %cst_50 {dimension_numbers = #tpu.dot_dimension_numbers<[1], [0], [0], [1], [0, 0, 1, 1], [], []>} : vector<64x16xbf16>, vector<16x256xbf16>, vector<64x256xf32> -> vector<64x256xf32>
    %c0_51 = arith.constant 0 : index
    %c0_52 = arith.constant 0 : index
    %c0_53 = arith.constant 0 : index
    %73 = vector.load %arg2[%c0_51, %c0_52, %c0_53] : memref<1x64x512xbf16, #tpu.memory_space<vmem>>, vector<1x64x512xbf16>
    %74 = vector.shape_cast %73 : vector<1x64x512xbf16> to vector<64x512xbf16>
    %c0_54 = arith.constant 0 : index
    %c0_55 = arith.constant 0 : index
    %75 = vector.load %arg5[%c0_54, %c0_55] : memref<512x256xbf16, #tpu.memory_space<vmem>>, vector<512x256xbf16>
    %cst_56 = arith.constant dense<0.000000e+00> : vector<64x256xf32>
    %76 = tpu.matmul %74, %75, %cst_56 {dimension_numbers = #tpu.dot_dimension_numbers<[1], [0], [0], [1], [0, 0, 1, 1], [], []>} : vector<64x512xbf16>, vector<512x256xbf16>, vector<64x256xf32> -> vector<64x256xf32>
    %c1_57 = arith.constant 1 : index
    %c0_58 = arith.constant 0 : index
    %c0_59 = arith.constant 0 : index
    %77 = vector.load %arg7[%c1_57, %c0_58, %c0_59] : memref<3x1x256xf32, #tpu.memory_space<vmem>>, vector<1x1x256xf32>
    %78 = vector.shape_cast %77 : vector<1x1x256xf32> to vector<1x256xf32>
    %79 = vector.broadcast %78 : vector<1x256xf32> to vector<64x256xf32>
    %80 = arith.addf %76, %79 : vector<64x256xf32>
    %81 = arith.addf %80, %72 : vector<64x256xf32>
    %cst_60 = arith.constant 0.000000e+00 : f32
    %82 = vector.broadcast %cst_60 : f32 to vector<9x768xf32>
    %c0_61 = arith.constant 0 : index
    %c0_62 = arith.constant 0 : index
    %83 = vector.load %arg18[%c0_61, %c0_62] : memref<80x768xf32, #tpu.memory_space<vmem>>, vector<9x768xf32>
    tpu.vector_store %arg18[%c0_61, %c0_62], %82 {strides = array<i32>} : memref<80x768xf32, #tpu.memory_space<vmem>>, vector<9x768xf32>,
    %c71 = arith.constant 71 : index
    %c0_63 = arith.constant 0 : index
    %84 = vector.load %arg18[%c71, %c0_63] : memref<80x768xf32, #tpu.memory_space<vmem>>, vector<9x768xf32>
    tpu.vector_store %arg18[%c71, %c0_63], %82 {strides = array<i32>} : memref<80x768xf32, #tpu.memory_space<vmem>>, vector<9x768xf32>,
    %85 = tpu.iota {dimensions = array<i32: 0>} : vector<64x256xi32>
    %c8_i32 = arith.constant 8 : i32
    %c0_i32_64 = arith.constant 0 : i32
    %86 = arith.cmpi eq, %c8_i32, %c0_i32_64 : i32
    %c1_i32_65 = arith.constant 1 : i32
    %87 = arith.select %86, %c1_i32_65, %c8_i32 : i32
    %88 = vector.broadcast %87 : i32 to vector<64x256xi32>
    %89 = arith.remsi %85, %88 : vector<64x256xi32>
    %c0_i32_66 = arith.constant 0 : i32
    %90 = vector.broadcast %c0_i32_66 : i32 to vector<64x256xi32>
    %91 = arith.cmpi ne, %89, %90 : vector<64x256xi32>
    %c0_i32_67 = arith.constant 0 : i32
    %92 = vector.broadcast %c0_i32_67 : i32 to vector<64x256xi32>
    %93 = arith.cmpi slt, %89, %92 : vector<64x256xi32>
    %c0_i32_68 = arith.constant 0 : i32
    %94 = arith.cmpi slt, %87, %c0_i32_68 : i32
    %95 = vector.broadcast %94 : i1 to vector<64x256xi1>
    %96 = vector.broadcast %95 : vector<64x256xi1> to vector<64x256xi1>
    %97 = arith.xori %93, %96 : vector<64x256xi1>
    %98 = arith.andi %97, %91 : vector<64x256xi1>
    %99 = vector.broadcast %87 : i32 to vector<64x256xi32>
    %100 = arith.addi %89, %99 : vector<64x256xi32>
    %101 = arith.select %98, %100, %89 : vector<64x256xi1>, vector<64x256xi32>
    %cst_69 = arith.constant 0.000000e+00 : f32
    %102 = vector.broadcast %cst_69 : f32 to vector<64x256xf32>
    %c7_i32 = arith.constant 7 : i32
    %103 = vector.broadcast %c7_i32 : i32 to vector<64x256xi32>
    %104 = arith.cmpi eq, %101, %103 : vector<64x256xi32>
    %105 = arith.select %104, %102, %81 : vector<64x256xi1>, vector<64x256xf32>
    %c9 = arith.constant 9 : index
    %c0_70 = arith.constant 0 : index
    %106 = vector.load %arg18[%c9, %c0_70] : memref<80x768xf32, #tpu.memory_space<vmem>>, vector<64x256xf32>
    tpu.vector_store %arg18[%c9, %c0_70], %105 {strides = array<i32>} : memref<80x768xf32, #tpu.memory_space<vmem>>, vector<64x256xf32>,
    %c8_71 = arith.constant 8 : index
    %c256_72 = arith.constant 256 : index
    %107 = vector.load %arg18[%c8_71, %c256_72] : memref<80x768xf32, #tpu.memory_space<vmem>>, vector<64x256xf32>
    tpu.vector_store %arg18[%c8_71, %c256_72], %81 {strides = array<i32>} : memref<80x768xf32, #tpu.memory_space<vmem>>, vector<64x256xf32>,
    %c0_i32_73 = arith.constant 0 : i32
    %108 = vector.broadcast %c0_i32_73 : i32 to vector<64x256xi32>
    %109 = arith.cmpi eq, %101, %108 : vector<64x256xi32>
    %110 = arith.select %109, %102, %81 : vector<64x256xi1>, vector<64x256xf32>
    %c7 = arith.constant 7 : index
    %c512_74 = arith.constant 512 : index
    %111 = vector.load %arg18[%c7, %c512_74] : memref<80x768xf32, #tpu.memory_space<vmem>>, vector<64x256xf32>
    tpu.vector_store %arg18[%c7, %c512_74], %110 {strides = array<i32>} : memref<80x768xf32, #tpu.memory_space<vmem>>, vector<64x256xf32>,
    %cst_75 = arith.constant 0.000000e+00 : f32
    %112 = vector.broadcast %cst_75 : f32 to vector<64x256xf32>
    %c0_76 = arith.constant 0 : index
    %c0_77 = arith.constant 0 : index
    %113 = vector.load %arg18[%c0_76, %c0_77] : memref<80x768xf32, #tpu.memory_space<vmem>>, vector<64x768xf32>
    %114 = arith.truncf %113 : vector<64x768xf32> to vector<64x768xbf16>
    %c1_78 = arith.constant 1 : index
    %c0_79 = arith.constant 0 : index
    %c0_80 = arith.constant 0 : index
    %c0_81 = arith.constant 0 : index
    %115 = vector.load %arg8[%c1_78, %c0_79, %c0_80, %c0_81] : memref<3x3x768x256xbf16, #tpu.memory_space<vmem>>, vector<1x1x768x256xbf16>
    %116 = vector.shape_cast %115 : vector<1x1x768x256xbf16> to vector<768x256xbf16>
    %cst_82 = arith.constant dense<0.000000e+00> : vector<64x256xf32>
    %117 = tpu.matmul %114, %116, %cst_82 {dimension_numbers = #tpu.dot_dimension_numbers<[1], [0], [0], [1], [0, 0, 1, 1], [], []>} : vector<64x768xbf16>, vector<768x256xbf16>, vector<64x256xf32> -> vector<64x256xf32>
    %118 = arith.addf %112, %117 : vector<64x256xf32>
    %c8_83 = arith.constant 8 : index
    %c0_84 = arith.constant 0 : index
    %119 = vector.load %arg18[%c8_83, %c0_84] : memref<80x768xf32, #tpu.memory_space<vmem>>, vector<64x768xf32>
    %120 = arith.truncf %119 : vector<64x768xf32> to vector<64x768xbf16>
    %c1_85 = arith.constant 1 : index
    %c1_86 = arith.constant 1 : index
    %c0_87 = arith.constant 0 : index
    %c0_88 = arith.constant 0 : index
    %121 = vector.load %arg8[%c1_85, %c1_86, %c0_87, %c0_88] : memref<3x3x768x256xbf16, #tpu.memory_space<vmem>>, vector<1x1x768x256xbf16>
    %122 = vector.shape_cast %121 : vector<1x1x768x256xbf16> to vector<768x256xbf16>
    %cst_89 = arith.constant dense<0.000000e+00> : vector<64x256xf32>
    %123 = tpu.matmul %120, %122, %cst_89 {dimension_numbers = #tpu.dot_dimension_numbers<[1], [0], [0], [1], [0, 0, 1, 1], [], []>} : vector<64x768xbf16>, vector<768x256xbf16>, vector<64x256xf32> -> vector<64x256xf32>
    %124 = arith.addf %118, %123 : vector<64x256xf32>
    %c16 = arith.constant 16 : index
    %c0_90 = arith.constant 0 : index
    %125 = vector.load %arg18[%c16, %c0_90] : memref<80x768xf32, #tpu.memory_space<vmem>>, vector<64x768xf32>
    %126 = arith.truncf %125 : vector<64x768xf32> to vector<64x768xbf16>
    %c1_91 = arith.constant 1 : index
    %c2_92 = arith.constant 2 : index
    %c0_93 = arith.constant 0 : index
    %c0_94 = arith.constant 0 : index
    %127 = vector.load %arg8[%c1_91, %c2_92, %c0_93, %c0_94] : memref<3x3x768x256xbf16, #tpu.memory_space<vmem>>, vector<1x1x768x256xbf16>
    %128 = vector.shape_cast %127 : vector<1x1x768x256xbf16> to vector<768x256xbf16>
    %cst_95 = arith.constant dense<0.000000e+00> : vector<64x256xf32>
    %129 = tpu.matmul %126, %128, %cst_95 {dimension_numbers = #tpu.dot_dimension_numbers<[1], [0], [0], [1], [0, 0, 1, 1], [], []>} : vector<64x768xbf16>, vector<768x256xbf16>, vector<64x256xf32> -> vector<64x256xf32>
    %130 = arith.addf %124, %129 : vector<64x256xf32>
    %c1_96 = arith.constant 1 : index
    %c0_97 = arith.constant 0 : index
    %c0_98 = arith.constant 0 : index
    %131 = vector.load %arg9[%c1_96, %c0_97, %c0_98] : memref<3x1x256xf32, #tpu.memory_space<vmem>>, vector<1x1x256xf32>
    %132 = vector.shape_cast %131 : vector<1x1x256xf32> to vector<1x256xf32>
    %133 = vector.broadcast %132 : vector<1x256xf32> to vector<64x256xf32>
    %134 = arith.addf %130, %133 : vector<64x256xf32>
    %c0_99 = arith.constant 0 : index
    %c0_100 = arith.constant 0 : index
    %c0_101 = arith.constant 0 : index
    %135 = vector.load %arg14[%c0_99, %c0_100, %c0_101] : memref<1x64x256xf32, #tpu.memory_space<vmem>>, vector<1x64x256xf32>
    %136 = vector.shape_cast %135 : vector<1x64x256xf32> to vector<64x256xf32>
    %137 = vector.shape_cast %134 : vector<64x256xf32> to vector<1x64x256xf32>
    tpu.vector_store %arg14[%c0_99, %c0_100, %c0_101], %137 {strides = array<i32>} : memref<1x64x256xf32, #tpu.memory_space<vmem>>, vector<1x64x256xf32>,
    %c0_102 = arith.constant 0 : index
    %c0_103 = arith.constant 0 : index
    %138 = vector.load %arg10[%c0_102, %c0_103] : memref<256x64xbf16, #tpu.memory_space<vmem>>, vector<256x64xbf16>
    %139 = arith.truncf %81 : vector<64x256xf32> to vector<64x256xbf16>
    %cst_104 = arith.constant dense<0.000000e+00> : vector<256x256xf32>
    %140 = tpu.matmul %138, %139, %cst_104 {dimension_numbers = #tpu.dot_dimension_numbers<[1], [0], [0], [1], [0, 0, 1, 1], [], []>} : vector<256x64xbf16>, vector<64x256xbf16>, vector<256x256xf32> -> vector<256x256xf32>
    %c0_105 = arith.constant 0 : index
    %c0_106 = arith.constant 0 : index
    %c0_107 = arith.constant 0 : index
    %141 = vector.load %arg1[%c0_105, %c0_106, %c0_107] : memref<1x256x256xbf16, #tpu.memory_space<vmem>>, vector<1x256x256xbf16>
    %142 = vector.shape_cast %141 : vector<1x256x256xbf16> to vector<256x256xbf16>
    %c0_108 = arith.constant 0 : index
    %c0_109 = arith.constant 0 : index
    %143 = vector.load %arg4[%c0_108, %c0_109] : memref<256x256xbf16, #tpu.memory_space<vmem>>, vector<256x256xbf16>
    %cst_110 = arith.constant dense<0.000000e+00> : vector<256x256xf32>
    %144 = tpu.matmul %142, %143, %cst_110 {dimension_numbers = #tpu.dot_dimension_numbers<[1], [0], [0], [1], [0, 0, 1, 1], [], []>} : vector<256x256xbf16>, vector<256x256xbf16>, vector<256x256xf32> -> vector<256x256xf32>
    %c0_111 = arith.constant 0 : index
    %c0_112 = arith.constant 0 : index
    %c0_113 = arith.constant 0 : index
    %145 = vector.load %arg7[%c0_111, %c0_112, %c0_113] : memref<3x1x256xf32, #tpu.memory_space<vmem>>, vector<1x1x256xf32>
    %146 = vector.shape_cast %145 : vector<1x1x256xf32> to vector<1x256xf32>
    %147 = vector.broadcast %146 : vector<1x256xf32> to vector<256x256xf32>
    %148 = arith.addf %144, %147 : vector<256x256xf32>
    %149 = arith.addf %148, %140 : vector<256x256xf32>
    %cst_114 = arith.constant 0.000000e+00 : f32
    %150 = vector.broadcast %cst_114 : f32 to vector<17x768xf32>
    %c0_115 = arith.constant 0 : index
    %c0_116 = arith.constant 0 : index
    %151 = vector.load %arg17[%c0_115, %c0_116] : memref<288x768xf32, #tpu.memory_space<vmem>>, vector<17x768xf32>
    tpu.vector_store %arg17[%c0_115, %c0_116], %150 {strides = array<i32>} : memref<288x768xf32, #tpu.memory_space<vmem>>, vector<17x768xf32>,
    %c271 = arith.constant 271 : index
    %c0_117 = arith.constant 0 : index
    %152 = vector.load %arg17[%c271, %c0_117] : memref<288x768xf32, #tpu.memory_space<vmem>>, vector<17x768xf32>
    tpu.vector_store %arg17[%c271, %c0_117], %150 {strides = array<i32>} : memref<288x768xf32, #tpu.memory_space<vmem>>, vector<17x768xf32>,
    %153 = tpu.iota {dimensions = array<i32: 0>} : vector<256x256xi32>
    %c16_i32 = arith.constant 16 : i32
    %c0_i32_118 = arith.constant 0 : i32
    %154 = arith.cmpi eq, %c16_i32, %c0_i32_118 : i32
    %c1_i32_119 = arith.constant 1 : i32
    %155 = arith.select %154, %c1_i32_119, %c16_i32 : i32
    %156 = vector.broadcast %155 : i32 to vector<256x256xi32>
    %157 = arith.remsi %153, %156 : vector<256x256xi32>
    %c0_i32_120 = arith.constant 0 : i32
    %158 = vector.broadcast %c0_i32_120 : i32 to vector<256x256xi32>
    %159 = arith.cmpi ne, %157, %158 : vector<256x256xi32>
    %c0_i32_121 = arith.constant 0 : i32
    %160 = vector.broadcast %c0_i32_121 : i32 to vector<256x256xi32>
    %161 = arith.cmpi slt, %157, %160 : vector<256x256xi32>
    %c0_i32_122 = arith.constant 0 : i32
    %162 = arith.cmpi slt, %155, %c0_i32_122 : i32
    %163 = vector.broadcast %162 : i1 to vector<256x256xi1>
    %164 = vector.broadcast %163 : vector<256x256xi1> to vector<256x256xi1>
    %165 = arith.xori %161, %164 : vector<256x256xi1>
    %166 = arith.andi %165, %159 : vector<256x256xi1>
    %167 = vector.broadcast %155 : i32 to vector<256x256xi32>
    %168 = arith.addi %157, %167 : vector<256x256xi32>
    %169 = arith.select %166, %168, %157 : vector<256x256xi1>, vector<256x256xi32>
    %cst_123 = arith.constant 0.000000e+00 : f32
    %170 = vector.broadcast %cst_123 : f32 to vector<256x256xf32>
    %c15_i32 = arith.constant 15 : i32
    %171 = vector.broadcast %c15_i32 : i32 to vector<256x256xi32>
    %172 = arith.cmpi eq, %169, %171 : vector<256x256xi32>
    %173 = arith.select %172, %170, %149 : vector<256x256xi1>, vector<256x256xf32>
    %c17 = arith.constant 17 : index
    %c0_124 = arith.constant 0 : index
    %174 = vector.load %arg17[%c17, %c0_124] : memref<288x768xf32, #tpu.memory_space<vmem>>, vector<256x256xf32>
    tpu.vector_store %arg17[%c17, %c0_124], %173 {strides = array<i32>} : memref<288x768xf32, #tpu.memory_space<vmem>>, vector<256x256xf32>,
    %c16_125 = arith.constant 16 : index
    %c256_126 = arith.constant 256 : index
    %175 = vector.load %arg17[%c16_125, %c256_126] : memref<288x768xf32, #tpu.memory_space<vmem>>, vector<256x256xf32>
    tpu.vector_store %arg17[%c16_125, %c256_126], %149 {strides = array<i32>} : memref<288x768xf32, #tpu.memory_space<vmem>>, vector<256x256xf32>,
    %c0_i32_127 = arith.constant 0 : i32
    %176 = vector.broadcast %c0_i32_127 : i32 to vector<256x256xi32>
    %177 = arith.cmpi eq, %169, %176 : vector<256x256xi32>
    %178 = arith.select %177, %170, %149 : vector<256x256xi1>, vector<256x256xf32>
    %c15 = arith.constant 15 : index
    %c512_128 = arith.constant 512 : index
    %179 = vector.load %arg17[%c15, %c512_128] : memref<288x768xf32, #tpu.memory_space<vmem>>, vector<256x256xf32>
    tpu.vector_store %arg17[%c15, %c512_128], %178 {strides = array<i32>} : memref<288x768xf32, #tpu.memory_space<vmem>>, vector<256x256xf32>,
    %cst_129 = arith.constant 0.000000e+00 : f32
    %180 = vector.broadcast %cst_129 : f32 to vector<256x256xf32>
    %c0_130 = arith.constant 0 : index
    %c0_131 = arith.constant 0 : index
    %181 = vector.load %arg17[%c0_130, %c0_131] : memref<288x768xf32, #tpu.memory_space<vmem>>, vector<256x768xf32>
    %182 = arith.truncf %181 : vector<256x768xf32> to vector<256x768xbf16>
    %c0_132 = arith.constant 0 : index
    %c0_133 = arith.constant 0 : index
    %c0_134 = arith.constant 0 : index
    %c0_135 = arith.constant 0 : index
    %183 = vector.load %arg8[%c0_132, %c0_133, %c0_134, %c0_135] : memref<3x3x768x256xbf16, #tpu.memory_space<vmem>>, vector<1x1x768x256xbf16>
    %184 = vector.shape_cast %183 : vector<1x1x768x256xbf16> to vector<768x256xbf16>
    %cst_136 = arith.constant dense<0.000000e+00> : vector<256x256xf32>
    %185 = tpu.matmul %182, %184, %cst_136 {dimension_numbers = #tpu.dot_dimension_numbers<[1], [0], [0], [1], [0, 0, 1, 1], [], []>} : vector<256x768xbf16>, vector<768x256xbf16>, vector<256x256xf32> -> vector<256x256xf32>
    %186 = arith.addf %180, %185 : vector<256x256xf32>
    %c16_137 = arith.constant 16 : index
    %c0_138 = arith.constant 0 : index
    %187 = vector.load %arg17[%c16_137, %c0_138] : memref<288x768xf32, #tpu.memory_space<vmem>>, vector<256x768xf32>
    %188 = arith.truncf %187 : vector<256x768xf32> to vector<256x768xbf16>
    %c0_139 = arith.constant 0 : index
    %c1_140 = arith.constant 1 : index
    %c0_141 = arith.constant 0 : index
    %c0_142 = arith.constant 0 : index
    %189 = vector.load %arg8[%c0_139, %c1_140, %c0_141, %c0_142] : memref<3x3x768x256xbf16, #tpu.memory_space<vmem>>, vector<1x1x768x256xbf16>
    %190 = vector.shape_cast %189 : vector<1x1x768x256xbf16> to vector<768x256xbf16>
    %cst_143 = arith.constant dense<0.000000e+00> : vector<256x256xf32>
    %191 = tpu.matmul %188, %190, %cst_143 {dimension_numbers = #tpu.dot_dimension_numbers<[1], [0], [0], [1], [0, 0, 1, 1], [], []>} : vector<256x768xbf16>, vector<768x256xbf16>, vector<256x256xf32> -> vector<256x256xf32>
    %192 = arith.addf %186, %191 : vector<256x256xf32>
    %c32 = arith.constant 32 : index
    %c0_144 = arith.constant 0 : index
    %193 = vector.load %arg17[%c32, %c0_144] : memref<288x768xf32, #tpu.memory_space<vmem>>, vector<256x768xf32>
    %194 = arith.truncf %193 : vector<256x768xf32> to vector<256x768xbf16>
    %c0_145 = arith.constant 0 : index
    %c2_146 = arith.constant 2 : index
    %c0_147 = arith.constant 0 : index
    %c0_148 = arith.constant 0 : index
    %195 = vector.load %arg8[%c0_145, %c2_146, %c0_147, %c0_148] : memref<3x3x768x256xbf16, #tpu.memory_space<vmem>>, vector<1x1x768x256xbf16>
    %196 = vector.shape_cast %195 : vector<1x1x768x256xbf16> to vector<768x256xbf16>
    %cst_149 = arith.constant dense<0.000000e+00> : vector<256x256xf32>
    %197 = tpu.matmul %194, %196, %cst_149 {dimension_numbers = #tpu.dot_dimension_numbers<[1], [0], [0], [1], [0, 0, 1, 1], [], []>} : vector<256x768xbf16>, vector<768x256xbf16>, vector<256x256xf32> -> vector<256x256xf32>
    %198 = arith.addf %192, %197 : vector<256x256xf32>
    %c0_150 = arith.constant 0 : index
    %c0_151 = arith.constant 0 : index
    %c0_152 = arith.constant 0 : index
    %199 = vector.load %arg9[%c0_150, %c0_151, %c0_152] : memref<3x1x256xf32, #tpu.memory_space<vmem>>, vector<1x1x256xf32>
    %200 = vector.shape_cast %199 : vector<1x1x256xf32> to vector<1x256xf32>
    %201 = vector.broadcast %200 : vector<1x256xf32> to vector<256x256xf32>
    %202 = arith.addf %198, %201 : vector<256x256xf32>
    %c0_153 = arith.constant 0 : index
    %c0_154 = arith.constant 0 : index
    %c0_155 = arith.constant 0 : index
    %203 = vector.load %arg13[%c0_153, %c0_154, %c0_155] : memref<1x256x256xf32, #tpu.memory_space<vmem>>, vector<1x256x256xf32>
    %204 = vector.shape_cast %203 : vector<1x256x256xf32> to vector<256x256xf32>
    %205 = vector.shape_cast %202 : vector<256x256xf32> to vector<1x256x256xf32>
    tpu.vector_store %arg13[%c0_153, %c0_154, %c0_155], %205 {strides = array<i32>} : memref<1x256x256xf32, #tpu.memory_space<vmem>>, vector<1x256x256xf32>,
    return
  }
  func.func @transform_0(%arg0: i32) -> (i32, i32, i32) {
    %c0_i32 = arith.constant 0 : i32
    %c0_i32_0 = arith.constant 0 : i32
    %c0_i32_1 = arith.constant 0 : i32
    return %arg0, %c0_i32, %c0_i32_0 : i32, i32, i32
  }
  func.func @transform_1(%arg0: i32) -> (i32, i32, i32) {
    %c0_i32 = arith.constant 0 : i32
    %c0_i32_0 = arith.constant 0 : i32
    %c0_i32_1 = arith.constant 0 : i32
    return %arg0, %c0_i32, %c0_i32_0 : i32, i32, i32
  }
  func.func @transform_2(%arg0: i32) -> (i32, i32, i32) {
    %c0_i32 = arith.constant 0 : i32
    %c0_i32_0 = arith.constant 0 : i32
    %c0_i32_1 = arith.constant 0 : i32
    return %arg0, %c0_i32, %c0_i32_0 : i32, i32, i32
  }
  func.func @transform_3(%arg0: i32) -> (i32, i32) {
    %c0_i32 = arith.constant 0 : i32
    %c0_i32_0 = arith.constant 0 : i32
    %c0_i32_1 = arith.constant 0 : i32
    return %c0_i32, %c0_i32_0 : i32, i32
  }
  func.func @transform_4(%arg0: i32) -> (i32, i32) {
    %c0_i32 = arith.constant 0 : i32
    %c0_i32_0 = arith.constant 0 : i32
    %c0_i32_1 = arith.constant 0 : i32
    return %c0_i32, %c0_i32_0 : i32, i32
  }
  func.func @transform_5(%arg0: i32) -> (i32, i32) {
    %c0_i32 = arith.constant 0 : i32
    %c0_i32_0 = arith.constant 0 : i32
    %c0_i32_1 = arith.constant 0 : i32
    return %c0_i32, %c0_i32_0 : i32, i32
  }
  func.func @transform_6(%arg0: i32) -> (i32, i32, i32) {
    %c0_i32 = arith.constant 0 : i32
    %c0_i32_0 = arith.constant 0 : i32
    %c0_i32_1 = arith.constant 0 : i32
    %c0_i32_2 = arith.constant 0 : i32
    return %c0_i32, %c0_i32_0, %c0_i32_1 : i32, i32, i32
  }
  func.func @transform_7(%arg0: i32) -> (i32, i32, i32, i32) {
    %c0_i32 = arith.constant 0 : i32
    %c0_i32_0 = arith.constant 0 : i32
    %c0_i32_1 = arith.constant 0 : i32
    %c0_i32_2 = arith.constant 0 : i32
    %c0_i32_3 = arith.constant 0 : i32
    return %c0_i32, %c0_i32_0, %c0_i32_1, %c0_i32_2 : i32, i32, i32, i32
  }
  func.func @transform_8(%arg0: i32) -> (i32, i32, i32) {
    %c0_i32 = arith.constant 0 : i32
    %c0_i32_0 = arith.constant 0 : i32
    %c0_i32_1 = arith.constant 0 : i32
    %c0_i32_2 = arith.constant 0 : i32
    return %c0_i32, %c0_i32_0, %c0_i32_1 : i32, i32, i32
  }
  func.func @transform_9(%arg0: i32) -> (i32, i32) {
    %c0_i32 = arith.constant 0 : i32
    %c0_i32_0 = arith.constant 0 : i32
    %c0_i32_1 = arith.constant 0 : i32
    return %c0_i32, %c0_i32_0 : i32, i32
  }
  func.func @transform_10(%arg0: i32) -> (i32, i32) {
    %c0_i32 = arith.constant 0 : i32
    %c0_i32_0 = arith.constant 0 : i32
    %c0_i32_1 = arith.constant 0 : i32
    return %c0_i32, %c0_i32_0 : i32, i32
  }
  func.func @transform_11(%arg0: i32) -> (i32, i32) {
    %c0_i32 = arith.constant 0 : i32
    %c0_i32_0 = arith.constant 0 : i32
    %c0_i32_1 = arith.constant 0 : i32
    return %c0_i32, %c0_i32_0 : i32, i32
  }
  func.func @transform_12(%arg0: i32) -> (i32, i32, i32) {
    %c0_i32 = arith.constant 0 : i32
    %c0_i32_0 = arith.constant 0 : i32
    %c0_i32_1 = arith.constant 0 : i32
    return %arg0, %c0_i32, %c0_i32_0 : i32, i32, i32
  }
  func.func @transform_13(%arg0: i32) -> (i32, i32, i32) {
    %c0_i32 = arith.constant 0 : i32
    %c0_i32_0 = arith.constant 0 : i32
    %c0_i32_1 = arith.constant 0 : i32
    return %arg0, %c0_i32, %c0_i32_0 : i32, i32, i32
  }
  func.func @transform_14(%arg0: i32) -> (i32, i32, i32) {
    %c0_i32 = arith.constant 0 : i32
    %c0_i32_0 = arith.constant 0 : i32
    %c0_i32_1 = arith.constant 0 : i32
    return %arg0, %c0_i32, %c0_i32_0 : i32, i32, i32
  }
  func.func @transform_15(%arg0: i32) -> (i32, i32, i32) {
    %c0_i32 = arith.constant 0 : i32
    %c0_i32_0 = arith.constant 0 : i32
    %c0_i32_1 = arith.constant 0 : i32
    return %arg0, %c0_i32, %c0_i32_0 : i32, i32, i32
  }
}

</mosaic_0001>

<bundles_post_ra>
// kernel: fpn_forward.1
= control target key start
LH: loop header
LB: loop body
LE: loop exit
PB: predicated region body
PF: predicated region fallthrough
CT: control target
= control target key end

     0   :  { %s27339_s0 = inlined_call_operand.vmem [shape: bf16[2,256,256], index: 0, kind: input, shape index: {}]   ;;  %s27340_s1 = inlined_call_operand.vmem [shape: bf16[2,64,512], index: 1, kind: input, shape index: {}]   ;;  %s27341_s2 = inlined_call_operand.vmem [shape: bf16[2,16,2048], index: 2, kind: input, shape index: {}]   ;;  %s27342_s3 = inlined_call_operand.vmem [shape: bf16[256,256], index: 3, kind: input, shape index: {}]   ;;  %s27343_s4 = inlined_call_operand.vmem [shape: bf16[512,256], index: 4, kind: input, shape index: {}]   ;;  %s27344_s5 = inlined_call_operand.vmem [shape: bf16[2048,256], index: 5, kind: input, shape index: {}]   ;;  %s27345_s6 = inlined_call_operand.vmem [shape: f32[3,1,256], index: 6, kind: input, shape index: {}]   ;;  %s27346_s7 = inlined_call_operand.vmem [shape: bf16[3,3,768,256], index: 7, kind: input, shape index: {}]   ;;  %s27347_s8 = inlined_call_operand.vmem [shape: f32[3,1,256], index: 8, kind: input, shape index: {}]   ;;  %s27348_s9 = inlined_call_operand.vmem [shape: bf16[256,64], index: 9, kind: input, shape index: {}]   ;;  %s27349_s10 = inlined_call_operand.vmem [shape: bf16[64,16], index: 10, kind: input, shape index: {}]   ;;  %s27350_s11 = inlined_call_operand.vmem [shape: f32[8,16], index: 11, kind: input, shape index: {}]   ;;  %s27351_s12 = inlined_call_operand.hbm [shape: f32[2,256,256], index: 12, kind: output, shape index: {0}]   ;;  %s27352_s13 = inlined_call_operand.hbm [shape: f32[2,64,256], index: 13, kind: output, shape index: {1}]   ;;  %s27353_s14 = inlined_call_operand.vmem [shape: f32[2,16,256], index: 14, kind: output, shape index: {2}]   ;;  %s27354_s15 = inlined_call_operand.vmem [shape: f32[2,4,256], index: 15, kind: output, shape index: {3}]  }
   0x1   :  { %27404 = sst [smem:[#allocation46_spill]] %s27340_s1 }
   0x2   :  { %27405 = sst [smem:[#allocation47_spill]] %s27341_s2 }
   0x3   :  { %27406 = sst [smem:[#allocation48_spill]] %s27351_s12 }
   0x4   :  { %21 = vsyncpa [#allocation6], 0 }
   0x5   :  { %23 = vsyncpa [#allocation6 + $0x1], 0 }
   0x6   :  { %24 = vsyncpa [#allocation8], 0 }
   0x7   :  { %26 = vsyncpa [#allocation8 + $0x1], 0  ;;  %s20767_s18 = smov 0   ;;  %s20769_s19 = smov 0  }
   0x8   :  { %s20771_s20 = smov 0   ;;  %s20773_s21 = smov 0  }
   0x9 LB: > { %27407 = sst [smem:[#allocation11_spill]] %s20667_s18  ;;  %s20788_s22 = sadd.s32 4294967295, %s20679_s21   ;;  %s20679_s21 = sphi %s20773_s21, %s27680_s21   ;;  %s20675_s20 = sphi %s20771_s20, %s27682_s20   ;;  %s20671_s19 = sphi %s20769_s19, %s27684_s19   ;;  %s20667_s18 = sphi %s20767_s18, %s27683_s18  }
   0xa   : > { %27408 = sst [smem:[#allocation12_spill]] %s20675_s20  ;;  %s15591_s23 = sadd.s32 4294967294, %s20679_s21  }
   0xb   : > { %27409 = sst [smem:[#allocation13_spill]] %s20679_s21  ;;  %s20792_s24 = sadd.s32 1, %s20679_s21  }
   0xc   : > { %27410 = sst [smem:[#allocation14_spill]] %s20792_s24  ;;  %s306_s25 = sadd.s32 1, %s20675_s20 }
   0xd   : > { %s303_s26 = ssub.s32 %s20679_s21, %s20792_s24  ;;  %p316_p0 = scmp.ne.s32.totalorder %s20675_s20, %s20671_s19 }
   0xe   : > { %p304_p1 = scmp.eq.s32.totalorder %s303_s26, 0  ;;  %p317_p2 = scmp.eq.s32.totalorder %s20788_s22, 1 }
   0xf   : > { %p322_p3 = scmp.ne.s32.totalorder %s20671_s19, %s20667_s18  ;;  %p323_p4 = scmp.eq.s32.totalorder %s15591_s23, 1 }
  0x10   : > { %s20803_s27 = scalar_select %p304_p1, %s20675_s20, %s306_s25  }
  0x11   : > { %p20805_p5 = por %p317_p2, %p316_p0  ;;  %p20809_p6 = por %p323_p4, %p322_p3 }
  0x12   : > { %27411 = sst [smem:[#allocation15_spill]] %s20803_s27  ;;  %p15594_p7 = scmp.ge.s32.totalorder %s20679_s21, 1 }
  0x13   : > { %s27413_s29 = scalar_select %p20809_p6, 1, 0 }
  0x14   : > { %p470_p8 = scmp.lt.s32.totalorder %s20679_s21, 3 }
  0x15   : > { %27414 = sst [smem:[#allocation16_spill]] %s27413_s29 }
  0x16   : > { %p471_p9 = pnand %p15594_p7, %p470_p8 }
  0x18   : > { %474 = sbr.rel (%p471_p9) target bundleno = 3553 (0xde1), region = 68 }
  0x1f   : > { %v18655_v0 = vld [vmem:[%s27344_s5 + $0x4] ss:$8 sps:$4 sm:$0xff]   ;;  %v18657_v1 = vld [vmem:[%s27344_s5] ss:$8 sps:$4 sm:$0xff]   ;;  %v18658_v2 = vld [vmem:[%s27344_s5 + $0x14] ss:$8 sps:$4 sm:$0xff]  }
  0x20   : > { %2214 = vmatprep.subr.bf16.mxu0 %v18655_v0  ;;  %v18660_v3 = vld [vmem:[%s27344_s5 + $0x10] ss:$8 sps:$4 sm:$0xff]   ;;  %v18661_v4 = vld [vmem:[%s27344_s5 + $0x24] ss:$8 sps:$4 sm:$0xff]   ;;  %v18663_v5 = vld [vmem:[%s27344_s5 + $0x20] ss:$8 sps:$4 sm:$0xff]  }
  0x21   : > { %2215 = vmatpush1.bf16.msra.mxu0 %v18657_v1  ;;  %p543_p10 = scmp.lt.s32.totalorder %s20788_s22, 1  ;;  %v18664_v6 = vld [vmem:[%s27344_s5 + $0x34] ss:$8 sps:$4 sm:$0xff]   ;;  %v18666_v7 = vld [vmem:[%s27344_s5 + $0x30] ss:$8 sps:$4 sm:$0xff]   ;;  %s27415_s2 = sld [smem:[#allocation47_spill]] }
  0x22   : > { %2216 = vmatprep.subr.bf16.mxu0 %v18658_v2  ;;  %v18667_v8 = vld [vmem:[%s27344_s5 + $0x44] ss:$8 sps:$4 sm:$0xff]   ;;  %v18669_v9 = vld [vmem:[%s27344_s5 + $0x40] ss:$8 sps:$4 sm:$0xff]   ;;  %v18670_v10 = vld [vmem:[%s27344_s5 + $0x54] ss:$8 sps:$4 sm:$0xff]  }
  0x23   : > { %s20841_s27 = scalar_select %p543_p10, %s20788_s22, 1  ;;  %v18672_v11 = vld [vmem:[%s27344_s5 + $0x50] ss:$8 sps:$4 sm:$0xff]   ;;  %v18673_v12 = vld [vmem:[%s27344_s5 + $0x64] ss:$8 sps:$4 sm:$0xff]   ;;  %vm2607_vm4 = vcmask 1044480  }
  0x24   : > { %v18675_v16 = vld [vmem:[%s27344_s5 + $0x60] ss:$8 sps:$4 sm:$0xff]   ;;  %v18676_v17 = vld [vmem:[%s27344_s5 + $0x74] ss:$8 sps:$4 sm:$0xff]   ;;  %v18678_v18 = vld [vmem:[%s27344_s5 + $0x70] ss:$8 sps:$4 sm:$0xff]  }
  0x25   : > { %2217 = vmatpush1.bf16.msra.mxu0 %v18660_v3  ;;  %s27360_s16 = sshll.u32 %s20841_s27, 7  ;;  %v18679_v19 = vld [vmem:[%s27344_s5 + $0x84] ss:$8 sps:$4 sm:$0xff]   ;;  %v18681_v20 = vld [vmem:[%s27344_s5 + $0x80] ss:$8 sps:$4 sm:$0xff]   ;;  %s27417_s1 = sld [smem:[#allocation46_spill]] }
  0x26   : > { %2218 = vmatprep.subr.bf16.mxu0 %v18661_v4  ;;  %v18682_v21 = vld [vmem:[%s27344_s5 + $0x94] ss:$8 sps:$4 sm:$0xff]   ;;  %v18684_v22 = vld [vmem:[%s27344_s5 + $0x90] ss:$8 sps:$4 sm:$0xff]   ;;  %v18685_v23 = vld [vmem:[%s27344_s5 + $0xa4] ss:$8 sps:$4 sm:$0xff]  }
  0x27   : > { %s20858_s18 = scalar_lea.vmem %s27415_s2, %s27360_s16  ;;  %v18687_v24 = vld [vmem:[%s27344_s5 + $0xa0] ss:$8 sps:$4 sm:$0xff]   ;;  %v18688_v25 = vld [vmem:[%s27344_s5 + $0xb4] ss:$8 sps:$4 sm:$0xff]   ;;  %v18690_v26 = vld [vmem:[%s27344_s5 + $0xb0] ss:$8 sps:$4 sm:$0xff]  }
  0x28   : > { %v569_v13 = vld [vmem:[%s20858_s18] sm:$0xff]  ;;  %v18694_v29 = vld [vmem:[%s27344_s5 + $0xd4] ss:$8 sps:$4 sm:$0xff]   ;;  %v18696_v30 = vld [vmem:[%s27344_s5 + $0xd0] ss:$8 sps:$4 sm:$0xff]   ;;  %s27416_s2 = sshll.u32 %s20841_s27, 7 }
  0x29   : > { %2219 = vmatpush1.bf16.msra.mxu0 %v18663_v5  ;;  %v577_v14 = vld [vmem:[%s20858_s18 + $0x40] sm:$0xff]  ;;  %v18700_v33 = vld [vmem:[%s27344_s5 + $0xf4] ss:$8 sps:$4 sm:$0xff]   ;;  %v18702_v34 = vld [vmem:[%s27344_s5 + $0xf0] ss:$8 sps:$4 sm:$0xff]   ;;  %s17708_s29 = sshll.u32 %s20841_s27, 8 }
  0x2a   : > { %2220 = vmatprep.subr.bf16.mxu0 %v18664_v6  ;;  %v15609_v15 = vcombine.high %v569_v13, %v577_v14  ;;  %v18691_v27 = vld [vmem:[%s27344_s5 + $0xc4] ss:$8 sps:$4 sm:$0xff]   ;;  %v18693_v28 = vld [vmem:[%s27344_s5 + $0xc0] ss:$8 sps:$4 sm:$0xff]   ;;  %v15608_v38 = vcombine.low %v569_v13, %v577_v14  ;;  %v18708_v41 = vld [vmem:[%s27344_s5 + $0x114] ss:$8 sps:$4 sm:$0xff]   ;;  %s21597_s20 = scalar_lea.vmem %s27339_s0, %s17708_s29 }
  0x2b   : > { %v18697_v31 = vld [vmem:[%s27344_s5 + $0xe4] ss:$8 sps:$4 sm:$0xff]   ;;  %v18699_v32 = vld [vmem:[%s27344_s5 + $0xe0] ss:$8 sps:$4 sm:$0xff]   ;;  %v18706_v42 = vld [vmem:[%s27344_s5 + $0x110] ss:$8 sps:$4 sm:$0xff]   ;;  %s21219_s24 = scalar_lea.vmem %s27417_s1, %s27416_s2 }
  0x2c   : > { %2246 = vmatprep.mubr.bf16.mxu0 %v15609_v15  ;;  %v18705_v35 = vld [vmem:[%s27344_s5 + $0x104] ss:$8 sps:$4 sm:$0xff]   ;;  %v18703_v39 = vld [vmem:[%s27344_s5 + $0x100] ss:$8 sps:$4 sm:$0xff]   ;;  %v18714_v45 = vld [vmem:[%s27344_s5 + $0x134] ss:$8 sps:$4 sm:$0xff]  }
  0x2d   : > { %2221 = vmatpush1.bf16.msra.mxu0 %v18666_v7  ;;  %v20929_v36 = vld [vmem:[%s20858_s18 + $0x8] sm:$0xff]  ;;  %v18712_v46 = vld [vmem:[%s27344_s5 + $0x130] ss:$8 sps:$4 sm:$0xff]   ;;  %v18720_v49 = vld [vmem:[%s27344_s5 + $0x154] ss:$8 sps:$4 sm:$0xff]   ;;  %vm2630_vm5 = vcmask 1043456  }
  0x2e   : > { %2222 = vmatprep.subr.bf16.mxu0 %v18667_v8  ;;  %v20932_v37 = vld [vmem:[%s20858_s18 + $0x48] sm:$0xff]  ;;  %v18718_v50 = vld [vmem:[%s27344_s5 + $0x150] ss:$8 sps:$4 sm:$0xff]   ;;  %v18726_v53 = vld [vmem:[%s27344_s5 + $0x174] ss:$8 sps:$4 sm:$0xff]   ;;  %vm2659_vm6 = vcmask 1042432  }
  0x2f   : > { %v15611_v40 = vcombine.high %v20929_v36, %v20932_v37  ;;  %v18711_v43 = vld [vmem:[%s27344_s5 + $0x124] ss:$8 sps:$4 sm:$0xff]   ;;  %v18709_v44 = vld [vmem:[%s27344_s5 + $0x120] ss:$8 sps:$4 sm:$0xff]   ;;  %v18724_v54 = vld [vmem:[%s27344_s5 + $0x170] ss:$8 sps:$4 sm:$0xff]  }
  0x30   : > { %v18717_v47 = vld [vmem:[%s27344_s5 + $0x144] ss:$8 sps:$4 sm:$0xff]   ;;  %v18715_v48 = vld [vmem:[%s27344_s5 + $0x140] ss:$8 sps:$4 sm:$0xff]   ;;  %v18732_v57 = vld [vmem:[%s27344_s5 + $0x194] ss:$8 sps:$4 sm:$0xff]  }
  0x31   : > { %2223 = vmatpush1.bf16.msra.mxu0 %v18669_v9  ;;  %v18723_v51 = vld [vmem:[%s27344_s5 + $0x164] ss:$8 sps:$4 sm:$0xff]   ;;  %v18721_v52 = vld [vmem:[%s27344_s5 + $0x160] ss:$8 sps:$4 sm:$0xff]   ;;  %v18730_v58 = vld [vmem:[%s27344_s5 + $0x190] ss:$8 sps:$4 sm:$0xff]  }
  0x32   : > { %2224 = vmatprep.subr.bf16.mxu0 %v18670_v10  ;;  %v18729_v55 = vld [vmem:[%s27344_s5 + $0x184] ss:$8 sps:$4 sm:$0xff]   ;;  %v18727_v56 = vld [vmem:[%s27344_s5 + $0x180] ss:$8 sps:$4 sm:$0xff]   ;;  %v18738_v61 = vld [vmem:[%s27344_s5 + $0x1b4] ss:$8 sps:$4 sm:$0xff]   ;;  %v15610_v10 = vcombine.low %v20929_v36, %v20932_v37 }
  0x33   : > { %v18735_v59 = vld [vmem:[%s27344_s5 + $0x1a4] ss:$8 sps:$4 sm:$0xff]   ;;  %v18733_v60 = vld [vmem:[%s27344_s5 + $0x1a0] ss:$8 sps:$4 sm:$0xff]   ;;  %v18736_v62 = vld [vmem:[%s27344_s5 + $0x1b0] ss:$8 sps:$4 sm:$0xff]  }
  0x34   : > { %v18741_v63 = vld [vmem:[%s27344_s5 + $0x1c4] ss:$8 sps:$4 sm:$0xff]   ;;  %v18739_v0 = vld [vmem:[%s27344_s5 + $0x1c0] ss:$8 sps:$4 sm:$0xff]   ;;  %v18744_v1 = vld [vmem:[%s27344_s5 + $0x1d4] ss:$8 sps:$4 sm:$0xff]  }
  0x35   : > { %2225 = vmatpush1.bf16.msra.mxu0 %v18672_v11  ;;  %v18742_v2 = vld [vmem:[%s27344_s5 + $0x1d0] ss:$8 sps:$4 sm:$0xff]   ;;  %v18747_v3 = vld [vmem:[%s27344_s5 + $0x1e4] ss:$8 sps:$4 sm:$0xff]   ;;  %v18745_v4 = vld [vmem:[%s27344_s5 + $0x1e0] ss:$8 sps:$4 sm:$0xff]  }
  0x36   : > { %2226 = vmatprep.subr.bf16.mxu0 %v18673_v12  ;;  %v18750_v5 = vld [vmem:[%s27344_s5 + $0x1f4] ss:$8 sps:$4 sm:$0xff]   ;;  %v18748_v6 = vld [vmem:[%s27344_s5 + $0x1f0] ss:$8 sps:$4 sm:$0xff]   ;;  %v18753_v7 = vld [vmem:[%s27344_s5 + $0x204] ss:$8 sps:$4 sm:$0xff]  }
  0x37   : > { %v21033_v8 = vld [vmem:[%s20858_s18 + $0x10] sm:$0xff]  ;;  %v18751_v11 = vld [vmem:[%s27344_s5 + $0x200] ss:$8 sps:$4 sm:$0xff]   ;;  %v18759_v15 = vld [vmem:[%s27344_s5 + $0x224] ss:$8 sps:$4 sm:$0xff]   ;;  %vm2932_vm7 = vcmask 1045504  }
  0x38   : > { %v21036_v9 = vld [vmem:[%s20858_s18 + $0x50] sm:$0xff]  ;;  %v18787_v36 = vld [vmem:[%s27344_s5 + $0x2c0] ss:$8 sps:$4 sm:$0xff]   ;;  %vm4919_vm8 = vcmask 130048   ;;  %vm5935_vm11 = vcmask 1040384   ;;  %vm6058_vm14 = vcmask 1046528  }
  0x39   : > { %2227 = vmatpush1.bf16.msra.mxu0 %v18675_v16  ;;  %v15613_v12 = vcombine.high %v21033_v8, %v21036_v9  ;;  %v18756_v13 = vld [vmem:[%s27344_s5 + $0x214] ss:$8 sps:$4 sm:$0xff]   ;;  %v18754_v14 = vld [vmem:[%s27344_s5 + $0x210] ss:$8 sps:$4 sm:$0xff]   ;;  %v18757_v16 = vld [vmem:[%s27344_s5 + $0x220] ss:$8 sps:$4 sm:$0xff]  }
  0x3a   : > { %2228 = vmatprep.subr.bf16.mxu0 %v18676_v17  ;;  %v18762_v17 = vld [vmem:[%s27344_s5 + $0x234] ss:$8 sps:$4 sm:$0xff]   ;;  %s17711_s1 = sshll.u32 %s20841_s27, 5  ;;  %s20683_s29 = smov [#allocation7]  }
  0x3b   : > { %v18792_v37 = vld [vmem:[%s27344_s5 + $0x2d4] ss:$8 sps:$4 sm:$0xff]   ;;  %s562_s26 = scalar_lea.vmem %s27353_s14, %s17711_s1 }
  0x3d   : > { %2229 = vmatpush1.bf16.msra.mxu0 %v18678_v18  ;;  %v18760_v18 = vld [vmem:[%s27344_s5 + $0x230] ss:$8 sps:$4 sm:$0xff]  }
  0x3e   : > { %2230 = vmatprep.subr.bf16.mxu0 %v18679_v19  ;;  %v18765_v19 = vld [vmem:[%s27344_s5 + $0x244] ss:$8 sps:$4 sm:$0xff]  }
  0x41   : > { %2231 = vmatpush1.bf16.msra.mxu0 %v18681_v20  ;;  %v18763_v20 = vld [vmem:[%s27344_s5 + $0x240] ss:$8 sps:$4 sm:$0xff]  }
  0x42   : > { %2232 = vmatprep.subr.bf16.mxu0 %v18682_v21  ;;  %v18768_v21 = vld [vmem:[%s27344_s5 + $0x254] ss:$8 sps:$4 sm:$0xff]  }
  0x45   : > { %2233 = vmatpush1.bf16.msra.mxu0 %v18684_v22  ;;  %v18766_v22 = vld [vmem:[%s27344_s5 + $0x250] ss:$8 sps:$4 sm:$0xff]  }
  0x46   : > { %2234 = vmatprep.subr.bf16.mxu0 %v18685_v23  ;;  %v18771_v23 = vld [vmem:[%s27344_s5 + $0x264] ss:$8 sps:$4 sm:$0xff]  }
  0x49   : > { %2235 = vmatpush1.bf16.msra.mxu0 %v18687_v24  ;;  %v18769_v24 = vld [vmem:[%s27344_s5 + $0x260] ss:$8 sps:$4 sm:$0xff]  }
  0x4a   : > { %2236 = vmatprep.subr.bf16.mxu0 %v18688_v25  ;;  %v18774_v25 = vld [vmem:[%s27344_s5 + $0x274] ss:$8 sps:$4 sm:$0xff]  }
  0x4d   : > { %2237 = vmatpush1.bf16.msra.mxu0 %v18690_v26  ;;  %v18772_v26 = vld [vmem:[%s27344_s5 + $0x270] ss:$8 sps:$4 sm:$0xff]  }
  0x4e   : > { %2238 = vmatprep.subr.bf16.mxu0 %v18691_v27  ;;  %v18777_v27 = vld [vmem:[%s27344_s5 + $0x284] ss:$8 sps:$4 sm:$0xff]  }
  0x51   : > { %2239 = vmatpush1.bf16.msra.mxu0 %v18693_v28  ;;  %v18775_v28 = vld [vmem:[%s27344_s5 + $0x280] ss:$8 sps:$4 sm:$0xff]  }
  0x52   : > { %2240 = vmatprep.subr.bf16.mxu0 %v18694_v29  ;;  %v18780_v29 = vld [vmem:[%s27344_s5 + $0x294] ss:$8 sps:$4 sm:$0xff]  }
  0x55   : > { %2241 = vmatpush1.bf16.msra.mxu0 %v18696_v30  ;;  %v18778_v30 = vld [vmem:[%s27344_s5 + $0x290] ss:$8 sps:$4 sm:$0xff]  }
  0x56   : > { %2242 = vmatprep.subr.bf16.mxu0 %v18697_v31  ;;  %v18783_v31 = vld [vmem:[%s27344_s5 + $0x2a4] ss:$8 sps:$4 sm:$0xff]  }
  0x59   : > { %2243 = vmatpush1.bf16.msra.mxu0 %v18699_v32  ;;  %v18781_v32 = vld [vmem:[%s27344_s5 + $0x2a0] ss:$8 sps:$4 sm:$0xff]  }
  0x5a   : > { %2244 = vmatprep.subr.bf16.mxu0 %v18700_v33  ;;  %v18786_v33 = vld [vmem:[%s27344_s5 + $0x2b4] ss:$8 sps:$4 sm:$0xff]  }
  0x5d   : > { %2245 = vmatpush1.bf16.msra.mxu0 %v18702_v34  ;;  %v18784_v34 = vld [vmem:[%s27344_s5 + $0x2b0] ss:$8 sps:$4 sm:$0xff]  }
  0x5e   : > { %2257 = vmatprep.subr.bf16.mxu0 %v18705_v35  ;;  %v18789_v35 = vld [vmem:[%s27344_s5 + $0x2c4] ss:$8 sps:$4 sm:$0xff]  }
  0x60   : > { %2247 = vmatmul.mubr.bf16.vlgmr.msra.gmra.mrb[0].mxu0 %v15608_v38  ;;  %v18790_v38 = vld [vmem:[%s27344_s5 + $0x2d0] ss:$8 sps:$4 sm:$0xff]  }
  0x61   : > { %2258 = vmatpush1.bf16.msra.mxu0 %v18703_v39  ;;  %2289 = vmatprep.mubr.bf16.mxu0 %v15611_v40  ;;  %v18795_v39 = vld [vmem:[%s27344_s5 + $0x2e4] ss:$8 sps:$4 sm:$0xff]   ;;  %v18793_v40 = vld [vmem:[%s27344_s5 + $0x2e0] ss:$8 sps:$4 sm:$0xff]  }
  0x62   : > { %2259 = vmatprep.subr.bf16.mxu0 %v18708_v41  ;;  %v18798_v41 = vld [vmem:[%s27344_s5 + $0x2f4] ss:$8 sps:$4 sm:$0xff]  }
  0x65   : > { %2260 = vmatpush1.bf16.msra.mxu0 %v18706_v42  ;;  %v18796_v42 = vld [vmem:[%s27344_s5 + $0x2f0] ss:$8 sps:$4 sm:$0xff]  }
  0x66   : > { %2261 = vmatprep.subr.bf16.mxu0 %v18711_v43  ;;  %v18801_v43 = vld [vmem:[%s27344_s5 + $0x304] ss:$8 sps:$4 sm:$0xff]  }
  0x69   : > { %2262 = vmatpush1.bf16.msra.mxu0 %v18709_v44  ;;  %v21139_v44 = vld [vmem:[%s20858_s18 + $0x18] sm:$0xff] }
  0x6a   : > { %2263 = vmatprep.subr.bf16.mxu0 %v18714_v45  ;;  %v21142_v45 = vld [vmem:[%s20858_s18 + $0x58] sm:$0xff] }
  0x6d   : > { %2264 = vmatpush1.bf16.msra.mxu0 %v18712_v46  ;;  %v15612_v46 = vcombine.low %v21033_v8, %v21036_v9  ;;  %v18835_v8 = vld [vmem:[%s27344_s5 + $0x3c0] ss:$8 sps:$4 sm:$0xff]   ;;  %v18840_v9 = vld [vmem:[%s27344_s5 + $0x3d4] ss:$8 sps:$4 sm:$0xff]  }
  0x6e   : > { %2265 = vmatprep.subr.bf16.mxu0 %v18717_v47  ;;  %v18799_v47 = vld [vmem:[%s27344_s5 + $0x300] ss:$8 sps:$4 sm:$0xff]  }
  0x71   : > { %2266 = vmatpush1.bf16.msra.mxu0 %v18715_v48  ;;  %v15615_v48 = vcombine.high %v21139_v44, %v21142_v45 }
  0x72   : > { %2267 = vmatprep.subr.bf16.mxu0 %v18720_v49  ;;  %v18804_v49 = vld [vmem:[%s27344_s5 + $0x314] ss:$8 sps:$4 sm:$0xff]  }
  0x75   : > { %2268 = vmatpush1.bf16.msra.mxu0 %v18718_v50  ;;  %v18802_v50 = vld [vmem:[%s27344_s5 + $0x310] ss:$8 sps:$4 sm:$0xff]  }
  0x76   : > { %2269 = vmatprep.subr.bf16.mxu0 %v18723_v51  ;;  %v18807_v51 = vld [vmem:[%s27344_s5 + $0x324] ss:$8 sps:$4 sm:$0xff]  }
  0x79   : > { %2270 = vmatpush1.bf16.msra.mxu0 %v18721_v52  ;;  %v18805_v52 = vld [vmem:[%s27344_s5 + $0x320] ss:$8 sps:$4 sm:$0xff]  }
  0x7a   : > { %2271 = vmatprep.subr.bf16.mxu0 %v18726_v53  ;;  %v18810_v53 = vld [vmem:[%s27344_s5 + $0x334] ss:$8 sps:$4 sm:$0xff]  }
  0x7d   : > { %2272 = vmatpush1.bf16.msra.mxu0 %v18724_v54  ;;  %v18808_v54 = vld [vmem:[%s27344_s5 + $0x330] ss:$8 sps:$4 sm:$0xff]  }
  0x7e   : > { %2273 = vmatprep.subr.bf16.mxu0 %v18729_v55  ;;  %v18813_v55 = vld [vmem:[%s27344_s5 + $0x344] ss:$8 sps:$4 sm:$0xff]  }
  0x81   : > { %2274 = vmatpush1.bf16.msra.mxu0 %v18727_v56  ;;  %v18811_v56 = vld [vmem:[%s27344_s5 + $0x340] ss:$8 sps:$4 sm:$0xff]  }
  0x82   : > { %2275 = vmatprep.subr.bf16.mxu0 %v18732_v57  ;;  %v18816_v57 = vld [vmem:[%s27344_s5 + $0x354] ss:$8 sps:$4 sm:$0xff]  }
  0x85   : > { %2276 = vmatpush1.bf16.msra.mxu0 %v18730_v58  ;;  %v18814_v58 = vld [vmem:[%s27344_s5 + $0x350] ss:$8 sps:$4 sm:$0xff]  }
  0x86   : > { %2277 = vmatprep.subr.bf16.mxu0 %v18735_v59  ;;  %v18819_v59 = vld [vmem:[%s27344_s5 + $0x364] ss:$8 sps:$4 sm:$0xff]  }
  0x89   : > { %2278 = vmatpush1.bf16.msra.mxu0 %v18733_v60  ;;  %v18817_v60 = vld [vmem:[%s27344_s5 + $0x360] ss:$8 sps:$4 sm:$0xff]  }
  0x8a   : > { %2279 = vmatprep.subr.bf16.mxu0 %v18738_v61  ;;  %v18822_v61 = vld [vmem:[%s27344_s5 + $0x374] ss:$8 sps:$4 sm:$0xff]  }
  0x8d   : > { %2280 = vmatpush1.bf16.msra.mxu0 %v18736_v62  ;;  %v18820_v62 = vld [vmem:[%s27344_s5 + $0x370] ss:$8 sps:$4 sm:$0xff]  }
  0x8e   : > { %2281 = vmatprep.subr.bf16.mxu0 %v18741_v63  ;;  %v18825_v63 = vld [vmem:[%s27344_s5 + $0x384] ss:$8 sps:$4 sm:$0xff]  }
  0x91   : > { %2282 = vmatpush1.bf16.msra.mxu0 %v18739_v0  ;;  %v18823_v0 = vld [vmem:[%s27344_s5 + $0x380] ss:$8 sps:$4 sm:$0xff]  }
  0x92   : > { %2283 = vmatprep.subr.bf16.mxu0 %v18744_v1  ;;  %v18828_v1 = vld [vmem:[%s27344_s5 + $0x394] ss:$8 sps:$4 sm:$0xff]  }
  0x95   : > { %2284 = vmatpush1.bf16.msra.mxu0 %v18742_v2  ;;  %v18826_v2 = vld [vmem:[%s27344_s5 + $0x390] ss:$8 sps:$4 sm:$0xff]  }
  0x96   : > { %2285 = vmatprep.subr.bf16.mxu0 %v18747_v3  ;;  %v18831_v3 = vld [vmem:[%s27344_s5 + $0x3a4] ss:$8 sps:$4 sm:$0xff]  }
  0x99   : > { %2286 = vmatpush1.bf16.msra.mxu0 %v18745_v4  ;;  %v18829_v4 = vld [vmem:[%s27344_s5 + $0x3a0] ss:$8 sps:$4 sm:$0xff]  }
  0x9a   : > { %2287 = vmatprep.subr.bf16.mxu0 %v18750_v5  ;;  %v18834_v5 = vld [vmem:[%s27344_s5 + $0x3b4] ss:$8 sps:$4 sm:$0xff]  }
  0x9d   : > { %2288 = vmatpush1.bf16.msra.mxu0 %v18748_v6  ;;  %v18832_v6 = vld [vmem:[%s27344_s5 + $0x3b0] ss:$8 sps:$4 sm:$0xff]  }
  0x9e   : > { %2300 = vmatprep.subr.bf16.mxu0 %v18753_v7  ;;  %v18837_v7 = vld [vmem:[%s27344_s5 + $0x3c4] ss:$8 sps:$4 sm:$0xff]  }
  0xa0   : > { %2290 = vmatmul.mubr.bf16.vlgmr.msra.gmra.mrb[0].mxu0 %v15610_v10  ;;  %v18838_v10 = vld [vmem:[%s27344_s5 + $0x3d0] ss:$8 sps:$4 sm:$0xff]  }
  0xa1   : > { %2301 = vmatpush1.bf16.msra.mxu0 %v18751_v11  ;;  %2332 = vmatprep.mubr.bf16.mxu0 %v15613_v12  ;;  %v18843_v11 = vld [vmem:[%s27344_s5 + $0x3e4] ss:$8 sps:$4 sm:$0xff]   ;;  %v18841_v12 = vld [vmem:[%s27344_s5 + $0x3e0] ss:$8 sps:$4 sm:$0xff]  }
  0xa2   : > { %2302 = vmatprep.subr.bf16.mxu0 %v18756_v13  ;;  %v18846_v13 = vld [vmem:[%s27344_s5 + $0x3f4] ss:$8 sps:$4 sm:$0xff]  }
  0xa5   : > { %2303 = vmatpush1.bf16.msra.mxu0 %v18754_v14  ;;  %v18844_v14 = vld [vmem:[%s27344_s5 + $0x3f0] ss:$8 sps:$4 sm:$0xff]  }
  0xa6   : > { %2304 = vmatprep.subr.bf16.mxu0 %v18759_v15  ;;  %v18849_v15 = vld [vmem:[%s27344_s5 + $0x404] ss:$8 sps:$4 sm:$0xff]  }
  0xa9   : > { %2305 = vmatpush1.bf16.msra.mxu0 %v18757_v16  ;;  %v21252_v16 = vld [vmem:[%s20858_s18 + $0x20] sm:$0xff] }
  0xaa   : > { %2306 = vmatprep.subr.bf16.mxu0 %v18762_v17  ;;  %v21255_v17 = vld [vmem:[%s20858_s18 + $0x60] sm:$0xff] }
  0xad   : > { %2307 = vmatpush1.bf16.msra.mxu0 %v18760_v18  ;;  %v15614_v18 = vcombine.low %v21139_v44, %v21142_v45  ;;  %v18883_v44 = vld [vmem:[%s27344_s5 + $0x4c0] ss:$8 sps:$4 sm:$0xff]   ;;  %v18888_v45 = vld [vmem:[%s27344_s5 + $0x4d4] ss:$8 sps:$4 sm:$0xff]  }
  0xae   : > { %2308 = vmatprep.subr.bf16.mxu0 %v18765_v19  ;;  %v18847_v19 = vld [vmem:[%s27344_s5 + $0x400] ss:$8 sps:$4 sm:$0xff]  }
  0xb1   : > { %2309 = vmatpush1.bf16.msra.mxu0 %v18763_v20  ;;  %v15617_v20 = vcombine.high %v21252_v16, %v21255_v17 }
  0xb2   : > { %2310 = vmatprep.subr.bf16.mxu0 %v18768_v21  ;;  %v18852_v21 = vld [vmem:[%s27344_s5 + $0x414] ss:$8 sps:$4 sm:$0xff]  }
  0xb5   : > { %2311 = vmatpush1.bf16.msra.mxu0 %v18766_v22  ;;  %v18850_v22 = vld [vmem:[%s27344_s5 + $0x410] ss:$8 sps:$4 sm:$0xff]  }
  0xb6   : > { %2312 = vmatprep.subr.bf16.mxu0 %v18771_v23  ;;  %v18855_v23 = vld [vmem:[%s27344_s5 + $0x424] ss:$8 sps:$4 sm:$0xff]  }
  0xb9   : > { %2313 = vmatpush1.bf16.msra.mxu0 %v18769_v24  ;;  %v18853_v24 = vld [vmem:[%s27344_s5 + $0x420] ss:$8 sps:$4 sm:$0xff]  }
  0xba   : > { %2314 = vmatprep.subr.bf16.mxu0 %v18774_v25  ;;  %v18858_v25 = vld [vmem:[%s27344_s5 + $0x434] ss:$8 sps:$4 sm:$0xff]  }
  0xbd   : > { %2315 = vmatpush1.bf16.msra.mxu0 %v18772_v26  ;;  %v18856_v26 = vld [vmem:[%s27344_s5 + $0x430] ss:$8 sps:$4 sm:$0xff]  }
  0xbe   : > { %2316 = vmatprep.subr.bf16.mxu0 %v18777_v27  ;;  %v18861_v27 = vld [vmem:[%s27344_s5 + $0x444] ss:$8 sps:$4 sm:$0xff]  }
  0xc1   : > { %2317 = vmatpush1.bf16.msra.mxu0 %v18775_v28  ;;  %v18859_v28 = vld [vmem:[%s27344_s5 + $0x440] ss:$8 sps:$4 sm:$0xff]  }
  0xc2   : > { %2318 = vmatprep.subr.bf16.mxu0 %v18780_v29  ;;  %v18864_v29 = vld [vmem:[%s27344_s5 + $0x454] ss:$8 sps:$4 sm:$0xff]  }
  0xc5   : > { %2319 = vmatpush1.bf16.msra.mxu0 %v18778_v30  ;;  %v18862_v30 = vld [vmem:[%s27344_s5 + $0x450] ss:$8 sps:$4 sm:$0xff]  }
  0xc6   : > { %2320 = vmatprep.subr.bf16.mxu0 %v18783_v31  ;;  %v18867_v31 = vld [vmem:[%s27344_s5 + $0x464] ss:$8 sps:$4 sm:$0xff]  }
  0xc9   : > { %2321 = vmatpush1.bf16.msra.mxu0 %v18781_v32  ;;  %v18865_v32 = vld [vmem:[%s27344_s5 + $0x460] ss:$8 sps:$4 sm:$0xff]  }
  0xca   : > { %2322 = vmatprep.subr.bf16.mxu0 %v18786_v33  ;;  %v18870_v33 = vld [vmem:[%s27344_s5 + $0x474] ss:$8 sps:$4 sm:$0xff]  }
  0xcd   : > { %2323 = vmatpush1.bf16.msra.mxu0 %v18784_v34  ;;  %v18868_v34 = vld [vmem:[%s27344_s5 + $0x470] ss:$8 sps:$4 sm:$0xff]  }
  0xce   : > { %2324 = vmatprep.subr.bf16.mxu0 %v18789_v35  ;;  %v18873_v35 = vld [vmem:[%s27344_s5 + $0x484] ss:$8 sps:$4 sm:$0xff]  }
  0xd1   : > { %2325 = vmatpush1.bf16.msra.mxu0 %v18787_v36  ;;  %v18871_v36 = vld [vmem:[%s27344_s5 + $0x480] ss:$8 sps:$4 sm:$0xff]  }
  0xd2   : > { %2326 = vmatprep.subr.bf16.mxu0 %v18792_v37  ;;  %v18876_v37 = vld [vmem:[%s27344_s5 + $0x494] ss:$8 sps:$4 sm:$0xff]  }
  0xd5   : > { %2327 = vmatpush1.bf16.msra.mxu0 %v18790_v38  ;;  %v18874_v38 = vld [vmem:[%s27344_s5 + $0x490] ss:$8 sps:$4 sm:$0xff]  }
  0xd6   : > { %2328 = vmatprep.subr.bf16.mxu0 %v18795_v39  ;;  %v18879_v39 = vld [vmem:[%s27344_s5 + $0x4a4] ss:$8 sps:$4 sm:$0xff]  }
  0xd9   : > { %2329 = vmatpush1.bf16.msra.mxu0 %v18793_v40  ;;  %v18877_v40 = vld [vmem:[%s27344_s5 + $0x4a0] ss:$8 sps:$4 sm:$0xff]  }
  0xda   : > { %2330 = vmatprep.subr.bf16.mxu0 %v18798_v41  ;;  %v18882_v41 = vld [vmem:[%s27344_s5 + $0x4b4] ss:$8 sps:$4 sm:$0xff]  }
  0xdd   : > { %2331 = vmatpush1.bf16.msra.mxu0 %v18796_v42  ;;  %v18880_v42 = vld [vmem:[%s27344_s5 + $0x4b0] ss:$8 sps:$4 sm:$0xff]  }
  0xde   : > { %2343 = vmatprep.subr.bf16.mxu0 %v18801_v43  ;;  %v18885_v43 = vld [vmem:[%s27344_s5 + $0x4c4] ss:$8 sps:$4 sm:$0xff]  }
  0xe0   : > { %2333 = vmatmul.mubr.bf16.vlgmr.msra.gmra.mrb[0].mxu0 %v15612_v46  ;;  %v18886_v46 = vld [vmem:[%s27344_s5 + $0x4d0] ss:$8 sps:$4 sm:$0xff]  }
  0xe1   : > { %2344 = vmatpush1.bf16.msra.mxu0 %v18799_v47  ;;  %2375 = vmatprep.mubr.bf16.mxu0 %v15615_v48  ;;  %v18891_v47 = vld [vmem:[%s27344_s5 + $0x4e4] ss:$8 sps:$4 sm:$0xff]   ;;  %v18889_v48 = vld [vmem:[%s27344_s5 + $0x4e0] ss:$8 sps:$4 sm:$0xff]  }
  0xe2   : > { %2345 = vmatprep.subr.bf16.mxu0 %v18804_v49  ;;  %v18894_v49 = vld [vmem:[%s27344_s5 + $0x4f4] ss:$8 sps:$4 sm:$0xff]  }
  0xe5   : > { %2346 = vmatpush1.bf16.msra.mxu0 %v18802_v50  ;;  %v18892_v50 = vld [vmem:[%s27344_s5 + $0x4f0] ss:$8 sps:$4 sm:$0xff]  }
  0xe6   : > { %2347 = vmatprep.subr.bf16.mxu0 %v18807_v51  ;;  %v18897_v51 = vld [vmem:[%s27344_s5 + $0x504] ss:$8 sps:$4 sm:$0xff]  }
  0xe9   : > { %2348 = vmatpush1.bf16.msra.mxu0 %v18805_v52  ;;  %v21358_v52 = vld [vmem:[%s20858_s18 + $0x28] sm:$0xff] }
  0xea   : > { %2349 = vmatprep.subr.bf16.mxu0 %v18810_v53  ;;  %v21361_v53 = vld [vmem:[%s20858_s18 + $0x68] sm:$0xff] }
  0xed   : > { %2350 = vmatpush1.bf16.msra.mxu0 %v18808_v54  ;;  %v15616_v54 = vcombine.low %v21252_v16, %v21255_v17  ;;  %v18931_v16 = vld [vmem:[%s27344_s5 + $0x5c0] ss:$8 sps:$4 sm:$0xff]   ;;  %v18936_v17 = vld [vmem:[%s27344_s5 + $0x5d4] ss:$8 sps:$4 sm:$0xff]  }
  0xee   : > { %2351 = vmatprep.subr.bf16.mxu0 %v18813_v55  ;;  %v18895_v55 = vld [vmem:[%s27344_s5 + $0x500] ss:$8 sps:$4 sm:$0xff]  }
  0xf1   : > { %2352 = vmatpush1.bf16.msra.mxu0 %v18811_v56  ;;  %v15619_v56 = vcombine.high %v21358_v52, %v21361_v53 }
  0xf2   : > { %2353 = vmatprep.subr.bf16.mxu0 %v18816_v57  ;;  %v18900_v57 = vld [vmem:[%s27344_s5 + $0x514] ss:$8 sps:$4 sm:$0xff]  }
  0xf5   : > { %2354 = vmatpush1.bf16.msra.mxu0 %v18814_v58  ;;  %v18898_v58 = vld [vmem:[%s27344_s5 + $0x510] ss:$8 sps:$4 sm:$0xff]  }
  0xf6   : > { %2355 = vmatprep.subr.bf16.mxu0 %v18819_v59  ;;  %v18903_v59 = vld [vmem:[%s27344_s5 + $0x524] ss:$8 sps:$4 sm:$0xff]  }
  0xf9   : > { %2356 = vmatpush1.bf16.msra.mxu0 %v18817_v60  ;;  %v18901_v60 = vld [vmem:[%s27344_s5 + $0x520] ss:$8 sps:$4 sm:$0xff]  }
  0xfa   : > { %2357 = vmatprep.subr.bf16.mxu0 %v18822_v61  ;;  %v18906_v61 = vld [vmem:[%s27344_s5 + $0x534] ss:$8 sps:$4 sm:$0xff]  }
  0xfd   : > { %2358 = vmatpush1.bf16.msra.mxu0 %v18820_v62  ;;  %v18904_v62 = vld [vmem:[%s27344_s5 + $0x530] ss:$8 sps:$4 sm:$0xff]  }
  0xfe   : > { %2359 = vmatprep.subr.bf16.mxu0 %v18825_v63  ;;  %v18909_v63 = vld [vmem:[%s27344_s5 + $0x544] ss:$8 sps:$4 sm:$0xff]  }
 0x101   : > { %2360 = vmatpush1.bf16.msra.mxu0 %v18823_v0  ;;  %v18907_v0 = vld [vmem:[%s27344_s5 + $0x540] ss:$8 sps:$4 sm:$0xff]  }
 0x102   : > { %2361 = vmatprep.subr.bf16.mxu0 %v18828_v1  ;;  %v18912_v1 = vld [vmem:[%s27344_s5 + $0x554] ss:$8 sps:$4 sm:$0xff]  }
 0x105   : > { %2362 = vmatpush1.bf16.msra.mxu0 %v18826_v2  ;;  %v18910_v2 = vld [vmem:[%s27344_s5 + $0x550] ss:$8 sps:$4 sm:$0xff]  }
 0x106   : > { %2363 = vmatprep.subr.bf16.mxu0 %v18831_v3  ;;  %v18915_v3 = vld [vmem:[%s27344_s5 + $0x564] ss:$8 sps:$4 sm:$0xff]  }
 0x109   : > { %2364 = vmatpush1.bf16.msra.mxu0 %v18829_v4  ;;  %v18913_v4 = vld [vmem:[%s27344_s5 + $0x560] ss:$8 sps:$4 sm:$0xff]  }
 0x10a   : > { %2365 = vmatprep.subr.bf16.mxu0 %v18834_v5  ;;  %v18918_v5 = vld [vmem:[%s27344_s5 + $0x574] ss:$8 sps:$4 sm:$0xff]  }
 0x10d   : > { %2366 = vmatpush1.bf16.msra.mxu0 %v18832_v6  ;;  %v18916_v6 = vld [vmem:[%s27344_s5 + $0x570] ss:$8 sps:$4 sm:$0xff]  }
 0x10e   : > { %2367 = vmatprep.subr.bf16.mxu0 %v18837_v7  ;;  %v18921_v7 = vld [vmem:[%s27344_s5 + $0x584] ss:$8 sps:$4 sm:$0xff]  }
 0x111   : > { %2368 = vmatpush1.bf16.msra.mxu0 %v18835_v8  ;;  %v18919_v8 = vld [vmem:[%s27344_s5 + $0x580] ss:$8 sps:$4 sm:$0xff]  }
 0x112   : > { %2369 = vmatprep.subr.bf16.mxu0 %v18840_v9  ;;  %v18924_v9 = vld [vmem:[%s27344_s5 + $0x594] ss:$8 sps:$4 sm:$0xff]  }
 0x115   : > { %2370 = vmatpush1.bf16.msra.mxu0 %v18838_v10  ;;  %v18922_v10 = vld [vmem:[%s27344_s5 + $0x590] ss:$8 sps:$4 sm:$0xff]  }
 0x116   : > { %2371 = vmatprep.subr.bf16.mxu0 %v18843_v11  ;;  %v18927_v11 = vld [vmem:[%s27344_s5 + $0x5a4] ss:$8 sps:$4 sm:$0xff]  }
 0x119   : > { %2372 = vmatpush1.bf16.msra.mxu0 %v18841_v12  ;;  %v18925_v12 = vld [vmem:[%s27344_s5 + $0x5a0] ss:$8 sps:$4 sm:$0xff]  }
 0x11a   : > { %2373 = vmatprep.subr.bf16.mxu0 %v18846_v13  ;;  %v18930_v13 = vld [vmem:[%s27344_s5 + $0x5b4] ss:$8 sps:$4 sm:$0xff]  }
 0x11d   : > { %2374 = vmatpush1.bf16.msra.mxu0 %v18844_v14  ;;  %v18928_v14 = vld [vmem:[%s27344_s5 + $0x5b0] ss:$8 sps:$4 sm:$0xff]  }
 0x11e   : > { %2386 = vmatprep.subr.bf16.mxu0 %v18849_v15  ;;  %v18933_v15 = vld [vmem:[%s27344_s5 + $0x5c4] ss:$8 sps:$4 sm:$0xff]  }
 0x120   : > { %2376 = vmatmul.mubr.bf16.vlgmr.msra.gmra.mrb[0].mxu0 %v15614_v18  ;;  %v18934_v18 = vld [vmem:[%s27344_s5 + $0x5d0] ss:$8 sps:$4 sm:$0xff]  }
 0x121   : > { %2387 = vmatpush1.bf16.msra.mxu0 %v18847_v19  ;;  %2418 = vmatprep.mubr.bf16.mxu0 %v15617_v20  ;;  %v18939_v19 = vld [vmem:[%s27344_s5 + $0x5e4] ss:$8 sps:$4 sm:$0xff]   ;;  %v18937_v20 = vld [vmem:[%s27344_s5 + $0x5e0] ss:$8 sps:$4 sm:$0xff]  }
 0x122   : > { %2388 = vmatprep.subr.bf16.mxu0 %v18852_v21  ;;  %v18942_v21 = vld [vmem:[%s27344_s5 + $0x5f4] ss:$8 sps:$4 sm:$0xff]  }
 0x125   : > { %2389 = vmatpush1.bf16.msra.mxu0 %v18850_v22  ;;  %v18940_v22 = vld [vmem:[%s27344_s5 + $0x5f0] ss:$8 sps:$4 sm:$0xff]  }
 0x126   : > { %2390 = vmatprep.subr.bf16.mxu0 %v18855_v23  ;;  %v18945_v23 = vld [vmem:[%s27344_s5 + $0x604] ss:$8 sps:$4 sm:$0xff]  }
 0x129   : > { %2391 = vmatpush1.bf16.msra.mxu0 %v18853_v24  ;;  %v21464_v24 = vld [vmem:[%s20858_s18 + $0x30] sm:$0xff] }
 0x12a   : > { %2392 = vmatprep.subr.bf16.mxu0 %v18858_v25  ;;  %v21467_v25 = vld [vmem:[%s20858_s18 + $0x70] sm:$0xff] }
 0x12d   : > { %2393 = vmatpush1.bf16.msra.mxu0 %v18856_v26  ;;  %v15618_v26 = vcombine.low %v21358_v52, %v21361_v53  ;;  %v19057_v52 = vld [vmem:[%s27346_s7 + $0x1564] ss:$8 sps:$4 sm:$0xff]   ;;  %v18961_v53 = vld [vmem:[%s27344_s5 + $0x660] ss:$8 sps:$4 sm:$0xff]  }
 0x12e   : > { %2394 = vmatprep.subr.bf16.mxu0 %v18861_v27  ;;  %v18943_v27 = vld [vmem:[%s27344_s5 + $0x600] ss:$8 sps:$4 sm:$0xff]  }
 0x131   : > { %2395 = vmatpush1.bf16.msra.mxu0 %v18859_v28  ;;  %v18948_v28 = vld [vmem:[%s27344_s5 + $0x614] ss:$8 sps:$4 sm:$0xff]  }
 0x132   : > { %2396 = vmatprep.subr.bf16.mxu0 %v18864_v29  ;;  %v15621_v29 = vcombine.high %v21464_v24, %v21467_v25 }
 0x135   : > { %2397 = vmatpush1.bf16.msra.mxu0 %v18862_v30  ;;  %v19039_v30 = vld [vmem:[%s27346_s7 + $0x1504] ss:$8 sps:$4 sm:$0xff]  }
 0x136   : > { %2398 = vmatprep.subr.bf16.mxu0 %v18867_v31  ;;  %v19041_v31 = vld [vmem:[%s27346_s7 + $0x1500] ss:$8 sps:$4 sm:$0xff]   ;;  %3437 = vmatprep.subr.bf16.mxu1 %v19039_v30  ;;  %v19008_v30 = vld [vmem:[%s27344_s5 + $0x754] ss:$8 sps:$4 sm:$0xff]  }
 0x137   : > { %3438 = vmatpush1.bf16.msra.mxu1 %v19041_v31  ;;  %v19006_v31 = vld [vmem:[%s27344_s5 + $0x750] ss:$8 sps:$4 sm:$0xff]  }
 0x139   : > { %2399 = vmatpush1.bf16.msra.mxu0 %v18865_v32  ;;  %v19042_v32 = vld [vmem:[%s27346_s7 + $0x1514] ss:$8 sps:$4 sm:$0xff]  }
 0x13a   : > { %2400 = vmatprep.subr.bf16.mxu0 %v18870_v33  ;;  %v18946_v33 = vld [vmem:[%s27344_s5 + $0x610] ss:$8 sps:$4 sm:$0xff]   ;;  %3439 = vmatprep.subr.bf16.mxu1 %v19042_v32  ;;  %v19011_v32 = vld [vmem:[%s27344_s5 + $0x764] ss:$8 sps:$4 sm:$0xff]  }
 0x13d   : > { %2401 = vmatpush1.bf16.msra.mxu0 %v18868_v34  ;;  %v18951_v34 = vld [vmem:[%s27344_s5 + $0x624] ss:$8 sps:$4 sm:$0xff]  }
 0x13e   : > { %2402 = vmatprep.subr.bf16.mxu0 %v18873_v35  ;;  %v19044_v35 = vld [vmem:[%s27346_s7 + $0x1510] ss:$8 sps:$4 sm:$0xff]  }
 0x13f   : > { %3440 = vmatpush1.bf16.msra.mxu1 %v19044_v35  ;;  %v19012_v35 = vld [vmem:[%s27344_s5 + $0x770] ss:$8 sps:$4 sm:$0xff]  }
 0x141   : > { %2403 = vmatpush1.bf16.msra.mxu0 %v18871_v36  ;;  %v19045_v36 = vld [vmem:[%s27346_s7 + $0x1524] ss:$8 sps:$4 sm:$0xff]  }
 0x142   : > { %2404 = vmatprep.subr.bf16.mxu0 %v18876_v37  ;;  %v18949_v37 = vld [vmem:[%s27344_s5 + $0x620] ss:$8 sps:$4 sm:$0xff]   ;;  %3441 = vmatprep.subr.bf16.mxu1 %v19045_v36  ;;  %v19017_v36 = vld [vmem:[%s27344_s5 + $0x784] ss:$8 sps:$4 sm:$0xff]  }
 0x145   : > { %2405 = vmatpush1.bf16.msra.mxu0 %v18874_v38  ;;  %v18954_v38 = vld [vmem:[%s27344_s5 + $0x634] ss:$8 sps:$4 sm:$0xff]  }
 0x146   : > { %2406 = vmatprep.subr.bf16.mxu0 %v18879_v39  ;;  %v19047_v39 = vld [vmem:[%s27346_s7 + $0x1520] ss:$8 sps:$4 sm:$0xff]  }
 0x147   : > { %3442 = vmatpush1.bf16.msra.mxu1 %v19047_v39  ;;  %v19018_v39 = vld [vmem:[%s27344_s5 + $0x790] ss:$8 sps:$4 sm:$0xff]  }
 0x149   : > { %2407 = vmatpush1.bf16.msra.mxu0 %v18877_v40  ;;  %v18952_v40 = vld [vmem:[%s27344_s5 + $0x630] ss:$8 sps:$4 sm:$0xff]  }
 0x14a   : > { %2408 = vmatprep.subr.bf16.mxu0 %v18882_v41  ;;  %v19048_v41 = vld [vmem:[%s27346_s7 + $0x1534] ss:$8 sps:$4 sm:$0xff]  }
 0x14b   : > { %3443 = vmatprep.subr.bf16.mxu1 %v19048_v41  ;;  %v19021_v41 = vld [vmem:[%s27344_s5 + $0x7a0] ss:$8 sps:$4 sm:$0xff]  }
 0x14d   : > { %2409 = vmatpush1.bf16.msra.mxu0 %v18880_v42  ;;  %v18957_v42 = vld [vmem:[%s27344_s5 + $0x644] ss:$8 sps:$4 sm:$0xff]  }
 0x14e   : > { %2410 = vmatprep.subr.bf16.mxu0 %v18885_v43  ;;  %v19050_v43 = vld [vmem:[%s27346_s7 + $0x1530] ss:$8 sps:$4 sm:$0xff]  }
 0x14f   : > { %3444 = vmatpush1.bf16.msra.mxu1 %v19050_v43  ;;  %v19024_v43 = vld [vmem:[%s27344_s5 + $0x7b0] ss:$8 sps:$4 sm:$0xff]  }
 0x151   : > { %2411 = vmatpush1.bf16.msra.mxu0 %v18883_v44  ;;  %v19051_v44 = vld [vmem:[%s27346_s7 + $0x1544] ss:$8 sps:$4 sm:$0xff]  }
 0x152   : > { %2412 = vmatprep.subr.bf16.mxu0 %v18888_v45  ;;  %v18955_v45 = vld [vmem:[%s27344_s5 + $0x640] ss:$8 sps:$4 sm:$0xff]   ;;  %3445 = vmatprep.subr.bf16.mxu1 %v19051_v44  ;;  %v19029_v44 = vld [vmem:[%s27344_s5 + $0x7c4] ss:$8 sps:$4 sm:$0xff]  }
 0x155   : > { %2413 = vmatpush1.bf16.msra.mxu0 %v18886_v46  ;;  %v18960_v46 = vld [vmem:[%s27344_s5 + $0x654] ss:$8 sps:$4 sm:$0xff]  }
 0x156   : > { %2414 = vmatprep.subr.bf16.mxu0 %v18891_v47  ;;  %v19053_v47 = vld [vmem:[%s27346_s7 + $0x1540] ss:$8 sps:$4 sm:$0xff]  }
 0x157   : > { %3446 = vmatpush1.bf16.msra.mxu1 %v19053_v47  ;;  %v19030_v47 = vld [vmem:[%s27344_s5 + $0x7d0] ss:$8 sps:$4 sm:$0xff]  }
 0x159   : > { %2415 = vmatpush1.bf16.msra.mxu0 %v18889_v48  ;;  %v19054_v48 = vld [vmem:[%s27346_s7 + $0x1554] ss:$8 sps:$4 sm:$0xff]  }
 0x15a   : > { %2416 = vmatprep.subr.bf16.mxu0 %v18894_v49  ;;  %v18958_v49 = vld [vmem:[%s27344_s5 + $0x650] ss:$8 sps:$4 sm:$0xff]   ;;  %3447 = vmatprep.subr.bf16.mxu1 %v19054_v48  ;;  %v19035_v48 = vld [vmem:[%s27344_s5 + $0x7e4] ss:$8 sps:$4 sm:$0xff]  }
 0x15d   : > { %2417 = vmatpush1.bf16.msra.mxu0 %v18892_v50  ;;  %v18963_v50 = vld [vmem:[%s27344_s5 + $0x664] ss:$8 sps:$4 sm:$0xff]  }
 0x15e   : > { %2429 = vmatprep.subr.bf16.mxu0 %v18897_v51  ;;  %v19056_v51 = vld [vmem:[%s27346_s7 + $0x1550] ss:$8 sps:$4 sm:$0xff]  }
 0x15f   : > { %3448 = vmatpush1.bf16.msra.mxu1 %v19056_v51  ;;  %v19036_v51 = vld [vmem:[%s27344_s5 + $0x7f0] ss:$8 sps:$4 sm:$0xff]  }
 0x160   : > { %2419 = vmatmul.mubr.bf16.vlgmr.msra.gmra.mrb[0].mxu0 %v15616_v54  ;;  %v18966_v54 = vld [vmem:[%s27344_s5 + $0x674] ss:$8 sps:$4 sm:$0xff]   ;;  %3449 = vmatprep.subr.bf16.mxu1 %v19057_v52 }
 0x161   : > { %2430 = vmatpush1.bf16.msra.mxu0 %v18895_v55  ;;  %2461 = vmatprep.mubr.bf16.mxu0 %v15619_v56  ;;  %v19059_v55 = vld [vmem:[%s27346_s7 + $0x1560] ss:$8 sps:$4 sm:$0xff]   ;;  %v19060_v56 = vld [vmem:[%s27346_s7 + $0x1574] ss:$8 sps:$4 sm:$0xff]  }
 0x162   : > { %2431 = vmatprep.subr.bf16.mxu0 %v18900_v57  ;;  %v18964_v57 = vld [vmem:[%s27344_s5 + $0x670] ss:$8 sps:$4 sm:$0xff]  }
 0x163   : > { %3450 = vmatpush1.bf16.msra.mxu1 %v19059_v55  ;;  %v19072_v55 = vld [vmem:[%s27346_s7 + $0x15b4] ss:$8 sps:$4 sm:$0xff]  }
 0x164   : > { %3451 = vmatprep.subr.bf16.mxu1 %v19060_v56  ;;  %v19074_v56 = vld [vmem:[%s27346_s7 + $0x15b0] ss:$8 sps:$4 sm:$0xff]  }
 0x165   : > { %2432 = vmatpush1.bf16.msra.mxu0 %v18898_v58  ;;  %v18969_v58 = vld [vmem:[%s27344_s5 + $0x684] ss:$8 sps:$4 sm:$0xff]  }
 0x166   : > { %2433 = vmatprep.subr.bf16.mxu0 %v18903_v59  ;;  %v19062_v59 = vld [vmem:[%s27346_s7 + $0x1570] ss:$8 sps:$4 sm:$0xff]  }
 0x167   : > { %3452 = vmatpush1.bf16.msra.mxu1 %v19062_v59  ;;  %v19078_v59 = vld [vmem:[%s27346_s7 + $0x15d4] ss:$8 sps:$4 sm:$0xff]  }
 0x169   : > { %2434 = vmatpush1.bf16.msra.mxu0 %v18901_v60  ;;  %v19063_v60 = vld [vmem:[%s27346_s7 + $0x1584] ss:$8 sps:$4 sm:$0xff]  }
 0x16a   : > { %2435 = vmatprep.subr.bf16.mxu0 %v18906_v61  ;;  %v18967_v61 = vld [vmem:[%s27344_s5 + $0x680] ss:$8 sps:$4 sm:$0xff]   ;;  %3453 = vmatprep.subr.bf16.mxu1 %v19063_v60  ;;  %v19080_v60 = vld [vmem:[%s27346_s7 + $0x15d0] ss:$8 sps:$4 sm:$0xff]  }
 0x16d   : > { %2436 = vmatpush1.bf16.msra.mxu0 %v18904_v62  ;;  %v18972_v62 = vld [vmem:[%s27344_s5 + $0x694] ss:$8 sps:$4 sm:$0xff]  }
 0x16e   : > { %2437 = vmatprep.subr.bf16.mxu0 %v18909_v63  ;;  %v19065_v63 = vld [vmem:[%s27346_s7 + $0x1580] ss:$8 sps:$4 sm:$0xff]  }
 0x16f   : > { %3454 = vmatpush1.bf16.msra.mxu1 %v19065_v63  ;;  %v19084_v63 = vld [vmem:[%s27346_s7 + $0x15f4] ss:$8 sps:$4 sm:$0xff]  }
 0x171   : > { %2438 = vmatpush1.bf16.msra.mxu0 %v18907_v0  ;;  %v19066_v0 = vld [vmem:[%s27346_s7 + $0x1594] ss:$8 sps:$4 sm:$0xff]  }
 0x172   : > { %2439 = vmatprep.subr.bf16.mxu0 %v18912_v1  ;;  %v18970_v1 = vld [vmem:[%s27344_s5 + $0x690] ss:$8 sps:$4 sm:$0xff]   ;;  %3455 = vmatprep.subr.bf16.mxu1 %v19066_v0 }
 0x173   : > { %v19086_v0 = vld [vmem:[%s27346_s7 + $0x15f0] ss:$8 sps:$4 sm:$0xff]  }
 0x175   : > { %2440 = vmatpush1.bf16.msra.mxu0 %v18910_v2  ;;  %v18975_v2 = vld [vmem:[%s27344_s5 + $0x6a4] ss:$8 sps:$4 sm:$0xff]  }
 0x176   : > { %2441 = vmatprep.subr.bf16.mxu0 %v18915_v3  ;;  %v19068_v3 = vld [vmem:[%s27346_s7 + $0x1590] ss:$8 sps:$4 sm:$0xff]  }
 0x177   : > { %3456 = vmatpush1.bf16.msra.mxu1 %v19068_v3 }
 0x179   : > { %2442 = vmatpush1.bf16.msra.mxu0 %v18913_v4  ;;  %v19069_v4 = vld [vmem:[%s27346_s7 + $0x15a4] ss:$8 sps:$4 sm:$0xff]  }
 0x17a   : > { %2443 = vmatprep.subr.bf16.mxu0 %v18918_v5  ;;  %v18973_v5 = vld [vmem:[%s27344_s5 + $0x6a0] ss:$8 sps:$4 sm:$0xff]   ;;  %3457 = vmatprep.subr.bf16.mxu1 %v19069_v4 }
 0x17d   : > { %2444 = vmatpush1.bf16.msra.mxu0 %v18916_v6  ;;  %v18978_v6 = vld [vmem:[%s27344_s5 + $0x6b4] ss:$8 sps:$4 sm:$0xff]  }
 0x17e   : > { %2445 = vmatprep.subr.bf16.mxu0 %v18921_v7  ;;  %v18976_v7 = vld [vmem:[%s27344_s5 + $0x6b0] ss:$8 sps:$4 sm:$0xff]  }
 0x181   : > { %2446 = vmatpush1.bf16.msra.mxu0 %v18919_v8  ;;  %v18981_v8 = vld [vmem:[%s27344_s5 + $0x6c4] ss:$8 sps:$4 sm:$0xff]  }
 0x182   : > { %2447 = vmatprep.subr.bf16.mxu0 %v18924_v9  ;;  %v18979_v9 = vld [vmem:[%s27344_s5 + $0x6c0] ss:$8 sps:$4 sm:$0xff]  }
 0x185   : > { %2448 = vmatpush1.bf16.msra.mxu0 %v18922_v10  ;;  %v18984_v10 = vld [vmem:[%s27344_s5 + $0x6d4] ss:$8 sps:$4 sm:$0xff]  }
 0x186   : > { %2449 = vmatprep.subr.bf16.mxu0 %v18927_v11  ;;  %v18982_v11 = vld [vmem:[%s27344_s5 + $0x6d0] ss:$8 sps:$4 sm:$0xff]  }
 0x189   : > { %2450 = vmatpush1.bf16.msra.mxu0 %v18925_v12  ;;  %v18987_v12 = vld [vmem:[%s27344_s5 + $0x6e4] ss:$8 sps:$4 sm:$0xff]  }
 0x18a   : > { %2451 = vmatprep.subr.bf16.mxu0 %v18930_v13  ;;  %v18985_v13 = vld [vmem:[%s27344_s5 + $0x6e0] ss:$8 sps:$4 sm:$0xff]  }
 0x18d   : > { %2452 = vmatpush1.bf16.msra.mxu0 %v18928_v14  ;;  %v18990_v14 = vld [vmem:[%s27344_s5 + $0x6f4] ss:$8 sps:$4 sm:$0xff]  }
 0x18e   : > { %2453 = vmatprep.subr.bf16.mxu0 %v18933_v15  ;;  %v18988_v15 = vld [vmem:[%s27344_s5 + $0x6f0] ss:$8 sps:$4 sm:$0xff]  }
 0x191   : > { %2454 = vmatpush1.bf16.msra.mxu0 %v18931_v16  ;;  %v18993_v16 = vld [vmem:[%s27344_s5 + $0x704] ss:$8 sps:$4 sm:$0xff]  }
 0x192   : > { %2455 = vmatprep.subr.bf16.mxu0 %v18936_v17  ;;  %v21639_v17 = vld [vmem:[%s20858_s18 + $0x38] sm:$0xff] }
 0x195   : > { %2456 = vmatpush1.bf16.msra.mxu0 %v18934_v18  ;;  %v21642_v18 = vld [vmem:[%s20858_s18 + $0x78] sm:$0xff]  ;;  %s20589_s18 = sshll.u32 %s20683_s29, 4  ;;  %s20590_s18 = int_to_ptr.vmem [resolvable:$false] %s20589_s18 }
 0x196   : > { %2457 = vmatprep.subr.bf16.mxu0 %v18939_v19  ;;  %v18991_v19 = vld [vmem:[%s27344_s5 + $0x700] ss:$8 sps:$4 sm:$0xff]   ;;  %v15622_v52 = vcombine.low %v21639_v17, %v21642_v18  ;;  %s20591_s25 = scalar_lea.vmem %s20590_s18, 4096 }
 0x199   : > { %2458 = vmatpush1.bf16.msra.mxu0 %v18937_v20  ;;  %v15620_v20 = vcombine.low %v21464_v24, %v21467_v25  ;;  %v18997_v24 = vld [vmem:[%s27344_s5 + $0x720] ss:$8 sps:$4 sm:$0xff]   ;;  %v19002_v25 = vld [vmem:[%s27344_s5 + $0x734] ss:$8 sps:$4 sm:$0xff]  }
 0x19a   : > { %2459 = vmatprep.subr.bf16.mxu0 %v18942_v21  ;;  %v18996_v21 = vld [vmem:[%s27344_s5 + $0x714] ss:$8 sps:$4 sm:$0xff]  }
 0x19d   : > { %2460 = vmatpush1.bf16.msra.mxu0 %v18940_v22  ;;  %v15623_v22 = vcombine.high %v21639_v17, %v21642_v18 }
 0x19e   : > { %2472 = vmatprep.subr.bf16.mxu0 %v18945_v23  ;;  %v18994_v23 = vld [vmem:[%s27344_s5 + $0x710] ss:$8 sps:$4 sm:$0xff]  }
 0x1a0   : > { %2462 = vmatmul.mubr.bf16.vlgmr.msra.gmra.mrb[0].mxu0 %v15618_v26  ;;  %v18999_v26 = vld [vmem:[%s27344_s5 + $0x724] ss:$8 sps:$4 sm:$0xff]  }
 0x1a1   : > { %2473 = vmatpush1.bf16.msra.mxu0 %v18943_v27  ;;  %2504 = vmatprep.mubr.bf16.mxu0 %v15621_v29  ;;  %v19000_v27 = vld [vmem:[%s27344_s5 + $0x730] ss:$8 sps:$4 sm:$0xff]   ;;  %v19003_v29 = vld [vmem:[%s27344_s5 + $0x740] ss:$8 sps:$4 sm:$0xff]  }
 0x1a2   : > { %2474 = vmatprep.subr.bf16.mxu0 %v18948_v28  ;;  %v19005_v28 = vld [vmem:[%s27344_s5 + $0x744] ss:$8 sps:$4 sm:$0xff]  }
 0x1a5   : > { %2475 = vmatpush1.bf16.msra.mxu0 %v18946_v33  ;;  %v19009_v33 = vld [vmem:[%s27344_s5 + $0x760] ss:$8 sps:$4 sm:$0xff]  }
 0x1a6   : > { %2476 = vmatprep.subr.bf16.mxu0 %v18951_v34  ;;  %v19014_v34 = vld [vmem:[%s27344_s5 + $0x774] ss:$8 sps:$4 sm:$0xff]  }
 0x1a9   : > { %2477 = vmatpush1.bf16.msra.mxu0 %v18949_v37  ;;  %v19015_v37 = vld [vmem:[%s27344_s5 + $0x780] ss:$8 sps:$4 sm:$0xff]  }
 0x1aa   : > { %2478 = vmatprep.subr.bf16.mxu0 %v18954_v38  ;;  %v19020_v38 = vld [vmem:[%s27344_s5 + $0x794] ss:$8 sps:$4 sm:$0xff]  }
 0x1ad   : > { %2479 = vmatpush1.bf16.msra.mxu0 %v18952_v40  ;;  %v19023_v40 = vld [vmem:[%s27344_s5 + $0x7a4] ss:$8 sps:$4 sm:$0xff]  }
 0x1ae   : > { %2480 = vmatprep.subr.bf16.mxu0 %v18957_v42  ;;  %v19026_v42 = vld [vmem:[%s27344_s5 + $0x7b4] ss:$8 sps:$4 sm:$0xff]  }
 0x1b1   : > { %2481 = vmatpush1.bf16.msra.mxu0 %v18955_v45  ;;  %v19027_v45 = vld [vmem:[%s27344_s5 + $0x7c0] ss:$8 sps:$4 sm:$0xff]  }
 0x1b2   : > { %2482 = vmatprep.subr.bf16.mxu0 %v18960_v46  ;;  %v19032_v46 = vld [vmem:[%s27344_s5 + $0x7d4] ss:$8 sps:$4 sm:$0xff]  }
 0x1b5   : > { %2483 = vmatpush1.bf16.msra.mxu0 %v18958_v49  ;;  %v19033_v49 = vld [vmem:[%s27344_s5 + $0x7e0] ss:$8 sps:$4 sm:$0xff]  }
 0x1b6   : > { %2484 = vmatprep.subr.bf16.mxu0 %v18963_v50  ;;  %v19038_v50 = vld [vmem:[%s27344_s5 + $0x7f4] ss:$8 sps:$4 sm:$0xff]  }
 0x1b9   : > { %2485 = vmatpush1.bf16.msra.mxu0 %v18961_v53  ;;  %v19071_v53 = vld [vmem:[%s27346_s7 + $0x15a0] ss:$8 sps:$4 sm:$0xff]  }
 0x1ba   : > { %2486 = vmatprep.subr.bf16.mxu0 %v18966_v54  ;;  %3458 = vmatpush1.bf16.msra.mxu1 %v19071_v53  ;;  %v20681_v54 = vmov 0.0  }
 0x1bb   : > { %2560 = vst [vmem:[#allocation4 + $0x10] sm:$0x1f] %v20681_v54  ;;  %2562 = vst [vmem:[#allocation4 + $0x20] sm:$0x1f] %v20681_v54  ;;  %3459 = vmatprep.subr.bf16.mxu1 %v19072_v55 }
 0x1bc   : > { %2558 = vst [vmem:[#allocation4] sm:$0x1f] %v20681_v54  ;;  %2559 = vst [vmem:[#allocation4 + $0x8] sm:$0x1f] %v20681_v54 }
 0x1bd   : > { %2487 = vmatpush1.bf16.msra.mxu0 %v18964_v57  ;;  %2561 = vst [vmem:[#allocation4 + $0x18] sm:$0x1f] %v20681_v54  ;;  %2563 = vst [vmem:[#allocation4 + $0x28] sm:$0x1f] %v20681_v54  ;;  %v19075_v57 = vld [vmem:[%s27346_s7 + $0x15c4] ss:$8 sps:$4 sm:$0xff]  }
 0x1be   : > { %2488 = vmatprep.subr.bf16.mxu0 %v18969_v58  ;;  %2564 = vst [vmem:[#allocation4 + $0x60] sm:$0xf8] %v20681_v54  ;;  %2565 = vst [vmem:[#allocation4 + $0x68] sm:$0xf8] %v20681_v54  ;;  %3460 = vmatpush1.bf16.msra.mxu1 %v19074_v56  ;;  %v19077_v58 = vld [vmem:[%s27346_s7 + $0x15c0] ss:$8 sps:$4 sm:$0xff]  }
 0x1bf   : > { %2566 = vst [vmem:[#allocation4 + $0x70] sm:$0xf8] %v20681_v54  ;;  %2567 = vst [vmem:[#allocation4 + $0x78] sm:$0xf8] %v20681_v54  ;;  %3461 = vmatprep.subr.bf16.mxu1 %v19075_v57 }
 0x1c0   : > { %2568 = vst [vmem:[#allocation4 + $0x80] sm:$0xf8] %v20681_v54  ;;  %2569 = vst [vmem:[#allocation4 + $0x88] sm:$0xf8] %v20681_v54 }
 0x1c1   : > { %2489 = vmatpush1.bf16.msra.mxu0 %v18967_v61  ;;  %5769 = vst [vmem:[#allocation3] sm:$0xff] %v20681_v54  ;;  %5773 = vst [vmem:[#allocation3 + $0x20] sm:$0xff] %v20681_v54  ;;  %v19081_v61 = vld [vmem:[%s27346_s7 + $0x15e4] ss:$8 sps:$4 sm:$0xff]  }
 0x1c2   : > { %2490 = vmatprep.subr.bf16.mxu0 %v18972_v62  ;;  %5774 = vst [vmem:[#allocation3 + $0x28] sm:$0xff] %v20681_v54  ;;  %5775 = vst [vmem:[#allocation3 + $0x30] sm:$0x1] %v20681_v54  ;;  %3462 = vmatpush1.bf16.msra.mxu1 %v19077_v58  ;;  %v19083_v62 = vld [vmem:[%s27346_s7 + $0x15e0] ss:$8 sps:$4 sm:$0xff]  }
 0x1c3   : > { %5776 = vst [vmem:[#allocation3 + $0x38] sm:$0x1] %v20681_v54  ;;  %5777 = vst [vmem:[#allocation3 + $0x40] sm:$0x1] %v20681_v54  ;;  %3463 = vmatprep.subr.bf16.mxu1 %v19078_v59 }
 0x1c4   : > { %5778 = vst [vmem:[#allocation3 + $0x48] sm:$0x1] %v20681_v54  ;;  %5779 = vst [vmem:[#allocation3 + $0x50] sm:$0x1] %v20681_v54 }
 0x1c5   : > { %2491 = vmatpush1.bf16.msra.mxu0 %v18970_v1  ;;  %5780 = vst [vmem:[#allocation3 + $0x58] sm:$0x1] %v20681_v54  ;;  %5781 = vst [vmem:[#allocation3 + $0x180] sm:$0x80] %v20681_v54  ;;  %v19089_v1 = vld [vmem:[%s27346_s7 + $0x1604] ss:$8 sps:$4 sm:$0xff]  }
 0x1c6   : > { %2492 = vmatprep.subr.bf16.mxu0 %v18975_v2  ;;  %5782 = vst [vmem:[#allocation3 + $0x188] sm:$0x80] %v20681_v54  ;;  %5783 = vst [vmem:[#allocation3 + $0x190] sm:$0x80] %v20681_v54  ;;  %3464 = vmatpush1.bf16.msra.mxu1 %v19080_v60  ;;  %v844_v2 = vlaneseq }
 0x1c7   : > { %5784 = vst [vmem:[#allocation3 + $0x198] sm:$0x80] %v20681_v54  ;;  %5785 = vst [vmem:[#allocation3 + $0x1a0] sm:$0x80] %v20681_v54  ;;  %3465 = vmatprep.subr.bf16.mxu1 %v19081_v61 }
 0x1c8   : > { %5786 = vst [vmem:[#allocation3 + $0x1a8] sm:$0x80] %v20681_v54  ;;  %5787 = vst [vmem:[#allocation3 + $0x1b0] sm:$0xff] %v20681_v54  ;;  %v21779_v3 = vshrl.u32 %v844_v2, 7 }
 0x1c9   : > { %2493 = vmatpush1.bf16.msra.mxu0 %v18973_v5  ;;  %5788 = vst [vmem:[#allocation3 + $0x1b8] sm:$0xff] %v20681_v54  ;;  %9773 = vst [vmem:[#allocation2 + $0x50] sm:$0xff] %v20681_v54 }
 0x1ca   : > { %2494 = vmatprep.subr.bf16.mxu0 %v18978_v6  ;;  %9774 = vst [vmem:[#allocation2 + $0x58] sm:$0xff] %v20681_v54  ;;  %9775 = vst [vmem:[#allocation2 + $0x60] sm:$0x1] %v20681_v54  ;;  %3466 = vmatpush1.bf16.msra.mxu1 %v19083_v62  ;;  %v21782_v4 = vsub.s32 0, %v21779_v3  ;;  %v21785_v5 = vadd.s32 8, %v21779_v3 }
 0x1cb   : > { %9776 = vst [vmem:[#allocation2 + $0x68] sm:$0x1] %v20681_v54  ;;  %9777 = vst [vmem:[#allocation2 + $0x70] sm:$0x1] %v20681_v54  ;;  %3467 = vmatprep.subr.bf16.mxu1 %v19084_v63  ;;  %v15607_v6 = vld [vmem:[%s27345_s6 + $0x4] sm:$0x3] }
 0x1cc   : > { %9778 = vst [vmem:[#allocation2 + $0x78] sm:$0x1] %v20681_v54  ;;  %9781 = vst [vmem:[#allocation2 + $0x630] sm:$0x80] %v20681_v54 }
 0x1cd   : > { %2495 = vmatpush1.bf16.msra.mxu0 %v18976_v7  ;;  %9782 = vst [vmem:[#allocation2 + $0x638] sm:$0x80] %v20681_v54  ;;  %9783 = vst [vmem:[#allocation2 + $0x640] sm:$0x80] %v20681_v54  ;;  %v21791_v7 = vsub.s32 1, %v21779_v3 }
 0x1ce   : > { %2496 = vmatprep.subr.bf16.mxu0 %v18981_v8  ;;  %9784 = vst [vmem:[#allocation2 + $0x648] sm:$0x80] %v20681_v54  ;;  %9785 = vst [vmem:[#allocation2 + $0x650] sm:$0x80] %v20681_v54  ;;  %3468 = vmatpush1.bf16.msra.mxu1 %v19086_v0  ;;  %v2577_v8 = vand.u32 3, %v21779_v3 }
 0x1cf   : > { %9786 = vst [vmem:[#allocation2 + $0x658] sm:$0x80] %v20681_v54  ;;  %9787 = vst [vmem:[#allocation2 + $0x660] sm:$0xff] %v20681_v54  ;;  %3480 = vmatprep.subr.bf16.mxu1 %v19089_v1 }
 0x1d0   : > { %9788 = vst [vmem:[#allocation2 + $0x668] sm:$0xff] %v20681_v54  ;;  %27418 = vst [vmem:[#allocation17_spill] sm:$0xff] %v21782_v4  ;;  %vm21797_vm0 = vcmp.eq.s32.totalorder %v2577_v8, 3  ;;  %vm21801_vm1 = vcmp.eq.s32.totalorder %v2577_v8, 0 }
 0x1d1   : > { %2497 = vmatpush1.bf16.msra.mxu0 %v18979_v9  ;;  %27419 = vst [vmem:[#allocation18_spill] sm:$0xff] %v21785_v5  ;;  %27420 = vst [vmem:[#allocation19_spill] sm:$0xff] %v21791_v7  ;;  %v847_v9 = vrot.slane %v15607_v6, %v21782_v4 }
 0x1d2   : > { %2498 = vmatprep.subr.bf16.mxu0 %v18984_v10  ;;  %v2584_v10 = vand.u32 3, %v21785_v5 }
 0x1d4   : > { %vm21805_vm2 = vcmp.eq.s32.totalorder %v2584_v10, 3  ;;  %vm21809_vm3 = vcmp.eq.s32.totalorder %v2584_v10, 0 }
 0x1d5   : > { %2499 = vmatpush1.bf16.msra.mxu0 %v18982_v11  ;;  %v851_v11 = vrot.slane %v15607_v6, %v21791_v7 }
 0x1d6   : > { %2500 = vmatprep.subr.bf16.mxu0 %v18987_v12 }
 0x1d9   : > { %2501 = vmatpush1.bf16.msra.mxu0 %v18985_v13 }
 0x1da   : > { %2502 = vmatprep.subr.bf16.mxu0 %v18990_v14 }
 0x1dd   : > { %2503 = vmatpush1.bf16.msra.mxu0 %v18988_v15 }
 0x1de   : > { %2515 = vmatprep.subr.bf16.mxu0 %v18993_v16 }
 0x1e0   : > { %2505 = vmatmul.mubr.bf16.vlgmr.msra.gmra.mrb[0].mxu0 %v15620_v20 }
 0x1e1   : > { %2516 = vmatpush1.bf16.msra.mxu0 %v18991_v19  ;;  %2547 = vmatprep.mubr.bf16.mxu0 %v15623_v22 }
 0x1e2   : > { %2517 = vmatprep.subr.bf16.mxu0 %v18996_v21 }
 0x1e5   : > { %2518 = vmatpush1.bf16.msra.mxu0 %v18994_v23 }
 0x1e6   : > { %2519 = vmatprep.subr.bf16.mxu0 %v18999_v26 }
 0x1e9   : > { %2520 = vmatpush1.bf16.msra.mxu0 %v18997_v24 }
 0x1ea   : > { %2521 = vmatprep.subr.bf16.mxu0 %v19002_v25 }
 0x1ed   : > { %2522 = vmatpush1.bf16.msra.mxu0 %v19000_v27 }
 0x1ee   : > { %2523 = vmatprep.subr.bf16.mxu0 %v19005_v28 }
 0x1f1   : > { %2524 = vmatpush1.bf16.msra.mxu0 %v19003_v29 }
 0x1f2   : > { %2525 = vmatprep.subr.bf16.mxu0 %v19008_v30 }
 0x1f5   : > { %2526 = vmatpush1.bf16.msra.mxu0 %v19006_v31 }
 0x1f6   : > { %2527 = vmatprep.subr.bf16.mxu0 %v19011_v32 }
 0x1f9   : > { %2528 = vmatpush1.bf16.msra.mxu0 %v19009_v33 }
 0x1fa   : > { %2529 = vmatprep.subr.bf16.mxu0 %v19014_v34 }
 0x1fd   : > { %2530 = vmatpush1.bf16.msra.mxu0 %v19012_v35 }
 0x1fe   : > { %2531 = vmatprep.subr.bf16.mxu0 %v19017_v36 }
 0x201   : > { %2532 = vmatpush1.bf16.msra.mxu0 %v19015_v37 }
 0x202   : > { %2533 = vmatprep.subr.bf16.mxu0 %v19020_v38 }
 0x205   : > { %2534 = vmatpush1.bf16.msra.mxu0 %v19018_v39 }
 0x206   : > { %2535 = vmatprep.subr.bf16.mxu0 %v19023_v40 }
 0x209   : > { %2536 = vmatpush1.bf16.msra.mxu0 %v19021_v41 }
 0x20a   : > { %2537 = vmatprep.subr.bf16.mxu0 %v19026_v42 }
 0x20d   : > { %2538 = vmatpush1.bf16.msra.mxu0 %v19024_v43 }
 0x20e   : > { %2539 = vmatprep.subr.bf16.mxu0 %v19029_v44 }
 0x211   : > { %2540 = vmatpush1.bf16.msra.mxu0 %v19027_v45 }
 0x212   : > { %2541 = vmatprep.subr.bf16.mxu0 %v19032_v46 }
 0x215   : > { %2542 = vmatpush1.bf16.msra.mxu0 %v19030_v47 }
 0x216   : > { %2543 = vmatprep.subr.bf16.mxu0 %v19035_v48 }
 0x219   : > { %2544 = vmatpush1.bf16.msra.mxu0 %v19033_v49 }
 0x21a   : > { %2545 = vmatprep.subr.bf16.mxu0 %v19038_v50 }
 0x21d   : > { %2546 = vmatpush1.bf16.msra.mxu0 %v19036_v51 }
 0x220   : > { %2548 = vmatmul.mubr.bf16.vlgmr.msra.gmra.mrb[0].mxu0 %v15622_v52 }
 0x2f3   : > { %v2549_v12 = vpop.f32.mrb[0].mxu0 }
 0x2f4   : > { %v17727_v15 = vadd.f32 %v2549_v12, %v847_v9  ;;  %v2551_v16 = vpop.f32.mrb[1].mxu0 }
 0x2f5   : > { %v17728_v19 = vadd.f32 %v2551_v16, %v851_v11  ;;  %v2553_v20 = vpop.f32.mrb[2].mxu0 }
 0x2f6   : > { %v2599_v21 = vsel %vm21797_vm0, 0.0, %v17727_v15  ;;  %v2631_v22 = vrot.slane %v17727_v15, 4  ;;  %v2651_v23 = vsel %vm21801_vm1, 0.0, %v17727_v15  ;;  %v17729_v26 = vadd.f32 %v2553_v20, %v847_v9  ;;  %v2555_v24 = vpop.f32.mrb[3].mxu0 }
 0x2f7   : > { %v2608_v25 = vrot.slane %v2599_v21, 3  ;;  %v2660_v27 = vrot.slane %v2651_v23, 5  ;;  %v2600_v28 = vsel %vm21797_vm0, 0.0, %v17728_v19  ;;  %v2632_v29 = vrot.slane %v17728_v19, 4 }
 0x2f8   : > { %2643 = vst [vmem:[#allocation4 + $0x10] sm:$0xf0] %v2631_v22  ;;  %v2609_v30 = vrot.slane %v2600_v28, 3  ;;  %v2652_v31 = vsel %vm21801_vm1, 0.0, %v17728_v19  ;;  %v2601_v32 = vsel %vm21805_vm2, 0.0, %v17729_v26  ;;  %v2633_v33 = vrot.slane %v17729_v26, 4 }
 0x2f9   : > { %2620 = vst [vmem:[#allocation4] sm:$0xe0] %v2608_v25  ;;  %2672 = vst [vmem:[#allocation4 + $0x20] sm:$0xf8] %v2660_v27  ;;  %v2661_v34 = vrot.slane %v2652_v31, 5  ;;  %v2610_v35 = vrot.slane %v2601_v32, 3  ;;  %v17730_v37 = vadd.f32 %v2555_v24, %v851_v11  ;;  %v5007_v40 = vpack.c.bf16 %v17729_v26, %v17727_v15 }
 0x2fa   : > { %2644 = vst [vmem:[#allocation4 + $0x18] sm:$0xf0] %v2632_v29  ;;  %v2653_v36 = vsel %vm21809_vm3, 0.0, %v17729_v26  ;;  %2621 = vst [vmem:[#allocation4 + $0x8] sm:$0xe0] %v2609_v30  ;;  %v21826_v38 = vsel %vm2630_vm5, %v2631_v22, %v2633_v33 }
 0x2fb   : > { %2647 = vst [vmem:[#allocation4 + $0x70] sm:$0xf] %v2633_v33  ;;  %v2662_v39 = vrot.slane %v2653_v36, 5  ;;  %2673 = vst [vmem:[#allocation4 + $0x28] sm:$0xf8] %v2661_v34  ;;  %v21829_v41 = vsel %vm2607_vm4, %v2608_v25, %v2610_v35  ;;  %v2602_v42 = vsel %vm21805_vm2, 0.0, %v17730_v37  ;;  %v5008_v48 = vpack.c.bf16 %v17730_v37, %v17728_v19 }
 0x2fc   : > { %2624 = vst [vmem:[#allocation4 + $0x60] sm:$0x1f] %v2610_v35  ;;  %2645 = vst [vmem:[#allocation4 + $0x40] sm:$0xff] %v21826_v38  ;;  %v2635_v43 = vrot.slane %v17730_v37, 4  ;;  %v2654_v44 = vsel %vm21809_vm3, 0.0, %v17730_v37  ;;  %v2612_v46 = vrot.slane %v2602_v42, 3 }
 0x2fd   : > { %2622 = vst [vmem:[#allocation4 + $0x30] sm:$0xff] %v21829_v41  ;;  %v2663_v45 = vsel %vm2659_vm6, %v2660_v27, %v2662_v39  ;;  %2676 = vst [vmem:[#allocation4 + $0x80] sm:$0x7] %v2662_v39  ;;  %v2664_v47 = vrot.slane %v2654_v44, 5  ;;  %5041 = vmatprep.subr.bf16.mxu0 %v5008_v48  ;;  %v19087_v28 = vld [vmem:[%s27346_s7 + $0x1600] ss:$8 sps:$4 sm:$0xff]  }
 0x2fe   : > { %2674 = vst [vmem:[#allocation4 + $0x50] sm:$0xff] %v2663_v45  ;;  %v21839_v49 = vsel %vm2630_vm5, %v2632_v29, %v2635_v43  ;;  %2648 = vst [vmem:[#allocation4 + $0x78] sm:$0xf] %v2635_v43  ;;  %v21842_v50 = vsel %vm2607_vm4, %v2609_v30, %v2612_v46  ;;  %5042 = vmatpush1.bf16.msra.mxu0 %v5007_v40  ;;  %v19092_v32 = vld [vmem:[%s27346_s7 + $0x1614] ss:$8 sps:$4 sm:$0xff]  }
 0x2ff   : > { %2625 = vst [vmem:[#allocation4 + $0x68] sm:$0x1f] %v2612_v46  ;;  %2646 = vst [vmem:[#allocation4 + $0x48] sm:$0xff] %v21839_v49  ;;  %v21846_v51 = vsel %vm2659_vm6, %v2661_v34, %v2664_v47  ;;  %v2795_v52 = vld [vmem:[#allocation4 + $0x10] sm:$0xf0] }
 0x300   : > { %2677 = vst [vmem:[#allocation4 + $0x88] sm:$0x7] %v2664_v47  ;;  %2623 = vst [vmem:[#allocation4 + $0x38] sm:$0xff] %v21842_v50  ;;  %v2813_v53 = vpack.c.bf16 %v21826_v38, %v2795_v52  ;;  %v2797_v54 = vld [vmem:[#allocation4 + $0x20] sm:$0xf0] }
 0x301   : > { %2675 = vst [vmem:[#allocation4 + $0x58] sm:$0xff] %v21846_v51  ;;  %v2794_v55 = vld [vmem:[#allocation4 + $0x8] sm:$0xf0]  ;;  %v2793_v56 = vld [vmem:[#allocation4] sm:$0xf0]  ;;  %v2815_v58 = vpack.c.bf16 %v2663_v45, %v2797_v54 }
 0x302   : > { %v2807_v57 = vld [vmem:[#allocation4 + $0x70] sm:$0xf]  ;;  %v2796_v60 = vld [vmem:[#allocation4 + $0x18] sm:$0xf0]  ;;  %v2798_v62 = vld [vmem:[#allocation4 + $0x28] sm:$0xf0]  ;;  %v2812_v63 = vpack.c.bf16 %v21842_v50, %v2794_v55  ;;  %v2811_v12 = vpack.c.bf16 %v21829_v41, %v2793_v56 }
 0x303   : > { %v2805_v59 = vld [vmem:[#allocation4 + $0x60] sm:$0xf]  ;;  %v2819_v61 = vpack.c.bf16 %v2807_v57, %v2807_v57  ;;  %v2816_v1 = vpack.c.bf16 %v21846_v51, %v2798_v62  ;;  %v2939_v8 = vrot.slane %v2813_v53, 2  ;;  %v2814_v13 = vpack.c.bf16 %v21839_v49, %v2796_v60  ;;  %v19090_v36 = vld [vmem:[%s27346_s7 + $0x1610] ss:$8 sps:$4 sm:$0xff]  }
 0x304   : > { %v2817_v0 = vpack.c.bf16 %v2805_v59, %v2805_v59  ;;  %v2809_v2 = vld [vmem:[#allocation4 + $0x80] sm:$0xf]  ;;  %v2945_v16 = vrot.slane %v2815_v58, 2  ;;  %v2936_v21 = vrot.slane %v2812_v63, 2  ;;  %v2933_v29 = vrot.slane %v2811_v12, 2 }
 0x305   : > { %v2808_v6 = vld [vmem:[#allocation4 + $0x78] sm:$0xf]  ;;  %v2940_v9 = vrot.slane %v2819_v61, 2  ;;  %v2821_v10 = vpack.c.bf16 %v2809_v2, %v2809_v2  ;;  %v2948_v23 = vrot.slane %v2816_v1, 2  ;;  %v2942_v31 = vrot.slane %v2814_v13, 2 }
 0x306   : > { %v2806_v11 = vld [vmem:[#allocation4 + $0x68] sm:$0xf]  ;;  %v2820_v14 = vpack.c.bf16 %v2808_v6, %v2808_v6  ;;  %v2934_v22 = vrot.slane %v2817_v0, 2  ;;  %v19095_v37 = vld [vmem:[%s27346_s7 + $0x1624] ss:$8 sps:$4 sm:$0xff]  }
 0x307   : > { %v2810_v15 = vld [vmem:[#allocation4 + $0x88] sm:$0xf]  ;;  %v2818_v17 = vpack.c.bf16 %v2806_v11, %v2806_v11  ;;  %v21856_v18 = vsel %vm2932_vm7, %v2939_v8, %v2940_v9  ;;  %v2946_v20 = vrot.slane %v2821_v10, 2  ;;  %v19098_v40 = vld [vmem:[%s27346_s7 + $0x1634] ss:$8 sps:$4 sm:$0xff]  }
 0x308   : > { %v2822_v19 = vpack.c.bf16 %v2810_v15, %v2810_v15  ;;  %v2943_v24 = vrot.slane %v2820_v14, 2  ;;  %v2935_v34 = vsel %vm2932_vm7, %v2933_v29, %v2934_v22  ;;  %v19093_v39 = vld [vmem:[%s27346_s7 + $0x1620] ss:$8 sps:$4 sm:$0xff]   ;;  %v19096_v42 = vld [vmem:[%s27346_s7 + $0x1630] ss:$8 sps:$4 sm:$0xff]  }
 0x309   : > { %v2937_v26 = vrot.slane %v2818_v17, 2  ;;  %v21859_v27 = vsel %vm2932_vm7, %v2945_v16, %v2946_v20  ;;  %v19101_v43 = vld [vmem:[%s27346_s7 + $0x1644] ss:$8 sps:$4 sm:$0xff]   ;;  %v19099_v44 = vld [vmem:[%s27346_s7 + $0x1640] ss:$8 sps:$4 sm:$0xff]  }
 0x30a   : > { %v2949_v25 = vrot.slane %v2822_v19, 2  ;;  %v2944_v35 = vsel %vm2932_vm7, %v2942_v31, %v2943_v24  ;;  %v19104_v45 = vld [vmem:[%s27346_s7 + $0x1654] ss:$8 sps:$4 sm:$0xff]   ;;  %v19102_v46 = vld [vmem:[%s27346_s7 + $0x1650] ss:$8 sps:$4 sm:$0xff]  }
 0x30b   : > { %v2938_v30 = vsel %vm2932_vm7, %v2936_v21, %v2937_v26  ;;  %v19107_v47 = vld [vmem:[%s27346_s7 + $0x1664] ss:$8 sps:$4 sm:$0xff]   ;;  %v19105_v48 = vld [vmem:[%s27346_s7 + $0x1660] ss:$8 sps:$4 sm:$0xff]   ;;  %v19110_v52 = vld [vmem:[%s27346_s7 + $0x1674] ss:$8 sps:$4 sm:$0xff]  }
 0x30c   : > { %v21869_v33 = vsel %vm2932_vm7, %v2948_v23, %v2949_v25  ;;  %3469 = vmatprep.mubr.bf16.mxu1 %v2938_v30  ;;  %v19108_v53 = vld [vmem:[%s27346_s7 + $0x1670] ss:$8 sps:$4 sm:$0xff]   ;;  %v19113_v54 = vld [vmem:[%s27346_s7 + $0x1684] ss:$8 sps:$4 sm:$0xff]   ;;  %v19111_v55 = vld [vmem:[%s27346_s7 + $0x1680] ss:$8 sps:$4 sm:$0xff]  }
 0x30d   : > { %3470 = vmatmul.mubr.bf16.vlgmr.msra.gmra.mrb[0].mxu1 %v2935_v34  ;;  %v19116_v56 = vld [vmem:[%s27346_s7 + $0x1694] ss:$8 sps:$4 sm:$0xff]   ;;  %v19114_v57 = vld [vmem:[%s27346_s7 + $0x1690] ss:$8 sps:$4 sm:$0xff]   ;;  %v19119_v58 = vld [vmem:[%s27346_s7 + $0x16a4] ss:$8 sps:$4 sm:$0xff]  }
 0x30e   : > { %3481 = vmatpush1.bf16.msra.mxu1 %v19087_v28  ;;  %3512 = vmatprep.mubr.bf16.mxu1 %v2944_v35  ;;  %v19117_v59 = vld [vmem:[%s27346_s7 + $0x16a0] ss:$8 sps:$4 sm:$0xff]   ;;  %v19122_v60 = vld [vmem:[%s27346_s7 + $0x16b4] ss:$8 sps:$4 sm:$0xff]   ;;  %v19120_v61 = vld [vmem:[%s27346_s7 + $0x16b0] ss:$8 sps:$4 sm:$0xff]  }
 0x30f   : > { %3482 = vmatprep.subr.bf16.mxu1 %v19092_v32  ;;  %v19125_v62 = vld [vmem:[%s27346_s7 + $0x16c4] ss:$8 sps:$4 sm:$0xff]   ;;  %v19123_v63 = vld [vmem:[%s27346_s7 + $0x16c0] ss:$8 sps:$4 sm:$0xff]   ;;  %v19128_v0 = vld [vmem:[%s27346_s7 + $0x16d4] ss:$8 sps:$4 sm:$0xff]  }
 0x310   : > { %v19126_v1 = vld [vmem:[%s27346_s7 + $0x16d0] ss:$8 sps:$4 sm:$0xff]   ;;  %v19131_v2 = vld [vmem:[%s27346_s7 + $0x16e4] ss:$8 sps:$4 sm:$0xff]   ;;  %v19129_v6 = vld [vmem:[%s27346_s7 + $0x16e0] ss:$8 sps:$4 sm:$0xff]  }
 0x311   : > { %v19134_v8 = vld [vmem:[%s27346_s7 + $0x16f4] ss:$8 sps:$4 sm:$0xff]   ;;  %v19132_v9 = vld [vmem:[%s27346_s7 + $0x16f0] ss:$8 sps:$4 sm:$0xff]   ;;  %v19137_v10 = vld [vmem:[%s27346_s7 + $0x1704] ss:$8 sps:$4 sm:$0xff]  }
 0x312   : > { %3483 = vmatpush1.bf16.msra.mxu1 %v19090_v36  ;;  %v19135_v11 = vld [vmem:[%s27346_s7 + $0x1700] ss:$8 sps:$4 sm:$0xff]   ;;  %v19140_v12 = vld [vmem:[%s27346_s7 + $0x1714] ss:$8 sps:$4 sm:$0xff]   ;;  %v19138_v13 = vld [vmem:[%s27346_s7 + $0x1710] ss:$8 sps:$4 sm:$0xff]  }
 0x313   : > { %3484 = vmatprep.subr.bf16.mxu1 %v19095_v37  ;;  %v19143_v14 = vld [vmem:[%s27346_s7 + $0x1724] ss:$8 sps:$4 sm:$0xff]   ;;  %v19141_v15 = vld [vmem:[%s27346_s7 + $0x1720] ss:$8 sps:$4 sm:$0xff]   ;;  %v19146_v16 = vld [vmem:[%s27346_s7 + $0x1734] ss:$8 sps:$4 sm:$0xff]  }
 0x314   : > { %v19144_v17 = vld [vmem:[%s27346_s7 + $0x1730] ss:$8 sps:$4 sm:$0xff]   ;;  %v19147_v19 = vld [vmem:[%s27346_s7 + $0x1740] ss:$8 sps:$4 sm:$0xff]   ;;  %v19152_v20 = vld [vmem:[%s27346_s7 + $0x1754] ss:$8 sps:$4 sm:$0xff]  }
 0x315   : > { %v19150_v21 = vld [vmem:[%s27346_s7 + $0x1750] ss:$8 sps:$4 sm:$0xff]   ;;  %v19155_v22 = vld [vmem:[%s27346_s7 + $0x1764] ss:$8 sps:$4 sm:$0xff]   ;;  %v19153_v23 = vld [vmem:[%s27346_s7 + $0x1760] ss:$8 sps:$4 sm:$0xff]  }
 0x316   : > { %3485 = vmatpush1.bf16.msra.mxu1 %v19093_v39  ;;  %v19158_v26 = vld [vmem:[%s27346_s7 + $0x1774] ss:$8 sps:$4 sm:$0xff]   ;;  %v19156_v24 = vld [vmem:[%s27346_s7 + $0x1770] ss:$8 sps:$4 sm:$0xff]   ;;  %v19161_v25 = vld [vmem:[%s27346_s7 + $0x1784] ss:$8 sps:$4 sm:$0xff]  }
 0x317   : > { %3486 = vmatprep.subr.bf16.mxu1 %v19098_v40  ;;  %v19159_v28 = vld [vmem:[%s27346_s7 + $0x1780] ss:$8 sps:$4 sm:$0xff]   ;;  %v19164_v29 = vld [vmem:[%s27346_s7 + $0x1794] ss:$8 sps:$4 sm:$0xff]   ;;  %v19162_v30 = vld [vmem:[%s27346_s7 + $0x1790] ss:$8 sps:$4 sm:$0xff]  }
 0x318   : > { %v19167_v31 = vld [vmem:[%s27346_s7 + $0x17a4] ss:$8 sps:$4 sm:$0xff]   ;;  %v19165_v32 = vld [vmem:[%s27346_s7 + $0x17a0] ss:$8 sps:$4 sm:$0xff]   ;;  %v19168_v34 = vld [vmem:[%s27346_s7 + $0x17b0] ss:$8 sps:$4 sm:$0xff]  }
 0x319   : > { %v19173_v35 = vld [vmem:[%s27346_s7 + $0x17c4] ss:$8 sps:$4 sm:$0xff]   ;;  %v19171_v36 = vld [vmem:[%s27346_s7 + $0x17c0] ss:$8 sps:$4 sm:$0xff]   ;;  %v19176_v37 = vld [vmem:[%s27346_s7 + $0x17d4] ss:$8 sps:$4 sm:$0xff]  }
 0x31a   : > { %3487 = vmatpush1.bf16.msra.mxu1 %v19096_v42  ;;  %v19174_v39 = vld [vmem:[%s27346_s7 + $0x17d0] ss:$8 sps:$4 sm:$0xff]   ;;  %v19179_v40 = vld [vmem:[%s27346_s7 + $0x17e4] ss:$8 sps:$4 sm:$0xff]   ;;  %v19177_v42 = vld [vmem:[%s27346_s7 + $0x17e0] ss:$8 sps:$4 sm:$0xff]  }
 0x31b   : > { %3488 = vmatprep.subr.bf16.mxu1 %v19101_v43  ;;  %v19182_v43 = vld [vmem:[%s27346_s7 + $0x17f4] ss:$8 sps:$4 sm:$0xff]  }
 0x31e   : > { %3489 = vmatpush1.bf16.msra.mxu1 %v19099_v44  ;;  %v19180_v44 = vld [vmem:[%s27346_s7 + $0x17f0] ss:$8 sps:$4 sm:$0xff]  }
 0x31f   : > { %3490 = vmatprep.subr.bf16.mxu1 %v19104_v45  ;;  %v19185_v45 = vld [vmem:[%s27346_s7 + $0x1204] ss:$8 sps:$4 sm:$0xff]  }
 0x322   : > { %3491 = vmatpush1.bf16.msra.mxu1 %v19102_v46  ;;  %v2679_v46 = vld [vmem:[#allocation4 + $0x8] sm:$0xff] }
 0x323   : > { %3492 = vmatprep.subr.bf16.mxu1 %v19107_v47  ;;  %v19183_v47 = vld [vmem:[%s27346_s7 + $0x1200] ss:$8 sps:$4 sm:$0xff]  }
 0x326   : > { %3493 = vmatpush1.bf16.msra.mxu1 %v19105_v48  ;;  %v19188_v48 = vld [vmem:[%s27346_s7 + $0x1214] ss:$8 sps:$4 sm:$0xff]  }
 0x327   : > { %3494 = vmatprep.subr.bf16.mxu1 %v19110_v52  ;;  %v2691_v52 = vpack.c.bf16 %v21842_v50, %v2679_v46  ;;  %v19194_v50 = vld [vmem:[%s27346_s7 + $0x1234] ss:$8 sps:$4 sm:$0xff]   ;;  %v19237_v46 = vld [vmem:[%s27346_s7 + $0x1320] ss:$8 sps:$4 sm:$0xff]  }
 0x32a   : > { %3495 = vmatpush1.bf16.msra.mxu1 %v19108_v53  ;;  %v19186_v53 = vld [vmem:[%s27346_s7 + $0x1210] ss:$8 sps:$4 sm:$0xff]  }
 0x32b   : > { %3496 = vmatprep.subr.bf16.mxu1 %v19113_v54  ;;  %v19191_v54 = vld [vmem:[%s27346_s7 + $0x1224] ss:$8 sps:$4 sm:$0xff]  }
 0x32e   : > { %3497 = vmatpush1.bf16.msra.mxu1 %v19111_v55  ;;  %v19189_v55 = vld [vmem:[%s27346_s7 + $0x1220] ss:$8 sps:$4 sm:$0xff]  }
 0x32f   : > { %3498 = vmatprep.subr.bf16.mxu1 %v19116_v56  ;;  %v19197_v56 = vld [vmem:[%s27346_s7 + $0x1244] ss:$8 sps:$4 sm:$0xff]  }
 0x332   : > { %3499 = vmatpush1.bf16.msra.mxu1 %v19114_v57  ;;  %v19195_v57 = vld [vmem:[%s27346_s7 + $0x1240] ss:$8 sps:$4 sm:$0xff]  }
 0x333   : > { %3500 = vmatprep.subr.bf16.mxu1 %v19119_v58  ;;  %v19200_v58 = vld [vmem:[%s27346_s7 + $0x1254] ss:$8 sps:$4 sm:$0xff]  }
 0x336   : > { %3501 = vmatpush1.bf16.msra.mxu1 %v19117_v59  ;;  %v19198_v59 = vld [vmem:[%s27346_s7 + $0x1250] ss:$8 sps:$4 sm:$0xff]  }
 0x337   : > { %3502 = vmatprep.subr.bf16.mxu1 %v19122_v60  ;;  %v19203_v60 = vld [vmem:[%s27346_s7 + $0x1264] ss:$8 sps:$4 sm:$0xff]  }
 0x33a   : > { %3503 = vmatpush1.bf16.msra.mxu1 %v19120_v61  ;;  %v19201_v61 = vld [vmem:[%s27346_s7 + $0x1260] ss:$8 sps:$4 sm:$0xff]  }
 0x33b   : > { %3504 = vmatprep.subr.bf16.mxu1 %v19125_v62  ;;  %v19206_v62 = vld [vmem:[%s27346_s7 + $0x1274] ss:$8 sps:$4 sm:$0xff]  }
 0x33e   : > { %3505 = vmatpush1.bf16.msra.mxu1 %v19123_v63  ;;  %v19204_v63 = vld [vmem:[%s27346_s7 + $0x1270] ss:$8 sps:$4 sm:$0xff]  }
 0x33f   : > { %3506 = vmatprep.subr.bf16.mxu1 %v19128_v0  ;;  %v19209_v0 = vld [vmem:[%s27346_s7 + $0x1284] ss:$8 sps:$4 sm:$0xff]  }
 0x342   : > { %3507 = vmatpush1.bf16.msra.mxu1 %v19126_v1  ;;  %v19207_v1 = vld [vmem:[%s27346_s7 + $0x1280] ss:$8 sps:$4 sm:$0xff]  }
 0x343   : > { %3508 = vmatprep.subr.bf16.mxu1 %v19131_v2  ;;  %v19212_v2 = vld [vmem:[%s27346_s7 + $0x1294] ss:$8 sps:$4 sm:$0xff]  }
 0x346   : > { %3509 = vmatpush1.bf16.msra.mxu1 %v19129_v6  ;;  %v19210_v6 = vld [vmem:[%s27346_s7 + $0x1290] ss:$8 sps:$4 sm:$0xff]  }
 0x347   : > { %3510 = vmatprep.subr.bf16.mxu1 %v19134_v8  ;;  %v19215_v8 = vld [vmem:[%s27346_s7 + $0x12a4] ss:$8 sps:$4 sm:$0xff]  }
 0x34a   : > { %3511 = vmatpush1.bf16.msra.mxu1 %v19132_v9  ;;  %v19213_v9 = vld [vmem:[%s27346_s7 + $0x12a0] ss:$8 sps:$4 sm:$0xff]  }
 0x34b   : > { %3523 = vmatprep.subr.bf16.mxu1 %v19137_v10  ;;  %v19218_v10 = vld [vmem:[%s27346_s7 + $0x12b4] ss:$8 sps:$4 sm:$0xff]  }
 0x34d   : > { %3513 = vmatmul.mubr.bf16.vlgmr.msra.gmra.mrb[0].mxu1 %v21856_v18  ;;  %v19149_v18 = vld [vmem:[%s27346_s7 + $0x1744] ss:$8 sps:$4 sm:$0xff]  }
 0x34e   : > { %3524 = vmatpush1.bf16.msra.mxu1 %v19135_v11  ;;  %3555 = vmatprep.mubr.bf16.mxu1 %v21869_v33  ;;  %v19170_v33 = vld [vmem:[%s27346_s7 + $0x17b4] ss:$8 sps:$4 sm:$0xff]   ;;  %v19216_v11 = vld [vmem:[%s27346_s7 + $0x12b0] ss:$8 sps:$4 sm:$0xff]  }
 0x34f   : > { %3525 = vmatprep.subr.bf16.mxu1 %v19140_v12  ;;  %v19221_v12 = vld [vmem:[%s27346_s7 + $0x12c4] ss:$8 sps:$4 sm:$0xff]  }
 0x352   : > { %3526 = vmatpush1.bf16.msra.mxu1 %v19138_v13  ;;  %v19320_v13 = vld [vmem:[%s27343_s4 + $0x4] ss:$8 sps:$4 sm:$0xff]  }
 0x353   : > { %3527 = vmatprep.subr.bf16.mxu1 %v19143_v14  ;;  %v19318_v14 = vld [vmem:[%s27343_s4] ss:$8 sps:$4 sm:$0xff]   ;;  %5607 = vmatprep.subr.bf16.mxu0 %v19320_v13 }
 0x354   : > { %v19255_v13 = vld [vmem:[%s27346_s7 + $0x1380] ss:$8 sps:$4 sm:$0xff]  }
 0x356   : > { %3528 = vmatpush1.bf16.msra.mxu1 %v19141_v15  ;;  %v19321_v15 = vld [vmem:[%s27349_s10] sm:$0xff]  }
 0x357   : > { %3529 = vmatprep.subr.bf16.mxu1 %v19146_v16  ;;  %v27363_v16 = vmov 0  }
 0x358   : > { %5073 = vmatprep.mubr.bf16.mxu0 %v27363_v16 }
 0x359   : > { %16462 = vmatmul.mubr.msk.bf16.vlgmr.msra.gmra.mrb[4].mxu0 %vm4919_vm8, %v19321_v15  ;;  %v19401_v15 = vld [vmem:[%s27343_s4 + $0xd4] ss:$8 sps:$4 sm:$0xff]  }
 0x35a   : > { %3530 = vmatpush1.bf16.msra.mxu1 %v19144_v17  ;;  %v19219_v17 = vld [vmem:[%s27346_s7 + $0x12c0] ss:$8 sps:$4 sm:$0xff]   ;;  %5608 = vmatpush1.bf16.msra.mxu0 %v19318_v14  ;;  %v19260_v14 = vld [vmem:[%s27346_s7 + $0x1394] ss:$8 sps:$4 sm:$0xff]  }
 0x35b   : > { %3531 = vmatprep.subr.bf16.mxu1 %v19149_v18  ;;  %v19224_v18 = vld [vmem:[%s27346_s7 + $0x12d4] ss:$8 sps:$4 sm:$0xff]   ;;  %5083 = vmatprep.mubr.bf16.mxu0 %v27363_v16 }
 0x35e   : > { %3532 = vmatpush1.bf16.msra.mxu1 %v19147_v19  ;;  %v19327_v19 = vld [vmem:[%s27343_s4 + $0x14] ss:$8 sps:$4 sm:$0xff]  }
 0x35f   : > { %3533 = vmatprep.subr.bf16.mxu1 %v19152_v20  ;;  %v19325_v20 = vld [vmem:[%s27343_s4 + $0x10] ss:$8 sps:$4 sm:$0xff]   ;;  %5609 = vmatprep.subr.bf16.mxu0 %v19327_v19  ;;  %v19263_v19 = vld [vmem:[%s27346_s7 + $0x13a4] ss:$8 sps:$4 sm:$0xff]  }
 0x360   : > { %5610 = vmatpush1.bf16.msra.mxu0 %v19325_v20  ;;  %v19407_v20 = vld [vmem:[%s27343_s4 + $0xe4] ss:$8 sps:$4 sm:$0xff]  }
 0x362   : > { %3534 = vmatpush1.bf16.msra.mxu1 %v19150_v21  ;;  %v19222_v21 = vld [vmem:[%s27346_s7 + $0x12d0] ss:$8 sps:$4 sm:$0xff]  }
 0x363   : > { %3535 = vmatprep.subr.bf16.mxu1 %v19155_v22  ;;  %v19227_v22 = vld [vmem:[%s27346_s7 + $0x12e4] ss:$8 sps:$4 sm:$0xff]  }
 0x366   : > { %3536 = vmatpush1.bf16.msra.mxu1 %v19153_v23  ;;  %v19333_v23 = vld [vmem:[%s27343_s4 + $0x24] ss:$8 sps:$4 sm:$0xff]  }
 0x367   : > { %3537 = vmatprep.subr.bf16.mxu1 %v19158_v26  ;;  %v19331_v26 = vld [vmem:[%s27343_s4 + $0x20] ss:$8 sps:$4 sm:$0xff]   ;;  %5611 = vmatprep.subr.bf16.mxu0 %v19333_v23 }
 0x368   : > { %5612 = vmatpush1.bf16.msra.mxu0 %v19331_v26  ;;  %v19261_v23 = vld [vmem:[%s27346_s7 + $0x13a0] ss:$8 sps:$4 sm:$0xff]   ;;  %v19266_v26 = vld [vmem:[%s27346_s7 + $0x13b4] ss:$8 sps:$4 sm:$0xff]  }
 0x36a   : > { %3538 = vmatpush1.bf16.msra.mxu1 %v19156_v24  ;;  %v19225_v24 = vld [vmem:[%s27346_s7 + $0x12e0] ss:$8 sps:$4 sm:$0xff]  }
 0x36b   : > { %3539 = vmatprep.subr.bf16.mxu1 %v19161_v25  ;;  %v19230_v25 = vld [vmem:[%s27346_s7 + $0x12f4] ss:$8 sps:$4 sm:$0xff]  }
 0x36e   : > { %3540 = vmatpush1.bf16.msra.mxu1 %v19159_v28  ;;  %v19339_v28 = vld [vmem:[%s27343_s4 + $0x34] ss:$8 sps:$4 sm:$0xff]  }
 0x36f   : > { %3541 = vmatprep.subr.bf16.mxu1 %v19164_v29  ;;  %v19337_v29 = vld [vmem:[%s27343_s4 + $0x30] ss:$8 sps:$4 sm:$0xff]   ;;  %5613 = vmatprep.subr.bf16.mxu0 %v19339_v28 }
 0x370   : > { %5614 = vmatpush1.bf16.msra.mxu0 %v19337_v29  ;;  %v19264_v28 = vld [vmem:[%s27346_s7 + $0x13b0] ss:$8 sps:$4 sm:$0xff]   ;;  %v19269_v29 = vld [vmem:[%s27346_s7 + $0x13c4] ss:$8 sps:$4 sm:$0xff]  }
 0x372   : > { %3542 = vmatpush1.bf16.msra.mxu1 %v19162_v30  ;;  %v19228_v30 = vld [vmem:[%s27346_s7 + $0x12f0] ss:$8 sps:$4 sm:$0xff]  }
 0x373   : > { %3543 = vmatprep.subr.bf16.mxu1 %v19167_v31  ;;  %v19233_v31 = vld [vmem:[%s27346_s7 + $0x1304] ss:$8 sps:$4 sm:$0xff]  }
 0x376   : > { %3544 = vmatpush1.bf16.msra.mxu1 %v19165_v32  ;;  %v2678_v32 = vld [vmem:[#allocation4] sm:$0xff] }
 0x377   : > { %3545 = vmatprep.subr.bf16.mxu1 %v19170_v33  ;;  %v19345_v33 = vld [vmem:[%s27343_s4 + $0x44] ss:$8 sps:$4 sm:$0xff]  }
 0x378   : > { %5615 = vmatprep.subr.bf16.mxu0 %v19345_v33  ;;  %v19421_v33 = vld [vmem:[%s27343_s4 + $0x100] ss:$8 sps:$4 sm:$0xff]  }
 0x37a   : > { %3546 = vmatpush1.bf16.msra.mxu1 %v19168_v34  ;;  %v2681_v34 = vld [vmem:[#allocation4 + $0x18] sm:$0xff] }
 0x37b   : > { %3547 = vmatprep.subr.bf16.mxu1 %v19173_v35  ;;  %v19343_v35 = vld [vmem:[%s27343_s4 + $0x40] ss:$8 sps:$4 sm:$0xff]  }
 0x37c   : > { %5616 = vmatpush1.bf16.msra.mxu0 %v19343_v35  ;;  %v19272_v35 = vld [vmem:[%s27346_s7 + $0x13d4] ss:$8 sps:$4 sm:$0xff]  }
 0x37e   : > { %3548 = vmatpush1.bf16.msra.mxu1 %v19171_v36  ;;  %v19231_v36 = vld [vmem:[%s27346_s7 + $0x1300] ss:$8 sps:$4 sm:$0xff]  }
 0x37f   : > { %3549 = vmatprep.subr.bf16.mxu1 %v19176_v37  ;;  %v2690_v37 = vpack.c.bf16 %v21829_v41, %v2678_v32  ;;  %v19234_v41 = vld [vmem:[%s27346_s7 + $0x1310] ss:$8 sps:$4 sm:$0xff]  }
 0x380   : > { %v19418_v32 = vld [vmem:[%s21219_s24] ss:$16 sps:$4 sm:$0xff]  }
 0x382   : > { %3550 = vmatpush1.bf16.msra.mxu1 %v19174_v39  ;;  %v19236_v39 = vld [vmem:[%s27346_s7 + $0x1314] ss:$8 sps:$4 sm:$0xff]  }
 0x383   : > { %3551 = vmatprep.subr.bf16.mxu1 %v19179_v40  ;;  %v2693_v40 = vpack.c.bf16 %v21839_v49, %v2681_v34  ;;  %v19239_v49 = vld [vmem:[%s27346_s7 + $0x1324] ss:$8 sps:$4 sm:$0xff]   ;;  %v19267_v34 = vld [vmem:[%s27346_s7 + $0x13c0] ss:$8 sps:$4 sm:$0xff]  }
 0x386   : > { %3552 = vmatpush1.bf16.msra.mxu1 %v19177_v42  ;;  %v19351_v42 = vld [vmem:[%s27343_s4 + $0x54] ss:$8 sps:$4 sm:$0xff]  }
 0x387   : > { %3553 = vmatprep.subr.bf16.mxu1 %v19182_v43  ;;  %v19349_v43 = vld [vmem:[%s27343_s4 + $0x50] ss:$8 sps:$4 sm:$0xff]   ;;  %5617 = vmatprep.subr.bf16.mxu0 %v19351_v42  ;;  %v19435_v42 = vld [vmem:[%s27343_s4 + $0x124] ss:$8 sps:$4 sm:$0xff]  }
 0x388   : > { %5618 = vmatpush1.bf16.msra.mxu0 %v19349_v43  ;;  %v19433_v43 = vld [vmem:[%s27343_s4 + $0x120] ss:$8 sps:$4 sm:$0xff]  }
 0x38a   : > { %3554 = vmatpush1.bf16.msra.mxu1 %v19180_v44  ;;  %v19357_v44 = vld [vmem:[%s27343_s4 + $0x64] ss:$8 sps:$4 sm:$0xff]  }
 0x38b   : > { %4046 = vmatprep.subr.bf16.mxu1 %v19185_v45  ;;  %v19355_v45 = vld [vmem:[%s27343_s4 + $0x60] ss:$8 sps:$4 sm:$0xff]   ;;  %5619 = vmatprep.subr.bf16.mxu0 %v19357_v44  ;;  %v19441_v44 = vld [vmem:[%s27343_s4 + $0x134] ss:$8 sps:$4 sm:$0xff]  }
 0x38c   : > { %5620 = vmatpush1.bf16.msra.mxu0 %v19355_v45  ;;  %v19439_v45 = vld [vmem:[%s27343_s4 + $0x130] ss:$8 sps:$4 sm:$0xff]  }
 0x38d   : > { %3556 = vmatmul.mubr.bf16.vlgmr.msra.gmra.mrb[0].mxu1 %v21859_v27  ;;  %v19192_v27 = vld [vmem:[%s27346_s7 + $0x1230] ss:$8 sps:$4 sm:$0xff]  }
 0x38e   : > { %4047 = vmatpush1.bf16.msra.mxu1 %v19183_v47  ;;  %4078 = vmatprep.mubr.bf16.mxu1 %v2691_v52  ;;  %v19242_v47 = vld [vmem:[%s27346_s7 + $0x1334] ss:$8 sps:$4 sm:$0xff]   ;;  %v19361_v52 = vld [vmem:[%s27343_s4 + $0x70] ss:$8 sps:$4 sm:$0xff]  }
 0x38f   : > { %4048 = vmatprep.subr.bf16.mxu1 %v19188_v48  ;;  %v19363_v48 = vld [vmem:[%s27343_s4 + $0x74] ss:$8 sps:$4 sm:$0xff]  }
 0x390   : > { %5621 = vmatprep.subr.bf16.mxu0 %v19363_v48  ;;  %v2680_v48 = vld [vmem:[#allocation4 + $0x10] sm:$0xff] }
 0x391   : > { %5622 = vmatpush1.bf16.msra.mxu0 %v19361_v52  ;;  %v19447_v52 = vld [vmem:[%s27343_s4 + $0x144] ss:$8 sps:$4 sm:$0xff]  }
 0x392   : > { %4049 = vmatpush1.bf16.msra.mxu1 %v19186_v53  ;;  %v19240_v53 = vld [vmem:[%s27346_s7 + $0x1330] ss:$8 sps:$4 sm:$0xff]  }
 0x393   : > { %4050 = vmatprep.subr.bf16.mxu1 %v19191_v54  ;;  %v19245_v54 = vld [vmem:[%s27346_s7 + $0x1344] ss:$8 sps:$4 sm:$0xff]  }
 0x396   : > { %4051 = vmatpush1.bf16.msra.mxu1 %v19189_v55  ;;  %v19369_v55 = vld [vmem:[%s27343_s4 + $0x84] ss:$8 sps:$4 sm:$0xff]  }
 0x397   : > { %4052 = vmatprep.subr.bf16.mxu1 %v19194_v50  ;;  %v19367_v50 = vld [vmem:[%s27343_s4 + $0x80] ss:$8 sps:$4 sm:$0xff]   ;;  %5623 = vmatprep.subr.bf16.mxu0 %v19369_v55 }
 0x398   : > { %5624 = vmatpush1.bf16.msra.mxu0 %v19367_v50  ;;  %v19279_v55 = vld [vmem:[%s27346_s7 + $0x1400] ss:$8 sps:$4 sm:$0xff]   ;;  %v2692_v50 = vpack.c.bf16 %v21826_v38, %v2680_v48  ;;  %v19282_v38 = vld [vmem:[%s27346_s7 + $0x1410] ss:$8 sps:$4 sm:$0xff]  }
 0x399   : > { %v19526_v48 = vld [vmem:[%s21219_s24 + $0x8] ss:$16 sps:$4 sm:$0xff]  }
 0x39a   : > { %4053 = vmatpush1.bf16.msra.mxu1 %v19192_v27  ;;  %v19243_v27 = vld [vmem:[%s27346_s7 + $0x1340] ss:$8 sps:$4 sm:$0xff]  }
 0x39b   : > { %4054 = vmatprep.subr.bf16.mxu1 %v19197_v56  ;;  %v19248_v56 = vld [vmem:[%s27346_s7 + $0x1354] ss:$8 sps:$4 sm:$0xff]  }
 0x39e   : > { %4055 = vmatpush1.bf16.msra.mxu1 %v19195_v57  ;;  %v19375_v57 = vld [vmem:[%s27343_s4 + $0x94] ss:$8 sps:$4 sm:$0xff]  }
 0x39f   : > { %4056 = vmatprep.subr.bf16.mxu1 %v19200_v58  ;;  %v19373_v58 = vld [vmem:[%s27343_s4 + $0x90] ss:$8 sps:$4 sm:$0xff]   ;;  %5625 = vmatprep.subr.bf16.mxu0 %v19375_v57  ;;  %v19453_v57 = vld [vmem:[%s27343_s4 + $0x154] ss:$8 sps:$4 sm:$0xff]  }
 0x3a0   : > { %5626 = vmatpush1.bf16.msra.mxu0 %v19373_v58  ;;  %v19451_v58 = vld [vmem:[%s27343_s4 + $0x150] ss:$8 sps:$4 sm:$0xff]  }
 0x3a2   : > { %4057 = vmatpush1.bf16.msra.mxu1 %v19198_v59  ;;  %v19246_v59 = vld [vmem:[%s27346_s7 + $0x1350] ss:$8 sps:$4 sm:$0xff]  }
 0x3a3   : > { %4058 = vmatprep.subr.bf16.mxu1 %v19203_v60  ;;  %v19251_v60 = vld [vmem:[%s27346_s7 + $0x1364] ss:$8 sps:$4 sm:$0xff]  }
 0x3a6   : > { %4059 = vmatpush1.bf16.msra.mxu1 %v19201_v61  ;;  %v19381_v61 = vld [vmem:[%s27343_s4 + $0xa4] ss:$8 sps:$4 sm:$0xff]  }
 0x3a7   : > { %4060 = vmatprep.subr.bf16.mxu1 %v19206_v62  ;;  %v19379_v62 = vld [vmem:[%s27343_s4 + $0xa0] ss:$8 sps:$4 sm:$0xff]   ;;  %5627 = vmatprep.subr.bf16.mxu0 %v19381_v61 }
 0x3a8   : > { %5628 = vmatpush1.bf16.msra.mxu0 %v19379_v62  ;;  %v19285_v61 = vld [vmem:[%s27346_s7 + $0x1420] ss:$8 sps:$4 sm:$0xff]   ;;  %v19290_v62 = vld [vmem:[%s27346_s7 + $0x1434] ss:$8 sps:$4 sm:$0xff]  }
 0x3aa   : > { %4061 = vmatpush1.bf16.msra.mxu1 %v19204_v63  ;;  %v19382_v63 = vld [vmem:[%s27349_s10 + $0x8] sm:$0xff]  }
 0x3ab   : > { %4062 = vmatprep.subr.bf16.mxu1 %v19209_v0  ;;  %v19249_v0 = vld [vmem:[%s27346_s7 + $0x1360] ss:$8 sps:$4 sm:$0xff]   ;;  %16463 = vmatmul.mubr.msk.bf16.gmra.mrb[8].mxu0 %vm4919_vm8, %v19382_v63  ;;  %v19465_v63 = vld [vmem:[%s27343_s4 + $0x174] ss:$8 sps:$4 sm:$0xff]  }
 0x3ac   : > { %5093 = vmatprep.mubr.bf16.mxu0 %v27363_v16 }
 0x3ae   : > { %4063 = vmatpush1.bf16.msra.mxu1 %v19207_v1  ;;  %v19254_v1 = vld [vmem:[%s27346_s7 + $0x1374] ss:$8 sps:$4 sm:$0xff]  }
 0x3af   : > { %4064 = vmatprep.subr.bf16.mxu1 %v19212_v2  ;;  %v19388_v2 = vld [vmem:[%s27343_s4 + $0xb4] ss:$8 sps:$4 sm:$0xff]  }
 0x3b0   : > { %5629 = vmatprep.subr.bf16.mxu0 %v19388_v2  ;;  %v19293_v2 = vld [vmem:[%s27346_s7 + $0x1444] ss:$8 sps:$4 sm:$0xff]  }
 0x3b2   : > { %4065 = vmatpush1.bf16.msra.mxu1 %v19210_v6  ;;  %v19386_v6 = vld [vmem:[%s27343_s4 + $0xb0] ss:$8 sps:$4 sm:$0xff]  }
 0x3b3   : > { %4066 = vmatprep.subr.bf16.mxu1 %v19215_v8  ;;  %v19252_v8 = vld [vmem:[%s27346_s7 + $0x1370] ss:$8 sps:$4 sm:$0xff]   ;;  %5630 = vmatpush1.bf16.msra.mxu0 %v19386_v6  ;;  %v19471_v6 = vld [vmem:[%s27343_s4 + $0x184] ss:$8 sps:$4 sm:$0xff]  }
 0x3b6   : > { %4067 = vmatpush1.bf16.msra.mxu1 %v19213_v9  ;;  %v19257_v9 = vld [vmem:[%s27346_s7 + $0x1384] ss:$8 sps:$4 sm:$0xff]  }
 0x3b7   : > { %4068 = vmatprep.subr.bf16.mxu1 %v19218_v10  ;;  %v19394_v10 = vld [vmem:[%s27343_s4 + $0xc4] ss:$8 sps:$4 sm:$0xff]  }
 0x3b8   : > { %5631 = vmatprep.subr.bf16.mxu0 %v19394_v10  ;;  %v19296_v10 = vld [vmem:[%s27346_s7 + $0x1454] ss:$8 sps:$4 sm:$0xff]  }
 0x3ba   : > { %4069 = vmatpush1.bf16.msra.mxu1 %v19216_v11  ;;  %v19392_v11 = vld [vmem:[%s27343_s4 + $0xc0] ss:$8 sps:$4 sm:$0xff]  }
 0x3bb   : > { %4070 = vmatprep.subr.bf16.mxu1 %v19221_v12  ;;  %v19395_v12 = vld [vmem:[%s27349_s10 + $0x10] sm:$0xff]   ;;  %5632 = vmatpush1.bf16.msra.mxu0 %v19392_v11 }
 0x3bc   : > { %16464 = vmatmul.mubr.msk.bf16.gmra.mrb[12].mxu0 %vm4919_vm8, %v19395_v12  ;;  %5633 = vmatprep.subr.bf16.mxu0 %v19401_v15  ;;  %v19477_v11 = vld [vmem:[%s27343_s4 + $0x194] ss:$8 sps:$4 sm:$0xff]   ;;  %v19475_v12 = vld [vmem:[%s27343_s4 + $0x190] ss:$8 sps:$4 sm:$0xff]  }
 0x3bd   : > { %5103 = vmatprep.mubr.bf16.mxu0 %v27363_v16  ;;  %v19481_v15 = vld [vmem:[%s21219_s24 + $0x24] ss:$16 sps:$4 sm:$0xff]  }
 0x3be   : > { %4071 = vmatpush1.bf16.msra.mxu1 %v19219_v17  ;;  %v19399_v17 = vld [vmem:[%s27343_s4 + $0xd0] ss:$8 sps:$4 sm:$0xff]  }
 0x3bf   : > { %4072 = vmatprep.subr.bf16.mxu1 %v19224_v18  ;;  %v19258_v18 = vld [vmem:[%s27346_s7 + $0x1390] ss:$8 sps:$4 sm:$0xff]   ;;  %5634 = vmatpush1.bf16.msra.mxu0 %v19399_v17 }
 0x3c0   : > { %5635 = vmatprep.subr.bf16.mxu0 %v19407_v20  ;;  %v19483_v17 = vld [vmem:[%s21219_s24 + $0x20] ss:$16 sps:$4 sm:$0xff]  }
 0x3c1   : > { %v19297_v20 = vld [vmem:[%s27346_s7 + $0x1460] ss:$8 sps:$4 sm:$0xff]  }
 0x3c2   : > { %4073 = vmatpush1.bf16.msra.mxu1 %v19222_v21  ;;  %v19405_v21 = vld [vmem:[%s27343_s4 + $0xe0] ss:$8 sps:$4 sm:$0xff]  }
 0x3c3   : > { %4074 = vmatprep.subr.bf16.mxu1 %v19227_v22  ;;  %v19408_v22 = vld [vmem:[%s27349_s10 + $0x18] sm:$0xff]   ;;  %5636 = vmatpush1.bf16.msra.mxu0 %v19405_v21 }
 0x3c4   : > { %16465 = vmatmul.mubr.msk.bf16.gmra.mrb[16].mxu0 %vm4919_vm8, %v19408_v22  ;;  %v19302_v21 = vld [vmem:[%s27346_s7 + $0x1474] ss:$8 sps:$4 sm:$0xff]  }
 0x3c5   : > { %v19492_v22 = vld [vmem:[%s27343_s4 + $0x1b4] ss:$8 sps:$4 sm:$0xff]  }
 0x3c6   : > { %4075 = vmatpush1.bf16.msra.mxu1 %v19225_v24  ;;  %v19414_v24 = vld [vmem:[%s27343_s4 + $0xf4] ss:$8 sps:$4 sm:$0xff]  }
 0x3c7   : > { %4076 = vmatprep.subr.bf16.mxu1 %v19230_v25  ;;  %v19412_v25 = vld [vmem:[%s27343_s4 + $0xf0] ss:$8 sps:$4 sm:$0xff]   ;;  %5637 = vmatprep.subr.bf16.mxu0 %v19414_v24  ;;  %v19305_v24 = vld [vmem:[%s27346_s7 + $0x1484] ss:$8 sps:$4 sm:$0xff]  }
 0x3c8   : > { %5638 = vmatpush1.bf16.msra.mxu0 %v19412_v25  ;;  %v19496_v25 = vld [vmem:[%s21219_s24 + $0x44] ss:$16 sps:$4 sm:$0xff]  }
 0x3ca   : > { %4077 = vmatpush1.bf16.msra.mxu1 %v19228_v30  ;;  %v19420_v30 = vld [vmem:[%s21219_s24 + $0x4] ss:$16 sps:$4 sm:$0xff]  }
 0x3cb   : > { %4089 = vmatprep.subr.bf16.mxu1 %v19233_v31  ;;  %v19423_v31 = vld [vmem:[%s27343_s4 + $0x104] ss:$8 sps:$4 sm:$0xff]   ;;  %5639 = vmatprep.mubr.bf16.mxu0 %v19420_v30  ;;  %v19499_v30 = vld [vmem:[%s27343_s4 + $0x1c0] ss:$8 sps:$4 sm:$0xff]  }
 0x3cc   : > { %5680 = vmatprep.subr.bf16.mxu0 %v19423_v31  ;;  %5640 = vmatmul.mubr.bf16.vlgmr.msra.gmra.mrb[4].mxu0 %v19418_v32  ;;  %v19303_v31 = vld [vmem:[%s27346_s7 + $0x1480] ss:$8 sps:$4 sm:$0xff]   ;;  %v19308_v32 = vld [vmem:[%s27346_s7 + $0x1494] ss:$8 sps:$4 sm:$0xff]  }
 0x3cd   : > { %4079 = vmatmul.mubr.bf16.vlgmr.msra.gmra.mrb[0].mxu1 %v2690_v37  ;;  %5681 = vmatpush1.bf16.msra.mxu0 %v19421_v33  ;;  %v19427_v37 = vld [vmem:[%s27343_s4 + $0x110] ss:$8 sps:$4 sm:$0xff]   ;;  %v19507_v33 = vld [vmem:[%s27343_s4 + $0x1d4] ss:$8 sps:$4 sm:$0xff]  }
 0x3ce   : > { %4090 = vmatpush1.bf16.msra.mxu1 %v19231_v36  ;;  %4121 = vmatprep.mubr.bf16.mxu1 %v2693_v40  ;;  %v19429_v36 = vld [vmem:[%s27343_s4 + $0x114] ss:$8 sps:$4 sm:$0xff]   ;;  %v19275_v40 = vld [vmem:[%s27346_s7 + $0x13e4] ss:$8 sps:$4 sm:$0xff]  }
 0x3cf   : > { %4091 = vmatprep.subr.bf16.mxu1 %v19236_v39  ;;  %v19270_v39 = vld [vmem:[%s27346_s7 + $0x13d0] ss:$8 sps:$4 sm:$0xff]   ;;  %5682 = vmatprep.subr.bf16.mxu0 %v19429_v36  ;;  %v19311_v36 = vld [vmem:[%s27346_s7 + $0x14a4] ss:$8 sps:$4 sm:$0xff]  }
 0x3d0   : > { %5649 = vmatprep.mubr.bf16.mxu0 %v19481_v15  ;;  %v19378_v15 = vld [vmem:[%s27346_s7 + $0x1864] ss:$8 sps:$4 sm:$0xff]  }
 0x3d1   : > { %5683 = vmatpush1.bf16.msra.mxu0 %v19427_v37  ;;  %v19511_v37 = vld [vmem:[%s21219_s24 + $0x64] ss:$16 sps:$4 sm:$0xff]  }
 0x3d2   : > { %4092 = vmatpush1.bf16.msra.mxu1 %v19234_v41  ;;  %v19273_v41 = vld [vmem:[%s27346_s7 + $0x13e0] ss:$8 sps:$4 sm:$0xff]   ;;  %5684 = vmatprep.subr.bf16.mxu0 %v19435_v42 }
 0x3d3   : > { %4093 = vmatprep.subr.bf16.mxu1 %v19239_v49  ;;  %v19278_v49 = vld [vmem:[%s27346_s7 + $0x13f4] ss:$8 sps:$4 sm:$0xff]   ;;  %v19514_v42 = vld [vmem:[%s27343_s4 + $0x1e0] ss:$8 sps:$4 sm:$0xff]  }
 0x3d4   : > { %5650 = vmatmul.mubr.bf16.gmra.mrb[8].mxu0 %v19483_v17  ;;  %v19376_v17 = vld [vmem:[%s27346_s7 + $0x1860] ss:$8 sps:$4 sm:$0xff]  }
 0x3d5   : > { %5685 = vmatpush1.bf16.msra.mxu0 %v19433_v43  ;;  %5659 = vmatprep.mubr.bf16.mxu0 %v19496_v25  ;;  %v19309_v43 = vld [vmem:[%s27346_s7 + $0x14a0] ss:$8 sps:$4 sm:$0xff]   ;;  %v19404_v25 = vld [vmem:[%s27346_s7 + $0x18a4] ss:$8 sps:$4 sm:$0xff]  }
 0x3d6   : > { %4094 = vmatpush1.bf16.msra.mxu1 %v19237_v46  ;;  %v19276_v46 = vld [vmem:[%s27346_s7 + $0x13f0] ss:$8 sps:$4 sm:$0xff]   ;;  %5686 = vmatprep.subr.bf16.mxu0 %v19441_v44 }
 0x3d7   : > { %4095 = vmatprep.subr.bf16.mxu1 %v19242_v47  ;;  %v19281_v47 = vld [vmem:[%s27346_s7 + $0x1404] ss:$8 sps:$4 sm:$0xff]   ;;  %v19520_v44 = vld [vmem:[%s27343_s4 + $0x1f0] ss:$8 sps:$4 sm:$0xff]  }
 0x3d9   : > { %5687 = vmatpush1.bf16.msra.mxu0 %v19439_v45  ;;  %v19312_v45 = vld [vmem:[%s27346_s7 + $0x14b0] ss:$8 sps:$4 sm:$0xff]  }
 0x3da   : > { %4096 = vmatpush1.bf16.msra.mxu1 %v19240_v53  ;;  %v2683_v53 = vld [vmem:[#allocation4 + $0x28] sm:$0xff]  ;;  %5688 = vmatprep.subr.bf16.mxu0 %v19447_v52 }
 0x3db   : > { %4097 = vmatprep.subr.bf16.mxu1 %v19245_v54  ;;  %v19445_v54 = vld [vmem:[%s27343_s4 + $0x140] ss:$8 sps:$4 sm:$0xff]  }
 0x3dc   : > { %v19315_v52 = vld [vmem:[%s27346_s7 + $0x14c0] ss:$8 sps:$4 sm:$0xff]  }
 0x3dd   : > { %5689 = vmatpush1.bf16.msra.mxu0 %v19445_v54  ;;  %v19322_v54 = vld [vmem:[%s27346_s7 + $0x14d0] ss:$8 sps:$4 sm:$0xff]  }
 0x3de   : > { %4098 = vmatpush1.bf16.msra.mxu1 %v19243_v27  ;;  %v19284_v27 = vld [vmem:[%s27346_s7 + $0x1414] ss:$8 sps:$4 sm:$0xff]   ;;  %5690 = vmatprep.subr.bf16.mxu0 %v19453_v57 }
 0x3df   : > { %4099 = vmatprep.subr.bf16.mxu1 %v19248_v56  ;;  %v2695_v56 = vpack.c.bf16 %v21846_v51, %v2683_v53  ;;  %v19287_v51 = vld [vmem:[%s27346_s7 + $0x1424] ss:$8 sps:$4 sm:$0xff]   ;;  %v19324_v53 = vld [vmem:[%s27346_s7 + $0x14d4] ss:$8 sps:$4 sm:$0xff]  }
 0x3e0   : > { %v19336_v57 = vld [vmem:[%s27346_s7 + $0x14f4] ss:$8 sps:$4 sm:$0xff]  }
 0x3e1   : > { %5691 = vmatpush1.bf16.msra.mxu0 %v19451_v58  ;;  %v19334_v58 = vld [vmem:[%s27346_s7 + $0x14f0] ss:$8 sps:$4 sm:$0xff]  }
 0x3e2   : > { %4100 = vmatpush1.bf16.msra.mxu1 %v19246_v59  ;;  %v19459_v59 = vld [vmem:[%s27343_s4 + $0x164] ss:$8 sps:$4 sm:$0xff]  }
 0x3e3   : > { %4101 = vmatprep.subr.bf16.mxu1 %v19251_v60  ;;  %v19457_v60 = vld [vmem:[%s27343_s4 + $0x160] ss:$8 sps:$4 sm:$0xff]   ;;  %5692 = vmatprep.subr.bf16.mxu0 %v19459_v59 }
 0x3e4   : > { %v4176_v59 = vld [vmem:[#allocation4 + $0x68] sm:$0xff] }
 0x3e5   : > { %5693 = vmatpush1.bf16.msra.mxu0 %v19457_v60  ;;  %v2682_v60 = vld [vmem:[#allocation4 + $0x20] sm:$0xff] }
 0x3e6   : > { %4102 = vmatpush1.bf16.msra.mxu1 %v19249_v0  ;;  %v19463_v0 = vld [vmem:[%s27343_s4 + $0x170] ss:$8 sps:$4 sm:$0xff]   ;;  %5694 = vmatprep.subr.bf16.mxu0 %v19465_v63  ;;  %v19348_v63 = vld [vmem:[%s27346_s7 + $0x1814] ss:$8 sps:$4 sm:$0xff]  }
 0x3e7   : > { %4103 = vmatprep.subr.bf16.mxu1 %v19254_v1  ;;  %v19288_v1 = vld [vmem:[%s27346_s7 + $0x1430] ss:$8 sps:$4 sm:$0xff]  }
 0x3e9   : > { %5695 = vmatpush1.bf16.msra.mxu0 %v19463_v0  ;;  %v20571_v0 = vld [vmem:[#allocation4 + $0x38] sm:$0xff] }
 0x3ea   : > { %4104 = vmatpush1.bf16.msra.mxu1 %v19252_v8  ;;  %v19469_v8 = vld [vmem:[%s27343_s4 + $0x180] ss:$8 sps:$4 sm:$0xff]   ;;  %5696 = vmatprep.subr.bf16.mxu0 %v19471_v6  ;;  %v19354_v6 = vld [vmem:[%s27346_s7 + $0x1824] ss:$8 sps:$4 sm:$0xff]  }
 0x3eb   : > { %4105 = vmatprep.subr.bf16.mxu1 %v19257_v9  ;;  %v19291_v9 = vld [vmem:[%s27346_s7 + $0x1440] ss:$8 sps:$4 sm:$0xff]  }
 0x3ed   : > { %5697 = vmatpush1.bf16.msra.mxu0 %v19469_v8  ;;  %v19352_v8 = vld [vmem:[%s27346_s7 + $0x1820] ss:$8 sps:$4 sm:$0xff]  }
 0x3ee   : > { %4106 = vmatpush1.bf16.msra.mxu1 %v19255_v13  ;;  %v19294_v13 = vld [vmem:[%s27346_s7 + $0x1450] ss:$8 sps:$4 sm:$0xff]   ;;  %5698 = vmatprep.subr.bf16.mxu0 %v19477_v11  ;;  %v19366_v11 = vld [vmem:[%s27346_s7 + $0x1844] ss:$8 sps:$4 sm:$0xff]  }
 0x3ef   : > { %4107 = vmatprep.subr.bf16.mxu1 %v19260_v14  ;;  %v19299_v14 = vld [vmem:[%s27346_s7 + $0x1464] ss:$8 sps:$4 sm:$0xff]  }
 0x3f1   : > { %5699 = vmatpush1.bf16.msra.mxu0 %v19475_v12  ;;  %v19364_v12 = vld [vmem:[%s27346_s7 + $0x1840] ss:$8 sps:$4 sm:$0xff]  }
 0x3f2   : > { %4108 = vmatpush1.bf16.msra.mxu1 %v19258_v18  ;;  %v19486_v18 = vld [vmem:[%s27343_s4 + $0x1a4] ss:$8 sps:$4 sm:$0xff]  }
 0x3f3   : > { %4109 = vmatprep.subr.bf16.mxu1 %v19263_v19  ;;  %v19484_v19 = vld [vmem:[%s27343_s4 + $0x1a0] ss:$8 sps:$4 sm:$0xff]   ;;  %5700 = vmatprep.subr.bf16.mxu0 %v19486_v18  ;;  %v19385_v18 = vld [vmem:[%s27346_s7 + $0x1874] ss:$8 sps:$4 sm:$0xff]  }
 0x3f5   : > { %5701 = vmatpush1.bf16.msra.mxu0 %v19484_v19  ;;  %v19383_v19 = vld [vmem:[%s27346_s7 + $0x1870] ss:$8 sps:$4 sm:$0xff]  }
 0x3f6   : > { %4110 = vmatpush1.bf16.msra.mxu1 %v19261_v23  ;;  %v19490_v23 = vld [vmem:[%s27343_s4 + $0x1b0] ss:$8 sps:$4 sm:$0xff]   ;;  %5702 = vmatprep.subr.bf16.mxu0 %v19492_v22  ;;  %v19398_v22 = vld [vmem:[%s27346_s7 + $0x1894] ss:$8 sps:$4 sm:$0xff]  }
 0x3f7   : > { %4111 = vmatprep.subr.bf16.mxu1 %v19266_v26  ;;  %v19300_v26 = vld [vmem:[%s27346_s7 + $0x1470] ss:$8 sps:$4 sm:$0xff]  }
 0x3f9   : > { %5703 = vmatpush1.bf16.msra.mxu0 %v19490_v23  ;;  %v19568_v23 = vld [vmem:[%s21219_s24 + $0x4c] ss:$16 sps:$4 sm:$0xff]  }
 0x3fa   : > { %4112 = vmatpush1.bf16.msra.mxu1 %v19264_v28  ;;  %v19498_v28 = vld [vmem:[%s21219_s24 + $0x40] ss:$16 sps:$4 sm:$0xff]  }
 0x3fb   : > { %4113 = vmatprep.subr.bf16.mxu1 %v19269_v29  ;;  %v19501_v29 = vld [vmem:[%s27343_s4 + $0x1c4] ss:$8 sps:$4 sm:$0xff]   ;;  %5660 = vmatmul.mubr.bf16.gmra.mrb[12].mxu0 %v19498_v28  ;;  %v19402_v28 = vld [vmem:[%s27346_s7 + $0x18a0] ss:$8 sps:$4 sm:$0xff]  }
 0x3fc   : > { %5704 = vmatprep.subr.bf16.mxu0 %v19501_v29  ;;  %5669 = vmatprep.mubr.bf16.mxu0 %v19511_v37  ;;  %v19411_v29 = vld [vmem:[%s27346_s7 + $0x18b4] ss:$8 sps:$4 sm:$0xff]   ;;  %v19432_v37 = vld [vmem:[%s27346_s7 + $0x18e4] ss:$8 sps:$4 sm:$0xff]  }
 0x3fd   : > { %5705 = vmatpush1.bf16.msra.mxu0 %v19499_v30  ;;  %v19577_v30 = vld [vmem:[%s21219_s24 + $0x6c] ss:$16 sps:$4 sm:$0xff]  }
 0x3fe   : > { %4114 = vmatpush1.bf16.msra.mxu1 %v19267_v34  ;;  %v19505_v34 = vld [vmem:[%s27343_s4 + $0x1d0] ss:$8 sps:$4 sm:$0xff]   ;;  %5706 = vmatprep.subr.bf16.mxu0 %v19507_v33  ;;  %v19417_v33 = vld [vmem:[%s27346_s7 + $0x18c4] ss:$8 sps:$4 sm:$0xff]  }
 0x3ff   : > { %4115 = vmatprep.subr.bf16.mxu1 %v19272_v35  ;;  %v19306_v35 = vld [vmem:[%s27346_s7 + $0x1490] ss:$8 sps:$4 sm:$0xff]  }
 0x401   : > { %5707 = vmatpush1.bf16.msra.mxu0 %v19505_v34  ;;  %v19415_v34 = vld [vmem:[%s27346_s7 + $0x18c0] ss:$8 sps:$4 sm:$0xff]  }
 0x402   : > { %4116 = vmatpush1.bf16.msra.mxu1 %v19270_v39  ;;  %v19513_v39 = vld [vmem:[%s21219_s24 + $0x60] ss:$16 sps:$4 sm:$0xff]  }
 0x403   : > { %4117 = vmatprep.subr.bf16.mxu1 %v19275_v40  ;;  %v19516_v40 = vld [vmem:[%s27343_s4 + $0x1e4] ss:$8 sps:$4 sm:$0xff]   ;;  %5670 = vmatmul.mubr.bf16.gmra.mrb[16].mxu0 %v19513_v39  ;;  %v19430_v39 = vld [vmem:[%s27346_s7 + $0x18e0] ss:$8 sps:$4 sm:$0xff]  }
 0x404   : > { %5708 = vmatprep.subr.bf16.mxu0 %v19516_v40  ;;  %v19438_v40 = vld [vmem:[%s27346_s7 + $0x18f4] ss:$8 sps:$4 sm:$0xff]  }
 0x405   : > { %5709 = vmatpush1.bf16.msra.mxu0 %v19514_v42  ;;  %v19436_v42 = vld [vmem:[%s27346_s7 + $0x18f0] ss:$8 sps:$4 sm:$0xff]  }
 0x406   : > { %4118 = vmatpush1.bf16.msra.mxu1 %v19273_v41  ;;  %v19314_v41 = vld [vmem:[%s27346_s7 + $0x14b4] ss:$8 sps:$4 sm:$0xff]  }
 0x407   : > { %4119 = vmatprep.subr.bf16.mxu1 %v19278_v49  ;;  %v19522_v49 = vld [vmem:[%s27343_s4 + $0x1f4] ss:$8 sps:$4 sm:$0xff]  }
 0x408   : > { %5710 = vmatprep.subr.bf16.mxu0 %v19522_v49  ;;  %v4178_v49 = vld [vmem:[#allocation4 + $0x78] sm:$0xff] }
 0x409   : > { %5711 = vmatpush1.bf16.msra.mxu0 %v19520_v44  ;;  %v19442_v44 = vld [vmem:[%s27346_s7 + $0x1900] ss:$8 sps:$4 sm:$0xff]  }
 0x40a   : > { %4120 = vmatpush1.bf16.msra.mxu1 %v19276_v46  ;;  %v19317_v46 = vld [vmem:[%s27346_s7 + $0x14c4] ss:$8 sps:$4 sm:$0xff]  }
 0x40b   : > { %4132 = vmatprep.subr.bf16.mxu1 %v19281_v47  ;;  %v19528_v47 = vld [vmem:[%s21219_s24 + $0xc] ss:$16 sps:$4 sm:$0xff]  }
 0x40c   : > { %5712 = vmatprep.mubr.bf16.mxu0 %v19528_v47  ;;  %v19450_v47 = vld [vmem:[%s27346_s7 + $0x1914] ss:$8 sps:$4 sm:$0xff]  }
 0x40d   : > { %4122 = vmatmul.mubr.bf16.vlgmr.msra.gmra.mrb[0].mxu1 %v2692_v50  ;;  %5713 = vmatmul.mubr.bf16.vlgmr.msra.gmra.mrb[4].mxu0 %v19526_v48  ;;  %v19535_v50 = vld [vmem:[%s21219_s24 + $0x2c] ss:$16 sps:$4 sm:$0xff]  }
 0x40e   : > { %4133 = vmatpush1.bf16.msra.mxu1 %v19279_v55  ;;  %4164 = vmatprep.mubr.bf16.mxu1 %v2695_v56  ;;  %v19330_v55 = vld [vmem:[%s27346_s7 + $0x14e4] ss:$8 sps:$4 sm:$0xff]   ;;  %v19328_v56 = vld [vmem:[%s27346_s7 + $0x14e0] ss:$8 sps:$4 sm:$0xff]  }
 0x40f   : > { %4134 = vmatprep.subr.bf16.mxu1 %v19284_v27  ;;  %v19537_v27 = vld [vmem:[%s21219_s24 + $0x28] ss:$16 sps:$4 sm:$0xff]   ;;  %5722 = vmatprep.mubr.bf16.mxu0 %v19535_v50  ;;  %v19462_v50 = vld [vmem:[%s27346_s7 + $0x1934] ss:$8 sps:$4 sm:$0xff]  }
 0x410   : > { %v20573_v48 = vld [vmem:[#allocation4 + $0x48] sm:$0xff] }
 0x412   : > { %4135 = vmatpush1.bf16.msra.mxu1 %v19282_v38  ;;  %v19342_v38 = vld [vmem:[%s27346_s7 + $0x1804] ss:$8 sps:$4 sm:$0xff]  }
 0x413   : > { %4136 = vmatprep.subr.bf16.mxu1 %v19287_v51  ;;  %v2688_v51 = vld [vmem:[#allocation4 + $0x50] sm:$0xff] }
 0x415   : > { %5723 = vmatmul.mubr.bf16.gmra.mrb[8].mxu0 %v19537_v27  ;;  %v19460_v27 = vld [vmem:[%s27346_s7 + $0x1930] ss:$8 sps:$4 sm:$0xff]  }
 0x416   : > { %4137 = vmatpush1.bf16.msra.mxu1 %v19285_v61  ;;  %v19340_v61 = vld [vmem:[%s27346_s7 + $0x1800] ss:$8 sps:$4 sm:$0xff]   ;;  %5732 = vmatprep.mubr.bf16.mxu0 %v19568_v23 }
 0x417   : > { %4138 = vmatprep.subr.bf16.mxu1 %v19290_v62  ;;  %v2694_v62 = vpack.c.bf16 %v2688_v51, %v2682_v60  ;;  %v19480_v51 = vld [vmem:[%s27346_s7 + $0x1964] ss:$8 sps:$4 sm:$0xff]   ;;  %v19489_v60 = vld [vmem:[%s27346_s7 + $0x1974] ss:$8 sps:$4 sm:$0xff]  }
 0x418   : > { %v20574_v23 = vld [vmem:[#allocation4 + $0x40] sm:$0xff] }
 0x41a   : > { %4139 = vmatpush1.bf16.msra.mxu1 %v19288_v1  ;;  %v4182_v1 = vpack.c.bf16 %v4176_v59, %v20571_v0  ;;  %v19478_v59 = vld [vmem:[%s27346_s7 + $0x1960] ss:$8 sps:$4 sm:$0xff]   ;;  %v19504_v0 = vld [vmem:[%s27346_s7 + $0x1994] ss:$8 sps:$4 sm:$0xff]  }
 0x41b   : > { %4140 = vmatprep.subr.bf16.mxu1 %v19293_v2  ;;  %v19346_v2 = vld [vmem:[%s27346_s7 + $0x1810] ss:$8 sps:$4 sm:$0xff]  }
 0x41e   : > { %4141 = vmatpush1.bf16.msra.mxu1 %v19291_v9  ;;  %v19360_v9 = vld [vmem:[%s27346_s7 + $0x1834] ss:$8 sps:$4 sm:$0xff]  }
 0x41f   : > { %4142 = vmatprep.subr.bf16.mxu1 %v19296_v10  ;;  %v19358_v10 = vld [vmem:[%s27346_s7 + $0x1830] ss:$8 sps:$4 sm:$0xff]  }
 0x422   : > { %4143 = vmatpush1.bf16.msra.mxu1 %v19294_v13  ;;  %v19372_v13 = vld [vmem:[%s27346_s7 + $0x1854] ss:$8 sps:$4 sm:$0xff]  }
 0x423   : > { %4144 = vmatprep.subr.bf16.mxu1 %v19299_v14  ;;  %v19370_v14 = vld [vmem:[%s27346_s7 + $0x1850] ss:$8 sps:$4 sm:$0xff]  }
 0x426   : > { %4145 = vmatpush1.bf16.msra.mxu1 %v19297_v20  ;;  %v19391_v20 = vld [vmem:[%s27346_s7 + $0x1884] ss:$8 sps:$4 sm:$0xff]  }
 0x427   : > { %4146 = vmatprep.subr.bf16.mxu1 %v19302_v21  ;;  %v19389_v21 = vld [vmem:[%s27346_s7 + $0x1880] ss:$8 sps:$4 sm:$0xff]  }
 0x42a   : > { %4147 = vmatpush1.bf16.msra.mxu1 %v19300_v26  ;;  %v19396_v26 = vld [vmem:[%s27346_s7 + $0x1890] ss:$8 sps:$4 sm:$0xff]  }
 0x42b   : > { %4148 = vmatprep.subr.bf16.mxu1 %v19305_v24  ;;  %v19570_v24 = vld [vmem:[%s21219_s24 + $0x48] ss:$16 sps:$4 sm:$0xff]  }
 0x42c   : > { %5733 = vmatmul.mubr.bf16.gmra.mrb[12].mxu0 %v19570_v24  ;;  %v19546_v24 = vld [vmem:[%s27346_s7 + $0x1a14] ss:$8 sps:$4 sm:$0xff]  }
 0x42d   : > { %5742 = vmatprep.mubr.bf16.mxu0 %v19577_v30  ;;  %v19549_v30 = vld [vmem:[%s27346_s7 + $0x1a24] ss:$8 sps:$4 sm:$0xff]  }
 0x42e   : > { %4149 = vmatpush1.bf16.msra.mxu1 %v19303_v31  ;;  %v19409_v31 = vld [vmem:[%s27346_s7 + $0x18b0] ss:$8 sps:$4 sm:$0xff]  }
 0x42f   : > { %4150 = vmatprep.subr.bf16.mxu1 %v19308_v32  ;;  %v19579_v32 = vld [vmem:[%s21219_s24 + $0x68] ss:$16 sps:$4 sm:$0xff]   ;;  %s17712_s24 = sshll.u32 %s20841_s27, 3 }
 0x430   : > { %s567_s17 = scalar_lea.vmem %s27354_s15, %s17712_s24  ;;  %s24754_s24 = sand.u32 1, %s20671_s19  }
 0x431   : > { %s15596_s30 = sshll.u32 %s24754_s24, 7  ;;  %s15595_s12 = sshll.u32 %s24754_s24, 9 }
 0x432   : > { %4151 = vmatpush1.bf16.msra.mxu1 %v19306_v35  ;;  %v19426_v35 = vld [vmem:[%s27346_s7 + $0x18d4] ss:$8 sps:$4 sm:$0xff]   ;;  %s24783_s21 = scalar_lea.vmem [#allocation7], %s15596_s30  ;;  %s27071_s23 = scalar_lea.vmem [#allocation5], %s15595_s12 }
 0x433   : > { %4152 = vmatprep.subr.bf16.mxu1 %v19311_v36  ;;  %v19424_v36 = vld [vmem:[%s27346_s7 + $0x18d0] ss:$8 sps:$4 sm:$0xff]   ;;  %s15417_s30 = sshll.u32 %s24783_s21, 4  ;;  %s27069_s30 = int_to_ptr.vmem [resolvable:$true] %s15417_s30 }
 0x434   : > { %5743 = vmatmul.mubr.bf16.gmra.mrb[16].mxu0 %v19579_v32  ;;  %v19552_v32 = vld [vmem:[%s27346_s7 + $0x1a34] ss:$8 sps:$4 sm:$0xff]   ;;  %s20585_s27 = scalar_lea.vmem %s27069_s30, 2048  ;;  %p20592_p0 = scmp.lt.s32.totalorder %s27069_s30, %s20590_s18 }
 0x435   : > { %8949 = vmatprep.mubr.bf16.mxu0 %v27363_v16  ;;  %p20586_p11 = scmp.ne.s32.totalorder %s27069_s30, %s20585_s27  ;;  %p20593_p1 = scmp.lt.s32.totalorder %s20591_s25, %s20585_s27 }
 0x436   : > { %4153 = vmatpush1.bf16.msra.mxu1 %v19309_v43  ;;  %v19444_v43 = vld [vmem:[%s27346_s7 + $0x1904] ss:$8 sps:$4 sm:$0xff]  }
 0x437   : > { %4154 = vmatprep.subr.bf16.mxu1 %v19314_v41  ;;  %v4175_v41 = vld [vmem:[#allocation4 + $0x60] sm:$0xff]  ;;  %p20587_p12 = pnand %p20586_p11, %p20805_p5  ;;  %p20594_p2 = por %p20593_p1, %p20592_p0 }
 0x439   : > { %p20588_p13 = pneg %p20587_p12 }
 0x43a   : > { %4155 = vmatpush1.bf16.msra.mxu1 %v19312_v45  ;;  %v20572_v45 = vld [vmem:[#allocation4 + $0x30] sm:$0xff] }
 0x43b   : > { %4156 = vmatprep.subr.bf16.mxu1 %v19317_v46  ;;  %v4181_v46 = vpack.c.bf16 %v4175_v41, %v20572_v45  ;;  %v19567_v41 = vld [vmem:[%s27346_s7 + $0x1a84] ss:$8 sps:$4 sm:$0xff]   ;;  %v19571_v45 = vld [vmem:[%s27346_s7 + $0x1a90] ss:$8 sps:$4 sm:$0xff]   ;;  %p20595_p3 = pnand %p20594_p2, %p20588_p13 }
 0x43e   : > { %4157 = vmatpush1.bf16.msra.mxu1 %v19315_v52  ;;  %v4184_v52 = vpack.c.bf16 %v4178_v49, %v20573_v48  ;;  %v19565_v49 = vld [vmem:[%s27346_s7 + $0x1a80] ss:$8 sps:$4 sm:$0xff]   ;;  %v19582_v48 = vld [vmem:[%s27346_s7 + $0x1ab4] ss:$8 sps:$4 sm:$0xff]  }
 0x43f   : > { %4158 = vmatprep.subr.bf16.mxu1 %v19324_v53  ;;  %v19448_v53 = vld [vmem:[%s27346_s7 + $0x1910] ss:$8 sps:$4 sm:$0xff]  }
 0x442   : > { %4159 = vmatpush1.bf16.msra.mxu1 %v19322_v54  ;;  %v19456_v54 = vld [vmem:[%s27346_s7 + $0x1924] ss:$8 sps:$4 sm:$0xff]  }
 0x443   : > { %4160 = vmatprep.subr.bf16.mxu1 %v19330_v55  ;;  %v19454_v55 = vld [vmem:[%s27346_s7 + $0x1920] ss:$8 sps:$4 sm:$0xff]  }
 0x446   : > { %4161 = vmatpush1.bf16.msra.mxu1 %v19328_v56  ;;  %v19468_v56 = vld [vmem:[%s27346_s7 + $0x1944] ss:$8 sps:$4 sm:$0xff]  }
 0x447   : > { %4162 = vmatprep.subr.bf16.mxu1 %v19336_v57  ;;  %v19466_v57 = vld [vmem:[%s27346_s7 + $0x1940] ss:$8 sps:$4 sm:$0xff]  }
 0x44a   : > { %4163 = vmatpush1.bf16.msra.mxu1 %v19334_v58  ;;  %v19474_v58 = vld [vmem:[%s27346_s7 + $0x1954] ss:$8 sps:$4 sm:$0xff]  }
 0x44b   : > { %4764 = vmatprep.subr.bf16.mxu1 %v19342_v38  ;;  %v19472_v38 = vld [vmem:[%s27346_s7 + $0x1950] ss:$8 sps:$4 sm:$0xff]  }
 0x44d   : > { %4165 = vmatmul.mubr.bf16.vlgmr.msra.gmra.mrb[0].mxu1 %v2694_v62  ;;  %v19495_v62 = vld [vmem:[%s27346_s7 + $0x1984] ss:$8 sps:$4 sm:$0xff]  }
 0x44e   : > { %4765 = vmatpush1.bf16.msra.mxu1 %v19340_v61  ;;  %4796 = vmatprep.mubr.bf16.mxu1 %v4182_v1  ;;  %v19487_v61 = vld [vmem:[%s27346_s7 + $0x1970] ss:$8 sps:$4 sm:$0xff]  }
 0x44f   : > { %4766 = vmatprep.subr.bf16.mxu1 %v19348_v63  ;;  %v19493_v63 = vld [vmem:[%s27346_s7 + $0x1980] ss:$8 sps:$4 sm:$0xff]   ;;  %v19502_v1 = vld [vmem:[%s27346_s7 + $0x1990] ss:$8 sps:$4 sm:$0xff]  }
 0x452   : > { %4767 = vmatpush1.bf16.msra.mxu1 %v19346_v2  ;;  %v19510_v2 = vld [vmem:[%s27346_s7 + $0x19a4] ss:$8 sps:$4 sm:$0xff]  }
 0x453   : > { %4768 = vmatprep.subr.bf16.mxu1 %v19354_v6  ;;  %v19508_v6 = vld [vmem:[%s27346_s7 + $0x19a0] ss:$8 sps:$4 sm:$0xff]  }
 0x456   : > { %4769 = vmatpush1.bf16.msra.mxu1 %v19352_v8  ;;  %v19519_v8 = vld [vmem:[%s27346_s7 + $0x19b4] ss:$8 sps:$4 sm:$0xff]  }
 0x457   : > { %4770 = vmatprep.subr.bf16.mxu1 %v19360_v9  ;;  %v19517_v9 = vld [vmem:[%s27346_s7 + $0x19b0] ss:$8 sps:$4 sm:$0xff]  }
 0x45a   : > { %4771 = vmatpush1.bf16.msra.mxu1 %v19358_v10  ;;  %v19525_v10 = vld [vmem:[%s27346_s7 + $0x19c4] ss:$8 sps:$4 sm:$0xff]  }
 0x45b   : > { %4772 = vmatprep.subr.bf16.mxu1 %v19366_v11  ;;  %v19523_v11 = vld [vmem:[%s27346_s7 + $0x19c0] ss:$8 sps:$4 sm:$0xff]  }
 0x45e   : > { %4773 = vmatpush1.bf16.msra.mxu1 %v19364_v12  ;;  %v19531_v12 = vld [vmem:[%s27346_s7 + $0x19d4] ss:$8 sps:$4 sm:$0xff]  }
 0x45f   : > { %4774 = vmatprep.subr.bf16.mxu1 %v19372_v13  ;;  %v19529_v13 = vld [vmem:[%s27346_s7 + $0x19d0] ss:$8 sps:$4 sm:$0xff]  }
 0x462   : > { %4775 = vmatpush1.bf16.msra.mxu1 %v19370_v14  ;;  %v19534_v14 = vld [vmem:[%s27346_s7 + $0x19e4] ss:$8 sps:$4 sm:$0xff]  }
 0x463   : > { %4776 = vmatprep.subr.bf16.mxu1 %v19378_v15  ;;  %v19532_v15 = vld [vmem:[%s27346_s7 + $0x19e0] ss:$8 sps:$4 sm:$0xff]  }
 0x466   : > { %4777 = vmatpush1.bf16.msra.mxu1 %v19376_v17  ;;  %v19540_v17 = vld [vmem:[%s27346_s7 + $0x19f4] ss:$8 sps:$4 sm:$0xff]  }
 0x467   : > { %4778 = vmatprep.subr.bf16.mxu1 %v19385_v18  ;;  %v19538_v18 = vld [vmem:[%s27346_s7 + $0x19f0] ss:$8 sps:$4 sm:$0xff]  }
 0x46a   : > { %4779 = vmatpush1.bf16.msra.mxu1 %v19383_v19  ;;  %v19543_v19 = vld [vmem:[%s27346_s7 + $0x1a04] ss:$8 sps:$4 sm:$0xff]  }
 0x46b   : > { %4780 = vmatprep.subr.bf16.mxu1 %v19391_v20  ;;  %v4177_v20 = vld [vmem:[#allocation4 + $0x70] sm:$0xff] }
 0x46e   : > { %4781 = vmatpush1.bf16.msra.mxu1 %v19389_v21  ;;  %v4180_v21 = vld [vmem:[#allocation4 + $0x88] sm:$0xff] }
 0x46f   : > { %4782 = vmatprep.subr.bf16.mxu1 %v19398_v22  ;;  %v19541_v22 = vld [vmem:[%s27346_s7 + $0x1a00] ss:$8 sps:$4 sm:$0xff]  }
 0x472   : > { %4783 = vmatpush1.bf16.msra.mxu1 %v19396_v26  ;;  %v4183_v26 = vpack.c.bf16 %v4177_v20, %v20574_v23 }
 0x473   : > { %4784 = vmatprep.subr.bf16.mxu1 %v19404_v25  ;;  %v20575_v25 = vld [vmem:[#allocation4 + $0x58] sm:$0xff] }
 0x476   : > { %4785 = vmatpush1.bf16.msra.mxu1 %v19402_v28  ;;  %v4186_v28 = vpack.c.bf16 %v4180_v21, %v20575_v25 }
 0x477   : > { %4786 = vmatprep.subr.bf16.mxu1 %v19411_v29  ;;  %v19544_v29 = vld [vmem:[%s27346_s7 + $0x1a10] ss:$8 sps:$4 sm:$0xff]  }
 0x47a   : > { %4787 = vmatpush1.bf16.msra.mxu1 %v19409_v31  ;;  %v19547_v31 = vld [vmem:[%s27346_s7 + $0x1a20] ss:$8 sps:$4 sm:$0xff]  }
 0x47b   : > { %4788 = vmatprep.subr.bf16.mxu1 %v19417_v33  ;;  %v19550_v33 = vld [vmem:[%s27346_s7 + $0x1a30] ss:$8 sps:$4 sm:$0xff]  }
 0x47e   : > { %4789 = vmatpush1.bf16.msra.mxu1 %v19415_v34  ;;  %v19555_v34 = vld [vmem:[%s27346_s7 + $0x1a44] ss:$8 sps:$4 sm:$0xff]  }
 0x47f   : > { %4790 = vmatprep.subr.bf16.mxu1 %v19426_v35  ;;  %v19553_v35 = vld [vmem:[%s27346_s7 + $0x1a40] ss:$8 sps:$4 sm:$0xff]  }
 0x482   : > { %4791 = vmatpush1.bf16.msra.mxu1 %v19424_v36  ;;  %v19558_v36 = vld [vmem:[%s27346_s7 + $0x1a54] ss:$8 sps:$4 sm:$0xff]  }
 0x483   : > { %4792 = vmatprep.subr.bf16.mxu1 %v19432_v37  ;;  %v19556_v37 = vld [vmem:[%s27346_s7 + $0x1a50] ss:$8 sps:$4 sm:$0xff]  }
 0x486   : > { %4793 = vmatpush1.bf16.msra.mxu1 %v19430_v39  ;;  %v19561_v39 = vld [vmem:[%s27346_s7 + $0x1a64] ss:$8 sps:$4 sm:$0xff]  }
 0x487   : > { %4794 = vmatprep.subr.bf16.mxu1 %v19438_v40  ;;  %v19559_v40 = vld [vmem:[%s27346_s7 + $0x1a60] ss:$8 sps:$4 sm:$0xff]  }
 0x48a   : > { %4795 = vmatpush1.bf16.msra.mxu1 %v19436_v42  ;;  %v19564_v42 = vld [vmem:[%s27346_s7 + $0x1a74] ss:$8 sps:$4 sm:$0xff]  }
 0x48b   : > { %4807 = vmatprep.subr.bf16.mxu1 %v19444_v43  ;;  %v19562_v43 = vld [vmem:[%s27346_s7 + $0x1a70] ss:$8 sps:$4 sm:$0xff]  }
 0x48d   : > { %4797 = vmatmul.mubr.bf16.vlgmr.msra.gmra.mrb[0].mxu1 %v4181_v46  ;;  %v19576_v46 = vld [vmem:[%s27346_s7 + $0x1aa4] ss:$8 sps:$4 sm:$0xff]  }
 0x48e   : > { %4808 = vmatpush1.bf16.msra.mxu1 %v19442_v44  ;;  %4839 = vmatprep.mubr.bf16.mxu1 %v4184_v52  ;;  %v19573_v44 = vld [vmem:[%s27346_s7 + $0x1a94] ss:$8 sps:$4 sm:$0xff]   ;;  %v19580_v52 = vld [vmem:[%s27346_s7 + $0x1ab0] ss:$8 sps:$4 sm:$0xff]  }
 0x48f   : > { %4809 = vmatprep.subr.bf16.mxu1 %v19450_v47  ;;  %v19574_v47 = vld [vmem:[%s27346_s7 + $0x1aa0] ss:$8 sps:$4 sm:$0xff]  }
 0x492   : > { %4810 = vmatpush1.bf16.msra.mxu1 %v19448_v53  ;;  %v19585_v53 = vld [vmem:[%s27346_s7 + $0x1ac4] ss:$8 sps:$4 sm:$0xff]  }
 0x493   : > { %4811 = vmatprep.subr.bf16.mxu1 %v19456_v54  ;;  %v19583_v54 = vld [vmem:[%s27346_s7 + $0x1ac0] ss:$8 sps:$4 sm:$0xff]  }
 0x496   : > { %4812 = vmatpush1.bf16.msra.mxu1 %v19454_v55  ;;  %v19588_v55 = vld [vmem:[%s27346_s7 + $0x1ad4] ss:$8 sps:$4 sm:$0xff]  }
 0x497   : > { %4813 = vmatprep.subr.bf16.mxu1 %v19462_v50  ;;  %v19586_v50 = vld [vmem:[%s27346_s7 + $0x1ad0] ss:$8 sps:$4 sm:$0xff]  }
 0x49a   : > { %4814 = vmatpush1.bf16.msra.mxu1 %v19460_v27  ;;  %v19591_v27 = vld [vmem:[%s27346_s7 + $0x1ae4] ss:$8 sps:$4 sm:$0xff]  }
 0x49b   : > { %4815 = vmatprep.subr.bf16.mxu1 %v19468_v56  ;;  %v19589_v56 = vld [vmem:[%s27346_s7 + $0x1ae0] ss:$8 sps:$4 sm:$0xff]  }
 0x49e   : > { %4816 = vmatpush1.bf16.msra.mxu1 %v19466_v57  ;;  %v19594_v57 = vld [vmem:[%s27346_s7 + $0x1af4] ss:$8 sps:$4 sm:$0xff]  }
 0x49f   : > { %4817 = vmatprep.subr.bf16.mxu1 %v19474_v58  ;;  %v19592_v58 = vld [vmem:[%s27346_s7 + $0x1af0] ss:$8 sps:$4 sm:$0xff]  }
 0x4a2   : > { %4818 = vmatpush1.bf16.msra.mxu1 %v19472_v38  ;;  %v4179_v38 = vld [vmem:[#allocation4 + $0x80] sm:$0xff] }
 0x4a3   : > { %4819 = vmatprep.subr.bf16.mxu1 %v19480_v51  ;;  %v16466_v51 = vld [vmem:[%s27345_s6 + $0x2] sm:$0x3] }
 0x4a6   : > { %4820 = vmatpush1.bf16.msra.mxu1 %v19478_v59  ;;  %v20576_v59 = vld [vmem:[#allocation4 + $0x50] sm:$0xff] }
 0x4a7   : > { %4821 = vmatprep.subr.bf16.mxu1 %v19489_v60  ;;  %v4185_v60 = vpack.c.bf16 %v4179_v38, %v20576_v59 }
 0x4aa   : > { %4822 = vmatpush1.bf16.msra.mxu1 %v19487_v61  ;;  %v5803_v61 = vand.u32 7, %v21779_v3 }
 0x4ab   : > { %4823 = vmatprep.subr.bf16.mxu1 %v19495_v62  ;;  %v22874_v62 = vrot.slane %v16466_v51, %v21782_v4 }
 0x4ac   : > { %vm22886_vm9 = vcmp.eq.s32.totalorder %v5803_v61, 7  ;;  %vm22891_vm10 = vcmp.eq.s32.totalorder %v5803_v61, 0 }
 0x4ae   : > { %4824 = vmatpush1.bf16.msra.mxu1 %v19493_v63  ;;  %v22877_v63 = vrot.slane %v16466_v51, %v21791_v7 }
 0x4af   : > { %4825 = vmatprep.subr.bf16.mxu1 %v19504_v0  ;;  %v5810_v0 = vand.u32 7, %v21785_v5 }
 0x4b1   : > { %vm22896_vm12 = vcmp.eq.s32.totalorder %v5810_v0, 7  ;;  %vm22900_vm13 = vcmp.eq.s32.totalorder %v5810_v0, 0 }
 0x4b2   : > { %4826 = vmatpush1.bf16.msra.mxu1 %v19502_v1  ;;  %v22881_v1 = vadd.s32 16, %v21779_v3 }
 0x4b3   : > { %4827 = vmatprep.subr.bf16.mxu1 %v19510_v2  ;;  %v22884_v2 = vadd.s32 24, %v21779_v3 }
 0x4b4   : > { %27429 = vst [vmem:[#allocation20_spill] sm:$0xff] %v22881_v1 }
 0x4b5   : > { %27430 = vst [vmem:[#allocation21_spill] sm:$0xff] %v22884_v2  ;;  %v5824_v23 = vand.u32 7, %v22884_v2 }
 0x4b6   : > { %4828 = vmatpush1.bf16.msra.mxu1 %v19508_v6  ;;  %v20577_v6 = vld [vmem:[#allocation3] sm:$0xff] }
 0x4b7   : > { %4829 = vmatprep.subr.bf16.mxu1 %v19519_v8  ;;  %vm22959_vm1 = vcmp.eq.s32.totalorder %v5824_v23, 7  ;;  %vm22963_vm2 = vcmp.eq.s32.totalorder %v5824_v23, 0 }
 0x4ba   : > { %4830 = vmatpush1.bf16.msra.mxu1 %v19517_v9 }
 0x4bb   : > { %4831 = vmatprep.subr.bf16.mxu1 %v19525_v10 }
 0x4be   : > { %4832 = vmatpush1.bf16.msra.mxu1 %v19523_v11 }
 0x4bf   : > { %4833 = vmatprep.subr.bf16.mxu1 %v19531_v12 }
 0x4c2   : > { %4834 = vmatpush1.bf16.msra.mxu1 %v19529_v13 }
 0x4c3   : > { %4835 = vmatprep.subr.bf16.mxu1 %v19534_v14 }
 0x4c6   : > { %4836 = vmatpush1.bf16.msra.mxu1 %v19532_v15 }
 0x4c7   : > { %4837 = vmatprep.subr.bf16.mxu1 %v19540_v17 }
 0x4ca   : > { %4838 = vmatpush1.bf16.msra.mxu1 %v19538_v18  ;;  %v5817_v18 = vand.u32 7, %v22881_v1 }
 0x4cb   : > { %4850 = vmatprep.subr.bf16.mxu1 %v19543_v19 }
 0x4cc   : > { %vm22930_vm15 = vcmp.eq.s32.totalorder %v5817_v18, 7  ;;  %vm22934_vm0 = vcmp.eq.s32.totalorder %v5817_v18, 0 }
 0x4cd   : > { %4840 = vmatmul.mubr.bf16.vlgmr.msra.gmra.mrb[0].mxu1 %v4183_v26 }
 0x4ce   : > { %4851 = vmatpush1.bf16.msra.mxu1 %v19541_v22  ;;  %4882 = vmatprep.mubr.bf16.mxu1 %v4186_v28 }
 0x4cf   : > { %4852 = vmatprep.subr.bf16.mxu1 %v19546_v24 }
 0x4d2   : > { %4853 = vmatpush1.bf16.msra.mxu1 %v19544_v29 }
 0x4d3   : > { %4854 = vmatprep.subr.bf16.mxu1 %v19549_v30 }
 0x4d6   : > { %4855 = vmatpush1.bf16.msra.mxu1 %v19547_v31 }
 0x4d7   : > { %4856 = vmatprep.subr.bf16.mxu1 %v19552_v32 }
 0x4da   : > { %4857 = vmatpush1.bf16.msra.mxu1 %v19550_v33 }
 0x4db   : > { %4858 = vmatprep.subr.bf16.mxu1 %v19555_v34 }
 0x4de   : > { %4859 = vmatpush1.bf16.msra.mxu1 %v19553_v35 }
 0x4df   : > { %4860 = vmatprep.subr.bf16.mxu1 %v19558_v36 }
 0x4e0   : > { %v5714_v8 = vpop.f32.mrb[4].mxu0 }
 0x4e1   : > { %v17731_v10 = vadd.f32 %v5714_v8, %v22874_v62  ;;  %v5716_v12 = vpop.f32.mrb[5].mxu0 }
 0x4e2   : > { %4861 = vmatpush1.bf16.msra.mxu1 %v19556_v37  ;;  %v17732_v13 = vadd.f32 %v5716_v12, %v22877_v63  ;;  %v5718_v14 = vpop.f32.mrb[6].mxu0 }
 0x4e3   : > { %4862 = vmatprep.subr.bf16.mxu1 %v19561_v39  ;;  %v5903_v19 = vsel %vm22886_vm9, 0.0, %v17731_v10  ;;  %6002 = vst [vmem:[#allocation3 + $0x40] sm:$0xff] %v17731_v10  ;;  %v6026_v20 = vsel %vm22891_vm10, 0.0, %v17731_v10  ;;  %v22910_v21 = vadd.f32 %v5718_v14, %v22874_v62  ;;  %v5720_v22 = vpop.f32.mrb[7].mxu0 }
 0x4e4   : > { %v5936_v26 = vrot.slane %v5903_v19, 7  ;;  %v6059_v24 = vrot.slane %v6026_v20, 1  ;;  %v5904_v25 = vsel %vm22886_vm9, 0.0, %v17732_v13  ;;  %6003 = vst [vmem:[#allocation3 + $0x48] sm:$0xff] %v17732_v13  ;;  %v6027_v28 = vsel %vm22891_vm10, 0.0, %v17732_v13 }
 0x4e5   : > { %v5937_v29 = vrot.slane %v5904_v25, 7  ;;  %v6060_v30 = vrot.slane %v6027_v28, 1  ;;  %v5905_v31 = vsel %vm22896_vm12, 0.0, %v22910_v21  ;;  %6004 = vst [vmem:[#allocation3 + $0x70] sm:$0xff] %v22910_v21  ;;  %v6028_v32 = vsel %vm22900_vm13, 0.0, %v22910_v21 }
 0x4e6   : > { %4863 = vmatpush1.bf16.msra.mxu1 %v19559_v40  ;;  %5984 = vst [vmem:[#allocation3 + $0x30] sm:$0xfe] %v5936_v26  ;;  %6107 = vst [vmem:[#allocation3 + $0x20] sm:$0x80] %v6059_v24  ;;  %v5938_v33 = vrot.slane %v5905_v31, 7  ;;  %v6061_v34 = vrot.slane %v6028_v32, 1  ;;  %v22925_v35 = vadd.f32 %v5720_v22, %v22877_v63  ;;  %v22928_v36 = vpack.c.bf16 %v22910_v21, %v17731_v10 }
 0x4e7   : > { %4864 = vmatprep.subr.bf16.mxu1 %v19564_v42  ;;  %5985 = vst [vmem:[#allocation3 + $0x38] sm:$0xfe] %v5937_v29  ;;  %6108 = vst [vmem:[#allocation3 + $0x28] sm:$0x80] %v6060_v30 }
 0x4e8   : > { %v22939_v40 = vsel %vm5935_vm11, %v5936_v26, %v5938_v33  ;;  %v6062_v42 = vsel %vm6058_vm14, %v6059_v24, %v6061_v34  ;;  %6005 = vst [vmem:[#allocation3 + $0x78] sm:$0xff] %v22925_v35 }
 0x4e9   : > { %5986 = vst [vmem:[#allocation3 + $0x60] sm:$0xff] %v22939_v40  ;;  %6109 = vst [vmem:[#allocation3 + $0x50] sm:$0xff] %v6062_v42 }
 0x4ea   : > { %4865 = vmatpush1.bf16.msra.mxu1 %v19562_v43  ;;  %v5906_v43 = vsel %vm22896_vm12, 0.0, %v22925_v35 }
 0x4eb   : > { %4866 = vmatprep.subr.bf16.mxu1 %v19567_v41  ;;  %v6029_v41 = vsel %vm22900_vm13, 0.0, %v22925_v35 }
 0x4ee   : > { %4867 = vmatpush1.bf16.msra.mxu1 %v19565_v49  ;;  %v5724_v49 = vpop.f32.mrb[8].mxu0 }
 0x4ef   : > { %4868 = vmatprep.subr.bf16.mxu1 %v19573_v44  ;;  %v5940_v44 = vrot.slane %v5906_v43, 7 }
 0x4f2   : > { %4869 = vmatpush1.bf16.msra.mxu1 %v19571_v45  ;;  %v6063_v45 = vrot.slane %v6029_v41, 1 }
 0x4f3   : > { %4870 = vmatprep.subr.bf16.mxu1 %v19576_v46  ;;  %v22951_v46 = vadd.f32 %v5724_v49, %v22874_v62 }
 0x4f5   : > { %6006 = vst [vmem:[#allocation3 + $0xa0] sm:$0xff] %v22951_v46 }
 0x4f6   : > { %4871 = vmatpush1.bf16.msra.mxu1 %v19574_v47  ;;  %v5726_v47 = vpop.f32.mrb[9].mxu0 }
 0x4f7   : > { %4872 = vmatprep.subr.bf16.mxu1 %v19582_v48  ;;  %v22954_v48 = vpack.c.bf16 %v22925_v35, %v17732_v13 }
 0x4f9   : > { %8917 = vmatprep.subr.bf16.mxu0 %v22954_v48 }
 0x4fa   : > { %4873 = vmatpush1.bf16.msra.mxu1 %v19580_v52  ;;  %v22957_v52 = vadd.f32 %v5726_v47, %v22877_v63  ;;  %8918 = vmatpush1.bf16.msra.mxu0 %v22928_v36  ;;  %v23084_v47 = vadd.s32 40, %v21779_v3 }
 0x4fb   : > { %4874 = vmatprep.subr.bf16.mxu1 %v19585_v53  ;;  %v5728_v53 = vpop.f32.mrb[10].mxu0 }
 0x4fc   : > { %v5908_v59 = vsel %vm22930_vm15, 0.0, %v22957_v52  ;;  %6007 = vst [vmem:[#allocation3 + $0xa8] sm:$0xff] %v22957_v52  ;;  %27448 = vst [vmem:[#allocation23_spill] sm:$0xff] %v23084_v47 }
 0x4fd   : > { %v5944_v61 = vrot.slane %v5908_v59, 7 }
 0x4fe   : > { %4875 = vmatpush1.bf16.msra.mxu1 %v19583_v54 }
 0x4ff   : > { %4876 = vmatprep.subr.bf16.mxu1 %v19588_v55  ;;  %v23003_v11 = vsel %vm5935_vm11, %v5940_v44, %v5944_v61  ;;  %v5838_v55 = vand.u32 7, %v23084_v47 }
 0x500   : > { %5989 = vst [vmem:[#allocation3 + $0x98] sm:$0xff] %v23003_v11 }
 0x501   : > { %vm23106_vm5 = vcmp.eq.s32.totalorder %v5838_v55, 7  ;;  %vm23113_vm6 = vcmp.eq.s32.totalorder %v5838_v55, 0 }
 0x502   : > { %4877 = vmatpush1.bf16.msra.mxu1 %v19586_v50  ;;  %v22968_v50 = vsel %vm5935_vm11, %v5937_v29, %v5940_v44 }
 0x503   : > { %4878 = vmatprep.subr.bf16.mxu1 %v19591_v27  ;;  %v22971_v27 = vsel %vm6058_vm14, %v6060_v30, %v6063_v45  ;;  %5987 = vst [vmem:[#allocation3 + $0x68] sm:$0xff] %v22968_v50 }
 0x504   : > { %6110 = vst [vmem:[#allocation3 + $0x58] sm:$0xff] %v22971_v27 }
 0x506   : > { %4879 = vmatpush1.bf16.msra.mxu1 %v19589_v56  ;;  %v5907_v56 = vsel %vm22930_vm15, 0.0, %v22951_v46 }
 0x507   : > { %4880 = vmatprep.subr.bf16.mxu1 %v19594_v57  ;;  %v6030_v57 = vsel %vm22934_vm0, 0.0, %v22951_v46  ;;  %v5942_v38 = vrot.slane %v5907_v56, 7 }
 0x508   : > { %v6065_v51 = vrot.slane %v6030_v57, 1  ;;  %v23093_v57 = vadd.s32 56, %v21779_v3 }
 0x509   : > { %v22998_v9 = vsel %vm5935_vm11, %v5938_v33, %v5942_v38 }
 0x50a   : > { %4881 = vmatpush1.bf16.msra.mxu1 %v19592_v58  ;;  %v5730_v58 = vpop.f32.mrb[11].mxu0  ;;  %v6066_v10 = vsel %vm6058_vm14, %v6061_v34, %v6065_v51  ;;  %5988 = vst [vmem:[#allocation3 + $0x90] sm:$0xff] %v22998_v9  ;;  %27450 = vst [vmem:[#allocation25_spill] sm:$0xff] %v23093_v57  ;;  %v5852_v55 = vand.u32 7, %v23093_v57 }
 0x50b   : > { %v22995_v8 = vadd.f32 %v5730_v58, %v22877_v63  ;;  %6111 = vst [vmem:[#allocation3 + $0x80] sm:$0xff] %v6066_v10  ;;  %v5734_v58 = vpop.f32.mrb[12].mxu0 }
 0x50c   : > { %v23104_v59 = vadd.f32 %v5734_v58, %v22874_v62  ;;  %vm23183_vm10 = vcmp.eq.s32.totalorder %v5852_v55, 7  ;;  %vm23187_vm12 = vcmp.eq.s32.totalorder %v5852_v55, 0 }
 0x50d   : > { %4883 = vmatmul.mubr.bf16.vlgmr.msra.gmra.mrb[0].mxu1 %v4185_v60  ;;  %v6031_v60 = vsel %vm22934_vm0, 0.0, %v22957_v52  ;;  %6009 = vst [vmem:[#allocation3 + $0xd8] sm:$0xff] %v22995_v8  ;;  %v5910_v18 = vsel %vm22959_vm1, 0.0, %v22995_v8  ;;  %v6033_v19 = vsel %vm22963_vm2, 0.0, %v22995_v8  ;;  %v23034_v23 = vpack.c.bf16 %v22995_v8, %v22957_v52 }
 0x50e   : > { %4987 = vmatprep.mubr.f32.mxu1 %v20577_v6  ;;  %v6067_v0 = vrot.slane %v6031_v60, 1  ;;  %v22992_v6 = vadd.f32 %v5728_v53, %v22874_v62  ;;  %v23028_v20 = vrot.slane %v5910_v18, 7  ;;  %v23030_v22 = vrot.slane %v6033_v19, 1  ;;  %v5736_v60 = vpop.f32.mrb[13].mxu0  ;;  %6010 = vst [vmem:[#allocation3 + $0x100] sm:$0xff] %v23104_v59 }
 0x50f   : > { %8919 = vmatprep.subr.bf16.mxu0 %v23034_v23  ;;  %v23087_v53 = vadd.s32 48, %v21779_v3  ;;  %v5738_v10 = vpop.f32.mrb[14].mxu0 }
 0x510   : > { %v23006_v12 = vsel %vm6058_vm14, %v6063_v45, %v6067_v0  ;;  %v5909_v13 = vsel %vm22959_vm1, 0.0, %v22992_v6  ;;  %6008 = vst [vmem:[#allocation3 + $0xd0] sm:$0xff] %v22992_v6  ;;  %v6032_v14 = vsel %vm22963_vm2, 0.0, %v22992_v6  ;;  %v23038_v26 = vpack.c.bf16 %v22992_v6, %v22951_v46 }
 0x511   : > { %6112 = vst [vmem:[#allocation3 + $0x88] sm:$0xff] %v23006_v12  ;;  %v23018_v15 = vrot.slane %v5909_v13, 7  ;;  %v23020_v17 = vrot.slane %v6032_v14, 1  ;;  %v23049_v28 = vsel %vm5935_vm11, %v5944_v61, %v23028_v20  ;;  %v6072_v29 = vsel %vm6058_vm14, %v6067_v0, %v23030_v22  ;;  %27449 = vst [vmem:[#allocation24_spill] sm:$0xff] %v23087_v53 }
 0x512   : > { %5991 = vst [vmem:[#allocation3 + $0xc8] sm:$0xff] %v23049_v28  ;;  %6114 = vst [vmem:[#allocation3 + $0xb8] sm:$0xff] %v6072_v29  ;;  %8920 = vmatpush1.bf16.msra.mxu0 %v23038_v26  ;;  %v23074_v41 = vld [vmem:[#allocation3 + $0x80] sm:$0xff]  ;;  %v23081_v45 = vadd.s32 32, %v21779_v3  ;;  %v5845_v56 = vand.u32 7, %v23087_v53  ;;  %v23111_v0 = vadd.f32 %v5736_v60, %v22877_v63  ;;  %v23133_v29 = vadd.f32 %v5738_v10, %v22874_v62 }
 0x513   : > { %v23042_v24 = vsel %vm5935_vm11, %v5942_v38, %v23018_v15  ;;  %v6070_v25 = vsel %vm6058_vm14, %v6065_v51, %v23020_v17 }
 0x514   : > { %5990 = vst [vmem:[#allocation3 + $0xc0] sm:$0xff] %v23042_v24  ;;  %6113 = vst [vmem:[#allocation3 + $0xb0] sm:$0xff] %v6070_v25  ;;  %v5831_v54 = vand.u32 7, %v23081_v45  ;;  %vm23117_vm7 = vcmp.eq.s32.totalorder %v5845_v56, 7  ;;  %vm23121_vm9 = vcmp.eq.s32.totalorder %v5845_v56, 0  ;;  %v5913_v10 = vsel %vm23106_vm5, 0.0, %v23133_v29 }
 0x515   : > { %27447 = vst [vmem:[#allocation22_spill] sm:$0xff] %v23081_v45  ;;  %6011 = vst [vmem:[#allocation3 + $0x108] sm:$0xff] %v23111_v0 }
 0x516   : > { %vm23095_vm3 = vcmp.eq.s32.totalorder %v5831_v54, 7  ;;  %vm23099_vm4 = vcmp.eq.s32.totalorder %v5831_v54, 0  ;;  %v5740_v54 = vpop.f32.mrb[15].mxu0  ;;  %6012 = vst [vmem:[#allocation3 + $0x130] sm:$0xff] %v23133_v29 }
 0x517   : > { %v5911_v19 = vsel %vm23095_vm3, 0.0, %v23104_v59  ;;  %v6034_v25 = vsel %vm23099_vm4, 0.0, %v23104_v59  ;;  %v5912_v60 = vsel %vm23095_vm3, 0.0, %v23111_v0  ;;  %v6035_v16 = vsel %vm23099_vm4, 0.0, %v23111_v0 }
 0x518   : > { %v5950_v56 = vrot.slane %v5911_v19, 7  ;;  %v6073_v58 = vrot.slane %v6034_v25, 1  ;;  %v5952_v44 = vrot.slane %v5912_v60, 7  ;;  %v6075_v43 = vrot.slane %v6035_v16, 1 }
 0x519   : > { %v23070_v42 = vld [vmem:[#allocation3 + $0xb8] sm:$0xff]  ;;  %v6036_v19 = vsel %vm23113_vm6, 0.0, %v23133_v29  ;;  %v5954_v25 = vrot.slane %v5913_v10, 7 }
 0x51a   : > { %v23152_v38 = vsel %vm5935_vm11, %v23018_v15, %v5950_v56  ;;  %v23156_v51 = vsel %vm6058_vm14, %v23020_v17, %v6073_v58  ;;  %v6077_v16 = vrot.slane %v6036_v19, 1  ;;  %v23162_v60 = vsel %vm5935_vm11, %v23028_v20, %v5952_v44  ;;  %v5744_v19 = vpop.f32.mrb[16].mxu0 }
 0x51b   : > { %v23076_v49 = vld [vmem:[#allocation3 + $0xb0] sm:$0xff]  ;;  %5992 = vst [vmem:[#allocation3 + $0xf0] sm:$0xff] %v23152_v38  ;;  %6115 = vst [vmem:[#allocation3 + $0xe0] sm:$0xff] %v23156_v51  ;;  %v23166_v31 = vsel %vm6058_vm14, %v23030_v22, %v6075_v43  ;;  %v23169_v15 = vadd.f32 %v5740_v54, %v22877_v63  ;;  %v23173_v17 = vpack.c.bf16 %v23133_v29, %v23104_v59  ;;  %v5746_v55 = vpop.f32.mrb[17].mxu0  ;;  %v16456_v22 = vld [vmem:[%s27347_s8 + $0x4] sm:$0x3] }
 0x51c   : > { %5993 = vst [vmem:[#allocation3 + $0xf8] sm:$0xff] %v23162_v60  ;;  %6116 = vst [vmem:[#allocation3 + $0xe8] sm:$0xff] %v23166_v31  ;;  %v23178_v10 = vsel %vm5935_vm11, %v5950_v56, %v5954_v25  ;;  %v23181_v20 = vsel %vm6058_vm14, %v6073_v58, %v6077_v16  ;;  %v23201_v30 = vadd.f32 %v5744_v19, %v22874_v62  ;;  %v5748_v61 = vpop.f32.mrb[18].mxu0 }
 0x51d   : > { %5994 = vst [vmem:[#allocation3 + $0x120] sm:$0xff] %v23178_v10  ;;  %6117 = vst [vmem:[#allocation3 + $0x110] sm:$0xff] %v23181_v20  ;;  %v5914_v56 = vsel %vm23106_vm5, 0.0, %v23169_v15  ;;  %v6037_v58 = vsel %vm23113_vm6, 0.0, %v23169_v15  ;;  %v23205_v39 = vpack.c.bf16 %v23169_v15, %v23111_v0  ;;  %v23208_v33 = vadd.f32 %v5746_v55, %v22877_v63 }
 0x51e   : > { %6013 = vst [vmem:[#allocation3 + $0x138] sm:$0xff] %v23169_v15  ;;  %v5956_v37 = vrot.slane %v5914_v56, 7  ;;  %v6079_v34 = vrot.slane %v6037_v58, 1  ;;  %v5915_v13 = vsel %vm23117_vm7, 0.0, %v23201_v30  ;;  %6014 = vst [vmem:[#allocation3 + $0x160] sm:$0xff] %v23201_v30  ;;  %v6038_v19 = vsel %vm23121_vm9, 0.0, %v23201_v30 }
 0x51f   : > { %v17745_v56 = vadd.f32 %v5748_v61, %v22874_v62  ;;  %v5750_v58 = vpop.f32.mrb[19].mxu0  ;;  %8921 = vmatprep.subr.bf16.mxu0 %v23205_v39  ;;  %v5958_v53 = vrot.slane %v5915_v13, 7  ;;  %v6081_v47 = vrot.slane %v6038_v19, 1  ;;  %6015 = vst [vmem:[#allocation3 + $0x168] sm:$0xff] %v23208_v33  ;;  %v5916_v62 = vsel %vm23117_vm7, 0.0, %v23208_v33 }
 0x520   : > { %v23224_v32 = vsel %vm5935_vm11, %v5952_v44, %v5956_v37  ;;  %v23227_v57 = vsel %vm6058_vm14, %v6075_v43, %v6079_v34  ;;  %8922 = vmatpush1.bf16.msra.mxu0 %v23173_v17  ;;  %v6039_v44 = vsel %vm23121_vm9, 0.0, %v23208_v33  ;;  %v5960_v55 = vrot.slane %v5916_v62, 7 }
 0x521   : > { %5995 = vst [vmem:[#allocation3 + $0x128] sm:$0xff] %v23224_v32  ;;  %6118 = vst [vmem:[#allocation3 + $0x118] sm:$0xff] %v23227_v57  ;;  %v5917_v43 = vsel %vm23183_vm10, 0.0, %v17745_v56  ;;  %v6040_v61 = vsel %vm23187_vm12, 0.0, %v17745_v56  ;;  %v23244_v13 = vsel %vm5935_vm11, %v5954_v25, %v5958_v53  ;;  %v23247_v19 = vsel %vm6058_vm14, %v6077_v16, %v6081_v47  ;;  %v23332_v16 = vld [vmem:[#allocation3 + $0x38] sm:$0xff] }
 0x522   : > { %6016 = vst [vmem:[#allocation3 + $0x190] sm:$0xff] %v17745_v56  ;;  %v6083_v14 = vrot.slane %v6039_v44, 1  ;;  %5996 = vst [vmem:[#allocation3 + $0x150] sm:$0xff] %v23244_v13  ;;  %v5962_v18 = vrot.slane %v5917_v43, 7  ;;  %v6085_v45 = vrot.slane %v6040_v61, 1  ;;  %v17746_v2 = vadd.f32 %v5750_v58, %v22877_v63 }
 0x523   : > { %6119 = vst [vmem:[#allocation3 + $0x140] sm:$0xff] %v23247_v19  ;;  %v23253_v1 = vpack.c.bf16 %v17745_v56, %v23201_v30  ;;  %v23256_v5 = vsel %vm5935_vm11, %v5956_v37, %v5960_v55 }
 0x524   : > { %v23259_v25 = vsel %vm6058_vm14, %v6079_v34, %v6083_v14  ;;  %5997 = vst [vmem:[#allocation3 + $0x158] sm:$0xff] %v23256_v5  ;;  %v23268_v63 = vsel %vm5935_vm11, %v5958_v53, %v5962_v18  ;;  %6000 = vst [vmem:[#allocation3 + $0x1b0] sm:$0x1] %v5962_v18  ;;  %v23271_v37 = vsel %vm6058_vm14, %v6081_v47, %v6085_v45  ;;  %v5918_v34 = vsel %vm23183_vm10, 0.0, %v17746_v2 }
 0x525   : > { %6120 = vst [vmem:[#allocation3 + $0x148] sm:$0xff] %v23259_v25  ;;  %6123 = vst [vmem:[#allocation3 + $0x1a0] sm:$0x7f] %v6085_v45  ;;  %v6041_v56 = vsel %vm23187_vm12, 0.0, %v17746_v2  ;;  %v5964_v58 = vrot.slane %v5918_v34, 7  ;;  %v23280_v53 = vpack.c.bf16 %v17746_v2, %v23208_v33  ;;  %v4903_v45 = vrot.slane %v16456_v22, %v21782_v4 }
 0x526   : > { %6017 = vst [vmem:[#allocation3 + $0x198] sm:$0xff] %v17746_v2  ;;  %5998 = vst [vmem:[#allocation3 + $0x180] sm:$0xff] %v23268_v63  ;;  %v6087_v44 = vrot.slane %v6041_v56, 1  ;;  %v4907_v56 = vrot.slane %v16456_v22, %v21791_v7  ;;  %v19597_v22 = vld [vmem:[%s27346_s7 + $0xc04] ss:$8 sps:$4 sm:$0xff]  }
 0x527   : > { %6121 = vst [vmem:[#allocation3 + $0x170] sm:$0xff] %v23271_v37  ;;  %v23289_v54 = vsel %vm5935_vm11, %v5960_v55, %v5964_v58  ;;  %6001 = vst [vmem:[#allocation3 + $0x1b8] sm:$0x1] %v5964_v58  ;;  %8923 = vmatprep.subr.bf16.mxu0 %v23280_v53 }
 0x528   : > { %v23292_v43 = vsel %vm6058_vm14, %v6083_v14, %v6087_v44  ;;  %6124 = vst [vmem:[#allocation3 + $0x1a8] sm:$0x7f] %v6087_v44  ;;  %5999 = vst [vmem:[#allocation3 + $0x188] sm:$0xff] %v23289_v54  ;;  %8924 = vmatpush1.bf16.msra.mxu0 %v23253_v1 }
 0x529   : > { %6122 = vst [vmem:[#allocation3 + $0x178] sm:$0xff] %v23292_v43 }
 0x5e0   : > { %v4884_v44 = vpop.f32.mrb[0].mxu1 }
 0x5e1   : > { %v4910_v58 = vadd.f32 %v4903_v45, %v4884_v44  ;;  %v4886_v47 = vpop.f32.mrb[1].mxu1  ;;  %v19612_v44 = vld [vmem:[%s27346_s7 + $0xc54] ss:$8 sps:$4 sm:$0xff]  }
 0x5e2   : > { %v4911_v61 = vadd.f32 %v4907_v56, %v4886_v47  ;;  %v4888_v34 = vpop.f32.mrb[2].mxu1  ;;  %v4918_v47 = vld [vmem:[%s27350_s11] sm:$0xff] }
 0x5e3   : > { %4914 = vst [vmem:[%s562_s26] sm:$0xff] %v4910_v58  ;;  %v4912_v2 = vadd.f32 %v4903_v45, %v4888_v34  ;;  %v4890_v18 = vpop.f32.mrb[3].mxu1  ;;  %v19595_v45 = vld [vmem:[%s27346_s7 + $0xc00] ss:$8 sps:$4 sm:$0xff]   ;;  %v19604_v34 = vld [vmem:[%s27346_s7 + $0xc30] ss:$8 sps:$4 sm:$0xff]  }
 0x5e4   : > { %4915 = vst [vmem:[%s562_s26 + $0x8] sm:$0xff] %v4911_v61  ;;  %v4913_v14 = vadd.f32 %v4907_v56, %v4890_v18  ;;  %v19606_v18 = vld [vmem:[%s27346_s7 + $0xc34] ss:$8 sps:$4 sm:$0xff]   ;;  %v19609_v56 = vld [vmem:[%s27346_s7 + $0xc44] ss:$8 sps:$4 sm:$0xff]  }
 0x5e5   : > { %4916 = vst [vmem:[%s562_s26 + $0x10] sm:$0xff] %v4912_v2  ;;  %v17717_v55 = vpack.c.bf16 %v4912_v2, %v4910_v58  ;;  %v19600_v2 = vld [vmem:[%s27346_s7 + $0xc14] ss:$8 sps:$4 sm:$0xff]   ;;  %v19607_v58 = vld [vmem:[%s27346_s7 + $0xc40] ss:$8 sps:$4 sm:$0xff]  }
 0x5e6   : > { %4917 = vst [vmem:[%s562_s26 + $0x18] sm:$0xff] %v4913_v14  ;;  %v17715_v62 = vpack.c.bf16 %v4913_v14, %v4911_v61  ;;  %v6301_v61 = vpack.c.bf16 %v22968_v50, %v23332_v16  ;;  %v19601_v14 = vld [vmem:[%s27346_s7 + $0xc20] ss:$8 sps:$4 sm:$0xff]   ;;  %s17714_s26 = sshll.u32 %s20788_s22, 11 }
 0x5e8   : > { %17716 = vmatprep.subr.bf16.mxu1 %v17715_v62  ;;  %v19598_v62 = vld [vmem:[%s27346_s7 + $0xc10] ss:$8 sps:$4 sm:$0xff]  }
 0x5e9   : > { %17718 = vmatpush1.bf16.msra.mxu1 %v17717_v55  ;;  %v19603_v55 = vld [vmem:[%s27346_s7 + $0xc24] ss:$8 sps:$4 sm:$0xff]  }
 0x5ea   : > { %6901 = vmatprep.subr.bf16.mxu1 %v19597_v22  ;;  %v19610_v22 = vld [vmem:[%s27346_s7 + $0xc50] ss:$8 sps:$4 sm:$0xff]  }
 0x5ec   : > { %16457 = vmatmul.mubr.msk.f32.vlgmr.msra.gmra.mrb[4].mxu1 %vm4919_vm8, %v4918_v47  ;;  %v19615_v47 = vld [vmem:[%s27346_s7 + $0xc64] ss:$8 sps:$4 sm:$0xff]   ;;  %vm8868_vm8 = vcmask 523264  }
 0x5ed   : > { %6902 = vmatpush1.bf16.msra.mxu1 %v19595_v45  ;;  %6933 = vmatprep.mubr.bf16.mxu1 %v6301_v61  ;;  %v19613_v45 = vld [vmem:[%s27346_s7 + $0xc60] ss:$8 sps:$4 sm:$0xff]   ;;  %v19616_v61 = vld [vmem:[%s27346_s7 + $0xc70] ss:$8 sps:$4 sm:$0xff]  }
 0x5ee   : > { %6903 = vmatprep.subr.bf16.mxu1 %v19600_v2  ;;  %v19618_v2 = vld [vmem:[%s27346_s7 + $0xc74] ss:$8 sps:$4 sm:$0xff]  }
 0x5f1   : > { %6904 = vmatpush1.bf16.msra.mxu1 %v19598_v62  ;;  %v19621_v62 = vld [vmem:[%s27346_s7 + $0xc84] ss:$8 sps:$4 sm:$0xff]  }
 0x5f2   : > { %6905 = vmatprep.subr.bf16.mxu1 %v19603_v55  ;;  %v19619_v55 = vld [vmem:[%s27346_s7 + $0xc80] ss:$8 sps:$4 sm:$0xff]  }
 0x5f5   : > { %6906 = vmatpush1.bf16.msra.mxu1 %v19601_v14  ;;  %v19624_v14 = vld [vmem:[%s27346_s7 + $0xc94] ss:$8 sps:$4 sm:$0xff]  }
 0x5f6   : > { %6907 = vmatprep.subr.bf16.mxu1 %v19606_v18  ;;  %v19622_v18 = vld [vmem:[%s27346_s7 + $0xc90] ss:$8 sps:$4 sm:$0xff]  }
 0x5f9   : > { %6908 = vmatpush1.bf16.msra.mxu1 %v19604_v34  ;;  %v19627_v34 = vld [vmem:[%s27346_s7 + $0xca4] ss:$8 sps:$4 sm:$0xff]  }
 0x5fa   : > { %6909 = vmatprep.subr.bf16.mxu1 %v19609_v56  ;;  %v19625_v56 = vld [vmem:[%s27346_s7 + $0xca0] ss:$8 sps:$4 sm:$0xff]  }
 0x5fd   : > { %6910 = vmatpush1.bf16.msra.mxu1 %v19607_v58  ;;  %v19630_v58 = vld [vmem:[%s27346_s7 + $0xcb4] ss:$8 sps:$4 sm:$0xff]  }
 0x5fe   : > { %6911 = vmatprep.subr.bf16.mxu1 %v19612_v44  ;;  %v19628_v44 = vld [vmem:[%s27346_s7 + $0xcb0] ss:$8 sps:$4 sm:$0xff]  }
 0x601   : > { %6912 = vmatpush1.bf16.msra.mxu1 %v19610_v22  ;;  %v19633_v22 = vld [vmem:[%s27346_s7 + $0xcc4] ss:$8 sps:$4 sm:$0xff]  }
 0x602   : > { %6913 = vmatprep.subr.bf16.mxu1 %v19615_v47  ;;  %v19631_v47 = vld [vmem:[%s27346_s7 + $0xcc0] ss:$8 sps:$4 sm:$0xff]  }
 0x605   : > { %6914 = vmatpush1.bf16.msra.mxu1 %v19613_v45  ;;  %v19636_v45 = vld [vmem:[%s27346_s7 + $0xcd4] ss:$8 sps:$4 sm:$0xff]  }
 0x606   : > { %6915 = vmatprep.subr.bf16.mxu1 %v19618_v2  ;;  %v19634_v2 = vld [vmem:[%s27346_s7 + $0xcd0] ss:$8 sps:$4 sm:$0xff]  }
 0x609   : > { %6916 = vmatpush1.bf16.msra.mxu1 %v19616_v61  ;;  %v19639_v61 = vld [vmem:[%s27346_s7 + $0xce4] ss:$8 sps:$4 sm:$0xff]  }
 0x60a   : > { %6917 = vmatprep.subr.bf16.mxu1 %v19621_v62  ;;  %v19637_v62 = vld [vmem:[%s27346_s7 + $0xce0] ss:$8 sps:$4 sm:$0xff]  }
 0x60d   : > { %6918 = vmatpush1.bf16.msra.mxu1 %v19619_v55  ;;  %v19642_v55 = vld [vmem:[%s27346_s7 + $0xcf4] ss:$8 sps:$4 sm:$0xff]  }
 0x60e   : > { %6919 = vmatprep.subr.bf16.mxu1 %v19624_v14  ;;  %v19640_v14 = vld [vmem:[%s27346_s7 + $0xcf0] ss:$8 sps:$4 sm:$0xff]  }
 0x611   : > { %6920 = vmatpush1.bf16.msra.mxu1 %v19622_v18  ;;  %v19645_v18 = vld [vmem:[%s27346_s7 + $0xd04] ss:$8 sps:$4 sm:$0xff]  }
 0x612   : > { %6921 = vmatprep.subr.bf16.mxu1 %v19627_v34  ;;  %v23436_v34 = vld [vmem:[#allocation3 + $0x30] sm:$0xff] }
 0x615   : > { %6922 = vmatpush1.bf16.msra.mxu1 %v19625_v56  ;;  %v19643_v56 = vld [vmem:[%s27346_s7 + $0xd00] ss:$8 sps:$4 sm:$0xff]  }
 0x616   : > { %6923 = vmatprep.subr.bf16.mxu1 %v19630_v58  ;;  %v6300_v58 = vpack.c.bf16 %v22939_v40, %v23436_v34 }
 0x619   : > { %6924 = vmatpush1.bf16.msra.mxu1 %v19628_v44  ;;  %v19648_v44 = vld [vmem:[%s27346_s7 + $0xd14] ss:$8 sps:$4 sm:$0xff]  }
 0x61a   : > { %6925 = vmatprep.subr.bf16.mxu1 %v19633_v22  ;;  %v27467_v22 = vpack.c.bf16 %v23049_v28, %v23003_v11 }
 0x61d   : > { %6926 = vmatpush1.bf16.msra.mxu1 %v19631_v47  ;;  %v19646_v47 = vld [vmem:[%s27346_s7 + $0xd10] ss:$8 sps:$4 sm:$0xff]  }
 0x61e   : > { %6927 = vmatprep.subr.bf16.mxu1 %v19636_v45  ;;  %v19651_v45 = vld [vmem:[%s27346_s7 + $0xd24] ss:$8 sps:$4 sm:$0xff]  }
 0x621   : > { %6928 = vmatpush1.bf16.msra.mxu1 %v19634_v2  ;;  %v19649_v2 = vld [vmem:[%s27346_s7 + $0xd20] ss:$8 sps:$4 sm:$0xff]  }
 0x622   : > { %6929 = vmatprep.subr.bf16.mxu1 %v19639_v61  ;;  %v19654_v61 = vld [vmem:[%s27346_s7 + $0xd34] ss:$8 sps:$4 sm:$0xff]  }
 0x625   : > { %6930 = vmatpush1.bf16.msra.mxu1 %v19637_v62  ;;  %v27468_v62 = vpack.c.bf16 %v23042_v24, %v22998_v9 }
 0x626   : > { %6931 = vmatprep.subr.bf16.mxu1 %v19642_v55  ;;  %v27469_v55 = vpack.c.bf16 %v23224_v32, %v23162_v60 }
 0x629   : > { %6932 = vmatpush1.bf16.msra.mxu1 %v19640_v14  ;;  %v19652_v14 = vld [vmem:[%s27346_s7 + $0xd30] ss:$8 sps:$4 sm:$0xff]  }
 0x62a   : > { %6974 = vmatprep.subr.bf16.mxu1 %v19645_v18  ;;  %v19657_v18 = vld [vmem:[%s27346_s7 + $0xd44] ss:$8 sps:$4 sm:$0xff]  }
 0x62c   : > { %6934 = vmatmul.mubr.bf16.vlgmr.msra.gmra.mrb[8].mxu1 %v6300_v58  ;;  %v19660_v58 = vld [vmem:[%s27346_s7 + $0xd54] ss:$8 sps:$4 sm:$0xff]  }
 0x62d   : > { %6943 = vmatprep.mubr.bf16.mxu1 %v27467_v22  ;;  %6975 = vmatpush1.bf16.msra.mxu1 %v19643_v56  ;;  %v19655_v56 = vld [vmem:[%s27346_s7 + $0xd40] ss:$8 sps:$4 sm:$0xff]   ;;  %v27471_v22 = vpack.c.bf16 %v23289_v54, %v23256_v5  ;;  %v19666_v54 = vld [vmem:[%s27346_s7 + $0xd74] ss:$8 sps:$4 sm:$0xff]  }
 0x62e   : > { %6976 = vmatprep.subr.bf16.mxu1 %v19648_v44  ;;  %v27470_v44 = vpack.c.bf16 %v23178_v10, %v23152_v38 }
 0x631   : > { %6977 = vmatpush1.bf16.msra.mxu1 %v19646_v47  ;;  %v19658_v47 = vld [vmem:[%s27346_s7 + $0xd50] ss:$8 sps:$4 sm:$0xff]  }
 0x632   : > { %6978 = vmatprep.subr.bf16.mxu1 %v19651_v45  ;;  %v19663_v45 = vld [vmem:[%s27346_s7 + $0xd64] ss:$8 sps:$4 sm:$0xff]  }
 0x634   : > { %6944 = vmatmul.mubr.bf16.gmra.mrb[12].mxu1 %v27468_v62  ;;  %v19664_v62 = vld [vmem:[%s27346_s7 + $0xd70] ss:$8 sps:$4 sm:$0xff]  }
 0x635   : > { %6953 = vmatprep.mubr.bf16.mxu1 %v27469_v55  ;;  %6979 = vmatpush1.bf16.msra.mxu1 %v19649_v2  ;;  %v19661_v2 = vld [vmem:[%s27346_s7 + $0xd60] ss:$8 sps:$4 sm:$0xff]   ;;  %v19669_v55 = vld [vmem:[%s27346_s7 + $0xd84] ss:$8 sps:$4 sm:$0xff]  }
 0x636   : > { %6980 = vmatprep.subr.bf16.mxu1 %v19654_v61  ;;  %v27472_v61 = vpack.c.bf16 %v23268_v63, %v23244_v13  ;;  %v19672_v63 = vld [vmem:[%s27346_s7 + $0xd94] ss:$8 sps:$4 sm:$0xff]  }
 0x639   : > { %6981 = vmatpush1.bf16.msra.mxu1 %v19652_v14  ;;  %v19667_v14 = vld [vmem:[%s27346_s7 + $0xd80] ss:$8 sps:$4 sm:$0xff]  }
 0x63a   : > { %6982 = vmatprep.subr.bf16.mxu1 %v19657_v18  ;;  %v19670_v18 = vld [vmem:[%s27346_s7 + $0xd90] ss:$8 sps:$4 sm:$0xff]  }
 0x63c   : > { %6954 = vmatmul.mubr.bf16.gmra.mrb[16].mxu1 %v27470_v44  ;;  %v19678_v44 = vld [vmem:[%s27346_s7 + $0xdb4] ss:$8 sps:$4 sm:$0xff]  }
 0x63d   : > { %6963 = vmatprep.mubr.bf16.mxu1 %v27471_v22  ;;  %6983 = vmatpush1.bf16.msra.mxu1 %v19655_v56  ;;  %v19675_v56 = vld [vmem:[%s27346_s7 + $0xda4] ss:$8 sps:$4 sm:$0xff]   ;;  %v19676_v22 = vld [vmem:[%s27346_s7 + $0xdb0] ss:$8 sps:$4 sm:$0xff]  }
 0x63e   : > { %6984 = vmatprep.subr.bf16.mxu1 %v19660_v58  ;;  %v19673_v58 = vld [vmem:[%s27346_s7 + $0xda0] ss:$8 sps:$4 sm:$0xff]  }
 0x641   : > { %6985 = vmatpush1.bf16.msra.mxu1 %v19658_v47  ;;  %v19681_v47 = vld [vmem:[%s27346_s7 + $0xdc4] ss:$8 sps:$4 sm:$0xff]  }
 0x642   : > { %6986 = vmatprep.subr.bf16.mxu1 %v19663_v45  ;;  %v19679_v45 = vld [vmem:[%s27346_s7 + $0xdc0] ss:$8 sps:$4 sm:$0xff]  }
 0x644   : > { %6964 = vmatmul.mubr.bf16.gmra.mrb[20].mxu1 %v27472_v61  ;;  %v19687_v61 = vld [vmem:[%s27346_s7 + $0xde4] ss:$8 sps:$4 sm:$0xff]  }
 0x645   : > { %6987 = vmatpush1.bf16.msra.mxu1 %v19661_v2  ;;  %7006 = vmatprep.mubr.bf16.mxu1 %v22954_v48  ;;  %v19684_v2 = vld [vmem:[%s27346_s7 + $0xdd4] ss:$8 sps:$4 sm:$0xff]  }
 0x646   : > { %6988 = vmatprep.subr.bf16.mxu1 %v19666_v54  ;;  %v19682_v54 = vld [vmem:[%s27346_s7 + $0xdd0] ss:$8 sps:$4 sm:$0xff]  }
 0x649   : > { %6989 = vmatpush1.bf16.msra.mxu1 %v19664_v62  ;;  %v19685_v62 = vld [vmem:[%s27346_s7 + $0xde0] ss:$8 sps:$4 sm:$0xff]  }
 0x64a   : > { %6990 = vmatprep.subr.bf16.mxu1 %v19669_v55  ;;  %v19690_v55 = vld [vmem:[%s27346_s7 + $0xdf4] ss:$8 sps:$4 sm:$0xff]  }
 0x64d   : > { %6991 = vmatpush1.bf16.msra.mxu1 %v19667_v14  ;;  %v19688_v14 = vld [vmem:[%s27346_s7 + $0xdf0] ss:$8 sps:$4 sm:$0xff]  }
 0x64e   : > { %6992 = vmatprep.subr.bf16.mxu1 %v19672_v63  ;;  %v19693_v63 = vld [vmem:[%s27346_s7 + $0xe04] ss:$8 sps:$4 sm:$0xff]  }
 0x651   : > { %6993 = vmatpush1.bf16.msra.mxu1 %v19670_v18  ;;  %v19691_v18 = vld [vmem:[%s27346_s7 + $0xe00] ss:$8 sps:$4 sm:$0xff]  }
 0x652   : > { %6994 = vmatprep.subr.bf16.mxu1 %v19675_v56  ;;  %v19696_v56 = vld [vmem:[%s27346_s7 + $0xe14] ss:$8 sps:$4 sm:$0xff]  }
 0x655   : > { %6995 = vmatpush1.bf16.msra.mxu1 %v19673_v58  ;;  %v19694_v58 = vld [vmem:[%s27346_s7 + $0xe10] ss:$8 sps:$4 sm:$0xff]  }
 0x656   : > { %6996 = vmatprep.subr.bf16.mxu1 %v19678_v44  ;;  %v19699_v44 = vld [vmem:[%s27346_s7 + $0xe24] ss:$8 sps:$4 sm:$0xff]  }
 0x659   : > { %6997 = vmatpush1.bf16.msra.mxu1 %v19676_v22  ;;  %v19697_v22 = vld [vmem:[%s27346_s7 + $0xe20] ss:$8 sps:$4 sm:$0xff]  }
 0x65a   : > { %6998 = vmatprep.subr.bf16.mxu1 %v19681_v47  ;;  %v19702_v47 = vld [vmem:[%s27346_s7 + $0xe34] ss:$8 sps:$4 sm:$0xff]  }
 0x65d   : > { %6999 = vmatpush1.bf16.msra.mxu1 %v19679_v45  ;;  %v19700_v45 = vld [vmem:[%s27346_s7 + $0xe30] ss:$8 sps:$4 sm:$0xff]  }
 0x65e   : > { %7000 = vmatprep.subr.bf16.mxu1 %v19684_v2  ;;  %v19705_v2 = vld [vmem:[%s27346_s7 + $0xe44] ss:$8 sps:$4 sm:$0xff]  }
 0x661   : > { %7001 = vmatpush1.bf16.msra.mxu1 %v19682_v54  ;;  %v19703_v54 = vld [vmem:[%s27346_s7 + $0xe40] ss:$8 sps:$4 sm:$0xff]  }
 0x662   : > { %7002 = vmatprep.subr.bf16.mxu1 %v19687_v61  ;;  %v19708_v61 = vld [vmem:[%s27346_s7 + $0xe54] ss:$8 sps:$4 sm:$0xff]  }
 0x665   : > { %7003 = vmatpush1.bf16.msra.mxu1 %v19685_v62  ;;  %v19706_v62 = vld [vmem:[%s27346_s7 + $0xe50] ss:$8 sps:$4 sm:$0xff]  }
 0x666   : > { %7004 = vmatprep.subr.bf16.mxu1 %v19690_v55  ;;  %v19711_v55 = vld [vmem:[%s27346_s7 + $0xe64] ss:$8 sps:$4 sm:$0xff]  }
 0x669   : > { %7005 = vmatpush1.bf16.msra.mxu1 %v19688_v14  ;;  %v19709_v14 = vld [vmem:[%s27346_s7 + $0xe60] ss:$8 sps:$4 sm:$0xff]  }
 0x66a   : > { %7047 = vmatprep.subr.bf16.mxu1 %v19693_v63  ;;  %v19714_v63 = vld [vmem:[%s27346_s7 + $0xe74] ss:$8 sps:$4 sm:$0xff]  }
 0x66c   : > { %7007 = vmatmul.mubr.bf16.vlgmr.msra.gmra.mrb[8].mxu1 %v22928_v36 }
 0x66d   : > { %7016 = vmatprep.mubr.bf16.mxu1 %v23034_v23  ;;  %7048 = vmatpush1.bf16.msra.mxu1 %v19691_v18  ;;  %v27473_v18 = vpack.c.bf16 %v23006_v12, %v22971_v27  ;;  %v19720_v27 = vld [vmem:[%s27346_s7 + $0xe94] ss:$8 sps:$4 sm:$0xff]  }
 0x66e   : > { %7049 = vmatprep.subr.bf16.mxu1 %v19696_v56  ;;  %v19712_v56 = vld [vmem:[%s27346_s7 + $0xe70] ss:$8 sps:$4 sm:$0xff]  }
 0x671   : > { %7050 = vmatpush1.bf16.msra.mxu1 %v19694_v58  ;;  %v19717_v58 = vld [vmem:[%s27346_s7 + $0xe84] ss:$8 sps:$4 sm:$0xff]  }
 0x672   : > { %7051 = vmatprep.subr.bf16.mxu1 %v19699_v44  ;;  %v19715_v44 = vld [vmem:[%s27346_s7 + $0xe80] ss:$8 sps:$4 sm:$0xff]  }
 0x674   : > { %7017 = vmatmul.mubr.bf16.gmra.mrb[12].mxu1 %v23038_v26 }
 0x675   : > { %7026 = vmatprep.mubr.bf16.mxu1 %v23205_v39  ;;  %7052 = vmatpush1.bf16.msra.mxu1 %v19697_v22  ;;  %v19718_v22 = vld [vmem:[%s27346_s7 + $0xe90] ss:$8 sps:$4 sm:$0xff]  }
 0x676   : > { %7053 = vmatprep.subr.bf16.mxu1 %v19702_v47  ;;  %v19723_v47 = vld [vmem:[%s27346_s7 + $0xea4] ss:$8 sps:$4 sm:$0xff]  }
 0x679   : > { %7054 = vmatpush1.bf16.msra.mxu1 %v19700_v45  ;;  %v19721_v45 = vld [vmem:[%s27346_s7 + $0xea0] ss:$8 sps:$4 sm:$0xff]  }
 0x67a   : > { %7055 = vmatprep.subr.bf16.mxu1 %v19705_v2  ;;  %v19726_v2 = vld [vmem:[%s27346_s7 + $0xeb4] ss:$8 sps:$4 sm:$0xff]  }
 0x67c   : > { %7027 = vmatmul.mubr.bf16.gmra.mrb[16].mxu1 %v23173_v17 }
 0x67d   : > { %7036 = vmatprep.mubr.bf16.mxu1 %v23280_v53  ;;  %7056 = vmatpush1.bf16.msra.mxu1 %v19703_v54  ;;  %v19724_v54 = vld [vmem:[%s27346_s7 + $0xeb0] ss:$8 sps:$4 sm:$0xff]  }
 0x67e   : > { %7057 = vmatprep.subr.bf16.mxu1 %v19708_v61  ;;  %v19729_v61 = vld [vmem:[%s27346_s7 + $0xec4] ss:$8 sps:$4 sm:$0xff]  }
 0x681   : > { %7058 = vmatpush1.bf16.msra.mxu1 %v19706_v62  ;;  %v19727_v62 = vld [vmem:[%s27346_s7 + $0xec0] ss:$8 sps:$4 sm:$0xff]  }
 0x682   : > { %7059 = vmatprep.subr.bf16.mxu1 %v19711_v55  ;;  %v19732_v55 = vld [vmem:[%s27346_s7 + $0xed4] ss:$8 sps:$4 sm:$0xff]  }
 0x684   : > { %7037 = vmatmul.mubr.bf16.gmra.mrb[20].mxu1 %v23253_v1 }
 0x685   : > { %7060 = vmatpush1.bf16.msra.mxu1 %v19709_v14  ;;  %7079 = vmatprep.mubr.bf16.mxu1 %v27473_v18  ;;  %v19730_v14 = vld [vmem:[%s27346_s7 + $0xed0] ss:$8 sps:$4 sm:$0xff]   ;;  %v19733_v18 = vld [vmem:[%s27346_s7 + $0xee0] ss:$8 sps:$4 sm:$0xff]  }
 0x686   : > { %7061 = vmatprep.subr.bf16.mxu1 %v19714_v63  ;;  %v19735_v63 = vld [vmem:[%s27346_s7 + $0xee4] ss:$8 sps:$4 sm:$0xff]  }
 0x689   : > { %7062 = vmatpush1.bf16.msra.mxu1 %v19712_v56  ;;  %v19738_v56 = vld [vmem:[%s27346_s7 + $0xef4] ss:$8 sps:$4 sm:$0xff]  }
 0x68a   : > { %7063 = vmatprep.subr.bf16.mxu1 %v19717_v58  ;;  %v19736_v58 = vld [vmem:[%s27346_s7 + $0xef0] ss:$8 sps:$4 sm:$0xff]  }
 0x68d   : > { %7064 = vmatpush1.bf16.msra.mxu1 %v19715_v44  ;;  %v19741_v44 = vld [vmem:[%s27346_s7 + $0x904] ss:$8 sps:$4 sm:$0xff]  }
 0x68e   : > { %7065 = vmatprep.subr.bf16.mxu1 %v19720_v27  ;;  %v23661_v27 = vld [vmem:[#allocation3 + $0x50] sm:$0xff] }
 0x691   : > { %7066 = vmatpush1.bf16.msra.mxu1 %v19718_v22  ;;  %v19739_v22 = vld [vmem:[%s27346_s7 + $0x900] ss:$8 sps:$4 sm:$0xff]  }
 0x692   : > { %7067 = vmatprep.subr.bf16.mxu1 %v19723_v47  ;;  %v6304_v47 = vpack.c.bf16 %v23074_v41, %v23661_v27 }
 0x695   : > { %7068 = vmatpush1.bf16.msra.mxu1 %v19721_v45  ;;  %v19744_v45 = vld [vmem:[%s27346_s7 + $0x914] ss:$8 sps:$4 sm:$0xff]  }
 0x696   : > { %7069 = vmatprep.subr.bf16.mxu1 %v19726_v2  ;;  %v6311_v2 = vpack.c.bf16 %v23166_v31, %v23070_v42 }
 0x699   : > { %7070 = vmatpush1.bf16.msra.mxu1 %v19724_v54  ;;  %v19742_v54 = vld [vmem:[%s27346_s7 + $0x910] ss:$8 sps:$4 sm:$0xff]  }
 0x69a   : > { %7071 = vmatprep.subr.bf16.mxu1 %v19729_v61  ;;  %v19747_v61 = vld [vmem:[%s27346_s7 + $0x924] ss:$8 sps:$4 sm:$0xff]  }
 0x69d   : > { %7072 = vmatpush1.bf16.msra.mxu1 %v19727_v62  ;;  %v19745_v62 = vld [vmem:[%s27346_s7 + $0x920] ss:$8 sps:$4 sm:$0xff]  }
 0x69e   : > { %7073 = vmatprep.subr.bf16.mxu1 %v19732_v55  ;;  %v6310_v55 = vpack.c.bf16 %v23156_v51, %v23076_v49 }
 0x6a1   : > { %7074 = vmatpush1.bf16.msra.mxu1 %v19730_v14  ;;  %v19750_v14 = vld [vmem:[%s27346_s7 + $0x934] ss:$8 sps:$4 sm:$0xff]  }
 0x6a2   : > { %7075 = vmatprep.subr.bf16.mxu1 %v19735_v63  ;;  %v27474_v63 = vpack.c.bf16 %v23259_v25, %v23227_v57 }
 0x6a5   : > { %7076 = vmatpush1.bf16.msra.mxu1 %v19733_v18  ;;  %v19748_v18 = vld [vmem:[%s27346_s7 + $0x930] ss:$8 sps:$4 sm:$0xff]  }
 0x6a6   : > { %7077 = vmatprep.subr.bf16.mxu1 %v19738_v56  ;;  %v19753_v56 = vld [vmem:[%s27346_s7 + $0x944] ss:$8 sps:$4 sm:$0xff]  }
 0x6a9   : > { %7078 = vmatpush1.bf16.msra.mxu1 %v19736_v58  ;;  %v6299_v58 = vld [vmem:[#allocation3 + $0x1a8] sm:$0xff] }
 0x6aa   : > { %7600 = vmatprep.subr.bf16.mxu1 %v19741_v44  ;;  %v19751_v44 = vld [vmem:[%s27346_s7 + $0x940] ss:$8 sps:$4 sm:$0xff]  }
 0x6ac   : > { %7080 = vmatmul.mubr.bf16.vlgmr.msra.gmra.mrb[8].mxu1 %v6304_v47  ;;  %v6323_v47 = vpack.c.bf16 %v6299_v58, %v23292_v43  ;;  %v23723_v58 = vld [vmem:[#allocation3] sm:$0xff] }
 0x6ad   : > { %7089 = vmatprep.mubr.bf16.mxu1 %v6311_v2  ;;  %7601 = vmatpush1.bf16.msra.mxu1 %v19739_v22  ;;  %v19756_v22 = vld [vmem:[%s27346_s7 + $0x954] ss:$8 sps:$4 sm:$0xff]   ;;  %v19754_v2 = vld [vmem:[%s27346_s7 + $0x950] ss:$8 sps:$4 sm:$0xff]  }
 0x6ae   : > { %7602 = vmatprep.subr.bf16.mxu1 %v19744_v45  ;;  %v27475_v45 = vpack.c.bf16 %v23247_v19, %v23181_v20 }
 0x6b1   : > { %7603 = vmatpush1.bf16.msra.mxu1 %v19742_v54  ;;  %v19759_v54 = vld [vmem:[%s27346_s7 + $0x964] ss:$8 sps:$4 sm:$0xff]  }
 0x6b2   : > { %7604 = vmatprep.subr.bf16.mxu1 %v19747_v61 }
 0x6b4   : > { %7090 = vmatmul.mubr.bf16.gmra.mrb[12].mxu1 %v6310_v55 }
 0x6b5   : > { %7099 = vmatprep.mubr.bf16.mxu1 %v27474_v63  ;;  %7605 = vmatpush1.bf16.msra.mxu1 %v19745_v62  ;;  %v6298_v62 = vld [vmem:[#allocation3 + $0x1a0] sm:$0xff] }
 0x6b6   : > { %7606 = vmatprep.subr.bf16.mxu1 %v19750_v14  ;;  %v19757_v63 = vld [vmem:[%s27346_s7 + $0x960] ss:$8 sps:$4 sm:$0xff]  }
 0x6b9   : > { %7607 = vmatpush1.bf16.msra.mxu1 %v19748_v18  ;;  %v6322_v18 = vpack.c.bf16 %v6298_v62, %v23271_v37  ;;  %v19774_v62 = vld [vmem:[%s27346_s7 + $0x9b4] ss:$8 sps:$4 sm:$0xff]  }
 0x6ba   : > { %7608 = vmatprep.subr.bf16.mxu1 %v19753_v56  ;;  %v19762_v56 = vld [vmem:[%s27346_s7 + $0x974] ss:$8 sps:$4 sm:$0xff]  }
 0x6bc   : > { %7100 = vmatmul.mubr.bf16.gmra.mrb[16].mxu1 %v27475_v45  ;;  %v19763_v45 = vld [vmem:[%s27346_s7 + $0x980] ss:$8 sps:$4 sm:$0xff]  }
 0x6bd   : > { %7109 = vmatprep.mubr.bf16.mxu1 %v6323_v47  ;;  %7609 = vmatpush1.bf16.msra.mxu1 %v19751_v44  ;;  %v6174_v44 = vpack.c.bf16 %v23332_v16, %v23723_v58  ;;  %v19765_v47 = vld [vmem:[%s27346_s7 + $0x984] ss:$8 sps:$4 sm:$0xff]   ;;  %v19768_v16 = vld [vmem:[%s27346_s7 + $0x994] ss:$8 sps:$4 sm:$0xff]  }
 0x6be   : > { %7610 = vmatprep.subr.bf16.mxu1 %v19756_v22  ;;  %v19760_v22 = vld [vmem:[%s27346_s7 + $0x970] ss:$8 sps:$4 sm:$0xff]  }
 0x6bf   : > { %v4989_v61 = vpop.f32.mrb[4].mxu1 }
 0x6c0   : > { %v4991_v55 = vpop.f32.mrb[5].mxu1 }
 0x6c1   : > { %7611 = vmatpush1.bf16.msra.mxu1 %v19754_v2  ;;  %v4996_v14 = vcombine.low %v4989_v61, %v4991_v55  ;;  %v19766_v2 = vld [vmem:[%s27346_s7 + $0x990] ss:$8 sps:$4 sm:$0xff]   ;;  %v19769_v61 = vld [vmem:[%s27346_s7 + $0x9a0] ss:$8 sps:$4 sm:$0xff]  }
 0x6c2   : > { %7612 = vmatprep.subr.bf16.mxu1 %v19759_v54  ;;  %v19771_v54 = vld [vmem:[%s27346_s7 + $0x9a4] ss:$8 sps:$4 sm:$0xff]   ;;  %v19772_v55 = vld [vmem:[%s27346_s7 + $0x9b0] ss:$8 sps:$4 sm:$0xff]  }
 0x6c3   : > { %4998 = vst [vmem:[%s567_s17] sm:$0xff] %v4996_v14  ;;  %v19777_v14 = vld [vmem:[%s27346_s7 + $0x9c4] ss:$8 sps:$4 sm:$0xff]  }
 0x6c4   : > { %7110 = vmatmul.mubr.bf16.gmra.mrb[20].mxu1 %v6322_v18  ;;  %v19780_v18 = vld [vmem:[%s27346_s7 + $0x9d4] ss:$8 sps:$4 sm:$0xff]  }
 0x6c5   : > { %7613 = vmatpush1.bf16.msra.mxu1 %v19757_v63  ;;  %7632 = vmatprep.mubr.bf16.mxu1 %v6174_v44  ;;  %v19775_v63 = vld [vmem:[%s27346_s7 + $0x9c0] ss:$8 sps:$4 sm:$0xff]   ;;  %v19783_v44 = vld [vmem:[%s27346_s7 + $0x9e4] ss:$8 sps:$4 sm:$0xff]  }
 0x6c6   : > { %7614 = vmatprep.subr.bf16.mxu1 %v19762_v56  ;;  %v19778_v56 = vld [vmem:[%s27346_s7 + $0x9d0] ss:$8 sps:$4 sm:$0xff]  }
 0x6c9   : > { %7615 = vmatpush1.bf16.msra.mxu1 %v19760_v22  ;;  %v19781_v22 = vld [vmem:[%s27346_s7 + $0x9e0] ss:$8 sps:$4 sm:$0xff]  }
 0x6ca   : > { %7616 = vmatprep.subr.bf16.mxu1 %v19765_v47  ;;  %v19786_v47 = vld [vmem:[%s27346_s7 + $0x9f4] ss:$8 sps:$4 sm:$0xff]  }
 0x6cd   : > { %7617 = vmatpush1.bf16.msra.mxu1 %v19763_v45  ;;  %v19784_v45 = vld [vmem:[%s27346_s7 + $0x9f0] ss:$8 sps:$4 sm:$0xff]  }
 0x6ce   : > { %7618 = vmatprep.subr.bf16.mxu1 %v19768_v16  ;;  %v19789_v16 = vld [vmem:[%s27346_s7 + $0xa04] ss:$8 sps:$4 sm:$0xff]  }
 0x6d1   : > { %7619 = vmatpush1.bf16.msra.mxu1 %v19766_v2  ;;  %v19787_v2 = vld [vmem:[%s27346_s7 + $0xa00] ss:$8 sps:$4 sm:$0xff]  }
 0x6d2   : > { %7620 = vmatprep.subr.bf16.mxu1 %v19771_v54  ;;  %v6173_v54 = vpack.c.bf16 %v23436_v34, %v23723_v58  ;;  %v19795_v34 = vld [vmem:[%s27346_s7 + $0xa24] ss:$8 sps:$4 sm:$0xff]  }
 0x6d5   : > { %7621 = vmatpush1.bf16.msra.mxu1 %v19769_v61  ;;  %v19792_v61 = vld [vmem:[%s27346_s7 + $0xa14] ss:$8 sps:$4 sm:$0xff]  }
 0x6d6   : > { %7622 = vmatprep.subr.bf16.mxu1 %v19774_v62  ;;  %v27476_v62 = vpack.c.bf16 %v23003_v11, %v22968_v50  ;;  %v19798_v50 = vld [vmem:[%s27346_s7 + $0xa34] ss:$8 sps:$4 sm:$0xff]   ;;  %v27477_v11 = vpack.c.bf16 %v22998_v9, %v22939_v40  ;;  %v19799_v40 = vld [vmem:[%s27346_s7 + $0xa40] ss:$8 sps:$4 sm:$0xff]  }
 0x6d7   : > { %v19804_v9 = vld [vmem:[%s27346_s7 + $0xa54] ss:$8 sps:$4 sm:$0xff]  }
 0x6d9   : > { %7623 = vmatpush1.bf16.msra.mxu1 %v19772_v55  ;;  %v19790_v55 = vld [vmem:[%s27346_s7 + $0xa10] ss:$8 sps:$4 sm:$0xff]  }
 0x6da   : > { %7624 = vmatprep.subr.bf16.mxu1 %v19777_v14  ;;  %v19793_v14 = vld [vmem:[%s27346_s7 + $0xa20] ss:$8 sps:$4 sm:$0xff]  }
 0x6dd   : > { %7625 = vmatpush1.bf16.msra.mxu1 %v19775_v63  ;;  %v27478_v63 = vpack.c.bf16 %v23162_v60, %v23049_v28  ;;  %v27479_v28 = vpack.c.bf16 %v23152_v38, %v23042_v24  ;;  %v27480_v60 = vpack.c.bf16 %v23256_v5, %v23224_v32  ;;  %v19805_v24 = vld [vmem:[%s27346_s7 + $0xa60] ss:$8 sps:$4 sm:$0xff]   ;;  %v19810_v5 = vld [vmem:[%s27346_s7 + $0xa74] ss:$8 sps:$4 sm:$0xff]  }
 0x6de   : > { %7626 = vmatprep.subr.bf16.mxu1 %v19780_v18  ;;  %v19796_v18 = vld [vmem:[%s27346_s7 + $0xa30] ss:$8 sps:$4 sm:$0xff]   ;;  %v20579_v32 = vld [vmem:[#allocation3 + $0x48] sm:$0xff] }
 0x6df   : > { %v6176_v38 = vpack.c.bf16 %v20579_v32, %v23723_v58  ;;  %v19843_v32 = vld [vmem:[%s27346_s7 + $0xb24] ss:$8 sps:$4 sm:$0xff]  }
 0x6e1   : > { %7627 = vmatpush1.bf16.msra.mxu1 %v19778_v56  ;;  %v19801_v56 = vld [vmem:[%s27346_s7 + $0xa44] ss:$8 sps:$4 sm:$0xff]  }
 0x6e2   : > { %7628 = vmatprep.subr.bf16.mxu1 %v19783_v44  ;;  %v19802_v44 = vld [vmem:[%s27346_s7 + $0xa50] ss:$8 sps:$4 sm:$0xff]  }
 0x6e5   : > { %7629 = vmatpush1.bf16.msra.mxu1 %v19781_v22  ;;  %v19807_v22 = vld [vmem:[%s27346_s7 + $0xa64] ss:$8 sps:$4 sm:$0xff]  }
 0x6e6   : > { %7630 = vmatprep.subr.bf16.mxu1 %v19786_v47  ;;  %v27481_v47 = vpack.c.bf16 %v23244_v13, %v23178_v10  ;;  %v19816_v10 = vld [vmem:[%s27346_s7 + $0xa94] ss:$8 sps:$4 sm:$0xff]   ;;  %v19814_v13 = vld [vmem:[%s27346_s7 + $0xa90] ss:$8 sps:$4 sm:$0xff]  }
 0x6e9   : > { %7631 = vmatpush1.bf16.msra.mxu1 %v19784_v45  ;;  %v19808_v45 = vld [vmem:[%s27346_s7 + $0xa70] ss:$8 sps:$4 sm:$0xff]  }
 0x6ea   : > { %7673 = vmatprep.subr.bf16.mxu1 %v19789_v16  ;;  %v19813_v16 = vld [vmem:[%s27346_s7 + $0xa84] ss:$8 sps:$4 sm:$0xff]  }
 0x6ec   : > { %7633 = vmatmul.mubr.bf16.vlgmr.msra.gmra.mrb[8].mxu1 %v6173_v54  ;;  %v19819_v54 = vld [vmem:[%s27346_s7 + $0xaa4] ss:$8 sps:$4 sm:$0xff]  }
 0x6ed   : > { %7642 = vmatprep.mubr.bf16.mxu1 %v27476_v62  ;;  %7674 = vmatpush1.bf16.msra.mxu1 %v19787_v2  ;;  %v19811_v2 = vld [vmem:[%s27346_s7 + $0xa80] ss:$8 sps:$4 sm:$0xff]   ;;  %v19822_v62 = vld [vmem:[%s27346_s7 + $0xab4] ss:$8 sps:$4 sm:$0xff]  }
 0x6ee   : > { %7675 = vmatprep.subr.bf16.mxu1 %v19792_v61  ;;  %v19817_v61 = vld [vmem:[%s27346_s7 + $0xaa0] ss:$8 sps:$4 sm:$0xff]  }
 0x6f1   : > { %7676 = vmatpush1.bf16.msra.mxu1 %v19790_v55  ;;  %v19820_v55 = vld [vmem:[%s27346_s7 + $0xab0] ss:$8 sps:$4 sm:$0xff]  }
 0x6f2   : > { %7677 = vmatprep.subr.bf16.mxu1 %v19795_v34  ;;  %v19825_v34 = vld [vmem:[%s27346_s7 + $0xac4] ss:$8 sps:$4 sm:$0xff]  }
 0x6f4   : > { %7643 = vmatmul.mubr.bf16.gmra.mrb[12].mxu1 %v27477_v11  ;;  %v19826_v11 = vld [vmem:[%s27346_s7 + $0xad0] ss:$8 sps:$4 sm:$0xff]  }
 0x6f5   : > { %7652 = vmatprep.mubr.bf16.mxu1 %v27478_v63  ;;  %7678 = vmatpush1.bf16.msra.mxu1 %v19793_v14  ;;  %v19823_v14 = vld [vmem:[%s27346_s7 + $0xac0] ss:$8 sps:$4 sm:$0xff]   ;;  %v19831_v63 = vld [vmem:[%s27346_s7 + $0xae4] ss:$8 sps:$4 sm:$0xff]  }
 0x6f6   : > { %7679 = vmatprep.subr.bf16.mxu1 %v19798_v50  ;;  %v19828_v50 = vld [vmem:[%s27346_s7 + $0xad4] ss:$8 sps:$4 sm:$0xff]  }
 0x6f9   : > { %7680 = vmatpush1.bf16.msra.mxu1 %v19796_v18  ;;  %v19829_v18 = vld [vmem:[%s27346_s7 + $0xae0] ss:$8 sps:$4 sm:$0xff]  }
 0x6fa   : > { %7681 = vmatprep.subr.bf16.mxu1 %v19801_v56  ;;  %v19834_v56 = vld [vmem:[%s27346_s7 + $0xaf4] ss:$8 sps:$4 sm:$0xff]  }
 0x6fc   : > { %7653 = vmatmul.mubr.bf16.gmra.mrb[16].mxu1 %v27479_v28  ;;  %v19835_v28 = vld [vmem:[%s27346_s7 + $0xb00] ss:$8 sps:$4 sm:$0xff]  }
 0x6fd   : > { %7662 = vmatprep.mubr.bf16.mxu1 %v27480_v60  ;;  %7682 = vmatpush1.bf16.msra.mxu1 %v19799_v40  ;;  %v19832_v40 = vld [vmem:[%s27346_s7 + $0xaf0] ss:$8 sps:$4 sm:$0xff]   ;;  %v20580_v60 = vld [vmem:[#allocation3 + $0x40] sm:$0xff] }
 0x6fe   : > { %7683 = vmatprep.subr.bf16.mxu1 %v19804_v9  ;;  %v19837_v9 = vld [vmem:[%s27346_s7 + $0xb04] ss:$8 sps:$4 sm:$0xff]  }
 0x701   : > { %7684 = vmatpush1.bf16.msra.mxu1 %v19802_v44  ;;  %v6175_v44 = vpack.c.bf16 %v20580_v60, %v23723_v58  ;;  %v19882_v60 = vld [vmem:[%s27346_s7 + $0xbf4] ss:$8 sps:$4 sm:$0xff]  }
 0x702   : > { %7685 = vmatprep.subr.bf16.mxu1 %v19807_v22  ;;  %v19840_v22 = vld [vmem:[%s27346_s7 + $0xb14] ss:$8 sps:$4 sm:$0xff]  }
 0x704   : > { %7663 = vmatmul.mubr.bf16.gmra.mrb[20].mxu1 %v27481_v47  ;;  %v27484_v47 = vpack.c.bf16 %v23111_v0, %v22995_v8  ;;  %v27485_v8 = vpack.c.bf16 %v23104_v59, %v22992_v6  ;;  %v27486_v0 = vpack.c.bf16 %v23208_v33, %v23169_v15  ;;  %v19853_v6 = vld [vmem:[%s27346_s7 + $0xb60] ss:$8 sps:$4 sm:$0xff]   ;;  %v19858_v33 = vld [vmem:[%s27346_s7 + $0xb74] ss:$8 sps:$4 sm:$0xff]  }
 0x705   : > { %7686 = vmatpush1.bf16.msra.mxu1 %v19805_v24  ;;  %7705 = vmatprep.mubr.bf16.mxu1 %v6176_v38  ;;  %v27482_v24 = vpack.c.bf16 %v22957_v52, %v22925_v35  ;;  %v19841_v38 = vld [vmem:[%s27346_s7 + $0xb20] ss:$8 sps:$4 sm:$0xff]   ;;  %v19846_v35 = vld [vmem:[%s27346_s7 + $0xb34] ss:$8 sps:$4 sm:$0xff]   ;;  %v27483_v52 = vpack.c.bf16 %v22951_v46, %v22910_v21 }
 0x706   : > { %7687 = vmatprep.subr.bf16.mxu1 %v19810_v5  ;;  %v19838_v5 = vld [vmem:[%s27346_s7 + $0xb10] ss:$8 sps:$4 sm:$0xff]   ;;  %v19847_v21 = vld [vmem:[%s27346_s7 + $0xb40] ss:$8 sps:$4 sm:$0xff]   ;;  %v19852_v46 = vld [vmem:[%s27346_s7 + $0xb54] ss:$8 sps:$4 sm:$0xff]  }
 0x707   : > { %v20581_v59 = vld [vmem:[#allocation3 + $0x58] sm:$0xff] }
 0x709   : > { %7688 = vmatpush1.bf16.msra.mxu1 %v19808_v45  ;;  %v19844_v45 = vld [vmem:[%s27346_s7 + $0xb30] ss:$8 sps:$4 sm:$0xff]  }
 0x70a   : > { %7689 = vmatprep.subr.bf16.mxu1 %v19813_v16  ;;  %v19849_v16 = vld [vmem:[%s27346_s7 + $0xb44] ss:$8 sps:$4 sm:$0xff]  }
 0x70d   : > { %7690 = vmatpush1.bf16.msra.mxu1 %v19811_v2  ;;  %v19850_v2 = vld [vmem:[%s27346_s7 + $0xb50] ss:$8 sps:$4 sm:$0xff]  }
 0x70e   : > { %7691 = vmatprep.subr.bf16.mxu1 %v19816_v10  ;;  %v19855_v10 = vld [vmem:[%s27346_s7 + $0xb64] ss:$8 sps:$4 sm:$0xff]  }
 0x711   : > { %7692 = vmatpush1.bf16.msra.mxu1 %v19814_v13  ;;  %v6130_v13 = vld [vmem:[#allocation3 + $0x28] sm:$0xff] }
 0x712   : > { %7693 = vmatprep.subr.bf16.mxu1 %v19819_v54  ;;  %v6178_v15 = vpack.c.bf16 %v20581_v59, %v6130_v13  ;;  %v27487_v54 = vpack.c.bf16 %v23201_v30, %v23133_v29  ;;  %v19864_v30 = vld [vmem:[%s27346_s7 + $0xb94] ss:$8 sps:$4 sm:$0xff]   ;;  %v19862_v29 = vld [vmem:[%s27346_s7 + $0xb90] ss:$8 sps:$4 sm:$0xff]   ;;  %v19909_v13 = vld [vmem:[%s27346_s7 + $0xf84] ss:$8 sps:$4 sm:$0xff]  }
 0x713   : > { %v19913_v59 = vld [vmem:[%s27346_s7 + $0xfa0] ss:$8 sps:$4 sm:$0xff]  }
 0x715   : > { %7694 = vmatpush1.bf16.msra.mxu1 %v19817_v61  ;;  %v19856_v61 = vld [vmem:[%s27346_s7 + $0xb70] ss:$8 sps:$4 sm:$0xff]  }
 0x716   : > { %7695 = vmatprep.subr.bf16.mxu1 %v19822_v62  ;;  %v19861_v62 = vld [vmem:[%s27346_s7 + $0xb84] ss:$8 sps:$4 sm:$0xff]  }
 0x719   : > { %7696 = vmatpush1.bf16.msra.mxu1 %v19820_v55  ;;  %v19859_v55 = vld [vmem:[%s27346_s7 + $0xb80] ss:$8 sps:$4 sm:$0xff]  }
 0x71a   : > { %7697 = vmatprep.subr.bf16.mxu1 %v19825_v34  ;;  %v19867_v34 = vld [vmem:[%s27346_s7 + $0xba4] ss:$8 sps:$4 sm:$0xff]  }
 0x71d   : > { %7698 = vmatpush1.bf16.msra.mxu1 %v19823_v14  ;;  %v19865_v14 = vld [vmem:[%s27346_s7 + $0xba0] ss:$8 sps:$4 sm:$0xff]  }
 0x71e   : > { %7699 = vmatprep.subr.bf16.mxu1 %v19828_v50  ;;  %v19870_v50 = vld [vmem:[%s27346_s7 + $0xbb4] ss:$8 sps:$4 sm:$0xff]  }
 0x721   : > { %7700 = vmatpush1.bf16.msra.mxu1 %v19826_v11  ;;  %v19868_v11 = vld [vmem:[%s27346_s7 + $0xbb0] ss:$8 sps:$4 sm:$0xff]  }
 0x722   : > { %7701 = vmatprep.subr.bf16.mxu1 %v19831_v63  ;;  %v19873_v63 = vld [vmem:[%s27346_s7 + $0xbc4] ss:$8 sps:$4 sm:$0xff]  }
 0x725   : > { %7702 = vmatpush1.bf16.msra.mxu1 %v19829_v18  ;;  %v19871_v18 = vld [vmem:[%s27346_s7 + $0xbc0] ss:$8 sps:$4 sm:$0xff]  }
 0x726   : > { %7703 = vmatprep.subr.bf16.mxu1 %v19834_v56  ;;  %v19876_v56 = vld [vmem:[%s27346_s7 + $0xbd4] ss:$8 sps:$4 sm:$0xff]  }
 0x729   : > { %7704 = vmatpush1.bf16.msra.mxu1 %v19832_v40  ;;  %v19874_v40 = vld [vmem:[%s27346_s7 + $0xbd0] ss:$8 sps:$4 sm:$0xff]  }
 0x72a   : > { %7746 = vmatprep.subr.bf16.mxu1 %v19837_v9  ;;  %v19879_v9 = vld [vmem:[%s27346_s7 + $0xbe4] ss:$8 sps:$4 sm:$0xff]  }
 0x72c   : > { %7706 = vmatmul.mubr.bf16.vlgmr.msra.gmra.mrb[8].mxu1 %v6175_v44  ;;  %v19880_v44 = vld [vmem:[%s27346_s7 + $0xbf0] ss:$8 sps:$4 sm:$0xff]  }
 0x72d   : > { %7715 = vmatprep.mubr.bf16.mxu1 %v27482_v24  ;;  %7747 = vmatpush1.bf16.msra.mxu1 %v19835_v28  ;;  %v19877_v28 = vld [vmem:[%s27346_s7 + $0xbe0] ss:$8 sps:$4 sm:$0xff]  }
 0x72e   : > { %7748 = vmatprep.subr.bf16.mxu1 %v19840_v22  ;;  %v19885_v22 = vld [vmem:[%s27346_s7 + $0xf04] ss:$8 sps:$4 sm:$0xff]  }
 0x72f   : > { %v6129_v24 = vld [vmem:[#allocation3 + $0x20] sm:$0xff] }
 0x731   : > { %7749 = vmatpush1.bf16.msra.mxu1 %v19838_v5  ;;  %v19883_v5 = vld [vmem:[%s27346_s7 + $0xf00] ss:$8 sps:$4 sm:$0xff]  }
 0x732   : > { %7750 = vmatprep.subr.bf16.mxu1 %v19843_v32  ;;  %v6177_v32 = vpack.c.bf16 %v23661_v27, %v6129_v24  ;;  %v19891_v27 = vld [vmem:[%s27346_s7 + $0xf24] ss:$8 sps:$4 sm:$0xff]  }
 0x733   : > { %v19939_v24 = vld [vmem:[%s27346_s7 + $0x1024] ss:$8 sps:$4 sm:$0xff]  }
 0x734   : > { %7716 = vmatmul.mubr.bf16.gmra.mrb[12].mxu1 %v27483_v52  ;;  %v19886_v52 = vld [vmem:[%s27346_s7 + $0xf10] ss:$8 sps:$4 sm:$0xff]  }
 0x735   : > { %7725 = vmatprep.mubr.bf16.mxu1 %v27484_v47  ;;  %7751 = vmatpush1.bf16.msra.mxu1 %v19841_v38  ;;  %v19888_v38 = vld [vmem:[%s27346_s7 + $0xf14] ss:$8 sps:$4 sm:$0xff]   ;;  %v19889_v47 = vld [vmem:[%s27346_s7 + $0xf20] ss:$8 sps:$4 sm:$0xff]  }
 0x736   : > { %7752 = vmatprep.subr.bf16.mxu1 %v19846_v35  ;;  %v27488_v35 = vpack.c.bf16 %v23070_v42, %v23006_v12  ;;  %v19894_v12 = vld [vmem:[%s27346_s7 + $0xf34] ss:$8 sps:$4 sm:$0xff]   ;;  %v27489_v42 = vpack.c.bf16 %v23076_v49, %v23074_v41  ;;  %v19895_v41 = vld [vmem:[%s27346_s7 + $0xf40] ss:$8 sps:$4 sm:$0xff]   ;;  %v27491_v49 = vpack.c.bf16 %v23181_v20, %v23156_v51 }
 0x737   : > { %v19901_v51 = vld [vmem:[%s27346_s7 + $0xf60] ss:$8 sps:$4 sm:$0xff]   ;;  %v19906_v20 = vld [vmem:[%s27346_s7 + $0xf74] ss:$8 sps:$4 sm:$0xff]  }
 0x739   : > { %7753 = vmatpush1.bf16.msra.mxu1 %v19844_v45  ;;  %v27490_v45 = vpack.c.bf16 %v23227_v57, %v23166_v31  ;;  %v19900_v31 = vld [vmem:[%s27346_s7 + $0xf54] ss:$8 sps:$4 sm:$0xff]   ;;  %v27492_v57 = vpack.c.bf16 %v23292_v43, %v23259_v25  ;;  %v27493_v43 = vpack.c.bf16 %v23271_v37, %v23247_v19  ;;  %v19910_v37 = vld [vmem:[%s27346_s7 + $0xf90] ss:$8 sps:$4 sm:$0xff]  }
 0x73a   : > { %7754 = vmatprep.subr.bf16.mxu1 %v19849_v16  ;;  %v19892_v16 = vld [vmem:[%s27346_s7 + $0xf30] ss:$8 sps:$4 sm:$0xff]   ;;  %v19912_v19 = vld [vmem:[%s27346_s7 + $0xf94] ss:$8 sps:$4 sm:$0xff]  }
 0x73c   : > { %7726 = vmatmul.mubr.bf16.gmra.mrb[16].mxu1 %v27485_v8  ;;  %v19903_v8 = vld [vmem:[%s27346_s7 + $0xf64] ss:$8 sps:$4 sm:$0xff]  }
 0x73d   : > { %7735 = vmatprep.mubr.bf16.mxu1 %v27486_v0  ;;  %7755 = vmatpush1.bf16.msra.mxu1 %v19847_v21  ;;  %v19897_v21 = vld [vmem:[%s27346_s7 + $0xf44] ss:$8 sps:$4 sm:$0xff]  }
 0x73e   : > { %7756 = vmatprep.subr.bf16.mxu1 %v19852_v46  ;;  %v19898_v46 = vld [vmem:[%s27346_s7 + $0xf50] ss:$8 sps:$4 sm:$0xff]   ;;  %v7820_v0 = vld [vmem:[#allocation3 + $0x68] sm:$0xff] }
 0x741   : > { %7757 = vmatpush1.bf16.msra.mxu1 %v19850_v2  ;;  %v7826_v2 = vld [vmem:[#allocation3 + $0x98] sm:$0xff] }
 0x742   : > { %7758 = vmatprep.subr.bf16.mxu1 %v19855_v10  ;;  %v7868_v25 = vpack.c.bf16 %v7826_v2, %v7820_v0  ;;  %v19904_v10 = vld [vmem:[%s27346_s7 + $0xf70] ss:$8 sps:$4 sm:$0xff]   ;;  %v19951_v2 = vld [vmem:[%s27346_s7 + $0x1064] ss:$8 sps:$4 sm:$0xff]  }
 0x743   : > { %v19946_v0 = vld [vmem:[%s27346_s7 + $0x1050] ss:$8 sps:$4 sm:$0xff]  }
 0x744   : > { %7736 = vmatmul.mubr.bf16.gmra.mrb[20].mxu1 %v27487_v54  ;;  %v19916_v54 = vld [vmem:[%s27346_s7 + $0xfb0] ss:$8 sps:$4 sm:$0xff]  }
 0x745   : > { %7759 = vmatpush1.bf16.msra.mxu1 %v19853_v6  ;;  %7778 = vmatprep.mubr.bf16.mxu1 %v6178_v15  ;;  %v19907_v6 = vld [vmem:[%s27346_s7 + $0xf80] ss:$8 sps:$4 sm:$0xff]   ;;  %v19918_v15 = vld [vmem:[%s27346_s7 + $0xfb4] ss:$8 sps:$4 sm:$0xff]  }
 0x746   : > { %7760 = vmatprep.subr.bf16.mxu1 %v19858_v33  ;;  %v19915_v33 = vld [vmem:[%s27346_s7 + $0xfa4] ss:$8 sps:$4 sm:$0xff]  }
 0x749   : > { %7761 = vmatpush1.bf16.msra.mxu1 %v19856_v61  ;;  %v19921_v61 = vld [vmem:[%s27346_s7 + $0xfc4] ss:$8 sps:$4 sm:$0xff]  }
 0x74a   : > { %7762 = vmatprep.subr.bf16.mxu1 %v19861_v62  ;;  %v19919_v62 = vld [vmem:[%s27346_s7 + $0xfc0] ss:$8 sps:$4 sm:$0xff]  }
 0x74d   : > { %7763 = vmatpush1.bf16.msra.mxu1 %v19859_v55  ;;  %v19924_v55 = vld [vmem:[%s27346_s7 + $0xfd4] ss:$8 sps:$4 sm:$0xff]  }
 0x74e   : > { %7764 = vmatprep.subr.bf16.mxu1 %v19864_v30  ;;  %v19922_v30 = vld [vmem:[%s27346_s7 + $0xfd0] ss:$8 sps:$4 sm:$0xff]  }
 0x751   : > { %7765 = vmatpush1.bf16.msra.mxu1 %v19862_v29  ;;  %v19927_v29 = vld [vmem:[%s27346_s7 + $0xfe4] ss:$8 sps:$4 sm:$0xff]  }
 0x752   : > { %7766 = vmatprep.subr.bf16.mxu1 %v19867_v34  ;;  %v19925_v34 = vld [vmem:[%s27346_s7 + $0xfe0] ss:$8 sps:$4 sm:$0xff]  }
 0x755   : > { %7767 = vmatpush1.bf16.msra.mxu1 %v19865_v14  ;;  %v19930_v14 = vld [vmem:[%s27346_s7 + $0xff4] ss:$8 sps:$4 sm:$0xff]  }
 0x756   : > { %7768 = vmatprep.subr.bf16.mxu1 %v19870_v50  ;;  %v19928_v50 = vld [vmem:[%s27346_s7 + $0xff0] ss:$8 sps:$4 sm:$0xff]  }
 0x759   : > { %7769 = vmatpush1.bf16.msra.mxu1 %v19868_v11  ;;  %v19933_v11 = vld [vmem:[%s27346_s7 + $0x1004] ss:$8 sps:$4 sm:$0xff]  }
 0x75a   : > { %7770 = vmatprep.subr.bf16.mxu1 %v19873_v63  ;;  %v7819_v63 = vld [vmem:[#allocation3 + $0x60] sm:$0xff] }
 0x75d   : > { %7771 = vmatpush1.bf16.msra.mxu1 %v19871_v18  ;;  %v7825_v18 = vld [vmem:[#allocation3 + $0x90] sm:$0xff] }
 0x75e   : > { %7772 = vmatprep.subr.bf16.mxu1 %v19876_v56  ;;  %v7832_v56 = vld [vmem:[#allocation3 + $0xc8] sm:$0xff] }
 0x761   : > { %7773 = vmatpush1.bf16.msra.mxu1 %v19874_v40  ;;  %v7838_v40 = vld [vmem:[#allocation3 + $0xf8] sm:$0xff] }
 0x762   : > { %7774 = vmatprep.subr.bf16.mxu1 %v19879_v9  ;;  %v19931_v9 = vld [vmem:[%s27346_s7 + $0x1000] ss:$8 sps:$4 sm:$0xff]  }
 0x765   : > { %7775 = vmatpush1.bf16.msra.mxu1 %v19877_v28  ;;  %v7867_v28 = vpack.c.bf16 %v7825_v18, %v7819_v63  ;;  %v19973_v63 = vld [vmem:[%s27346_s7 + $0x10e0] ss:$8 sps:$4 sm:$0xff]   ;;  %v19978_v18 = vld [vmem:[%s27346_s7 + $0x10f4] ss:$8 sps:$4 sm:$0xff]  }
 0x766   : > { %7776 = vmatprep.subr.bf16.mxu1 %v19882_v60  ;;  %v19936_v60 = vld [vmem:[%s27346_s7 + $0x1014] ss:$8 sps:$4 sm:$0xff]  }
 0x769   : > { %7777 = vmatpush1.bf16.msra.mxu1 %v19880_v44  ;;  %v7874_v44 = vpack.c.bf16 %v7838_v40, %v7832_v56  ;;  %v19976_v56 = vld [vmem:[%s27346_s7 + $0x10f0] ss:$8 sps:$4 sm:$0xff]   ;;  %v19981_v40 = vld [vmem:[%s27346_s7 + $0x1104] ss:$8 sps:$4 sm:$0xff]  }
 0x76a   : > { %8468 = vmatprep.subr.bf16.mxu1 %v19885_v22  ;;  %v19934_v22 = vld [vmem:[%s27346_s7 + $0x1010] ss:$8 sps:$4 sm:$0xff]  }
 0x76c   : > { %7779 = vmatmul.mubr.bf16.vlgmr.msra.gmra.mrb[8].mxu1 %v6177_v32  ;;  %v7837_v32 = vld [vmem:[#allocation3 + $0xf0] sm:$0xff] }
 0x76d   : > { %7788 = vmatprep.mubr.bf16.mxu1 %v27488_v35  ;;  %8469 = vmatpush1.bf16.msra.mxu1 %v19883_v5  ;;  %v7831_v5 = vld [vmem:[#allocation3 + $0xc0] sm:$0xff]  ;;  %v7850_v35 = vld [vmem:[#allocation3 + $0x158] sm:$0xff] }
 0x76e   : > { %8470 = vmatprep.subr.bf16.mxu1 %v19888_v38  ;;  %v7844_v38 = vld [vmem:[#allocation3 + $0x128] sm:$0xff] }
 0x771   : > { %8471 = vmatpush1.bf16.msra.mxu1 %v19886_v52  ;;  %v19937_v52 = vld [vmem:[%s27346_s7 + $0x1020] ss:$8 sps:$4 sm:$0xff]  }
 0x772   : > { %8472 = vmatprep.subr.bf16.mxu1 %v19891_v27  ;;  %v7873_v27 = vpack.c.bf16 %v7837_v32, %v7831_v5  ;;  %v19984_v5 = vld [vmem:[%s27346_s7 + $0x1114] ss:$8 sps:$4 sm:$0xff]  }
 0x774   : > { %7789 = vmatmul.mubr.bf16.gmra.mrb[12].mxu1 %v27489_v42  ;;  %v19940_v42 = vld [vmem:[%s27346_s7 + $0x1030] ss:$8 sps:$4 sm:$0xff]  }
 0x775   : > { %7798 = vmatprep.mubr.bf16.mxu1 %v27490_v45  ;;  %8473 = vmatpush1.bf16.msra.mxu1 %v19889_v47  ;;  %v19942_v47 = vld [vmem:[%s27346_s7 + $0x1034] ss:$8 sps:$4 sm:$0xff]   ;;  %v19945_v45 = vld [vmem:[%s27346_s7 + $0x1044] ss:$8 sps:$4 sm:$0xff]  }
 0x776   : > { %8474 = vmatprep.subr.bf16.mxu1 %v19894_v12  ;;  %v7880_v12 = vpack.c.bf16 %v7850_v35, %v7844_v38  ;;  %v19982_v38 = vld [vmem:[%s27346_s7 + $0x1110] ss:$8 sps:$4 sm:$0xff]   ;;  %v19987_v35 = vld [vmem:[%s27346_s7 + $0x1124] ss:$8 sps:$4 sm:$0xff]  }
 0x779   : > { %8475 = vmatpush1.bf16.msra.mxu1 %v19892_v16  ;;  %v7843_v16 = vld [vmem:[#allocation3 + $0x120] sm:$0xff] }
 0x77a   : > { %8476 = vmatprep.subr.bf16.mxu1 %v19897_v21  ;;  %v7849_v21 = vld [vmem:[#allocation3 + $0x150] sm:$0xff] }
 0x77c   : > { %7799 = vmatmul.mubr.bf16.gmra.mrb[16].mxu1 %v27491_v49  ;;  %v19943_v49 = vld [vmem:[%s27346_s7 + $0x1040] ss:$8 sps:$4 sm:$0xff]  }
 0x77d   : > { %7808 = vmatprep.mubr.bf16.mxu1 %v27492_v57  ;;  %8477 = vmatpush1.bf16.msra.mxu1 %v19895_v41  ;;  %v7856_v41 = vld [vmem:[#allocation3 + $0x188] sm:$0xff]  ;;  %v7879_v57 = vpack.c.bf16 %v7849_v21, %v7843_v16  ;;  %v19990_v16 = vld [vmem:[%s27346_s7 + $0x1134] ss:$8 sps:$4 sm:$0xff]  }
 0x77e   : > { %8478 = vmatprep.subr.bf16.mxu1 %v19900_v31  ;;  %v7862_v31 = vld [vmem:[#allocation3 + $0x1b8] sm:$0xff] }
 0x781   : > { %8479 = vmatpush1.bf16.msra.mxu1 %v19898_v46  ;;  %v19948_v46 = vld [vmem:[%s27346_s7 + $0x1054] ss:$8 sps:$4 sm:$0xff]  }
 0x782   : > { %8480 = vmatprep.subr.bf16.mxu1 %v19903_v8  ;;  %v7886_v8 = vpack.c.bf16 %v7862_v31, %v7856_v41  ;;  %v19988_v41 = vld [vmem:[%s27346_s7 + $0x1130] ss:$8 sps:$4 sm:$0xff]   ;;  %v19993_v31 = vld [vmem:[%s27346_s7 + $0x1144] ss:$8 sps:$4 sm:$0xff]  }
 0x784   : > { %7809 = vmatmul.mubr.bf16.gmra.mrb[20].mxu1 %v27493_v43  ;;  %v7828_v43 = vld [vmem:[#allocation3 + $0xa8] sm:$0xff] }
 0x785   : > { %8481 = vmatpush1.bf16.msra.mxu1 %v19901_v51  ;;  %8500 = vmatprep.mubr.bf16.mxu1 %v7868_v25  ;;  %v7855_v51 = vld [vmem:[#allocation3 + $0x180] sm:$0xff]  ;;  %v7822_v25 = vld [vmem:[#allocation3 + $0x78] sm:$0xff] }
 0x786   : > { %8482 = vmatprep.subr.bf16.mxu1 %v19906_v20  ;;  %v7861_v20 = vld [vmem:[#allocation3 + $0x1b0] sm:$0xff] }
 0x789   : > { %8483 = vmatpush1.bf16.msra.mxu1 %v19904_v10  ;;  %v19949_v10 = vld [vmem:[%s27346_s7 + $0x1060] ss:$8 sps:$4 sm:$0xff]  }
 0x78a   : > { %8484 = vmatprep.subr.bf16.mxu1 %v19909_v13  ;;  %v7885_v13 = vpack.c.bf16 %v7861_v20, %v7855_v51  ;;  %v19994_v20 = vld [vmem:[%s27346_s7 + $0x1150] ss:$8 sps:$4 sm:$0xff]  }
 0x78d   : > { %8485 = vmatpush1.bf16.msra.mxu1 %v19907_v6  ;;  %v19954_v6 = vld [vmem:[%s27346_s7 + $0x1074] ss:$8 sps:$4 sm:$0xff]  }
 0x78e   : > { %8486 = vmatprep.subr.bf16.mxu1 %v19912_v19  ;;  %v7870_v19 = vpack.c.bf16 %v7828_v43, %v7822_v25  ;;  %v19999_v25 = vld [vmem:[%s27346_s7 + $0x1164] ss:$8 sps:$4 sm:$0xff]   ;;  %v7857_v43 = vld [vmem:[#allocation3 + $0x190] sm:$0xff] }
 0x791   : > { %8487 = vmatpush1.bf16.msra.mxu1 %v19910_v37  ;;  %v19952_v37 = vld [vmem:[%s27346_s7 + $0x1070] ss:$8 sps:$4 sm:$0xff]  }
 0x792   : > { %8488 = vmatprep.subr.bf16.mxu1 %v19915_v33  ;;  %v19957_v33 = vld [vmem:[%s27346_s7 + $0x1084] ss:$8 sps:$4 sm:$0xff]  }
 0x795   : > { %8489 = vmatpush1.bf16.msra.mxu1 %v19913_v59  ;;  %v19955_v59 = vld [vmem:[%s27346_s7 + $0x1080] ss:$8 sps:$4 sm:$0xff]  }
 0x796   : > { %8490 = vmatprep.subr.bf16.mxu1 %v19918_v15  ;;  %v19960_v15 = vld [vmem:[%s27346_s7 + $0x1094] ss:$8 sps:$4 sm:$0xff]  }
 0x799   : > { %8491 = vmatpush1.bf16.msra.mxu1 %v19916_v54  ;;  %v19958_v54 = vld [vmem:[%s27346_s7 + $0x1090] ss:$8 sps:$4 sm:$0xff]  }
 0x79a   : > { %8492 = vmatprep.subr.bf16.mxu1 %v19921_v61  ;;  %v19963_v61 = vld [vmem:[%s27346_s7 + $0x10a4] ss:$8 sps:$4 sm:$0xff]  }
 0x79d   : > { %8493 = vmatpush1.bf16.msra.mxu1 %v19919_v62  ;;  %v19961_v62 = vld [vmem:[%s27346_s7 + $0x10a0] ss:$8 sps:$4 sm:$0xff]  }
 0x79e   : > { %8494 = vmatprep.subr.bf16.mxu1 %v19924_v55  ;;  %v19966_v55 = vld [vmem:[%s27346_s7 + $0x10b4] ss:$8 sps:$4 sm:$0xff]  }
 0x7a1   : > { %8495 = vmatpush1.bf16.msra.mxu1 %v19922_v30  ;;  %v19964_v30 = vld [vmem:[%s27346_s7 + $0x10b0] ss:$8 sps:$4 sm:$0xff]  }
 0x7a2   : > { %8496 = vmatprep.subr.bf16.mxu1 %v19927_v29  ;;  %v19969_v29 = vld [vmem:[%s27346_s7 + $0x10c4] ss:$8 sps:$4 sm:$0xff]  }
 0x7a5   : > { %8497 = vmatpush1.bf16.msra.mxu1 %v19925_v34  ;;  %v19967_v34 = vld [vmem:[%s27346_s7 + $0x10c0] ss:$8 sps:$4 sm:$0xff]  }
 0x7a6   : > { %8498 = vmatprep.subr.bf16.mxu1 %v19930_v14  ;;  %v19972_v14 = vld [vmem:[%s27346_s7 + $0x10d4] ss:$8 sps:$4 sm:$0xff]  }
 0x7a9   : > { %8499 = vmatpush1.bf16.msra.mxu1 %v19928_v50  ;;  %v19970_v50 = vld [vmem:[%s27346_s7 + $0x10d0] ss:$8 sps:$4 sm:$0xff]  }
 0x7aa   : > { %8541 = vmatprep.subr.bf16.mxu1 %v19933_v11  ;;  %v19975_v11 = vld [vmem:[%s27346_s7 + $0x10e4] ss:$8 sps:$4 sm:$0xff]  }
 0x7ac   : > { %8501 = vmatmul.mubr.bf16.vlgmr.msra.gmra.mrb[8].mxu1 %v7867_v28  ;;  %v7827_v28 = vld [vmem:[#allocation3 + $0xa0] sm:$0xff] }
 0x7ad   : > { %8510 = vmatprep.mubr.bf16.mxu1 %v7874_v44  ;;  %8542 = vmatpush1.bf16.msra.mxu1 %v19931_v9  ;;  %v7821_v9 = vld [vmem:[#allocation3 + $0x70] sm:$0xff]  ;;  %v7840_v44 = vld [vmem:[#allocation3 + $0x108] sm:$0xff] }
 0x7ae   : > { %8543 = vmatprep.subr.bf16.mxu1 %v19936_v60  ;;  %v7834_v60 = vld [vmem:[#allocation3 + $0xd8] sm:$0xff] }
 0x7af   : > { %v7876_v32 = vpack.c.bf16 %v7840_v44, %v7834_v60  ;;  %v20095_v60 = vld [vmem:[%s27348_s9 + $0x18] sm:$0xff]   ;;  %v20021_v44 = vld [vmem:[%s27346_s7 + $0x11e0] ss:$8 sps:$4 sm:$0xff]  }
 0x7b1   : > { %8544 = vmatpush1.bf16.msra.mxu1 %v19934_v22  ;;  %v19979_v22 = vld [vmem:[%s27346_s7 + $0x1100] ss:$8 sps:$4 sm:$0xff]  }
 0x7b2   : > { %8545 = vmatprep.subr.bf16.mxu1 %v19939_v24  ;;  %v7869_v24 = vpack.c.bf16 %v7827_v28, %v7821_v9  ;;  %v20018_v9 = vld [vmem:[%s27346_s7 + $0x11d0] ss:$8 sps:$4 sm:$0xff]   ;;  %v20023_v28 = vld [vmem:[%s27346_s7 + $0x11e4] ss:$8 sps:$4 sm:$0xff]  }
 0x7b4   : > { %8511 = vmatmul.mubr.bf16.gmra.mrb[12].mxu1 %v7873_v27  ;;  %v7839_v27 = vld [vmem:[#allocation3 + $0x100] sm:$0xff] }
 0x7b5   : > { %8520 = vmatprep.mubr.bf16.mxu1 %v7880_v12  ;;  %8546 = vmatpush1.bf16.msra.mxu1 %v19937_v52  ;;  %v7833_v52 = vld [vmem:[#allocation3 + $0xd0] sm:$0xff]  ;;  %v7852_v12 = vld [vmem:[#allocation3 + $0x168] sm:$0xff] }
 0x7b6   : > { %8547 = vmatprep.subr.bf16.mxu1 %v19942_v47  ;;  %v7846_v47 = vld [vmem:[#allocation3 + $0x138] sm:$0xff] }
 0x7b7   : > { %v7882_v21 = vpack.c.bf16 %v7852_v12, %v7846_v47  ;;  %v7835_v12 = vld [vmem:[#allocation3 + $0xe0] sm:$0xff] }
 0x7b9   : > { %8548 = vmatpush1.bf16.msra.mxu1 %v19940_v42  ;;  %v19985_v42 = vld [vmem:[%s27346_s7 + $0x1120] ss:$8 sps:$4 sm:$0xff]  }
 0x7ba   : > { %8549 = vmatprep.subr.bf16.mxu1 %v19945_v45  ;;  %v7875_v45 = vpack.c.bf16 %v7839_v27, %v7833_v52  ;;  %v7842_v52 = vld [vmem:[#allocation3 + $0x118] sm:$0xff] }
 0x7bc   : > { %8521 = vmatmul.mubr.bf16.gmra.mrb[16].mxu1 %v7879_v57  ;;  %v7851_v57 = vld [vmem:[#allocation3 + $0x160] sm:$0xff] }
 0x7bd   : > { %8530 = vmatprep.mubr.bf16.mxu1 %v7886_v8  ;;  %8550 = vmatpush1.bf16.msra.mxu1 %v19943_v49  ;;  %v7845_v49 = vld [vmem:[#allocation3 + $0x130] sm:$0xff]  ;;  %v19991_v8 = vld [vmem:[%s27346_s7 + $0x1140] ss:$8 sps:$4 sm:$0xff]  }
 0x7be   : > { %8551 = vmatprep.subr.bf16.mxu1 %v19948_v46  ;;  %v7858_v46 = vld [vmem:[#allocation3 + $0x198] sm:$0xff] }
 0x7bf   : > { %v7888_v51 = vpack.c.bf16 %v23723_v58, %v7858_v46  ;;  %v20582_v46 = vld [vmem:[#allocation3] sm:$0xff] }
 0x7c1   : > { %8552 = vmatpush1.bf16.msra.mxu1 %v19946_v0  ;;  %v7881_v0 = vpack.c.bf16 %v7851_v57, %v7845_v49 }
 0x7c2   : > { %8553 = vmatprep.subr.bf16.mxu1 %v19951_v2  ;;  %v19996_v2 = vld [vmem:[%s27346_s7 + $0x1154] ss:$8 sps:$4 sm:$0xff]  }
 0x7c4   : > { %8531 = vmatmul.mubr.bf16.gmra.mrb[20].mxu1 %v7885_v13  ;;  %v7830_v13 = vld [vmem:[#allocation3 + $0xb8] sm:$0xff] }
 0x7c5   : > { %8554 = vmatpush1.bf16.msra.mxu1 %v19949_v10  ;;  %8573 = vmatprep.mubr.bf16.mxu1 %v7870_v19  ;;  %v7824_v10 = vld [vmem:[#allocation3 + $0x88] sm:$0xff]  ;;  %v7887_v19 = vpack.c.bf16 %v23723_v58, %v7857_v43  ;;  %v20040_v43 = vld [vmem:[%s27342_s3 + $0x34] ss:$8 sps:$4 sm:$0xff]  }
 0x7c6   : > { %8555 = vmatprep.subr.bf16.mxu1 %v19954_v6  ;;  %v19997_v6 = vld [vmem:[%s27346_s7 + $0x1160] ss:$8 sps:$4 sm:$0xff]  }
 0x7c9   : > { %8556 = vmatpush1.bf16.msra.mxu1 %v19952_v37  ;;  %v20002_v37 = vld [vmem:[%s27346_s7 + $0x1174] ss:$8 sps:$4 sm:$0xff]  }
 0x7ca   : > { %8557 = vmatprep.subr.bf16.mxu1 %v19957_v33  ;;  %v7872_v33 = vpack.c.bf16 %v7830_v13, %v7824_v10  ;;  %v20038_v10 = vld [vmem:[%s27342_s3 + $0x30] ss:$8 sps:$4 sm:$0xff]   ;;  %v20044_v13 = vld [vmem:[%s27342_s3 + $0x44] ss:$8 sps:$4 sm:$0xff]  }
 0x7cd   : > { %8558 = vmatpush1.bf16.msra.mxu1 %v19955_v59  ;;  %v20000_v59 = vld [vmem:[%s27346_s7 + $0x1170] ss:$8 sps:$4 sm:$0xff]  }
 0x7ce   : > { %8559 = vmatprep.subr.bf16.mxu1 %v19960_v15  ;;  %v20005_v15 = vld [vmem:[%s27346_s7 + $0x1184] ss:$8 sps:$4 sm:$0xff]  }
 0x7d1   : > { %8560 = vmatpush1.bf16.msra.mxu1 %v19958_v54  ;;  %v20003_v54 = vld [vmem:[%s27346_s7 + $0x1180] ss:$8 sps:$4 sm:$0xff]  }
 0x7d2   : > { %8561 = vmatprep.subr.bf16.mxu1 %v19963_v61  ;;  %v20083_v61 = vld [vmem:[%s27348_s9] sm:$0xff]  }
 0x7d3   : > { %17140 = vmatmul.mubr.msk.bf16.vlgmr.msra.gmra.mrb[20].mxu0 %vm8868_vm8, %v20083_v61  ;;  %v20054_v61 = vld [vmem:[%s27342_s3 + $0x74] ss:$8 sps:$4 sm:$0xff]  }
 0x7d5   : > { %8562 = vmatpush1.bf16.msra.mxu1 %v19961_v62  ;;  %v20008_v62 = vld [vmem:[%s27346_s7 + $0x1194] ss:$8 sps:$4 sm:$0xff]  }
 0x7d6   : > { %8563 = vmatprep.subr.bf16.mxu1 %v19966_v55  ;;  %v27494_v55 = vmov 0  }
 0x7d7   : > { %8959 = vmatprep.mubr.bf16.mxu0 %v27494_v55 }
 0x7d9   : > { %8564 = vmatpush1.bf16.msra.mxu1 %v19964_v30  ;;  %v20006_v30 = vld [vmem:[%s27346_s7 + $0x1190] ss:$8 sps:$4 sm:$0xff]  }
 0x7da   : > { %8565 = vmatprep.subr.bf16.mxu1 %v19969_v29  ;;  %v20011_v29 = vld [vmem:[%s27346_s7 + $0x11a4] ss:$8 sps:$4 sm:$0xff]  }
 0x7dd   : > { %8566 = vmatpush1.bf16.msra.mxu1 %v19967_v34  ;;  %v20087_v34 = vld [vmem:[%s27348_s9 + $0x8] sm:$0xff]  }
 0x7de   : > { %8567 = vmatprep.subr.bf16.mxu1 %v19972_v14  ;;  %v20009_v14 = vld [vmem:[%s27346_s7 + $0x11a0] ss:$8 sps:$4 sm:$0xff]   ;;  %17141 = vmatmul.mubr.msk.bf16.gmra.mrb[24].mxu0 %vm8868_vm8, %v20087_v34 }
 0x7df   : > { %8969 = vmatprep.mubr.bf16.mxu0 %v27494_v55  ;;  %v20056_v34 = vld [vmem:[%s27342_s3 + $0x80] ss:$8 sps:$4 sm:$0xff]  }
 0x7e1   : > { %8568 = vmatpush1.bf16.msra.mxu1 %v19970_v50  ;;  %v20014_v50 = vld [vmem:[%s27346_s7 + $0x11b4] ss:$8 sps:$4 sm:$0xff]  }
 0x7e2   : > { %8569 = vmatprep.subr.bf16.mxu1 %v19975_v11  ;;  %v20012_v11 = vld [vmem:[%s27346_s7 + $0x11b0] ss:$8 sps:$4 sm:$0xff]  }
 0x7e5   : > { %8570 = vmatpush1.bf16.msra.mxu1 %v19973_v63  ;;  %v20017_v63 = vld [vmem:[%s27346_s7 + $0x11c4] ss:$8 sps:$4 sm:$0xff]  }
 0x7e6   : > { %8571 = vmatprep.subr.bf16.mxu1 %v19978_v18  ;;  %v20091_v18 = vld [vmem:[%s27348_s9 + $0x10] sm:$0xff]  }
 0x7e7   : > { %17142 = vmatmul.mubr.msk.bf16.gmra.mrb[28].mxu0 %vm8868_vm8, %v20091_v18  ;;  %v20063_v18 = vld [vmem:[%s27342_s3 + $0xa0] ss:$8 sps:$4 sm:$0xff]  }
 0x7e8   : > { %8979 = vmatprep.mubr.bf16.mxu0 %v27494_v55 }
 0x7e9   : > { %8572 = vmatpush1.bf16.msra.mxu1 %v19976_v56  ;;  %v20015_v56 = vld [vmem:[%s27346_s7 + $0x11c0] ss:$8 sps:$4 sm:$0xff]  }
 0x7ea   : > { %8614 = vmatprep.subr.bf16.mxu1 %v19981_v40  ;;  %v20020_v40 = vld [vmem:[%s27346_s7 + $0x11d4] ss:$8 sps:$4 sm:$0xff]  }
 0x7ec   : > { %8574 = vmatmul.mubr.bf16.vlgmr.msra.gmra.mrb[8].mxu1 %v7869_v24  ;;  %v20024_v24 = vld [vmem:[%s27346_s7 + $0x11f0] ss:$8 sps:$4 sm:$0xff]  }
 0x7ed   : > { %8583 = vmatprep.mubr.bf16.mxu1 %v7876_v32  ;;  %8615 = vmatpush1.bf16.msra.mxu1 %v19979_v22  ;;  %v20026_v22 = vld [vmem:[%s27346_s7 + $0x11f4] ss:$8 sps:$4 sm:$0xff]  }
 0x7ee   : > { %8616 = vmatprep.subr.bf16.mxu1 %v19984_v5  ;;  %v7823_v5 = vld [vmem:[#allocation3 + $0x80] sm:$0xff]  ;;  %v7829_v32 = vld [vmem:[#allocation3 + $0xb0] sm:$0xff] }
 0x7ef   : > { %17143 = vmatmul.mubr.msk.bf16.gmra.mrb[32].mxu0 %vm8868_vm8, %v20095_v60  ;;  %v7871_v27 = vpack.c.bf16 %v7829_v32, %v7823_v5  ;;  %v20070_v60 = vld [vmem:[%s27342_s3 + $0xc0] ss:$8 sps:$4 sm:$0xff]   ;;  %v20076_v5 = vld [vmem:[%s27348_s9 + $0x78] sm:$0xff]  }
 0x7f0   : > { %8989 = vmatprep.mubr.bf16.mxu0 %v27494_v55  ;;  %v20077_v32 = vld [vmem:[%s27342_s3 + $0xe0] ss:$8 sps:$4 sm:$0xff]  }
 0x7f1   : > { %8617 = vmatpush1.bf16.msra.mxu1 %v19982_v38  ;;  %v20099_v38 = vld [vmem:[%s27348_s9 + $0x20] sm:$0xff]  }
 0x7f2   : > { %8618 = vmatprep.subr.bf16.mxu1 %v19987_v35  ;;  %v7836_v35 = vld [vmem:[#allocation3 + $0xe8] sm:$0xff] }
 0x7f3   : > { %v7878_v47 = vpack.c.bf16 %v7842_v52, %v7836_v35  ;;  %v20080_v35 = vld [vmem:[%s27342_s3 + $0xf0] ss:$8 sps:$4 sm:$0xff]   ;;  %v20084_v52 = vld [vmem:[%s21597_s20] ss:$8 sps:$4 sm:$0xff]  }
 0x7f4   : > { %8584 = vmatmul.mubr.bf16.gmra.mrb[12].mxu1 %v7875_v45  ;;  %v20103_v45 = vld [vmem:[%s27348_s9 + $0x28] sm:$0xff]  }
 0x7f5   : > { %8593 = vmatprep.mubr.bf16.mxu1 %v7882_v21  ;;  %8619 = vmatpush1.bf16.msra.mxu1 %v19985_v42  ;;  %v7841_v42 = vld [vmem:[#allocation3 + $0x110] sm:$0xff] }
 0x7f6   : > { %8620 = vmatprep.subr.bf16.mxu1 %v19990_v16  ;;  %v7848_v16 = vld [vmem:[#allocation3 + $0x148] sm:$0xff]  ;;  %v7877_v21 = vpack.c.bf16 %v7841_v42, %v7835_v12 }
 0x7f7   : > { %17144 = vmatmul.mubr.msk.bf16.gmra.mrb[36].mxu0 %vm8868_vm8, %v20099_v38  ;;  %v20086_v38 = vld [vmem:[%s21597_s20 + $0x4] ss:$8 sps:$4 sm:$0xff]   ;;  %v20094_v42 = vld [vmem:[%s21597_s20 + $0x20] ss:$8 sps:$4 sm:$0xff]  }
 0x7f8   : > { %8999 = vmatprep.mubr.bf16.mxu0 %v27494_v55  ;;  %v20092_v12 = vld [vmem:[%s21597_s20 + $0x24] ss:$8 sps:$4 sm:$0xff]  }
 0x7f9   : > { %8621 = vmatpush1.bf16.msra.mxu1 %v19988_v41 }
 0x7fa   : > { %8622 = vmatprep.subr.bf16.mxu1 %v19993_v31  ;;  %v7860_v31 = vld [vmem:[#allocation3 + $0x1a8] sm:$0xff] }
 0x7fb   : > { %v7890_v57 = vpack.c.bf16 %v23723_v58, %v7860_v31  ;;  %v20028_v58 = vld [vmem:[%s27342_s3] ss:$8 sps:$4 sm:$0xff]   ;;  %v20142_v31 = vld [vmem:[%s27346_s7 + $0x310] ss:$8 sps:$4 sm:$0xff]  }
 0x7fc   : > { %8594 = vmatmul.mubr.bf16.gmra.mrb[16].mxu1 %v7881_v0  ;;  %v20033_v0 = vld [vmem:[%s27342_s3 + $0x14] ss:$8 sps:$4 sm:$0xff]  }
 0x7fd   : > { %8603 = vmatprep.mubr.bf16.mxu1 %v7888_v51  ;;  %8623 = vmatpush1.bf16.msra.mxu1 %v19991_v8  ;;  %v20037_v51 = vld [vmem:[%s27342_s3 + $0x24] ss:$8 sps:$4 sm:$0xff]  }
 0x7fe   : > { %8624 = vmatprep.subr.bf16.mxu1 %v19996_v2  ;;  %v20031_v2 = vld [vmem:[%s27342_s3 + $0x10] ss:$8 sps:$4 sm:$0xff]  }
 0x7ff   : > { %17145 = vmatmul.mubr.msk.bf16.gmra.mrb[40].mxu0 %vm8868_vm8, %v20103_v45  ;;  %v20096_v45 = vld [vmem:[%s21597_s20 + $0x34] ss:$8 sps:$4 sm:$0xff]  }
 0x800   : > { %9009 = vmatprep.mubr.bf16.mxu0 %v27494_v55 }
 0x801   : > { %8625 = vmatpush1.bf16.msra.mxu1 %v19994_v20  ;;  %v20034_v20 = vld [vmem:[%s27348_s9 + $0x48] sm:$0xff]  }
 0x802   : > { %8626 = vmatprep.subr.bf16.mxu1 %v19999_v25  ;;  %v20035_v25 = vld [vmem:[%s27342_s3 + $0x20] ss:$8 sps:$4 sm:$0xff]  }
 0x804   : > { %8604 = vmatmul.mubr.bf16.gmra.mrb[20].mxu1 %v7887_v19  ;;  %v20042_v19 = vld [vmem:[%s27342_s3 + $0x40] ss:$8 sps:$4 sm:$0xff]  }
 0x805   : > { %8627 = vmatpush1.bf16.msra.mxu1 %v19997_v6  ;;  %8646 = vmatprep.mubr.bf16.mxu1 %v7872_v33  ;;  %v20041_v6 = vld [vmem:[%s27348_s9 + $0x50] sm:$0xff]  }
 0x806   : > { %8628 = vmatprep.subr.bf16.mxu1 %v20002_v37  ;;  %v20047_v37 = vld [vmem:[%s27342_s3 + $0x54] ss:$8 sps:$4 sm:$0xff]   ;;  %v20045_v33 = vld [vmem:[%s27342_s3 + $0x50] ss:$8 sps:$4 sm:$0xff]  }
 0x809   : > { %8629 = vmatpush1.bf16.msra.mxu1 %v20000_v59  ;;  %v20051_v59 = vld [vmem:[%s27342_s3 + $0x64] ss:$8 sps:$4 sm:$0xff]  }
 0x80a   : > { %8630 = vmatprep.subr.bf16.mxu1 %v20005_v15  ;;  %v20048_v15 = vld [vmem:[%s27348_s9 + $0x58] sm:$0xff]  }
 0x80d   : > { %8631 = vmatpush1.bf16.msra.mxu1 %v20003_v54  ;;  %v20049_v54 = vld [vmem:[%s27342_s3 + $0x60] ss:$8 sps:$4 sm:$0xff]  }
 0x80e   : > { %8632 = vmatprep.subr.bf16.mxu1 %v20008_v62  ;;  %v20052_v62 = vld [vmem:[%s27342_s3 + $0x70] ss:$8 sps:$4 sm:$0xff]  }
 0x811   : > { %8633 = vmatpush1.bf16.msra.mxu1 %v20006_v30  ;;  %v20058_v30 = vld [vmem:[%s27342_s3 + $0x84] ss:$8 sps:$4 sm:$0xff]  }
 0x812   : > { %8634 = vmatprep.subr.bf16.mxu1 %v20011_v29  ;;  %v20055_v29 = vld [vmem:[%s27348_s9 + $0x60] sm:$0xff]  }
 0x815   : > { %8635 = vmatpush1.bf16.msra.mxu1 %v20009_v14  ;;  %v20061_v14 = vld [vmem:[%s27342_s3 + $0x94] ss:$8 sps:$4 sm:$0xff]  }
 0x816   : > { %8636 = vmatprep.subr.bf16.mxu1 %v20014_v50  ;;  %v20059_v50 = vld [vmem:[%s27342_s3 + $0x90] ss:$8 sps:$4 sm:$0xff]  }
 0x819   : > { %8637 = vmatpush1.bf16.msra.mxu1 %v20012_v11  ;;  %v20065_v11 = vld [vmem:[%s27342_s3 + $0xa4] ss:$8 sps:$4 sm:$0xff]  }
 0x81a   : > { %8638 = vmatprep.subr.bf16.mxu1 %v20017_v63  ;;  %v20062_v63 = vld [vmem:[%s27348_s9 + $0x68] sm:$0xff]  }
 0x81d   : > { %8639 = vmatpush1.bf16.msra.mxu1 %v20015_v56  ;;  %v20068_v56 = vld [vmem:[%s27342_s3 + $0xb4] ss:$8 sps:$4 sm:$0xff]  }
 0x81e   : > { %8640 = vmatprep.subr.bf16.mxu1 %v20020_v40  ;;  %v20066_v40 = vld [vmem:[%s27342_s3 + $0xb0] ss:$8 sps:$4 sm:$0xff]  }
 0x821   : > { %8641 = vmatpush1.bf16.msra.mxu1 %v20018_v9  ;;  %v20072_v9 = vld [vmem:[%s27342_s3 + $0xc4] ss:$8 sps:$4 sm:$0xff]  }
 0x822   : > { %8642 = vmatprep.subr.bf16.mxu1 %v20023_v28  ;;  %v20069_v28 = vld [vmem:[%s27348_s9 + $0x70] sm:$0xff]  }
 0x825   : > { %8643 = vmatpush1.bf16.msra.mxu1 %v20021_v44  ;;  %v20075_v44 = vld [vmem:[%s27342_s3 + $0xd4] ss:$8 sps:$4 sm:$0xff]  }
 0x826   : > { %8644 = vmatprep.subr.bf16.mxu1 %v20026_v22  ;;  %v20073_v22 = vld [vmem:[%s27342_s3 + $0xd0] ss:$8 sps:$4 sm:$0xff]  }
 0x829   : > { %8645 = vmatpush1.bf16.msra.mxu1 %v20024_v24  ;;  %v20079_v24 = vld [vmem:[%s27342_s3 + $0xe4] ss:$8 sps:$4 sm:$0xff]  }
 0x82a   : > { %17719 = vmatprep.subr.bf16.mxu1 %v22954_v48  ;;  %v7854_v48 = vld [vmem:[#allocation3 + $0x178] sm:$0xff] }
 0x82b   : > { %v7884_v41 = vpack.c.bf16 %v7854_v48, %v7848_v16  ;;  %v20139_v16 = vld [vmem:[%s27346_s7 + $0x300] ss:$8 sps:$4 sm:$0xff]   ;;  %v20141_v48 = vld [vmem:[%s27346_s7 + $0x304] ss:$8 sps:$4 sm:$0xff]  }
 0x82c   : > { %8647 = vmatmul.mubr.bf16.vlgmr.msra.gmra.mrb[8].mxu1 %v7871_v27  ;;  %v20088_v27 = vld [vmem:[%s21597_s20 + $0x14] ss:$8 sps:$4 sm:$0xff]  }
 0x82d   : > { %8656 = vmatprep.mubr.bf16.mxu1 %v7878_v47  ;;  %17723 = vmatpush1.bf16.msra.mxu1 %v22928_v36  ;;  %v20030_v36 = vld [vmem:[%s27342_s3 + $0x4] ss:$8 sps:$4 sm:$0xff]   ;;  %v20090_v47 = vld [vmem:[%s21597_s20 + $0x10] ss:$8 sps:$4 sm:$0xff]  }
 0x82e   : > { %17720 = vmatprep.subr.bf16.mxu1 %v23034_v23  ;;  %v7847_v23 = vld [vmem:[#allocation3 + $0x140] sm:$0xff] }
 0x831   : > { %17724 = vmatpush1.bf16.msra.mxu1 %v23038_v26  ;;  %v7853_v26 = vld [vmem:[#allocation3 + $0x170] sm:$0xff] }
 0x832   : > { %17721 = vmatprep.subr.bf16.mxu1 %v23205_v39  ;;  %v20107_v39 = vld [vmem:[%s27348_s9 + $0x30] sm:$0xff]   ;;  %v7883_v49 = vpack.c.bf16 %v7853_v26, %v7847_v23 }
 0x833   : > { %17146 = vmatmul.mubr.msk.bf16.gmra.mrb[44].mxu0 %vm8868_vm8, %v20107_v39  ;;  %v20098_v23 = vld [vmem:[%s21597_s20 + $0x30] ss:$8 sps:$4 sm:$0xff]   ;;  %v20153_v26 = vld [vmem:[%s27346_s7 + $0x514] ss:$8 sps:$4 sm:$0xff]   ;;  %v20100_v39 = vld [vmem:[%s21597_s20 + $0x44] ss:$8 sps:$4 sm:$0xff]  }
 0x834   : > { %8657 = vmatmul.mubr.bf16.gmra.mrb[12].mxu1 %v7877_v21  ;;  %9019 = vmatprep.mubr.bf16.mxu0 %v27494_v55  ;;  %v20144_v21 = vld [vmem:[%s27346_s7 + $0x314] ss:$8 sps:$4 sm:$0xff]  }
 0x835   : > { %8666 = vmatprep.mubr.bf16.mxu1 %v7884_v41  ;;  %17725 = vmatpush1.bf16.msra.mxu1 %v23173_v17  ;;  %v7859_v17 = vld [vmem:[#allocation3 + $0x1a0] sm:$0xff] }
 0x836   : > { %17722 = vmatprep.subr.bf16.mxu1 %v23280_v53  ;;  %v20111_v53 = vld [vmem:[%s27348_s9 + $0x38] sm:$0xff]   ;;  %v7889_v8 = vpack.c.bf16 %v20582_v46, %v7859_v17  ;;  %v20145_v41 = vld [vmem:[%s27346_s7 + $0x500] ss:$8 sps:$4 sm:$0xff]   ;;  %v20159_v17 = vld [vmem:[%s27346_s7 + $0x524] ss:$8 sps:$4 sm:$0xff]  }
 0x837   : > { %v20156_v46 = vld [vmem:[%s27346_s7 + $0x334] ss:$8 sps:$4 sm:$0xff]  }
 0x839   : > { %17726 = vmatpush1.bf16.msra.mxu1 %v23253_v1  ;;  %v20027_v1 = vld [vmem:[%s27348_s9 + $0x40] sm:$0xff]  }
 0x83a   : > { %9506 = vmatprep.subr.bf16.mxu1 %v20030_v36  ;;  %v20147_v36 = vld [vmem:[%s27346_s7 + $0x504] ss:$8 sps:$4 sm:$0xff]  }
 0x83b   : > { %17147 = vmatmul.mubr.msk.bf16.gmra.mrb[48].mxu0 %vm8868_vm8, %v20111_v53  ;;  %12472 = vmatprep.subr.bf16.mxu0 %v20147_v36  ;;  %v20148_v53 = vld [vmem:[%s27346_s7 + $0x320] ss:$8 sps:$4 sm:$0xff]   ;;  %v20202_v36 = vld [vmem:[%s27346_s7 + $0x3b0] ss:$8 sps:$4 sm:$0xff]  }
 0x83c   : > { %8667 = vmatmul.mubr.bf16.gmra.mrb[16].mxu1 %v7883_v49  ;;  %12473 = vmatpush1.bf16.msra.mxu0 %v20145_v41  ;;  %v20150_v49 = vld [vmem:[%s27346_s7 + $0x324] ss:$8 sps:$4 sm:$0xff]  }
 0x83d   : > { %8676 = vmatprep.mubr.bf16.mxu1 %v7890_v57  ;;  %v20151_v57 = vld [vmem:[%s27346_s7 + $0x510] ss:$8 sps:$4 sm:$0xff]   ;;  %12474 = vmatprep.subr.bf16.mxu0 %v20153_v26  ;;  %v20213_v26 = vld [vmem:[%s27346_s7 + $0x5b4] ss:$8 sps:$4 sm:$0xff]  }
 0x840   : > { %12475 = vmatpush1.bf16.msra.mxu0 %v20151_v57  ;;  %v20208_v57 = vld [vmem:[%s27346_s7 + $0x3c0] ss:$8 sps:$4 sm:$0xff]  }
 0x841   : > { %12476 = vmatprep.subr.bf16.mxu0 %v20159_v17  ;;  %v20219_v17 = vld [vmem:[%s27346_s7 + $0x5c4] ss:$8 sps:$4 sm:$0xff]  }
 0x844   : > { %8677 = vmatmul.mubr.bf16.gmra.mrb[20].mxu1 %v7889_v8  ;;  %v20157_v8 = vld [vmem:[%s27346_s7 + $0x520] ss:$8 sps:$4 sm:$0xff]  }
 0x845   : > { %9029 = vmatprep.mubr.bf16.mxu1 %v27494_v55  ;;  %12477 = vmatpush1.bf16.msra.mxu0 %v20157_v8  ;;  %v20216_v8 = vld [vmem:[%s27346_s7 + $0x3d4] ss:$8 sps:$4 sm:$0xff]  }
 0x84c   : > { %17148 = vmatmul.mubr.msk.bf16.vlgmr.msra.gmra.mrb[24].mxu1 %vm8868_vm8, %v20027_v1  ;;  %v20165_v1 = vld [vmem:[%s27346_s7 + $0x534] ss:$8 sps:$4 sm:$0xff]  }
 0x84d   : > { %9507 = vmatpush1.bf16.msra.mxu1 %v20028_v58  ;;  %9039 = vmatprep.mubr.bf16.mxu1 %v27494_v55  ;;  %v20102_v58 = vld [vmem:[%s21597_s20 + $0x40] ss:$8 sps:$4 sm:$0xff]  }
 0x84e   : > { %9508 = vmatprep.subr.bf16.mxu1 %v20033_v0  ;;  %v20104_v0 = vld [vmem:[%s21597_s20 + $0x54] ss:$8 sps:$4 sm:$0xff]   ;;  %12478 = vmatprep.subr.bf16.mxu0 %v20165_v1  ;;  %v20129_v1 = vld [vmem:[%s21597_s20 + $0xc0] ss:$8 sps:$4 sm:$0xff]  }
 0x851   : > { %9509 = vmatpush1.bf16.msra.mxu1 %v20031_v2  ;;  %v20154_v2 = vld [vmem:[%s27346_s7 + $0x330] ss:$8 sps:$4 sm:$0xff]  }
 0x852   : > { %9510 = vmatprep.subr.bf16.mxu1 %v20037_v51  ;;  %v20162_v51 = vld [vmem:[%s27346_s7 + $0x344] ss:$8 sps:$4 sm:$0xff]  }
 0x854   : > { %17149 = vmatmul.mubr.msk.bf16.gmra.mrb[28].mxu1 %vm8868_vm8, %v20034_v20  ;;  %v20163_v20 = vld [vmem:[%s27346_s7 + $0x530] ss:$8 sps:$4 sm:$0xff]  }
 0x855   : > { %9511 = vmatpush1.bf16.msra.mxu1 %v20035_v25  ;;  %9049 = vmatprep.mubr.bf16.mxu1 %v27494_v55  ;;  %v20171_v25 = vld [vmem:[%s27346_s7 + $0x544] ss:$8 sps:$4 sm:$0xff]  }
 0x856   : > { %9512 = vmatprep.subr.bf16.mxu1 %v20040_v43  ;;  %v20160_v43 = vld [vmem:[%s27346_s7 + $0x340] ss:$8 sps:$4 sm:$0xff]   ;;  %12479 = vmatpush1.bf16.msra.mxu0 %v20163_v20  ;;  %v20225_v20 = vld [vmem:[%s27346_s7 + $0x5d4] ss:$8 sps:$4 sm:$0xff]  }
 0x857   : > { %12480 = vmatprep.subr.bf16.mxu0 %v20171_v25 }
 0x859   : > { %9513 = vmatpush1.bf16.msra.mxu1 %v20038_v10  ;;  %v20168_v10 = vld [vmem:[%s27346_s7 + $0x354] ss:$8 sps:$4 sm:$0xff]  }
 0x85a   : > { %9514 = vmatprep.subr.bf16.mxu1 %v20044_v13  ;;  %v20169_v13 = vld [vmem:[%s27346_s7 + $0x540] ss:$8 sps:$4 sm:$0xff]  }
 0x85b   : > { %12481 = vmatpush1.bf16.msra.mxu0 %v20169_v13  ;;  %v20220_v13 = vld [vmem:[%s27346_s7 + $0x3e0] ss:$8 sps:$4 sm:$0xff]  }
 0x85c   : > { %17150 = vmatmul.mubr.msk.bf16.gmra.mrb[32].mxu1 %vm8868_vm8, %v20041_v6  ;;  %v20177_v6 = vld [vmem:[%s27346_s7 + $0x554] ss:$8 sps:$4 sm:$0xff]  }
 0x85d   : > { %9515 = vmatpush1.bf16.msra.mxu1 %v20042_v19  ;;  %9059 = vmatprep.mubr.bf16.mxu1 %v27494_v55  ;;  %v20106_v19 = vld [vmem:[%s21597_s20 + $0x50] ss:$8 sps:$4 sm:$0xff]  }
 0x85e   : > { %9516 = vmatprep.subr.bf16.mxu1 %v20047_v37  ;;  %v20108_v37 = vld [vmem:[%s21597_s20 + $0x64] ss:$8 sps:$4 sm:$0xff]   ;;  %12482 = vmatprep.subr.bf16.mxu0 %v20177_v6 }
 0x85f   : > { %v20231_v6 = vld [vmem:[%s27346_s7 + $0x5e4] ss:$8 sps:$4 sm:$0xff]  }
 0x861   : > { %9517 = vmatpush1.bf16.msra.mxu1 %v20045_v33  ;;  %v20166_v33 = vld [vmem:[%s27346_s7 + $0x350] ss:$8 sps:$4 sm:$0xff]  }
 0x862   : > { %9518 = vmatprep.subr.bf16.mxu1 %v20051_v59  ;;  %v20174_v59 = vld [vmem:[%s27346_s7 + $0x364] ss:$8 sps:$4 sm:$0xff]  }
 0x864   : > { %17151 = vmatmul.mubr.msk.bf16.gmra.mrb[36].mxu1 %vm8868_vm8, %v20048_v15  ;;  %v20175_v15 = vld [vmem:[%s27346_s7 + $0x550] ss:$8 sps:$4 sm:$0xff]  }
 0x865   : > { %9519 = vmatpush1.bf16.msra.mxu1 %v20049_v54  ;;  %9069 = vmatprep.mubr.bf16.mxu1 %v27494_v55  ;;  %v20183_v54 = vld [vmem:[%s27346_s7 + $0x564] ss:$8 sps:$4 sm:$0xff]  }
 0x866   : > { %9520 = vmatprep.subr.bf16.mxu1 %v20054_v61  ;;  %v20172_v61 = vld [vmem:[%s27346_s7 + $0x360] ss:$8 sps:$4 sm:$0xff]   ;;  %12483 = vmatpush1.bf16.msra.mxu0 %v20175_v15 }
 0x867   : > { %12484 = vmatprep.subr.bf16.mxu0 %v20183_v54  ;;  %v20226_v54 = vld [vmem:[%s27346_s7 + $0x3f0] ss:$8 sps:$4 sm:$0xff]  }
 0x869   : > { %9521 = vmatpush1.bf16.msra.mxu1 %v20052_v62  ;;  %v20180_v62 = vld [vmem:[%s27346_s7 + $0x374] ss:$8 sps:$4 sm:$0xff]  }
 0x86a   : > { %9522 = vmatprep.subr.bf16.mxu1 %v20058_v30  ;;  %v20181_v30 = vld [vmem:[%s27346_s7 + $0x560] ss:$8 sps:$4 sm:$0xff]  }
 0x86b   : > { %12485 = vmatpush1.bf16.msra.mxu0 %v20181_v30  ;;  %v20234_v30 = vld [vmem:[%s27346_s7 + $0x5f4] ss:$8 sps:$4 sm:$0xff]  }
 0x86c   : > { %17152 = vmatmul.mubr.msk.bf16.gmra.mrb[40].mxu1 %vm8868_vm8, %v20055_v29  ;;  %v20189_v29 = vld [vmem:[%s27346_s7 + $0x574] ss:$8 sps:$4 sm:$0xff]  }
 0x86d   : > { %9523 = vmatpush1.bf16.msra.mxu1 %v20056_v34  ;;  %9079 = vmatprep.mubr.bf16.mxu1 %v27494_v55  ;;  %v20110_v34 = vld [vmem:[%s21597_s20 + $0x60] ss:$8 sps:$4 sm:$0xff]  }
 0x86e   : > { %9524 = vmatprep.subr.bf16.mxu1 %v20061_v14  ;;  %v20112_v14 = vld [vmem:[%s21597_s20 + $0x74] ss:$8 sps:$4 sm:$0xff]   ;;  %12486 = vmatprep.subr.bf16.mxu0 %v20189_v29 }
 0x871   : > { %9525 = vmatpush1.bf16.msra.mxu1 %v20059_v50  ;;  %v20178_v50 = vld [vmem:[%s27346_s7 + $0x370] ss:$8 sps:$4 sm:$0xff]  }
 0x872   : > { %9526 = vmatprep.subr.bf16.mxu1 %v20065_v11  ;;  %v20186_v11 = vld [vmem:[%s27346_s7 + $0x384] ss:$8 sps:$4 sm:$0xff]  }
 0x874   : > { %17153 = vmatmul.mubr.msk.bf16.gmra.mrb[44].mxu1 %vm8868_vm8, %v20062_v63  ;;  %v20187_v63 = vld [vmem:[%s27346_s7 + $0x570] ss:$8 sps:$4 sm:$0xff]  }
 0x875   : > { %9527 = vmatpush1.bf16.msra.mxu1 %v20063_v18  ;;  %9089 = vmatprep.mubr.bf16.mxu1 %v27494_v55  ;;  %v20195_v18 = vld [vmem:[%s27346_s7 + $0x584] ss:$8 sps:$4 sm:$0xff]  }
 0x876   : > { %9528 = vmatprep.subr.bf16.mxu1 %v20068_v56  ;;  %v20184_v56 = vld [vmem:[%s27346_s7 + $0x380] ss:$8 sps:$4 sm:$0xff]   ;;  %12487 = vmatpush1.bf16.msra.mxu0 %v20187_v63 }
 0x877   : > { %12488 = vmatprep.subr.bf16.mxu0 %v20195_v18  ;;  %v17123_v63 = vld [vmem:[%s27347_s8 + $0x2] sm:$0x3]  ;;  %v20136_v18 = vld [vmem:[%s21597_s20 + $0xf4] ss:$8 sps:$4 sm:$0xff]  }
 0x879   : > { %9529 = vmatpush1.bf16.msra.mxu1 %v20066_v40  ;;  %v20192_v40 = vld [vmem:[%s27346_s7 + $0x394] ss:$8 sps:$4 sm:$0xff]  }
 0x87a   : > { %9530 = vmatprep.subr.bf16.mxu1 %v20072_v9  ;;  %v20193_v9 = vld [vmem:[%s27346_s7 + $0x580] ss:$8 sps:$4 sm:$0xff]  }
 0x87b   : > { %12489 = vmatpush1.bf16.msra.mxu0 %v20193_v9  ;;  %v24766_v9 = vrot.slane %v17123_v63, %v21782_v4 }
 0x87c   : > { %17154 = vmatmul.mubr.msk.bf16.gmra.mrb[48].mxu1 %vm8868_vm8, %v20069_v28  ;;  %v20201_v28 = vld [vmem:[%s27346_s7 + $0x594] ss:$8 sps:$4 sm:$0xff]  }
 0x87d   : > { %9531 = vmatpush1.bf16.msra.mxu1 %v20070_v60  ;;  %9099 = vmatprep.mubr.bf16.mxu1 %v27494_v55  ;;  %v20082_v55 = vld [vmem:[%s27342_s3 + $0xf4] ss:$8 sps:$4 sm:$0xff]   ;;  %v20114_v60 = vld [vmem:[%s21597_s20 + $0x70] ss:$8 sps:$4 sm:$0xff]  }
 0x87e   : > { %9532 = vmatprep.subr.bf16.mxu1 %v20075_v44  ;;  %v20115_v44 = vld [vmem:[%s21597_s20 + $0x84] ss:$8 sps:$4 sm:$0xff]   ;;  %12490 = vmatprep.subr.bf16.mxu0 %v20201_v28  ;;  %v24769_v28 = vrot.slane %v17123_v63, %v21791_v7 }
 0x881   : > { %9533 = vmatpush1.bf16.msra.mxu1 %v20073_v22  ;;  %v20190_v22 = vld [vmem:[%s27346_s7 + $0x390] ss:$8 sps:$4 sm:$0xff]  }
 0x882   : > { %9534 = vmatprep.subr.bf16.mxu1 %v20079_v24  ;;  %v20198_v24 = vld [vmem:[%s27346_s7 + $0x3a4] ss:$8 sps:$4 sm:$0xff]  }
 0x884   : > { %17155 = vmatmul.mubr.msk.bf16.gmra.mrb[52].mxu1 %vm8868_vm8, %v20076_v5  ;;  %v20199_v5 = vld [vmem:[%s27346_s7 + $0x590] ss:$8 sps:$4 sm:$0xff]  }
 0x885   : > { %9535 = vmatpush1.bf16.msra.mxu1 %v20077_v32  ;;  %9538 = vmatprep.mubr.bf16.mxu1 %v20086_v38  ;;  %v20196_v32 = vld [vmem:[%s27346_s7 + $0x3a0] ss:$8 sps:$4 sm:$0xff]  }
 0x886   : > { %9536 = vmatprep.subr.bf16.mxu1 %v20082_v55  ;;  %12491 = vmatpush1.bf16.msra.mxu0 %v20199_v5  ;;  %v20117_v38 = vld [vmem:[%s21597_s20 + $0x80] ss:$8 sps:$4 sm:$0xff]   ;;  %v20118_v55 = vld [vmem:[%s21597_s20 + $0x94] ss:$8 sps:$4 sm:$0xff]   ;;  %v20138_v5 = vld [vmem:[%s21597_s20 + $0xf0] ss:$8 sps:$4 sm:$0xff]  }
 0x889   : > { %9537 = vmatpush1.bf16.msra.mxu1 %v20080_v35  ;;  %v20120_v35 = vld [vmem:[%s21597_s20 + $0x90] ss:$8 sps:$4 sm:$0xff]  }
 0x88a   : > { %12086 = vmatprep.subr.bf16.mxu1 %v20141_v48  ;;  %v20204_v48 = vld [vmem:[%s27346_s7 + $0x3b4] ss:$8 sps:$4 sm:$0xff]  }
 0x88c   : > { %9539 = vmatmul.mubr.bf16.vlgmr.msra.gmra.mrb[56].mxu1 %v20084_v52  ;;  %v20121_v52 = vld [vmem:[%s21597_s20 + $0xa4] ss:$8 sps:$4 sm:$0xff]  }
 0x88d   : > { %9548 = vmatprep.mubr.bf16.mxu1 %v20088_v27  ;;  %12087 = vmatpush1.bf16.msra.mxu1 %v20139_v16  ;;  %v20123_v27 = vld [vmem:[%s21597_s20 + $0xa0] ss:$8 sps:$4 sm:$0xff]  }
 0x88e   : > { %12088 = vmatprep.subr.bf16.mxu1 %v20144_v21  ;;  %v20126_v21 = vld [vmem:[%s21597_s20 + $0xb0] ss:$8 sps:$4 sm:$0xff]  }
 0x891   : > { %12089 = vmatpush1.bf16.msra.mxu1 %v20142_v31  ;;  %v20211_v31 = vld [vmem:[%s27346_s7 + $0x5b0] ss:$8 sps:$4 sm:$0xff]  }
 0x892   : > { %12090 = vmatprep.subr.bf16.mxu1 %v20150_v49  ;;  %v20210_v49 = vld [vmem:[%s27346_s7 + $0x3c4] ss:$8 sps:$4 sm:$0xff]  }
 0x894   : > { %9549 = vmatmul.mubr.bf16.gmra.mrb[60].mxu1 %v20090_v47  ;;  %v20124_v47 = vld [vmem:[%s21597_s20 + $0xb4] ss:$8 sps:$4 sm:$0xff]  }
 0x895   : > { %9558 = vmatprep.mubr.bf16.mxu1 %v20092_v12  ;;  %12091 = vmatpush1.bf16.msra.mxu1 %v20148_v53  ;;  %v20207_v12 = vld [vmem:[%s27346_s7 + $0x5a4] ss:$8 sps:$4 sm:$0xff]   ;;  %v20217_v53 = vld [vmem:[%s27346_s7 + $0x5c0] ss:$8 sps:$4 sm:$0xff]  }
 0x896   : > { %12092 = vmatprep.subr.bf16.mxu1 %v20156_v46  ;;  %12492 = vmatprep.subr.bf16.mxu0 %v20207_v12 }
 0x899   : > { %12093 = vmatpush1.bf16.msra.mxu1 %v20154_v2  ;;  %v20130_v2 = vld [vmem:[%s21597_s20 + $0xd4] ss:$8 sps:$4 sm:$0xff]  }
 0x89a   : > { %12094 = vmatprep.subr.bf16.mxu1 %v20162_v51 }
 0x89c   : > { %9559 = vmatmul.mubr.bf16.gmra.mrb[64].mxu1 %v20094_v42 }
 0x89d   : > { %9568 = vmatprep.mubr.bf16.mxu1 %v20096_v45  ;;  %12095 = vmatpush1.bf16.msra.mxu1 %v20160_v43  ;;  %v20205_v45 = vld [vmem:[%s27346_s7 + $0x5a0] ss:$8 sps:$4 sm:$0xff]   ;;  %v20223_v43 = vld [vmem:[%s27346_s7 + $0x5d0] ss:$8 sps:$4 sm:$0xff]  }
 0x89e   : > { %12096 = vmatprep.subr.bf16.mxu1 %v20168_v10  ;;  %12493 = vmatpush1.bf16.msra.mxu0 %v20205_v45  ;;  %v20222_v10 = vld [vmem:[%s27346_s7 + $0x3e4] ss:$8 sps:$4 sm:$0xff]  }
 0x89f   : > { %12494 = vmatprep.subr.bf16.mxu0 %v20213_v26 }
 0x8a1   : > { %12097 = vmatpush1.bf16.msra.mxu1 %v20166_v33  ;;  %v20228_v33 = vld [vmem:[%s27346_s7 + $0x3f4] ss:$8 sps:$4 sm:$0xff]  }
 0x8a2   : > { %12098 = vmatprep.subr.bf16.mxu1 %v20174_v59  ;;  %12495 = vmatpush1.bf16.msra.mxu0 %v20211_v31  ;;  %v20132_v59 = vld [vmem:[%s21597_s20 + $0xd0] ss:$8 sps:$4 sm:$0xff]  }
 0x8a3   : > { %12496 = vmatprep.subr.bf16.mxu0 %v20219_v17 }
 0x8a4   : > { %9569 = vmatmul.mubr.bf16.gmra.mrb[68].mxu1 %v20098_v23  ;;  %v20127_v23 = vld [vmem:[%s21597_s20 + $0xc4] ss:$8 sps:$4 sm:$0xff]  }
 0x8a5   : > { %9578 = vmatprep.mubr.bf16.mxu1 %v20100_v39  ;;  %12099 = vmatpush1.bf16.msra.mxu1 %v20172_v61  ;;  %v20133_v61 = vld [vmem:[%s21597_s20 + $0xe4] ss:$8 sps:$4 sm:$0xff]  }
 0x8a6   : > { %12100 = vmatprep.subr.bf16.mxu1 %v20180_v62  ;;  %v24655_v42 = vpop.f32.mrb[20].mxu0  ;;  %12497 = vmatpush1.bf16.msra.mxu0 %v20217_v53 }
 0x8a7   : > { %v24660_v16 = vpop.f32.mrb[21].mxu0  ;;  %12498 = vmatprep.subr.bf16.mxu0 %v20225_v20 }
 0x8a8   : > { %v24666_v41 = vpop.f32.mrb[22].mxu0 }
 0x8a9   : > { %12101 = vmatpush1.bf16.msra.mxu1 %v20178_v50  ;;  %v24675_v39 = vpop.f32.mrb[23].mxu0  ;;  %v20135_v50 = vld [vmem:[%s21597_s20 + $0xe0] ss:$8 sps:$4 sm:$0xff]   ;;  %s27067_s20 = scalar_lea.hbm %s27352_s13, %s17714_s26 }
 0x8aa   : > { %12102 = vmatprep.subr.bf16.mxu1 %v20186_v11  ;;  %12499 = vmatpush1.bf16.msra.mxu0 %v20223_v43 }
 0x8ab   : > { %12500 = vmatprep.subr.bf16.mxu0 %v20231_v6 }
 0x8ac   : > { %9579 = vmatmul.mubr.bf16.gmra.mrb[72].mxu1 %v20102_v58 }
 0x8ad   : > { %9588 = vmatprep.mubr.bf16.mxu1 %v20104_v0  ;;  %12103 = vmatpush1.bf16.msra.mxu1 %v20184_v56  ;;  %v20214_v0 = vld [vmem:[%s27346_s7 + $0x3d0] ss:$8 sps:$4 sm:$0xff]  }
 0x8ae   : > { %12104 = vmatprep.subr.bf16.mxu1 %v20192_v40 }
 0x8b1   : > { %12105 = vmatpush1.bf16.msra.mxu1 %v20190_v22  ;;  %v24692_v46 = vpop.f32.mrb[24].mxu0 }
 0x8b2   : > { %12106 = vmatprep.subr.bf16.mxu1 %v20198_v24  ;;  %v24698_v58 = vpop.f32.mrb[25].mxu0 }
 0x8b3   : > { %v24704_v51 = vpop.f32.mrb[26].mxu0 }
 0x8b4   : > { %9589 = vmatmul.mubr.bf16.gmra.mrb[76].mxu1 %v20106_v19  ;;  %v24709_v25 = vpop.f32.mrb[27].mxu0  ;;  %v20229_v19 = vld [vmem:[%s27346_s7 + $0x5e0] ss:$8 sps:$4 sm:$0xff]  }
 0x8b5   : > { %9598 = vmatprep.mubr.bf16.mxu1 %v20108_v37  ;;  %12107 = vmatpush1.bf16.msra.mxu1 %v20196_v32 }
 0x8b6   : > { %12108 = vmatprep.subr.bf16.mxu1 %v20204_v48  ;;  %12501 = vmatpush1.bf16.msra.mxu0 %v20229_v19 }
 0x8b7   : > { %12502 = vmatprep.subr.bf16.mxu0 %v20234_v30 }
 0x8b9   : > { %12109 = vmatpush1.bf16.msra.mxu1 %v20202_v36 }
 0x8ba   : > { %12110 = vmatprep.subr.bf16.mxu1 %v20210_v49  ;;  %v24726_v37 = vpop.f32.mrb[28].mxu0 }
 0x8bb   : > { %v24732_v15 = vpop.f32.mrb[29].mxu0 }
 0x8bc   : > { %9599 = vmatmul.mubr.bf16.gmra.mrb[80].mxu1 %v20110_v34  ;;  %v24738_v62 = vpop.f32.mrb[30].mxu0  ;;  %v20232_v34 = vld [vmem:[%s27346_s7 + $0x5f0] ss:$8 sps:$4 sm:$0xff]  }
 0x8bd   : > { %9608 = vmatprep.mubr.bf16.mxu1 %v20112_v14  ;;  %12111 = vmatpush1.bf16.msra.mxu1 %v20208_v57  ;;  %v24743_v29 = vpop.f32.mrb[31].mxu0 }
 0x8be   : > { %12112 = vmatprep.subr.bf16.mxu1 %v20216_v8  ;;  %12503 = vmatpush1.bf16.msra.mxu0 %v20232_v34 }
 0x8c1   : > { %12113 = vmatpush1.bf16.msra.mxu1 %v20214_v0 }
 0x8c2   : > { %12114 = vmatprep.subr.bf16.mxu1 %v20222_v10  ;;  %v24748_v14 = vpop.f32.mrb[32].mxu0 }
 0x8c3   : > { %v24751_v11 = vpop.f32.mrb[33].mxu0 }
 0x8c4   : > { %9609 = vmatmul.mubr.bf16.gmra.mrb[84].mxu1 %v20114_v60  ;;  %v24760_v56 = vpop.f32.mrb[34].mxu0 }
 0x8c5   : > { %9618 = vmatprep.mubr.bf16.mxu1 %v20115_v44  ;;  %12115 = vmatpush1.bf16.msra.mxu1 %v20220_v13  ;;  %v24762_v40 = vpop.f32.mrb[35].mxu0 }
 0x8c6   : > { %12116 = vmatprep.subr.bf16.mxu1 %v20228_v33 }
 0x8c9   : > { %12117 = vmatpush1.bf16.msra.mxu1 %v20226_v54 }
 0x8ca   : > { %v24771_v44 = vpop.f32.mrb[36].mxu0 }
 0x8cb   : > { %v24775_v32 = vpop.f32.mrb[37].mxu0 }
 0x8cc   : > { %9619 = vmatmul.mubr.bf16.gmra.mrb[24].mxu1 %v20117_v38 }
 0x8cd   : > { %9628 = vmatprep.mubr.bf16.mxu1 %v20118_v55 }
 0x8d4   : > { %9629 = vmatmul.mubr.bf16.gmra.mrb[28].mxu1 %v20120_v35  ;;  %v20237_v35 = vld [vmem:[%s27346_s7 + $0x4] ss:$8 sps:$4 sm:$0xff]  }
 0x8d5   : > { %9638 = vmatprep.mubr.bf16.mxu1 %v20121_v52  ;;  %v24781_v52 = vpop.f32.mrb[38].mxu0  ;;  %13145 = vmatprep.subr.bf16.mxu0 %v20237_v35 }
 0x8d6   : > { %v24787_v12 = vpop.f32.mrb[39].mxu0 }
 0x8dc   : > { %9639 = vmatmul.mubr.bf16.gmra.mrb[32].mxu1 %v20123_v27 }
 0x8dd   : > { %9648 = vmatprep.mubr.bf16.mxu1 %v20124_v47 }
 0x8e4   : > { %9649 = vmatmul.mubr.bf16.gmra.mrb[36].mxu1 %v20126_v21  ;;  %v24793_v21 = vpop.f32.mrb[40].mxu0 }
 0x8e5   : > { %9658 = vmatprep.mubr.bf16.mxu1 %v20127_v23  ;;  %v24796_v26 = vpop.f32.mrb[41].mxu0 }
 0x8e6   : > { %v24799_v57 = vpop.f32.mrb[42].mxu0 }
 0x8e7   : > { %v24803_v8 = vpop.f32.mrb[43].mxu0 }
 0x8ec   : > { %9659 = vmatmul.mubr.bf16.gmra.mrb[40].mxu1 %v20129_v1 }
 0x8ed   : > { %9668 = vmatprep.mubr.bf16.mxu1 %v20130_v2 }
 0x8f4   : > { %9669 = vmatmul.mubr.bf16.gmra.mrb[44].mxu1 %v20132_v59 }
 0x8f5   : > { %9678 = vmatprep.mubr.bf16.mxu1 %v20133_v61 }
 0x8fc   : > { %9679 = vmatmul.mubr.bf16.gmra.mrb[48].mxu1 %v20135_v50 }
 0x8fd   : > { %9688 = vmatprep.mubr.bf16.mxu1 %v20136_v18 }
 0x8ff   : > { %v8648_v60 = vpop.f32.mrb[8].mxu1 }
 0x900   : > { %v8716_v22 = vadd.f32 %v24766_v9, %v8648_v60  ;;  %v8650_v24 = vpop.f32.mrb[9].mxu1 }
 0x901   : > { %v8717_v38 = vadd.f32 %v24769_v28, %v8650_v24  ;;  %v8652_v55 = vpop.f32.mrb[10].mxu1 }
 0x902   : > { %8732 = vst [vmem:[%s24783_s21] sm:$0xff] %v8716_v22  ;;  %v8718_v27 = vadd.f32 %v24766_v9, %v8652_v55  ;;  %v8654_v47 = vpop.f32.mrb[11].mxu1 }
 0x903   : > { %8733 = vst [vmem:[%s24783_s21 + $0x8] sm:$0xff] %v8717_v38  ;;  %v8719_v45 = vadd.f32 %v24769_v28, %v8654_v47  ;;  %v9174_v47 = vld [vmem:[%s27345_s6] sm:$0x3] }
 0x904   : > { %8734 = vst [vmem:[%s24783_s21 + $0x10] sm:$0xff] %v8718_v27  ;;  %9689 = vmatmul.mubr.bf16.gmra.mrb[52].mxu1 %v20138_v5  ;;  %v20258_v27 = vld [vmem:[%s27346_s7 + $0x404] ss:$8 sps:$4 sm:$0xff]  }
 0x905   : > { %8735 = vst [vmem:[%s24783_s21 + $0x18] sm:$0xff] %v8719_v45  ;;  %12279 = vmatprep.subr.bf16.mxu1 %v20258_v27  ;;  %v24848_v45 = vrot.slane %v9174_v47, %v21782_v4 }
 0x906   : > { %v24809_v2 = vpop.f32.mrb[44].mxu0 }
 0x907   : > { %v8658_v48 = vpop.f32.mrb[12].mxu1  ;;  %v24812_v10 = vpop.f32.mrb[45].mxu0  ;;  %v24937_v27 = vadd.f32 %v24848_v45, %v24771_v44 }
 0x908   : > { %v8720_v36 = vadd.f32 %v24766_v9, %v8658_v48  ;;  %v8660_v23 = vpop.f32.mrb[13].mxu1  ;;  %v24815_v19 = vpop.f32.mrb[46].mxu0  ;;  %v9827_v48 = vand.u32 15, %v21779_v3 }
 0x909   : > { %v8721_v31 = vadd.f32 %v24769_v28, %v8660_v23  ;;  %v8662_v49 = vpop.f32.mrb[14].mxu1  ;;  %v24819_v54 = vpop.f32.mrb[47].mxu0  ;;  %v17747_v23 = vadd.f32 %v24848_v45, %v24655_v42  ;;  %v24873_v42 = vadd.f32 %v24848_v45, %v24692_v46  ;;  %v24891_v46 = vadd.f32 %v24848_v45, %v24726_v37 }
 0x90a   : > { %8736 = vst [vmem:[%s24783_s21 + $0x20] sm:$0xff] %v8720_v36  ;;  %v8722_v17 = vadd.f32 %v24766_v9, %v8662_v49  ;;  %v8664_v53 = vpop.f32.mrb[15].mxu1  ;;  %v17751_v49 = vadd.f32 %v24848_v45, %v24666_v41  ;;  %vm24861_vm13 = vcmp.eq.s32.totalorder %v9827_v48, 0  ;;  %v24881_v41 = vadd.f32 %v24848_v45, %v24704_v51 }
 0x90b   : > { %8737 = vst [vmem:[%s24783_s21 + $0x28] sm:$0xff] %v8721_v31  ;;  %v8723_v1 = vadd.f32 %v24769_v28, %v8664_v53  ;;  %v24899_v51 = vadd.f32 %v24848_v45, %v24738_v62 }
 0x90c   : > { %8738 = vst [vmem:[%s24783_s21 + $0x30] sm:$0xff] %v8722_v17 }
 0x90d   : > { %8739 = vst [vmem:[%s24783_s21 + $0x38] sm:$0xff] %v8723_v1  ;;  %v24994_v1 = vadd.f32 %v24848_v45, %v24799_v57 }
 0x90e   : > { %v24825_v34 = vpop.f32.mrb[48].mxu0 }
 0x90f   : > { %v8668_v0 = vpop.f32.mrb[16].mxu1  ;;  %v24828_v18 = vpop.f32.mrb[49].mxu0 }
 0x910   : > { %v8724_v20 = vadd.f32 %v24766_v9, %v8668_v0  ;;  %v8670_v43 = vpop.f32.mrb[17].mxu1  ;;  %v24831_v24 = vpop.f32.mrb[50].mxu0  ;;  %v27500_v0 = vld [vmem:[#allocation20_spill] sm:$0xff] }
 0x911   : > { %v8725_v13 = vadd.f32 %v24769_v28, %v8670_v43  ;;  %v8672_v6 = vpop.f32.mrb[18].mxu1  ;;  %v24835_v55 = vpop.f32.mrb[51].mxu0  ;;  %v27501_v43 = vld [vmem:[#allocation21_spill] sm:$0xff] }
 0x912   : > { %8740 = vst [vmem:[%s24783_s21 + $0x40] sm:$0xff] %v8724_v20  ;;  %v8726_v33 = vadd.f32 %v24766_v9, %v8672_v6  ;;  %v8674_v59 = vpop.f32.mrb[19].mxu1  ;;  %v9841_v20 = vand.u32 15, %v27500_v0  ;;  %v27502_v6 = vld [vmem:[#allocation22_spill] sm:$0xff] }
 0x913   : > { %8741 = vst [vmem:[%s24783_s21 + $0x48] sm:$0xff] %v8725_v13  ;;  %v8727_v61 = vadd.f32 %v24769_v28, %v8674_v59  ;;  %v9848_v13 = vand.u32 15, %v27501_v43  ;;  %v24903_v59 = vadd.s32 64, %v21779_v3 }
 0x914   : > { %8742 = vst [vmem:[%s24783_s21 + $0x50] sm:$0xff] %v8726_v33  ;;  %v9855_v33 = vand.u32 15, %v27502_v6  ;;  %vm24921_vm0 = vcmp.eq.s32.totalorder %v9841_v20, 0  ;;  %v24962_v20 = vadd.s32 80, %v21779_v3 }
 0x915   : > { %8743 = vst [vmem:[%s24783_s21 + $0x58] sm:$0xff] %v8727_v61  ;;  %v27503_v61 = vld [vmem:[#allocation23_spill] sm:$0xff]  ;;  %vm24947_vm1 = vcmp.eq.s32.totalorder %v9848_v13, 15 }
 0x916   : > { %vm24998_vm2 = vcmp.eq.s32.totalorder %v9855_v33, 0 }
 0x917   : > { %v8678_v30 = vpop.f32.mrb[20].mxu1 }
 0x918   : > { %v8728_v50 = vadd.f32 %v24766_v9, %v8678_v30  ;;  %v8680_v63 = vpop.f32.mrb[21].mxu1  ;;  %v9862_v30 = vand.u32 15, %v27503_v61 }
 0x919   : > { %v8729_v60 = vadd.f32 %v24769_v28, %v8680_v63  ;;  %v8682_v22 = vpop.f32.mrb[22].mxu1 }
 0x91a   : > { %8744 = vst [vmem:[%s24783_s21 + $0x60] sm:$0xff] %v8728_v50  ;;  %v8730_v5 = vadd.f32 %v24766_v9, %v8682_v22  ;;  %v8684_v38 = vpop.f32.mrb[23].mxu1  ;;  %v24851_v9 = vrot.slane %v9174_v47, %v21791_v7  ;;  %vm25015_vm3 = vcmp.eq.s32.totalorder %v9862_v30, 15 }
 0x91b   : > { %8745 = vst [vmem:[%s24783_s21 + $0x68] sm:$0xff] %v8729_v60  ;;  %v8731_v35 = vadd.f32 %v24769_v28, %v8684_v38  ;;  %v27495_v28 = vld [vmem:[#allocation18_spill] sm:$0xff]  ;;  %v24927_v60 = vadd.f32 %v24848_v45, %v24760_v56  ;;  %v24945_v56 = vadd.f32 %v24848_v45, %v24781_v52 }
 0x91c   : > { %8746 = vst [vmem:[%s24783_s21 + $0x70] sm:$0xff] %v8730_v5  ;;  %v9834_v36 = vand.u32 15, %v27495_v28  ;;  %v17749_v31 = vadd.f32 %v24851_v9, %v24660_v16  ;;  %v17753_v53 = vadd.f32 %v24851_v9, %v24675_v39  ;;  %v24877_v16 = vadd.f32 %v24851_v9, %v24698_v58 }
 0x91d   : > { %8747 = vst [vmem:[%s24783_s21 + $0x78] sm:$0xff] %v8731_v35  ;;  %v24886_v39 = vadd.f32 %v24851_v9, %v24709_v25  ;;  %v24895_v58 = vadd.f32 %v24851_v9, %v24732_v15  ;;  %v24906_v25 = vadd.s32 72, %v21779_v3  ;;  %v24910_v37 = vadd.f32 %v24851_v9, %v24743_v29  ;;  %v27506_v29 = vld [vmem:[#allocation24_spill] sm:$0xff]  ;;  %s15378_s21 = scalar_lea.sflag [#allocation8], %s24754_s24 }
 0x91e   : > { %vm24867_vm15 = vcmp.eq.s32.totalorder %v9834_v36, 15  ;;  %v24915_v15 = vadd.f32 %v24848_v45, %v24748_v14  ;;  %v24919_v62 = vadd.f32 %v24851_v9, %v24751_v11  ;;  %v24932_v5 = vadd.f32 %v24851_v9, %v24762_v40  ;;  %v27507_v14 = vld [vmem:[#allocation25_spill] sm:$0xff] }
 0x91f   : > { %v24941_v47 = vadd.f32 %v24851_v9, %v24775_v32  ;;  %v24954_v44 = vadd.f32 %v24851_v9, %v24787_v12  ;;  %v27514_v4 = vand.u32 15, %v27506_v29 }
 0x921   : > { %vm25071_vm4 = vcmp.eq.s32.totalorder %v27514_v4, 0 }
 0x95f   : > { %v9540_v50 = vpop.f32.mrb[56].mxu1 }
 0x960   : > { %v17748_v35 = vadd.f32 %v17747_v23, %v9540_v50  ;;  %v9542_v11 = vpop.f32.mrb[57].mxu1 }
 0x961   : > { %v17750_v48 = vadd.f32 %v17749_v31, %v9542_v11  ;;  %v9544_v28 = vpop.f32.mrb[58].mxu1 }
 0x962   : > { %v10367_v32 = vrot.slane %v17748_v35, 7  ;;  %10625 = vst [vmem:[#allocation2 + $0x70] sm:$0xff] %v17748_v35  ;;  %v10721_v52 = vsel %vm24861_vm13, 0.0, %v17748_v35  ;;  %v24959_v0 = vadd.f32 %v17751_v49, %v9544_v28  ;;  %v9546_v31 = vpop.f32.mrb[59].mxu1  ;;  %v24974_v35 = vadd.s32 88, %v21779_v3 }
 0x963   : > { %v10849_v43 = vrot.slane %v10721_v52, 1  ;;  %v10368_v13 = vrot.slane %v17750_v48, 7  ;;  %10626 = vst [vmem:[#allocation2 + $0x78] sm:$0xff] %v17750_v48  ;;  %v10722_v12 = vsel %vm24861_vm13, 0.0, %v17750_v48  ;;  %v24966_v6 = vadd.f32 %v17753_v53, %v9546_v31 }
 0x964   : > { %10559 = vst [vmem:[#allocation2 + $0x60] sm:$0xfe] %v10367_v32  ;;  %v10850_v61 = vrot.slane %v10722_v12, 1  ;;  %v10241_v50 = vsel %vm24867_vm15, 0.0, %v24959_v0  ;;  %10627 = vst [vmem:[#allocation2 + $0xa0] sm:$0xff] %v24959_v0  ;;  %v10851_v49 = vrot.slane %v24959_v0, 1  ;;  %v24983_v48 = vadd.f32 %v24848_v45, %v24793_v21 }
 0x965   : > { %11041 = vst [vmem:[#allocation2 + $0x50] sm:$0x80] %v10849_v43  ;;  %10560 = vst [vmem:[#allocation2 + $0x68] sm:$0xfe] %v10368_v13  ;;  %v10369_v11 = vrot.slane %v10241_v50, 7  ;;  %v10242_v17 = vsel %vm24867_vm15, 0.0, %v24966_v6  ;;  %v24990_v0 = vadd.f32 %v24851_v9, %v24796_v26  ;;  %v25005_v50 = vadd.f32 %v24851_v9, %v24803_v8 }
 0x966   : > { %10628 = vst [vmem:[#allocation2 + $0xa8] sm:$0xff] %v24966_v6  ;;  %v10853_v53 = vrot.slane %v24966_v6, 1  ;;  %11042 = vst [vmem:[#allocation2 + $0x58] sm:$0x80] %v10850_v61  ;;  %v24986_v28 = vsel %vm6058_vm14, %v10849_v43, %v10851_v49  ;;  %v10371_v52 = vrot.slane %v10242_v17, 7  ;;  %v25021_v8 = vadd.f32 %v24851_v9, %v24812_v10 }
 0x967   : > { %v10370_v31 = vsel %vm5935_vm11, %v10367_v32, %v10369_v11  ;;  %v9550_v6 = vpop.f32.mrb[60].mxu1  ;;  %v25037_v10 = vadd.f32 %v24851_v9, %v24819_v54 }
 0x968   : > { %v10854_v12 = vsel %vm6058_vm14, %v10850_v61, %v10853_v53  ;;  %v10372_v26 = vsel %vm5935_vm11, %v10368_v13, %v10371_v52  ;;  %v17756_v57 = vadd.f32 %v24873_v42, %v9550_v6  ;;  %v9552_v17 = vpop.f32.mrb[61].mxu1  ;;  %v25012_v61 = vadd.f32 %v24848_v45, %v24809_v2 }
 0x969   : > { %v17758_v33 = vadd.f32 %v24877_v16, %v9552_v17  ;;  %v9554_v23 = vpop.f32.mrb[62].mxu1  ;;  %v25025_v42 = vadd.f32 %v24848_v45, %v24815_v19  ;;  %v25028_v13 = vadd.s32 96, %v21779_v3 }
 0x96a   : > { %v10373_v2 = vrot.slane %v17756_v57, 7  ;;  %10629 = vst [vmem:[#allocation2 + $0xd0] sm:$0xff] %v17756_v57  ;;  %v10725_v16 = vsel %vm24921_vm0, 0.0, %v17756_v57  ;;  %v25033_v30 = vadd.f32 %v24881_v41, %v9554_v23  ;;  %v9556_v6 = vpop.f32.mrb[63].mxu1 }
 0x96b   : > { %v10855_v17 = vrot.slane %v10725_v16, 1  ;;  %v10375_v32 = vrot.slane %v17758_v33, 7  ;;  %10630 = vst [vmem:[#allocation2 + $0xd8] sm:$0xff] %v17758_v33  ;;  %v10726_v19 = vsel %vm24921_vm0, 0.0, %v17758_v33  ;;  %v25042_v36 = vadd.f32 %v24886_v39, %v9556_v6  ;;  %v11119_v16 = vld [vmem:[#allocation2 + $0x60] sm:$0xff] }
 0x96c   : > { %v10374_v38 = vsel %vm5935_vm11, %v10369_v11, %v10373_v2  ;;  %v10857_v57 = vrot.slane %v10726_v19, 1  ;;  %v10245_v41 = vsel %vm24947_vm1, 0.0, %v25033_v30  ;;  %10631 = vst [vmem:[#allocation2 + $0x100] sm:$0xff] %v25033_v30  ;;  %v10859_v54 = vrot.slane %v25033_v30, 1  ;;  %v11120_v23 = vld [vmem:[#allocation2 + $0x68] sm:$0xff] }
 0x96d   : > { %10563 = vst [vmem:[#allocation2 + $0xc0] sm:$0xff] %v10374_v38  ;;  %v10856_v63 = vsel %vm6058_vm14, %v10851_v49, %v10855_v17  ;;  %v10376_v33 = vsel %vm5935_vm11, %v10371_v52, %v10375_v32  ;;  %v10377_v39 = vrot.slane %v10245_v41, 7  ;;  %v10246_v11 = vsel %vm24947_vm1, 0.0, %v25042_v36  ;;  %10632 = vst [vmem:[#allocation2 + $0x108] sm:$0xff] %v25042_v36 }
 0x96e   : > { %10564 = vst [vmem:[#allocation2 + $0xc8] sm:$0xff] %v10376_v33  ;;  %v10858_v6 = vsel %vm6058_vm14, %v10853_v53, %v10857_v57  ;;  %v25060_v19 = vsel %vm6058_vm14, %v10855_v17, %v10859_v54  ;;  %v10379_v22 = vrot.slane %v10246_v11, 7  ;;  %v10861_v49 = vrot.slane %v25042_v36, 1  ;;  %v20235_v11 = vld [vmem:[%s27346_s7] ss:$8 sps:$4 sm:$0xff]  }
 0x96f   : > { %v10378_v52 = vsel %vm5935_vm11, %v10373_v2, %v10377_v39  ;;  %11047 = vst [vmem:[#allocation2 + $0xe0] sm:$0xff] %v25060_v19  ;;  %v9560_v41 = vpop.f32.mrb[64].mxu1  ;;  %v25065_v40 = vpack.c.bf16 %v10372_v26, %v11120_v23  ;;  %v25067_v7 = vpack.c.bf16 %v10370_v31, %v11119_v16  ;;  %v25075_v17 = vpack.c.bf16 %v10858_v6, %v10854_v12  ;;  %v20240_v12 = vld [vmem:[%s27346_s7 + $0x14] ss:$8 sps:$4 sm:$0xff]   ;;  %v20256_v23 = vld [vmem:[%s27346_s7 + $0x400] ss:$8 sps:$4 sm:$0xff]  }
 0x970   : > { %10565 = vst [vmem:[#allocation2 + $0xf0] sm:$0xff] %v10378_v52  ;;  %v10380_v2 = vsel %vm5935_vm11, %v10375_v32, %v10379_v22  ;;  %v10862_v31 = vsel %vm6058_vm14, %v10857_v57, %v10861_v49  ;;  %v17764_v26 = vadd.f32 %v24891_v46, %v9560_v41  ;;  %v9562_v29 = vpop.f32.mrb[65].mxu1  ;;  %v25086_v4 = vpack.c.bf16 %v10856_v63, %v24986_v28 }
 0x971   : > { %10566 = vst [vmem:[#allocation2 + $0xf8] sm:$0xff] %v10380_v2  ;;  %11048 = vst [vmem:[#allocation2 + $0xe8] sm:$0xff] %v10862_v31  ;;  %v17766_v32 = vadd.f32 %v24895_v58, %v9562_v29  ;;  %v9564_v16 = vpop.f32.mrb[66].mxu1  ;;  %12118 = vmatprep.mubr.bf16.mxu1 %v25065_v40  ;;  %v27517_v46 = vand.u32 15, %v27507_v14  ;;  %12504 = vmatprep.mubr.bf16.mxu0 %v25075_v17  ;;  %v25103_v57 = vpack.c.bf16 %v10380_v2, %v10376_v33  ;;  %v20264_v58 = vld [vmem:[%s27346_s7 + $0x414] ss:$8 sps:$4 sm:$0xff]  }
 0x972   : > { %v25105_v63 = vpack.c.bf16 %v10378_v52, %v10374_v38  ;;  %v10381_v41 = vrot.slane %v17764_v26, 7  ;;  %10633 = vst [vmem:[#allocation2 + $0x130] sm:$0xff] %v17764_v26  ;;  %v10729_v14 = vsel %vm24998_vm2, 0.0, %v17764_v26  ;;  %v25114_v29 = vadd.f32 %v24899_v51, %v9564_v16  ;;  %12119 = vmatmul.mubr.bf16.vlgmr.msra.gmra.mrb[88].mxu1 %v25067_v7  ;;  %12505 = vmatmul.mubr.bf16.vlgmr.msra.gmra.mrb[52].mxu0 %v25086_v4  ;;  %v20238_v51 = vld [vmem:[%s27346_s7 + $0x10] ss:$8 sps:$4 sm:$0xff]  }
 0x973   : > { %vm25098_vm5 = vcmp.eq.s32.totalorder %v27517_v46, 15  ;;  %v9566_v46 = vpop.f32.mrb[67].mxu1  ;;  %v25119_v38 = vadd.s32 104, %v21779_v3  ;;  %v10863_v33 = vrot.slane %v10729_v14, 1  ;;  %v10383_v52 = vrot.slane %v17766_v32, 7  ;;  %10634 = vst [vmem:[#allocation2 + $0x138] sm:$0xff] %v17766_v32  ;;  %12128 = vmatprep.mubr.bf16.mxu1 %v25103_v57  ;;  %13146 = vmatpush1.bf16.msra.mxu0 %v20235_v11 }
 0x974   : > { %v10730_v2 = vsel %vm24998_vm2, 0.0, %v17766_v32  ;;  %v25124_v6 = vadd.f32 %v24910_v37, %v9566_v46  ;;  %v10382_v26 = vsel %vm5935_vm11, %v10377_v39, %v10381_v41  ;;  %v10249_v14 = vsel %vm25015_vm3, 0.0, %v25114_v29  ;;  %10635 = vst [vmem:[#allocation2 + $0x160] sm:$0xff] %v25114_v29  ;;  %13147 = vmatprep.subr.bf16.mxu0 %v20240_v12  ;;  %v20243_v37 = vld [vmem:[%s27346_s7 + $0x24] ss:$8 sps:$4 sm:$0xff]   ;;  %12280 = vmatpush1.bf16.msra.mxu1 %v20256_v23 }
 0x975   : > { %v10865_v16 = vrot.slane %v10730_v2, 1  ;;  %v10867_v21 = vrot.slane %v25114_v29, 1  ;;  %10567 = vst [vmem:[#allocation2 + $0x120] sm:$0xff] %v10382_v26  ;;  %v10864_v39 = vsel %vm6058_vm14, %v10859_v54, %v10863_v33  ;;  %v10384_v11 = vsel %vm5935_vm11, %v10379_v22, %v10383_v52  ;;  %v20262_v12 = vld [vmem:[%s27346_s7 + $0x410] ss:$8 sps:$4 sm:$0xff]   ;;  %12281 = vmatprep.subr.bf16.mxu1 %v20264_v58 }
 0x976   : > { %v10385_v32 = vrot.slane %v10249_v14, 7  ;;  %v10250_v46 = vsel %vm25015_vm3, 0.0, %v25124_v6  ;;  %10636 = vst [vmem:[#allocation2 + $0x168] sm:$0xff] %v25124_v6  ;;  %11049 = vst [vmem:[#allocation2 + $0x110] sm:$0xff] %v10864_v39  ;;  %v10869_v54 = vrot.slane %v25124_v6, 1  ;;  %v27520_v2 = vand.u32 15, %v24903_v59 }
 0x977   : > { %10568 = vst [vmem:[#allocation2 + $0x128] sm:$0xff] %v10384_v11  ;;  %v10866_v30 = vsel %vm6058_vm14, %v10861_v49, %v10865_v16  ;;  %v25156_v22 = vsel %vm6058_vm14, %v10863_v33, %v10867_v21  ;;  %v10387_v43 = vrot.slane %v10250_v46, 7  ;;  %v9570_v58 = vpop.f32.mrb[68].mxu1  ;;  %v25170_v33 = vpack.c.bf16 %v10864_v39, %v25060_v19  ;;  %13148 = vmatpush1.bf16.msra.mxu0 %v20238_v51  ;;  %v20241_v14 = vld [vmem:[%s27346_s7 + $0x20] ss:$8 sps:$4 sm:$0xff]  }
 0x978   : > { %11050 = vst [vmem:[#allocation2 + $0x118] sm:$0xff] %v10866_v30  ;;  %v10386_v23 = vsel %vm5935_vm11, %v10381_v41, %v10385_v32  ;;  %11051 = vst [vmem:[#allocation2 + $0x140] sm:$0xff] %v25156_v22  ;;  %vm25163_vm6 = vcmp.eq.s32.totalorder %v27520_v2, 0  ;;  %v25167_v49 = vpack.c.bf16 %v10866_v30, %v10862_v31  ;;  %v25177_v41 = vadd.f32 %v24848_v45, %v24825_v34  ;;  %v9572_v39 = vpop.f32.mrb[69].mxu1  ;;  %v20246_v46 = vld [vmem:[%s27346_s7 + $0x34] ss:$8 sps:$4 sm:$0xff]  }
 0x979   : > { %27523 = vst [vmem:[#allocation18_spill] sm:$0xff] %v25170_v33  ;;  %10569 = vst [vmem:[#allocation2 + $0x150] sm:$0xff] %v10386_v23  ;;  %v10388_v59 = vsel %vm5935_vm11, %v10383_v52, %v10387_v43  ;;  %v25183_v31 = vsel %vm6058_vm14, %v10865_v16, %v10869_v54  ;;  %v17772_v19 = vadd.f32 %v24915_v15, %v9570_v58  ;;  %13149 = vmatprep.subr.bf16.mxu0 %v20243_v37  ;;  %v20267_v34 = vld [vmem:[%s27346_s7 + $0x424] ss:$8 sps:$4 sm:$0xff]   ;;  %v9574_v16 = vpop.f32.mrb[70].mxu1 }
 0x97a   : > { %v25186_v51 = vpack.c.bf16 %v10386_v23, %v10382_v26  ;;  %10570 = vst [vmem:[#allocation2 + $0x158] sm:$0xff] %v10388_v59  ;;  %11052 = vst [vmem:[#allocation2 + $0x148] sm:$0xff] %v25183_v31  ;;  %v17774_v52 = vadd.f32 %v24919_v62, %v9572_v39  ;;  %v27524_v15 = vand.u32 15, %v24906_v25  ;;  %12514 = vmatprep.mubr.bf16.mxu0 %v25167_v49  ;;  %12282 = vmatpush1.bf16.msra.mxu1 %v20262_v12  ;;  %v20265_v62 = vld [vmem:[%s27346_s7 + $0x420] ss:$8 sps:$4 sm:$0xff]  }
 0x97b   : > { %v25203_v37 = vpack.c.bf16 %v10388_v59, %v10384_v11  ;;  %v25208_v23 = vadd.f32 %v24851_v9, %v24828_v18  ;;  %v10389_v25 = vrot.slane %v17772_v19, 7  ;;  %10637 = vst [vmem:[#allocation2 + $0x190] sm:$0xff] %v17772_v19  ;;  %v10733_v58 = vsel %vm25071_vm4, 0.0, %v17772_v19  ;;  %v9576_v11 = vpop.f32.mrb[71].mxu1  ;;  %12129 = vmatmul.mubr.bf16.gmra.mrb[92].mxu1 %v25105_v63  ;;  %12515 = vmatmul.mubr.bf16.gmra.mrb[56].mxu0 %v25170_v33  ;;  %v20273_v12 = vld [vmem:[%s27346_s7 + $0x434] ss:$8 sps:$4 sm:$0xff]  }
 0x97c   : > { %vm25198_vm7 = vcmp.eq.s32.totalorder %v27524_v15, 15  ;;  %v25216_v2 = vadd.f32 %v24927_v60, %v9574_v16  ;;  %v25221_v18 = vadd.s32 112, %v21779_v3  ;;  %v10871_v59 = vrot.slane %v10733_v58, 1  ;;  %10638 = vst [vmem:[#allocation2 + $0x198] sm:$0xff] %v17774_v52  ;;  %13150 = vmatpush1.bf16.msra.mxu0 %v20241_v14  ;;  %v20244_v16 = vld [vmem:[%s27346_s7 + $0x30] ss:$8 sps:$4 sm:$0xff]   ;;  %12283 = vmatprep.subr.bf16.mxu1 %v20267_v34 }
 0x97d   : > { %v10391_v39 = vrot.slane %v17774_v52, 7  ;;  %v10734_v19 = vsel %vm25071_vm4, 0.0, %v17774_v52  ;;  %v25229_v60 = vadd.f32 %v24932_v5, %v9576_v11  ;;  %12138 = vmatprep.mubr.bf16.mxu1 %v25203_v37  ;;  %v10390_v15 = vsel %vm5935_vm11, %v10385_v32, %v10389_v25  ;;  %13151 = vmatprep.subr.bf16.mxu0 %v20246_v46  ;;  %v20249_v5 = vld [vmem:[%s27346_s7 + $0x44] ss:$8 sps:$4 sm:$0xff]   ;;  %v20271_v46 = vld [vmem:[%s27346_s7 + $0x430] ss:$8 sps:$4 sm:$0xff]  }
 0x97e   : > { %v10873_v30 = vrot.slane %v10734_v19, 1  ;;  %v10253_v58 = vsel %vm25098_vm5, 0.0, %v25216_v2  ;;  %10639 = vst [vmem:[#allocation2 + $0x1c0] sm:$0xff] %v25216_v2  ;;  %v10875_v53 = vrot.slane %v25216_v2, 1  ;;  %10571 = vst [vmem:[#allocation2 + $0x180] sm:$0xff] %v10390_v15  ;;  %v10872_v32 = vsel %vm6058_vm14, %v10867_v21, %v10871_v59  ;;  %12284 = vmatpush1.bf16.msra.mxu1 %v20265_v62 }
 0x97f   : > { %v10392_v14 = vsel %vm5935_vm11, %v10387_v43, %v10391_v39  ;;  %v10393_v52 = vrot.slane %v10253_v58, 7  ;;  %v10254_v11 = vsel %vm25098_vm5, 0.0, %v25229_v60  ;;  %10640 = vst [vmem:[#allocation2 + $0x1c8] sm:$0xff] %v25229_v60  ;;  %11053 = vst [vmem:[#allocation2 + $0x170] sm:$0xff] %v10872_v32  ;;  %v10877_v43 = vrot.slane %v25229_v60, 1  ;;  %12285 = vmatprep.subr.bf16.mxu1 %v20273_v12  ;;  %v9580_v62 = vpop.f32.mrb[72].mxu1 }
 0x980   : > { %10572 = vst [vmem:[#allocation2 + $0x188] sm:$0xff] %v10392_v14  ;;  %v10874_v29 = vsel %vm6058_vm14, %v10869_v54, %v10873_v30  ;;  %v25261_v21 = vsel %vm6058_vm14, %v10871_v59, %v10875_v53  ;;  %v10395_v28 = vrot.slane %v10254_v11, 7  ;;  %v27527_v19 = vand.u32 15, %v24962_v20  ;;  %13152 = vmatpush1.bf16.msra.mxu0 %v20244_v16  ;;  %v9582_v58 = vpop.f32.mrb[73].mxu1 }
 0x981   : > { %11054 = vst [vmem:[#allocation2 + $0x178] sm:$0xff] %v10874_v29  ;;  %v10394_v34 = vsel %vm5935_vm11, %v10389_v25, %v10393_v52  ;;  %11055 = vst [vmem:[#allocation2 + $0x1a0] sm:$0xff] %v25261_v21  ;;  %v25273_v54 = vpack.c.bf16 %v10874_v29, %v25183_v31  ;;  %v25276_v59 = vpack.c.bf16 %v10872_v32, %v25156_v22  ;;  %v20247_v25 = vld [vmem:[%s27346_s7 + $0x40] ss:$8 sps:$4 sm:$0xff]   ;;  %13153 = vmatprep.subr.bf16.mxu0 %v20249_v5  ;;  %v20276_v32 = vld [vmem:[%s27346_s7 + $0x444] ss:$8 sps:$4 sm:$0xff]  }
 0x982   : > { %vm25268_vm9 = vcmp.eq.s32.totalorder %v27527_v19, 0  ;;  %v25280_v12 = vadd.f32 %v24848_v45, %v24831_v24  ;;  %10573 = vst [vmem:[#allocation2 + $0x1b0] sm:$0xff] %v10394_v34  ;;  %v10396_v20 = vsel %vm5935_vm11, %v10391_v39, %v10395_v28  ;;  %v25289_v31 = vsel %vm6058_vm14, %v10873_v30, %v10877_v43  ;;  %v20252_v24 = vld [vmem:[%s27346_s7 + $0x54] ss:$8 sps:$4 sm:$0xff]   ;;  %v9584_v39 = vpop.f32.mrb[74].mxu1  ;;  %12286 = vmatpush1.bf16.msra.mxu1 %v20271_v46 }
 0x983   : > { %27530 = vst [vmem:[#allocation20_spill] sm:$0xff] %v25273_v54  ;;  %27531 = vst [vmem:[#allocation21_spill] sm:$0xff] %v25276_v59  ;;  %v17780_v22 = vadd.f32 %v24937_v27, %v9580_v62  ;;  %v25292_v16 = vpack.c.bf16 %v10394_v34, %v10390_v15  ;;  %v17782_v30 = vadd.f32 %v24941_v47, %v9582_v58  ;;  %v27532_v27 = vand.u32 15, %v24974_v35  ;;  %v20274_v47 = vld [vmem:[%s27346_s7 + $0x440] ss:$8 sps:$4 sm:$0xff]  }
 0x984   : > { %10574 = vst [vmem:[#allocation2 + $0x1b8] sm:$0xff] %v10396_v20  ;;  %11056 = vst [vmem:[#allocation2 + $0x1a8] sm:$0xff] %v25289_v31  ;;  %12524 = vmatprep.mubr.bf16.mxu0 %v25273_v54  ;;  %v25309_v5 = vpack.c.bf16 %v10396_v20, %v10392_v14  ;;  %v25314_v29 = vadd.f32 %v24851_v9, %v24835_v55  ;;  %v25322_v62 = vadd.f32 %v24945_v56, %v9584_v39  ;;  %v9586_v14 = vpop.f32.mrb[75].mxu1  ;;  %v20282_v46 = vld [vmem:[%s27346_s7 + $0x454] ss:$8 sps:$4 sm:$0xff]  }
 0x985   : > { %vm25304_vm10 = vcmp.eq.s32.totalorder %v27532_v27, 15  ;;  %v10397_v35 = vrot.slane %v17780_v22, 7  ;;  %10641 = vst [vmem:[#allocation2 + $0x1f0] sm:$0xff] %v17780_v22  ;;  %v10737_v34 = vsel %vm25163_vm6, 0.0, %v17780_v22  ;;  %12139 = vmatmul.mubr.bf16.gmra.mrb[96].mxu1 %v25186_v51  ;;  %12525 = vmatmul.mubr.bf16.gmra.mrb[60].mxu0 %v25276_v59  ;;  %v25327_v55 = vadd.s32 120, %v21779_v3  ;;  %10642 = vst [vmem:[#allocation2 + $0x1f8] sm:$0xff] %v17782_v30 }
 0x986   : > { %v10879_v19 = vrot.slane %v10737_v34, 1  ;;  %v10399_v20 = vrot.slane %v17782_v30, 7  ;;  %v10738_v22 = vsel %vm25163_vm6, 0.0, %v17782_v30  ;;  %v25335_v56 = vadd.f32 %v24954_v44, %v9586_v14  ;;  %12148 = vmatprep.mubr.bf16.mxu1 %v25309_v5  ;;  %13154 = vmatpush1.bf16.msra.mxu0 %v20247_v25  ;;  %v20250_v58 = vld [vmem:[%s27346_s7 + $0x50] ss:$8 sps:$4 sm:$0xff]   ;;  %10643 = vst [vmem:[#allocation2 + $0x220] sm:$0xff] %v25322_v62 }
 0x987   : > { %v10398_v39 = vsel %vm5935_vm11, %v10393_v52, %v10397_v35  ;;  %v10881_v27 = vrot.slane %v10738_v22, 1  ;;  %v10257_v34 = vsel %vm25198_vm7, 0.0, %v25322_v62  ;;  %v10883_v36 = vrot.slane %v25322_v62, 1  ;;  %13155 = vmatprep.subr.bf16.mxu0 %v20252_v24  ;;  %v20255_v44 = vld [vmem:[%s27346_s7 + $0x64] ss:$8 sps:$4 sm:$0xff]   ;;  %12287 = vmatprep.subr.bf16.mxu1 %v20276_v32 }
 0x988   : > { %10575 = vst [vmem:[#allocation2 + $0x1e0] sm:$0xff] %v10398_v39  ;;  %v10880_v52 = vsel %vm6058_vm14, %v10875_v53, %v10879_v19  ;;  %v10400_v25 = vsel %vm5935_vm11, %v10395_v28, %v10399_v20  ;;  %v10401_v30 = vrot.slane %v10257_v34, 7  ;;  %v10258_v14 = vsel %vm25198_vm7, 0.0, %v25335_v56  ;;  %10644 = vst [vmem:[#allocation2 + $0x228] sm:$0xff] %v25335_v56  ;;  %12288 = vmatpush1.bf16.msra.mxu1 %v20274_v47  ;;  %v20280_v24 = vld [vmem:[%s27346_s7 + $0x450] ss:$8 sps:$4 sm:$0xff]  }
 0x989   : > { %11057 = vst [vmem:[#allocation2 + $0x1d0] sm:$0xff] %v10880_v52  ;;  %10576 = vst [vmem:[#allocation2 + $0x1e8] sm:$0xff] %v10400_v25  ;;  %v10882_v2 = vsel %vm6058_vm14, %v10877_v43, %v10881_v27  ;;  %v25367_v53 = vsel %vm6058_vm14, %v10879_v19, %v10883_v36  ;;  %v10403_v26 = vrot.slane %v10258_v14, 7  ;;  %v10885_v28 = vrot.slane %v25335_v56, 1  ;;  %12289 = vmatprep.subr.bf16.mxu1 %v20282_v46  ;;  %v9590_v47 = vpop.f32.mrb[76].mxu1 }
 0x98a   : > { %11058 = vst [vmem:[#allocation2 + $0x1d8] sm:$0xff] %v10882_v2  ;;  %v10402_v32 = vsel %vm5935_vm11, %v10397_v35, %v10401_v30  ;;  %11059 = vst [vmem:[#allocation2 + $0x200] sm:$0xff] %v25367_v53  ;;  %v27535_v22 = vand.u32 15, %v25028_v13  ;;  %v25379_v43 = vpack.c.bf16 %v10882_v2, %v25289_v31  ;;  %v25382_v19 = vpack.c.bf16 %v10880_v52, %v25261_v21  ;;  %v20253_v35 = vld [vmem:[%s27346_s7 + $0x60] ss:$8 sps:$4 sm:$0xff]   ;;  %v9592_v14 = vpop.f32.mrb[77].mxu1 }
 0x98b   : > { %13156 = vmatpush1.bf16.msra.mxu0 %v20250_v58  ;;  %10577 = vst [vmem:[#allocation2 + $0x210] sm:$0xff] %v10402_v32  ;;  %v10404_v13 = vsel %vm5935_vm11, %v10399_v20, %v10403_v26  ;;  %v25392_v34 = vsel %vm6058_vm14, %v10881_v27, %v10885_v28  ;;  %v17788_v31 = vadd.f32 %v24983_v48, %v9590_v47  ;;  %v20261_v58 = vld [vmem:[%s27346_s7 + $0x74] ss:$8 sps:$4 sm:$0xff]   ;;  %v20285_v52 = vld [vmem:[%s27346_s7 + $0x464] ss:$8 sps:$4 sm:$0xff]   ;;  %v9594_v27 = vpop.f32.mrb[78].mxu1 }
 0x98c   : > { %vm25374_vm12 = vcmp.eq.s32.totalorder %v27535_v22, 0  ;;  %27538 = vst [vmem:[#allocation22_spill] sm:$0xff] %v25379_v43  ;;  %27539 = vst [vmem:[#allocation23_spill] sm:$0xff] %v25382_v19  ;;  %v25395_v21 = vpack.c.bf16 %v10402_v32, %v10398_v39  ;;  %13157 = vmatprep.subr.bf16.mxu0 %v20255_v44  ;;  %v17790_v20 = vadd.f32 %v24990_v0, %v9592_v14  ;;  %v27540_v48 = vand.u32 15, %v25119_v38  ;;  %v20283_v0 = vld [vmem:[%s27346_s7 + $0x460] ss:$8 sps:$4 sm:$0xff]  }
 0x98d   : > { %10578 = vst [vmem:[#allocation2 + $0x218] sm:$0xff] %v10404_v13  ;;  %11060 = vst [vmem:[#allocation2 + $0x208] sm:$0xff] %v25392_v34  ;;  %12534 = vmatprep.mubr.bf16.mxu0 %v25379_v43  ;;  %v25412_v44 = vpack.c.bf16 %v10404_v13, %v10400_v25  ;;  %v25415_v2 = vadd.s32 128, %v21779_v3  ;;  %v25418_v32 = vadd.s32 136, %v21779_v3  ;;  %12290 = vmatpush1.bf16.msra.mxu1 %v20280_v24  ;;  %v10405_v38 = vrot.slane %v17788_v31, 7  ;;  %v9596_v25 = vpop.f32.mrb[79].mxu1 }
 0x98e   : > { %vm25407_vm8 = vcmp.eq.s32.totalorder %v27540_v48, 15  ;;  %10645 = vst [vmem:[#allocation2 + $0x250] sm:$0xff] %v17788_v31  ;;  %v10741_v47 = vsel %vm25268_vm9, 0.0, %v17788_v31  ;;  %v25426_v22 = vadd.f32 %v24994_v1, %v9594_v27  ;;  %12149 = vmatmul.mubr.bf16.gmra.mrb[100].mxu1 %v25292_v16  ;;  %12535 = vmatmul.mubr.bf16.gmra.mrb[64].mxu0 %v25382_v19  ;;  %v25431_v13 = vadd.s32 144, %v21779_v3  ;;  %v20291_v24 = vld [vmem:[%s27346_s7 + $0x474] ss:$8 sps:$4 sm:$0xff]  }
 0x98f   : > { %v10887_v14 = vrot.slane %v10741_v47, 1  ;;  %v10407_v48 = vrot.slane %v17790_v20, 7  ;;  %10646 = vst [vmem:[#allocation2 + $0x258] sm:$0xff] %v17790_v20  ;;  %v10742_v31 = vsel %vm25268_vm9, 0.0, %v17790_v20  ;;  %v25439_v1 = vadd.f32 %v25005_v50, %v9596_v25  ;;  %12158 = vmatprep.mubr.bf16.mxu1 %v25412_v44  ;;  %13158 = vmatpush1.bf16.msra.mxu0 %v20253_v35  ;;  %v20259_v27 = vld [vmem:[%s27346_s7 + $0x70] ss:$8 sps:$4 sm:$0xff]  }
 0x990   : > { %v10406_v46 = vsel %vm5935_vm11, %v10401_v30, %v10405_v38  ;;  %v10889_v11 = vrot.slane %v10742_v31, 1  ;;  %v10261_v47 = vsel %vm25304_vm10, 0.0, %v25426_v22  ;;  %10647 = vst [vmem:[#allocation2 + $0x280] sm:$0xff] %v25426_v22  ;;  %v10891_v6 = vrot.slane %v25426_v22, 1  ;;  %13159 = vmatprep.subr.bf16.mxu0 %v20261_v58  ;;  %v20270_v50 = vld [vmem:[%s27346_s7 + $0x84] ss:$8 sps:$4 sm:$0xff]   ;;  %12291 = vmatprep.subr.bf16.mxu1 %v20285_v52 }
 0x991   : > { %10579 = vst [vmem:[#allocation2 + $0x240] sm:$0xff] %v10406_v46  ;;  %v10888_v30 = vsel %vm6058_vm14, %v10883_v36, %v10887_v14  ;;  %v10408_v35 = vsel %vm5935_vm11, %v10403_v26, %v10407_v48  ;;  %v10409_v20 = vrot.slane %v10261_v47, 7  ;;  %v10262_v25 = vsel %vm25304_vm10, 0.0, %v25439_v1  ;;  %10648 = vst [vmem:[#allocation2 + $0x288] sm:$0xff] %v25439_v1  ;;  %12292 = vmatpush1.bf16.msra.mxu1 %v20283_v0  ;;  %v20289_v58 = vld [vmem:[%s27346_s7 + $0x470] ss:$8 sps:$4 sm:$0xff]  }
 0x992   : > { %11061 = vst [vmem:[#allocation2 + $0x230] sm:$0xff] %v10888_v30  ;;  %10580 = vst [vmem:[#allocation2 + $0x248] sm:$0xff] %v10408_v35  ;;  %v10890_v62 = vsel %vm6058_vm14, %v10885_v28, %v10889_v11  ;;  %v25471_v36 = vsel %vm6058_vm14, %v10887_v14, %v10891_v6  ;;  %v10411_v15 = vrot.slane %v10262_v25, 7  ;;  %v10893_v26 = vrot.slane %v25439_v1, 1  ;;  %12293 = vmatprep.subr.bf16.mxu1 %v20291_v24  ;;  %v9600_v0 = vpop.f32.mrb[80].mxu1 }
 0x993   : > { %11062 = vst [vmem:[#allocation2 + $0x238] sm:$0xff] %v10890_v62  ;;  %v10410_v52 = vsel %vm5935_vm11, %v10405_v38, %v10409_v20  ;;  %11063 = vst [vmem:[#allocation2 + $0x260] sm:$0xff] %v25471_v36  ;;  %v27543_v31 = vand.u32 15, %v25221_v18  ;;  %v25483_v28 = vpack.c.bf16 %v10890_v62, %v25392_v34  ;;  %v25486_v14 = vpack.c.bf16 %v10888_v30, %v25367_v53  ;;  %v20268_v38 = vld [vmem:[%s27346_s7 + $0x80] ss:$8 sps:$4 sm:$0xff]   ;;  %v9602_v25 = vpop.f32.mrb[81].mxu1 }
 0x994   : > { %v9939_v24 = vand.u32 15, %v25415_v2  ;;  %13160 = vmatpush1.bf16.msra.mxu0 %v20259_v27  ;;  %10581 = vst [vmem:[#allocation2 + $0x270] sm:$0xff] %v10410_v52  ;;  %v10412_v18 = vsel %vm5935_vm11, %v10407_v48, %v10411_v15  ;;  %v25496_v47 = vsel %vm6058_vm14, %v10889_v11, %v10893_v26  ;;  %v17796_v34 = vadd.f32 %v25012_v61, %v9600_v0  ;;  %v20279_v27 = vld [vmem:[%s27346_s7 + $0x94] ss:$8 sps:$4 sm:$0xff]   ;;  %v20294_v30 = vld [vmem:[%s27346_s7 + $0x484] ss:$8 sps:$4 sm:$0xff]  }
 0x995   : > { %vm25478_vm13 = vcmp.eq.s32.totalorder %v27543_v31, 0  ;;  %27546 = vst [vmem:[#allocation24_spill] sm:$0xff] %v25483_v28  ;;  %27547 = vst [vmem:[#allocation25_spill] sm:$0xff] %v25486_v14  ;;  %v25499_v53 = vpack.c.bf16 %v10410_v52, %v10406_v46  ;;  %13161 = vmatprep.subr.bf16.mxu0 %v20270_v50  ;;  %v17798_v11 = vadd.f32 %v25021_v8, %v9602_v25  ;;  %v9604_v48 = vpop.f32.mrb[82].mxu1  ;;  %v27548_v61 = vand.u32 15, %v25327_v55 }
 0x996   : > { %10582 = vst [vmem:[#allocation2 + $0x278] sm:$0xff] %v10412_v18  ;;  %11064 = vst [vmem:[#allocation2 + $0x268] sm:$0xff] %v25496_v47  ;;  %12544 = vmatprep.mubr.bf16.mxu0 %v25483_v28  ;;  %v25516_v50 = vpack.c.bf16 %v10412_v18, %v10408_v35  ;;  %12294 = vmatpush1.bf16.msra.mxu1 %v20289_v58  ;;  %v20292_v8 = vld [vmem:[%s27346_s7 + $0x480] ss:$8 sps:$4 sm:$0xff]   ;;  %v10413_v0 = vrot.slane %v17796_v34, 7  ;;  %v10745_v55 = vsel %vm25374_vm12, 0.0, %v17796_v34 }
 0x997   : > { %vm25511_vm15 = vcmp.eq.s32.totalorder %v27548_v61, 15  ;;  %10649 = vst [vmem:[#allocation2 + $0x2b0] sm:$0xff] %v17796_v34  ;;  %v25526_v31 = vadd.f32 %v25025_v42, %v9604_v48  ;;  %v9606_v25 = vpop.f32.mrb[83].mxu1  ;;  %12159 = vmatmul.mubr.bf16.gmra.mrb[104].mxu1 %v25395_v21  ;;  %12545 = vmatmul.mubr.bf16.gmra.mrb[68].mxu0 %v25486_v14  ;;  %v25531_v35 = vadd.s32 152, %v21779_v3  ;;  %v20300_v58 = vld [vmem:[%s27346_s7 + $0x494] ss:$8 sps:$4 sm:$0xff]  }
 0x998   : > { %v10895_v18 = vrot.slane %v10745_v55, 1  ;;  %v10415_v61 = vrot.slane %v17798_v11, 7  ;;  %10650 = vst [vmem:[#allocation2 + $0x2b8] sm:$0xff] %v17798_v11  ;;  %v10746_v34 = vsel %vm25374_vm12, 0.0, %v17798_v11  ;;  %v25539_v42 = vadd.f32 %v25037_v10, %v9606_v25  ;;  %12168 = vmatprep.mubr.bf16.mxu1 %v25516_v50  ;;  %13162 = vmatpush1.bf16.msra.mxu0 %v20268_v38  ;;  %v20277_v48 = vld [vmem:[%s27346_s7 + $0x90] ss:$8 sps:$4 sm:$0xff]  }
 0x999   : > { %v10414_v52 = vsel %vm5935_vm11, %v10409_v20, %v10413_v0  ;;  %v10897_v62 = vrot.slane %v10746_v34, 1  ;;  %v10265_v55 = vsel %vm25407_vm8, 0.0, %v25526_v31  ;;  %10651 = vst [vmem:[#allocation2 + $0x2e0] sm:$0xff] %v25526_v31  ;;  %v10899_v60 = vrot.slane %v25526_v31, 1  ;;  %13163 = vmatprep.subr.bf16.mxu0 %v20279_v27  ;;  %v20288_v10 = vld [vmem:[%s27346_s7 + $0xa4] ss:$8 sps:$4 sm:$0xff]   ;;  %12295 = vmatprep.subr.bf16.mxu1 %v20294_v30 }
 0x99a   : > { %10583 = vst [vmem:[#allocation2 + $0x2a0] sm:$0xff] %v10414_v52  ;;  %v10896_v20 = vsel %vm6058_vm14, %v10891_v6, %v10895_v18  ;;  %v10416_v38 = vsel %vm5935_vm11, %v10411_v15, %v10415_v61  ;;  %v10417_v11 = vrot.slane %v10265_v55, 7  ;;  %v10266_v25 = vsel %vm25407_vm8, 0.0, %v25539_v42  ;;  %10652 = vst [vmem:[#allocation2 + $0x2e8] sm:$0xff] %v25539_v42  ;;  %12296 = vmatpush1.bf16.msra.mxu1 %v20292_v8  ;;  %v20298_v27 = vld [vmem:[%s27346_s7 + $0x490] ss:$8 sps:$4 sm:$0xff]  }
 0x99b   : > { %11065 = vst [vmem:[#allocation2 + $0x290] sm:$0xff] %v10896_v20  ;;  %10584 = vst [vmem:[#allocation2 + $0x2a8] sm:$0xff] %v10416_v38  ;;  %v10898_v22 = vsel %vm6058_vm14, %v10893_v26, %v10897_v62  ;;  %v25571_v6 = vsel %vm6058_vm14, %v10895_v18, %v10899_v60  ;;  %v10419_v39 = vrot.slane %v10266_v25, 7  ;;  %v10901_v15 = vrot.slane %v25539_v42, 1  ;;  %12297 = vmatprep.subr.bf16.mxu1 %v20300_v58  ;;  %v9610_v8 = vpop.f32.mrb[84].mxu1 }
 0x99c   : > { %11066 = vst [vmem:[#allocation2 + $0x298] sm:$0xff] %v10898_v22  ;;  %v10418_v30 = vsel %vm5935_vm11, %v10413_v0, %v10417_v11  ;;  %11067 = vst [vmem:[#allocation2 + $0x2c0] sm:$0xff] %v25571_v6  ;;  %vm25578_vm0 = vcmp.eq.s32.totalorder %v9939_v24, 0  ;;  %v25583_v26 = vpack.c.bf16 %v10898_v22, %v25496_v47  ;;  %v25586_v18 = vpack.c.bf16 %v10896_v20, %v25471_v36  ;;  %v20286_v0 = vld [vmem:[%s27346_s7 + $0xa0] ss:$8 sps:$4 sm:$0xff]   ;;  %v9612_v34 = vpop.f32.mrb[85].mxu1 }
 0x99d   : > { %13164 = vmatpush1.bf16.msra.mxu0 %v20277_v48  ;;  %10585 = vst [vmem:[#allocation2 + $0x2d0] sm:$0xff] %v10418_v30  ;;  %v10420_v2 = vsel %vm5935_vm11, %v10415_v61, %v10419_v39  ;;  %v25596_v24 = vsel %vm6058_vm14, %v10897_v62, %v10901_v15  ;;  %v17804_v47 = vadd.f32 %v25177_v41, %v9610_v8  ;;  %v20297_v48 = vld [vmem:[%s27346_s7 + $0xb4] ss:$8 sps:$4 sm:$0xff]   ;;  %v20303_v55 = vld [vmem:[%s27346_s7 + $0x4a4] ss:$8 sps:$4 sm:$0xff]   ;;  %v9614_v61 = vpop.f32.mrb[86].mxu1 }
 0x99e   : > { %27553 = vst [vmem:[#allocation26_spill] sm:$0xff] %v25583_v26  ;;  %27554 = vst [vmem:[#allocation27_spill] sm:$0xff] %v25586_v18  ;;  %v25599_v36 = vpack.c.bf16 %v10418_v30, %v10414_v52  ;;  %13165 = vmatprep.subr.bf16.mxu0 %v20288_v10  ;;  %v17806_v62 = vadd.f32 %v25208_v23, %v9612_v34  ;;  %v27555_v41 = vand.u32 15, %v25418_v32  ;;  %12554 = vmatprep.mubr.bf16.mxu0 %v25583_v26  ;;  %v20301_v23 = vld [vmem:[%s27346_s7 + $0x4a0] ss:$8 sps:$4 sm:$0xff]  }
 0x99f   : > { %10586 = vst [vmem:[#allocation2 + $0x2d8] sm:$0xff] %v10420_v2  ;;  %11068 = vst [vmem:[#allocation2 + $0x2c8] sm:$0xff] %v25596_v24  ;;  %v25616_v10 = vpack.c.bf16 %v10420_v2, %v10416_v38  ;;  %v25619_v20 = vadd.s32 160, %v21779_v3  ;;  %v25622_v25 = vadd.s32 168, %v21779_v3  ;;  %12298 = vmatpush1.bf16.msra.mxu1 %v20298_v27  ;;  %v10421_v32 = vrot.slane %v17804_v47, 7  ;;  %v9616_v38 = vpop.f32.mrb[87].mxu1  ;;  %12555 = vmatmul.mubr.bf16.gmra.mrb[72].mxu0 %v25586_v18 }
 0x9a0   : > { %vm25611_vm1 = vcmp.eq.s32.totalorder %v27555_v41, 15  ;;  %10653 = vst [vmem:[#allocation2 + $0x310] sm:$0xff] %v17804_v47  ;;  %v10749_v22 = vsel %vm25478_vm13, 0.0, %v17804_v47  ;;  %v25630_v30 = vadd.f32 %v25280_v12, %v9614_v61  ;;  %12169 = vmatmul.mubr.bf16.gmra.mrb[108].mxu1 %v25499_v53  ;;  %v25635_v8 = vadd.s32 176, %v21779_v3  ;;  %v20309_v27 = vld [vmem:[%s27346_s7 + $0x4b4] ss:$8 sps:$4 sm:$0xff]   ;;  %12299 = vmatprep.subr.bf16.mxu1 %v20303_v55 }
 0x9a1   : > { %v10903_v2 = vrot.slane %v10749_v22, 1  ;;  %v10423_v34 = vrot.slane %v17806_v62, 7  ;;  %10654 = vst [vmem:[#allocation2 + $0x318] sm:$0xff] %v17806_v62  ;;  %v10750_v47 = vsel %vm25478_vm13, 0.0, %v17806_v62  ;;  %v25643_v12 = vadd.f32 %v25314_v29, %v9616_v38  ;;  %12178 = vmatprep.mubr.bf16.mxu1 %v25616_v10  ;;  %13166 = vmatpush1.bf16.msra.mxu0 %v20286_v0  ;;  %v20295_v61 = vld [vmem:[%s27346_s7 + $0xb0] ss:$8 sps:$4 sm:$0xff]  }
 0x9a2   : > { %v10422_v41 = vsel %vm5935_vm11, %v10417_v11, %v10421_v32  ;;  %v10905_v58 = vrot.slane %v10750_v47, 1  ;;  %v10269_v22 = vsel %vm25511_vm15, 0.0, %v25630_v30  ;;  %10655 = vst [vmem:[#allocation2 + $0x340] sm:$0xff] %v25630_v30  ;;  %v27377_v56 = vrot.slane %v25630_v30, 1  ;;  %13167 = vmatprep.subr.bf16.mxu0 %v20297_v48  ;;  %v20306_v29 = vld [vmem:[%s27346_s7 + $0xc4] ss:$8 sps:$4 sm:$0xff]  }
 0x9a3   : > { %10587 = vst [vmem:[#allocation2 + $0x300] sm:$0xff] %v10422_v41  ;;  %v10904_v11 = vsel %vm6058_vm14, %v10899_v60, %v10903_v2  ;;  %v10424_v0 = vsel %vm5935_vm11, %v10419_v39, %v10423_v34  ;;  %v10425_v62 = vrot.slane %v10269_v22, 7  ;;  %v10270_v38 = vsel %vm25511_vm15, 0.0, %v25643_v12  ;;  %10656 = vst [vmem:[#allocation2 + $0x348] sm:$0xff] %v25643_v12  ;;  %12300 = vmatpush1.bf16.msra.mxu1 %v20301_v23  ;;  %v20307_v48 = vld [vmem:[%s27346_s7 + $0x4b0] ss:$8 sps:$4 sm:$0xff]  }
 0x9a4   : > { %11069 = vst [vmem:[#allocation2 + $0x2f0] sm:$0xff] %v10904_v11  ;;  %10588 = vst [vmem:[#allocation2 + $0x308] sm:$0xff] %v10424_v0  ;;  %v10906_v31 = vsel %vm6058_vm14, %v10901_v15, %v10905_v58  ;;  %v25675_v60 = vsel %vm6058_vm14, %v10903_v2, %v27377_v56  ;;  %v10427_v46 = vrot.slane %v10270_v38, 7  ;;  %v27376_v39 = vrot.slane %v25643_v12, 1  ;;  %12301 = vmatprep.subr.bf16.mxu1 %v20309_v27  ;;  %v9620_v23 = vpop.f32.mrb[24].mxu1 }
 0x9a5   : > { %11070 = vst [vmem:[#allocation2 + $0x2f8] sm:$0xff] %v10906_v31  ;;  %v10426_v55 = vsel %vm5935_vm11, %v10421_v32, %v10425_v62  ;;  %11071 = vst [vmem:[#allocation2 + $0x320] sm:$0xff] %v25675_v60  ;;  %v27558_v47 = vand.u32 15, %v25431_v13  ;;  %v25687_v15 = vpack.c.bf16 %v10906_v31, %v25596_v24  ;;  %v25690_v2 = vpack.c.bf16 %v10904_v11, %v25571_v6  ;;  %v20304_v32 = vld [vmem:[%s27346_s7 + $0xc0] ss:$8 sps:$4 sm:$0xff]   ;;  %v9622_v38 = vpop.f32.mrb[25].mxu1 }
 0x9a6   : > { %13168 = vmatpush1.bf16.msra.mxu0 %v20295_v61  ;;  %10589 = vst [vmem:[#allocation2 + $0x330] sm:$0xff] %v10426_v55  ;;  %v10428_v13 = vsel %vm5935_vm11, %v10423_v34, %v10427_v46  ;;  %v25700_v22 = vsel %vm6058_vm14, %v10905_v58, %v27376_v39  ;;  %v9621_v24 = vadd.f32 %v9620_v23, %v24848_v45  ;;  %v20312_v61 = vld [vmem:[%s27346_s7 + $0x4c4] ss:$8 sps:$4 sm:$0xff]   ;;  %v20315_v11 = vld [vmem:[%s27346_s7 + $0xd4] ss:$8 sps:$4 sm:$0xff]   ;;  %v9624_v34 = vpop.f32.mrb[26].mxu1 }
 0x9a7   : > { %vm25682_vm2 = vcmp.eq.s32.totalorder %v27558_v47, 0  ;;  %27561 = vst [vmem:[#allocation28_spill] sm:$0xff] %v25687_v15  ;;  %27562 = vst [vmem:[#allocation29_spill] sm:$0xff] %v25690_v2  ;;  %v25703_v6 = vpack.c.bf16 %v10426_v55, %v10422_v41  ;;  %13169 = vmatprep.subr.bf16.mxu0 %v20306_v29  ;;  %v9623_v58 = vadd.f32 %v9622_v38, %v24851_v9  ;;  %v27563_v31 = vand.u32 15, %v25531_v35  ;;  %v20310_v47 = vld [vmem:[%s27346_s7 + $0x4c0] ss:$8 sps:$4 sm:$0xff]  }
 0x9a8   : > { %10590 = vst [vmem:[#allocation2 + $0x338] sm:$0xff] %v10428_v13  ;;  %11072 = vst [vmem:[#allocation2 + $0x328] sm:$0xff] %v25700_v22  ;;  %12564 = vmatprep.mubr.bf16.mxu0 %v25687_v15  ;;  %v25720_v29 = vpack.c.bf16 %v10428_v13, %v10424_v0  ;;  %12302 = vmatpush1.bf16.msra.mxu1 %v20307_v48  ;;  %v10429_v38 = vrot.slane %v9621_v24, 7  ;;  %v10753_v35 = vsel %vm25578_vm0, 0.0, %v9621_v24  ;;  %v9626_v27 = vpop.f32.mrb[27].mxu1  ;;  %v25735_v0 = vadd.s32 184, %v21779_v3 }
 0x9a9   : > { %vm25715_vm3 = vcmp.eq.s32.totalorder %v27563_v31, 15  ;;  %10657 = vst [vmem:[#allocation2 + $0x370] sm:$0xff] %v9621_v24  ;;  %v25730_v31 = vadd.f32 %v9624_v34, %v24848_v45  ;;  %12179 = vmatmul.mubr.bf16.gmra.mrb[112].mxu1 %v25599_v36  ;;  %12565 = vmatmul.mubr.bf16.gmra.mrb[76].mxu0 %v25690_v2  ;;  %v20318_v48 = vld [vmem:[%s27346_s7 + $0x4d4] ss:$8 sps:$4 sm:$0xff]   ;;  %v10911_v13 = vrot.slane %v10753_v35, 1  ;;  %v10431_v23 = vrot.slane %v9623_v58, 7 }
 0x9aa   : > { %10658 = vst [vmem:[#allocation2 + $0x378] sm:$0xff] %v9623_v58  ;;  %v10754_v24 = vsel %vm25578_vm0, 0.0, %v9623_v58  ;;  %v25743_v34 = vadd.f32 %v9626_v27, %v24851_v9  ;;  %12188 = vmatprep.mubr.bf16.mxu1 %v25720_v29  ;;  %13170 = vmatpush1.bf16.msra.mxu0 %v20304_v32  ;;  %v20313_v55 = vld [vmem:[%s27346_s7 + $0xd0] ss:$8 sps:$4 sm:$0xff]   ;;  %v10430_v39 = vsel %vm5935_vm11, %v10425_v62, %v10429_v38  ;;  %v20324_v27 = vld [vmem:[%s27346_s7 + $0xe4] ss:$8 sps:$4 sm:$0xff]  }
 0x9ab   : > { %v10913_v56 = vrot.slane %v10754_v24, 1  ;;  %v10273_v35 = vsel %vm25611_vm1, 0.0, %v25730_v31  ;;  %10659 = vst [vmem:[#allocation2 + $0x3a0] sm:$0xff] %v25730_v31  ;;  %v27381_v1 = vrot.slane %v25730_v31, 1  ;;  %12303 = vmatprep.subr.bf16.mxu1 %v20312_v61  ;;  %13171 = vmatprep.subr.bf16.mxu0 %v20315_v11  ;;  %10591 = vst [vmem:[#allocation2 + $0x360] sm:$0xff] %v10430_v39  ;;  %v27566_v32 = vrot.slane %v25630_v30, 1 }
 0x9ac   : > { %v10432_v58 = vsel %vm5935_vm11, %v10427_v46, %v10431_v23  ;;  %v10433_v24 = vrot.slane %v10273_v35, 7  ;;  %v10274_v2 = vsel %vm25611_vm1, 0.0, %v25743_v34  ;;  %10660 = vst [vmem:[#allocation2 + $0x3a8] sm:$0xff] %v25743_v34  ;;  %12304 = vmatpush1.bf16.msra.mxu1 %v20310_v47  ;;  %v20316_v61 = vld [vmem:[%s27346_s7 + $0x4d0] ss:$8 sps:$4 sm:$0xff]   ;;  %v27567_v30 = vrot.slane %v25643_v12, 1 }
 0x9ad   : > { %v10912_v62 = vsel %vm6058_vm14, %v27566_v32, %v10911_v13  ;;  %10592 = vst [vmem:[#allocation2 + $0x368] sm:$0xff] %v10432_v58  ;;  %v25775_v46 = vsel %vm6058_vm14, %v10911_v13, %v27381_v1  ;;  %v10435_v52 = vrot.slane %v10274_v2, 7  ;;  %v27380_v35 = vrot.slane %v25743_v34, 1  ;;  %12305 = vmatprep.subr.bf16.mxu1 %v20318_v48  ;;  %v9630_v32 = vpop.f32.mrb[28].mxu1  ;;  %v20328_v42 = vld [vmem:[%s27346_s7 + $0xf0] ss:$8 sps:$4 sm:$0xff]  }
 0x9ae   : > { %11073 = vst [vmem:[#allocation2 + $0x350] sm:$0xff] %v10912_v62  ;;  %v10914_v11 = vsel %vm6058_vm14, %v27567_v30, %v10913_v56  ;;  %v10434_v47 = vsel %vm5935_vm11, %v10429_v38, %v10433_v24  ;;  %11075 = vst [vmem:[#allocation2 + $0x380] sm:$0xff] %v25775_v46  ;;  %v27568_v15 = vand.u32 15, %v25619_v20  ;;  %v25790_v2 = vpack.c.bf16 %v10912_v62, %v25675_v60  ;;  %v20321_v38 = vld [vmem:[%s27346_s7 + $0x4e4] ss:$8 sps:$4 sm:$0xff]   ;;  %v9632_v13 = vpop.f32.mrb[29].mxu1 }
 0x9af   : > { %11074 = vst [vmem:[#allocation2 + $0x358] sm:$0xff] %v10914_v11  ;;  %v25787_v30 = vpack.c.bf16 %v10914_v11, %v25700_v22  ;;  %13172 = vmatpush1.bf16.msra.mxu0 %v20313_v55  ;;  %10593 = vst [vmem:[#allocation2 + $0x390] sm:$0xff] %v10434_v47  ;;  %v10436_v20 = vsel %vm5935_vm11, %v10431_v23, %v10435_v52  ;;  %v9631_v22 = vadd.f32 %v9630_v32, %v24848_v45  ;;  %v20322_v60 = vld [vmem:[%s27346_s7 + $0xe0] ss:$8 sps:$4 sm:$0xff]   ;;  %v9634_v62 = vpop.f32.mrb[30].mxu1 }
 0x9b0   : > { %vm25782_vm4 = vcmp.eq.s32.totalorder %v27568_v15, 0  ;;  %27572 = vst [vmem:[#allocation31_spill] sm:$0xff] %v25790_v2  ;;  %v10918_v15 = vsel %vm6058_vm14, %v10913_v56, %v27380_v35  ;;  %v25801_v11 = vpack.c.bf16 %v10434_v47, %v10430_v39  ;;  %13173 = vmatprep.subr.bf16.mxu0 %v20324_v27  ;;  %10594 = vst [vmem:[#allocation2 + $0x398] sm:$0xff] %v10436_v20  ;;  %v27573_v23 = vand.u32 15, %v25622_v25  ;;  %v20319_v27 = vld [vmem:[%s27346_s7 + $0x4e0] ss:$8 sps:$4 sm:$0xff]  }
 0x9b1   : > { %27571 = vst [vmem:[#allocation30_spill] sm:$0xff] %v25787_v30  ;;  %11076 = vst [vmem:[#allocation2 + $0x388] sm:$0xff] %v10918_v15  ;;  %v9633_v55 = vadd.f32 %v9632_v13, %v24851_v9  ;;  %12574 = vmatprep.mubr.bf16.mxu0 %v25787_v30  ;;  %v25814_v56 = vpack.c.bf16 %v10436_v20, %v10432_v58  ;;  %v25817_v39 = vadd.s32 192, %v21779_v3  ;;  %12306 = vmatpush1.bf16.msra.mxu1 %v20316_v61  ;;  %v20330_v25 = vld [vmem:[%s27346_s7 + $0xf4] ss:$8 sps:$4 sm:$0xff]   ;;  %v9636_v20 = vpop.f32.mrb[31].mxu1 }
 0x9b2   : > { %vm25809_vm5 = vcmp.eq.s32.totalorder %v27573_v23, 15  ;;  %v10437_v47 = vrot.slane %v9631_v22, 7  ;;  %10661 = vst [vmem:[#allocation2 + $0x3d0] sm:$0xff] %v9631_v22  ;;  %v10757_v32 = vsel %vm25682_vm2, 0.0, %v9631_v22  ;;  %v25828_v58 = vadd.f32 %v9634_v62, %v24848_v45  ;;  %12189 = vmatmul.mubr.bf16.gmra.mrb[116].mxu1 %v25703_v6  ;;  %12575 = vmatmul.mubr.bf16.gmra.mrb[80].mxu0 %v25790_v2  ;;  %v20327_v13 = vld [vmem:[%s27346_s7 + $0x4f4] ss:$8 sps:$4 sm:$0xff]  }
 0x9b3   : > { %v25833_v61 = vadd.s32 200, %v21779_v3  ;;  %v10919_v23 = vrot.slane %v10757_v32, 1  ;;  %v10439_v35 = vrot.slane %v9633_v55, 7  ;;  %10662 = vst [vmem:[#allocation2 + $0x3d8] sm:$0xff] %v9633_v55  ;;  %v10758_v22 = vsel %vm25682_vm2, 0.0, %v9633_v55  ;;  %12198 = vmatprep.mubr.bf16.mxu1 %v25814_v56  ;;  %12307 = vmatprep.subr.bf16.mxu1 %v20321_v38 }
 0x9b4   : > { %v25841_v62 = vadd.f32 %v9636_v20, %v24851_v9  ;;  %v10438_v1 = vsel %vm5935_vm11, %v10433_v24, %v10437_v47  ;;  %v10921_v2 = vrot.slane %v10758_v22, 1  ;;  %v10277_v30 = vsel %vm25715_vm3, 0.0, %v25828_v58  ;;  %10663 = vst [vmem:[#allocation2 + $0x400] sm:$0xff] %v25828_v58  ;;  %13174 = vmatpush1.bf16.msra.mxu0 %v20322_v60  ;;  %v20325_v60 = vld [vmem:[%s27346_s7 + $0x4f0] ss:$8 sps:$4 sm:$0xff]  }
 0x9b5   : > { %v27385_v32 = vrot.slane %v25828_v58, 1  ;;  %10595 = vst [vmem:[#allocation2 + $0x3c0] sm:$0xff] %v10438_v1  ;;  %v27576_v55 = vrot.slane %v25730_v31, 1  ;;  %v10440_v24 = vsel %vm5935_vm11, %v10435_v52, %v10439_v35  ;;  %v10441_v20 = vrot.slane %v10277_v30, 7  ;;  %12308 = vmatpush1.bf16.msra.mxu1 %v20319_v27  ;;  %13175 = vmatprep.subr.bf16.mxu0 %v20330_v25  ;;  %v9640_v25 = vpop.f32.mrb[32].mxu1 }
 0x9b6   : > { %v10278_v22 = vsel %vm25715_vm3, 0.0, %v25841_v62  ;;  %10664 = vst [vmem:[#allocation2 + $0x408] sm:$0xff] %v25841_v62  ;;  %10596 = vst [vmem:[#allocation2 + $0x3c8] sm:$0xff] %v10440_v24  ;;  %v27577_v31 = vrot.slane %v25743_v34, 1  ;;  %v10925_v30 = vrot.slane %v25841_v62, 1  ;;  %12309 = vmatprep.subr.bf16.mxu1 %v20327_v13  ;;  %v27578_v18 = vand.u32 15, %v25635_v8 }
 0x9b7   : > { %v10920_v38 = vsel %vm6058_vm14, %v27576_v55, %v10919_v23  ;;  %v25870_v52 = vsel %vm6058_vm14, %v10919_v23, %v27385_v32  ;;  %v10443_v41 = vrot.slane %v10278_v22, 7  ;;  %v10442_v27 = vsel %vm5935_vm11, %v10437_v47, %v10441_v20  ;;  %v20333_v47 = vld [vmem:[%s27346_s7 + $0x104] ss:$8 sps:$4 sm:$0xff]   ;;  %v9642_v22 = vpop.f32.mrb[33].mxu1 }
 0x9b8   : > { %11077 = vst [vmem:[#allocation2 + $0x3b0] sm:$0xff] %v10920_v38  ;;  %v10922_v55 = vsel %vm6058_vm14, %v27577_v31, %v10921_v2  ;;  %11079 = vst [vmem:[#allocation2 + $0x3e0] sm:$0xff] %v25870_v52  ;;  %vm25877_vm6 = vcmp.eq.s32.totalorder %v27578_v18, 0  ;;  %v25884_v23 = vpack.c.bf16 %v10920_v38, %v25775_v46  ;;  %v9995_v62 = vand.u32 15, %v25817_v39  ;;  %13176 = vmatpush1.bf16.msra.mxu0 %v20328_v42 }
 0x9b9   : > { %11078 = vst [vmem:[#allocation2 + $0x3b8] sm:$0xff] %v10922_v55  ;;  %v25881_v31 = vpack.c.bf16 %v10922_v55, %v10918_v15  ;;  %10597 = vst [vmem:[#allocation2 + $0x3f0] sm:$0xff] %v10442_v27  ;;  %v10444_v13 = vsel %vm5935_vm11, %v10439_v35, %v10443_v41  ;;  %v10926_v8 = vsel %vm6058_vm14, %v10921_v2, %v10925_v30  ;;  %v9644_v15 = vpop.f32.mrb[34].mxu1  ;;  %v27583_v39 = vand.u32 15, %v25735_v0 }
 0x9ba   : > { %27582 = vst [vmem:[#allocation33_spill] sm:$0xff] %v25884_v23  ;;  %v9641_v18 = vadd.f32 %v9640_v25, %v24848_v45  ;;  %v25893_v32 = vpack.c.bf16 %v10442_v27, %v10438_v1  ;;  %10598 = vst [vmem:[#allocation2 + $0x3f8] sm:$0xff] %v10444_v13  ;;  %v9643_v46 = vadd.f32 %v9642_v22, %v24851_v9  ;;  %v10002_v2 = vand.u32 15, %v25833_v61  ;;  %v9646_v27 = vpop.f32.mrb[35].mxu1 }
 0x9bb   : > { %27581 = vst [vmem:[#allocation32_spill] sm:$0xff] %v25881_v31  ;;  %11080 = vst [vmem:[#allocation2 + $0x3e8] sm:$0xff] %v10926_v8  ;;  %vm25898_vm7 = vcmp.eq.s32.totalorder %v27583_v39, 15  ;;  %12584 = vmatprep.mubr.bf16.mxu0 %v25881_v31  ;;  %v25903_v35 = vpack.c.bf16 %v10444_v13, %v10440_v24  ;;  %v25907_v1 = vadd.s32 208, %v21779_v3  ;;  %12310 = vmatpush1.bf16.msra.mxu1 %v20325_v60  ;;  %v25917_v24 = vadd.s32 216, %v21779_v3 }
 0x9bc   : > { %v10445_v42 = vrot.slane %v9641_v18, 7  ;;  %10665 = vst [vmem:[#allocation2 + $0x430] sm:$0xff] %v9641_v18  ;;  %v10761_v55 = vsel %vm25782_vm4, 0.0, %v9641_v18  ;;  %v25912_v0 = vadd.f32 %v9644_v15, %v24848_v45  ;;  %12199 = vmatmul.mubr.bf16.gmra.mrb[120].mxu1 %v25801_v11  ;;  %12585 = vmatmul.mubr.bf16.gmra.mrb[84].mxu0 %v25884_v23  ;;  %v10447_v25 = vrot.slane %v9643_v46, 7  ;;  %10666 = vst [vmem:[#allocation2 + $0x438] sm:$0xff] %v9643_v46 }
 0x9bd   : > { %v10927_v61 = vrot.slane %v10761_v55, 1  ;;  %v10762_v60 = vsel %vm25782_vm4, 0.0, %v9643_v46  ;;  %v25922_v13 = vadd.f32 %v9646_v27, %v24851_v9  ;;  %12208 = vmatprep.mubr.bf16.mxu1 %v25903_v35  ;;  %13338 = vmatprep.subr.bf16.mxu0 %v20333_v47  ;;  %v27586_v12 = vrot.slane %v25828_v58, 1 }
 0x9be   : > { %v10446_v18 = vsel %vm5935_vm11, %v10441_v20, %v10445_v42  ;;  %v10929_v22 = vrot.slane %v10762_v60, 1  ;;  %v10281_v15 = vsel %vm25809_vm5, 0.0, %v25912_v0  ;;  %10667 = vst [vmem:[#allocation2 + $0x460] sm:$0xff] %v25912_v0  ;;  %v10931_v39 = vrot.slane %v25912_v0, 1 }
 0x9bf   : > { %10599 = vst [vmem:[#allocation2 + $0x420] sm:$0xff] %v10446_v18  ;;  %v10928_v46 = vsel %vm6058_vm14, %v27586_v12, %v10927_v61  ;;  %v10448_v55 = vsel %vm5935_vm11, %v10443_v41, %v10447_v25  ;;  %v10449_v27 = vrot.slane %v10281_v15, 7  ;;  %v10282_v20 = vsel %vm25809_vm5, 0.0, %v25922_v13  ;;  %10668 = vst [vmem:[#allocation2 + $0x468] sm:$0xff] %v25922_v13  ;;  %v9650_v41 = vpop.f32.mrb[36].mxu1 }
 0x9c0   : > { %11081 = vst [vmem:[#allocation2 + $0x410] sm:$0xff] %v10928_v46  ;;  %10600 = vst [vmem:[#allocation2 + $0x428] sm:$0xff] %v10448_v55  ;;  %v10930_v47 = vsel %vm6058_vm14, %v10925_v30, %v10929_v22  ;;  %v10932_v0 = vsel %vm6058_vm14, %v10927_v61, %v10931_v39  ;;  %v10451_v60 = vrot.slane %v10282_v20, 7  ;;  %v10933_v58 = vrot.slane %v25922_v13, 1  ;;  %v9652_v20 = vpop.f32.mrb[37].mxu1 }
 0x9c1   : > { %11082 = vst [vmem:[#allocation2 + $0x418] sm:$0xff] %v10930_v47  ;;  %v10450_v12 = vsel %vm5935_vm11, %v10445_v42, %v10449_v27  ;;  %11083 = vst [vmem:[#allocation2 + $0x440] sm:$0xff] %v10932_v0  ;;  %vm25943_vm9 = vcmp.eq.s32.totalorder %v9995_v62, 0  ;;  %v25947_v48 = vpack.c.bf16 %v10930_v47, %v10926_v8  ;;  %v25950_v23 = vpack.c.bf16 %v10928_v46, %v25870_v52  ;;  %v9654_v31 = vpop.f32.mrb[38].mxu1 }
 0x9c2   : > { %10601 = vst [vmem:[#allocation2 + $0x450] sm:$0xff] %v10450_v12  ;;  %v10452_v30 = vsel %vm5935_vm11, %v10447_v25, %v10451_v60  ;;  %v10934_v61 = vsel %vm6058_vm14, %v10929_v22, %v10933_v58  ;;  %v9651_v13 = vadd.f32 %v9650_v41, %v24848_v45  ;;  %v25955_v42 = vpack.c.bf16 %v10450_v12, %v10446_v18  ;;  %v9656_v47 = vpop.f32.mrb[39].mxu1 }
 0x9c3   : > { %27589 = vst [vmem:[#allocation34_spill] sm:$0xff] %v25947_v48  ;;  %27590 = vst [vmem:[#allocation35_spill] sm:$0xff] %v25950_v23  ;;  %v9653_v62 = vadd.f32 %v9652_v20, %v24851_v9  ;;  %vm25958_vm10 = vcmp.eq.s32.totalorder %v10002_v2, 15  ;;  %12594 = vmatprep.mubr.bf16.mxu0 %v25947_v48  ;;  %v25963_v52 = vpack.c.bf16 %v10452_v30, %v10448_v55  ;;  %v10009_v25 = vand.u32 15, %v25907_v1 }
 0x9c4   : > { %10602 = vst [vmem:[#allocation2 + $0x458] sm:$0xff] %v10452_v30  ;;  %11084 = vst [vmem:[#allocation2 + $0x448] sm:$0xff] %v10934_v61  ;;  %v10453_v22 = vrot.slane %v9651_v13, 7  ;;  %v10765_v18 = vsel %vm25877_vm6, 0.0, %v9651_v13  ;;  %v25969_v46 = vadd.f32 %v9654_v31, %v24848_v45  ;;  %12209 = vmatmul.mubr.bf16.gmra.mrb[124].mxu1 %v25893_v32  ;;  %12595 = vmatmul.mubr.bf16.gmra.mrb[88].mxu0 %v25950_v23  ;;  %v10016_v2 = vand.u32 15, %v25917_v24 }
 0x9c5   : > { %10669 = vst [vmem:[#allocation2 + $0x490] sm:$0xff] %v9651_v13  ;;  %v10935_v12 = vrot.slane %v10765_v18, 1  ;;  %v10455_v55 = vrot.slane %v9653_v62, 7  ;;  %10670 = vst [vmem:[#allocation2 + $0x498] sm:$0xff] %v9653_v62  ;;  %v10766_v1 = vsel %vm25877_vm6, 0.0, %v9653_v62  ;;  %v25977_v41 = vadd.f32 %v9656_v47, %v24851_v9  ;;  %12218 = vmatprep.mubr.bf16.mxu1 %v25963_v52 }
 0x9c6   : > { %v10454_v31 = vsel %vm5935_vm11, %v10449_v27, %v10453_v22  ;;  %v10937_v30 = vrot.slane %v10766_v1, 1  ;;  %v10285_v13 = vsel %vm25898_vm7, 0.0, %v25969_v46  ;;  %10671 = vst [vmem:[#allocation2 + $0x4c0] sm:$0xff] %v25969_v46  ;;  %v10939_v24 = vrot.slane %v25969_v46, 1 }
 0x9c7   : > { %10603 = vst [vmem:[#allocation2 + $0x480] sm:$0xff] %v10454_v31  ;;  %v10936_v34 = vsel %vm6058_vm14, %v10931_v39, %v10935_v12  ;;  %v10456_v20 = vsel %vm5935_vm11, %v10451_v60, %v10455_v55  ;;  %v10457_v62 = vrot.slane %v10285_v13, 7  ;;  %v10286_v18 = vsel %vm25898_vm7, 0.0, %v25977_v41  ;;  %10672 = vst [vmem:[#allocation2 + $0x4c8] sm:$0xff] %v25977_v41  ;;  %v9660_v60 = vpop.f32.mrb[40].mxu1 }
 0x9c8   : > { %11085 = vst [vmem:[#allocation2 + $0x470] sm:$0xff] %v10936_v34  ;;  %10604 = vst [vmem:[#allocation2 + $0x488] sm:$0xff] %v10456_v20  ;;  %v10938_v27 = vsel %vm6058_vm14, %v10933_v58, %v10937_v30  ;;  %v10940_v47 = vsel %vm6058_vm14, %v10935_v12, %v10939_v24  ;;  %v10459_v1 = vrot.slane %v10286_v18, 7  ;;  %v10941_v46 = vrot.slane %v25977_v41, 1  ;;  %v9662_v18 = vpop.f32.mrb[41].mxu1 }
 0x9c9   : > { %11086 = vst [vmem:[#allocation2 + $0x478] sm:$0xff] %v10938_v27  ;;  %v10458_v39 = vsel %vm5935_vm11, %v10453_v22, %v10457_v62  ;;  %11087 = vst [vmem:[#allocation2 + $0x4a0] sm:$0xff] %v10940_v47  ;;  %vm25996_vm12 = vcmp.eq.s32.totalorder %v10009_v25, 0  ;;  %v26000_v38 = vpack.c.bf16 %v10938_v27, %v10934_v61  ;;  %v26002_v23 = vpack.c.bf16 %v10936_v34, %v10932_v0  ;;  %v9664_v22 = vpop.f32.mrb[42].mxu1 }
 0x9ca   : > { %10605 = vst [vmem:[#allocation2 + $0x4b0] sm:$0xff] %v10458_v39  ;;  %v10460_v58 = vsel %vm5935_vm11, %v10455_v55, %v10459_v1  ;;  %v10942_v12 = vsel %vm6058_vm14, %v10937_v30, %v10941_v46  ;;  %v9661_v41 = vadd.f32 %v9660_v60, %v24848_v45  ;;  %v26007_v48 = vpack.c.bf16 %v10458_v39, %v10454_v31  ;;  %v9666_v27 = vpop.f32.mrb[43].mxu1 }
 0x9cb   : > { %27595 = vst [vmem:[#allocation36_spill] sm:$0xff] %v26000_v38  ;;  %27596 = vst [vmem:[#allocation37_spill] sm:$0xff] %v26002_v23  ;;  %v9663_v25 = vadd.f32 %v9662_v18, %v24851_v9  ;;  %vm26010_vm8 = vcmp.eq.s32.totalorder %v10016_v2, 15  ;;  %12604 = vmatprep.mubr.bf16.mxu0 %v26000_v38  ;;  %v26015_v0 = vpack.c.bf16 %v10460_v58, %v10456_v20  ;;  %v26018_v55 = vadd.s32 224, %v21779_v3 }
 0x9cc   : > { %10606 = vst [vmem:[#allocation2 + $0x4b8] sm:$0xff] %v10460_v58  ;;  %11088 = vst [vmem:[#allocation2 + $0x4a8] sm:$0xff] %v10942_v12  ;;  %v26021_v30 = vadd.s32 232, %v21779_v3  ;;  %v10461_v31 = vrot.slane %v9661_v41, 7  ;;  %v10769_v34 = vsel %vm25943_vm9, 0.0, %v9661_v41  ;;  %v26026_v2 = vadd.f32 %v9664_v22, %v24848_v45  ;;  %12219 = vmatmul.mubr.bf16.gmra.mrb[128].mxu1 %v25955_v42  ;;  %12605 = vmatmul.mubr.bf16.gmra.mrb[92].mxu0 %v26002_v23 }
 0x9cd   : > { %10673 = vst [vmem:[#allocation2 + $0x4f0] sm:$0xff] %v9661_v41  ;;  %v26031_v20 = vadd.s32 240, %v21779_v3  ;;  %v10943_v39 = vrot.slane %v10769_v34, 1  ;;  %v10463_v60 = vrot.slane %v9663_v25, 7  ;;  %10674 = vst [vmem:[#allocation2 + $0x4f8] sm:$0xff] %v9663_v25  ;;  %v10770_v58 = vsel %vm25943_vm9, 0.0, %v9663_v25  ;;  %12228 = vmatprep.mubr.bf16.mxu1 %v26015_v0 }
 0x9ce   : > { %v26036_v18 = vadd.f32 %v9666_v27, %v24851_v9  ;;  %v10462_v41 = vsel %vm5935_vm11, %v10457_v62, %v10461_v31  ;;  %v10945_v22 = vrot.slane %v10770_v58, 1  ;;  %v10289_v23 = vsel %vm25958_vm10, 0.0, %v26026_v2  ;;  %10675 = vst [vmem:[#allocation2 + $0x520] sm:$0xff] %v26026_v2 }
 0x9cf   : > { %v10947_v34 = vrot.slane %v26026_v2, 1  ;;  %10607 = vst [vmem:[#allocation2 + $0x4e0] sm:$0xff] %v10462_v41  ;;  %v10944_v15 = vsel %vm6058_vm14, %v10939_v24, %v10943_v39  ;;  %v10464_v25 = vsel %vm5935_vm11, %v10459_v1, %v10463_v60  ;;  %v10465_v27 = vrot.slane %v10289_v23, 7  ;;  %v9670_v23 = vpop.f32.mrb[44].mxu1 }
 0x9d0   : > { %v10290_v38 = vsel %vm25958_vm10, 0.0, %v26036_v18  ;;  %10676 = vst [vmem:[#allocation2 + $0x528] sm:$0xff] %v26036_v18  ;;  %11089 = vst [vmem:[#allocation2 + $0x4d0] sm:$0xff] %v10944_v15  ;;  %v10946_v62 = vsel %vm6058_vm14, %v10941_v46, %v10945_v22  ;;  %v10949_v2 = vrot.slane %v26036_v18, 1  ;;  %v10023_v1 = vand.u32 15, %v26018_v55 }
 0x9d1   : > { %10608 = vst [vmem:[#allocation2 + $0x4e8] sm:$0xff] %v10464_v25  ;;  %v10948_v58 = vsel %vm6058_vm14, %v10943_v39, %v10947_v34  ;;  %v10467_v26 = vrot.slane %v10290_v38, 7  ;;  %11090 = vst [vmem:[#allocation2 + $0x4d8] sm:$0xff] %v10946_v62  ;;  %v10466_v24 = vsel %vm5935_vm11, %v10461_v31, %v10465_v27  ;;  %v26056_v8 = vpack.c.bf16 %v10946_v62, %v10942_v12  ;;  %v9672_v39 = vpop.f32.mrb[45].mxu1 }
 0x9d2   : > { %11091 = vst [vmem:[#allocation2 + $0x500] sm:$0xff] %v10948_v58  ;;  %v26058_v14 = vpack.c.bf16 %v10944_v15, %v10940_v47  ;;  %10609 = vst [vmem:[#allocation2 + $0x510] sm:$0xff] %v10466_v24  ;;  %v10950_v46 = vsel %vm6058_vm14, %v10945_v22, %v10949_v2  ;;  %v9671_v38 = vadd.f32 %v9670_v23, %v24848_v45  ;;  %v9674_v19 = vpop.f32.mrb[46].mxu1  ;;  %v10030_v12 = vand.u32 15, %v26021_v30 }
 0x9d3   : > { %27599 = vst [vmem:[#allocation38_spill] sm:$0xff] %v26056_v8  ;;  %v10468_v28 = vsel %vm5935_vm11, %v10463_v60, %v10467_v26  ;;  %v26063_v18 = vpack.c.bf16 %v10466_v24, %v10462_v41  ;;  %11092 = vst [vmem:[#allocation2 + $0x508] sm:$0xff] %v10950_v46  ;;  %v9673_v31 = vadd.f32 %v9672_v39, %v24851_v9  ;;  %12614 = vmatprep.mubr.bf16.mxu0 %v26056_v8  ;;  %v9676_v15 = vpop.f32.mrb[47].mxu1 }
 0x9d4   : > { %27600 = vst [vmem:[#allocation39_spill] sm:$0xff] %v26058_v14  ;;  %10610 = vst [vmem:[#allocation2 + $0x518] sm:$0xff] %v10468_v28  ;;  %v26068_v47 = vpack.c.bf16 %v10468_v28, %v10464_v25  ;;  %v10037_v55 = vand.u32 15, %v26031_v20  ;;  %v10469_v60 = vrot.slane %v9671_v38, 7  ;;  %v10773_v22 = vsel %vm25996_vm12, 0.0, %v9671_v38  ;;  %12229 = vmatmul.mubr.bf16.gmra.mrb[132].mxu1 %v26007_v48  ;;  %12615 = vmatmul.mubr.bf16.gmra.mrb[96].mxu0 %v26058_v14 }
 0x9d5   : > { %10677 = vst [vmem:[#allocation2 + $0x550] sm:$0xff] %v9671_v38  ;;  %v26074_v41 = vadd.f32 %v9674_v19, %v24848_v45  ;;  %v26079_v30 = vadd.s32 248, %v21779_v3  ;;  %v10951_v28 = vrot.slane %v10773_v22, 1  ;;  %v10471_v25 = vrot.slane %v9673_v31, 7  ;;  %10678 = vst [vmem:[#allocation2 + $0x558] sm:$0xff] %v9673_v31 }
 0x9d6   : > { %v10774_v20 = vsel %vm25996_vm12, 0.0, %v9673_v31  ;;  %v26084_v62 = vadd.f32 %v9676_v15, %v24851_v9  ;;  %12238 = vmatprep.mubr.bf16.mxu1 %v26068_v47  ;;  %v10470_v19 = vsel %vm5935_vm11, %v10465_v27, %v10469_v60  ;;  %vm26103_vm13 = vcmp.eq.s32.totalorder %v10023_v1, 0 }
 0x9d7   : > { %v10953_v24 = vrot.slane %v10774_v20, 1  ;;  %v10293_v23 = vsel %vm26010_vm8, 0.0, %v26074_v41  ;;  %10679 = vst [vmem:[#allocation2 + $0x580] sm:$0xff] %v26074_v41  ;;  %v10955_v3 = vrot.slane %v26074_v41, 1  ;;  %10611 = vst [vmem:[#allocation2 + $0x540] sm:$0xff] %v10470_v19  ;;  %v10952_v13 = vsel %vm6058_vm14, %v10947_v34, %v10951_v28 }
 0x9d8   : > { %v10472_v38 = vsel %vm5935_vm11, %v10467_v26, %v10471_v25  ;;  %v10473_v39 = vrot.slane %v10293_v23, 7  ;;  %v10294_v31 = vsel %vm26010_vm8, 0.0, %v26084_v62  ;;  %10680 = vst [vmem:[#allocation2 + $0x588] sm:$0xff] %v26084_v62  ;;  %11093 = vst [vmem:[#allocation2 + $0x530] sm:$0xff] %v10952_v13  ;;  %v10957_v20 = vrot.slane %v26084_v62, 1  ;;  %v9680_v26 = vpop.f32.mrb[48].mxu1 }
 0x9d9   : > { %10612 = vst [vmem:[#allocation2 + $0x548] sm:$0xff] %v10472_v38  ;;  %v10954_v27 = vsel %vm6058_vm14, %v10949_v2, %v10953_v24  ;;  %v10956_v22 = vsel %vm6058_vm14, %v10951_v28, %v10955_v3  ;;  %v10475_v15 = vrot.slane %v10294_v31, 7  ;;  %v26109_v14 = vpack.c.bf16 %v10952_v13, %v10948_v58  ;;  %v9682_v8 = vpop.f32.mrb[49].mxu1 }
 0x9da   : > { %11094 = vst [vmem:[#allocation2 + $0x538] sm:$0xff] %v10954_v27  ;;  %v10474_v34 = vsel %vm5935_vm11, %v10469_v60, %v10473_v39  ;;  %11095 = vst [vmem:[#allocation2 + $0x560] sm:$0xff] %v10956_v22  ;;  %v26107_v61 = vpack.c.bf16 %v10954_v27, %v10950_v46  ;;  %v10958_v28 = vsel %vm6058_vm14, %v10953_v24, %v10957_v20  ;;  %v9684_v60 = vpop.f32.mrb[50].mxu1  ;;  %vm26117_vm15 = vcmp.eq.s32.totalorder %v10030_v12, 15 }
 0x9db   : > { %27604 = vst [vmem:[#allocation41_spill] sm:$0xff] %v26109_v14  ;;  %10613 = vst [vmem:[#allocation2 + $0x570] sm:$0xff] %v10474_v34  ;;  %v10476_v2 = vsel %vm5935_vm11, %v10471_v25, %v10475_v15  ;;  %v9681_v31 = vadd.f32 %v9680_v26, %v24848_v45  ;;  %v26114_v43 = vpack.c.bf16 %v10474_v34, %v10470_v19  ;;  %vm26121_vm0 = vcmp.eq.s32.totalorder %v10037_v55, 0  ;;  %v9686_v12 = vpop.f32.mrb[51].mxu1 }
 0x9dc   : > { %27603 = vst [vmem:[#allocation40_spill] sm:$0xff] %v26107_v61  ;;  %10614 = vst [vmem:[#allocation2 + $0x578] sm:$0xff] %v10476_v2  ;;  %v9683_v1 = vadd.f32 %v9682_v8, %v24851_v9  ;;  %12624 = vmatprep.mubr.bf16.mxu0 %v26107_v61  ;;  %v26126_v25 = vpack.c.bf16 %v10476_v2, %v10472_v38  ;;  %v26131_v8 = vadd.f32 %v9684_v60, %v24848_v45 }
 0x9dd   : > { %11096 = vst [vmem:[#allocation2 + $0x568] sm:$0xff] %v10958_v28  ;;  %v10477_v24 = vrot.slane %v9681_v31, 7  ;;  %10681 = vst [vmem:[#allocation2 + $0x5b0] sm:$0xff] %v9681_v31  ;;  %v10777_v19 = vsel %vm26103_vm13, 0.0, %v9681_v31  ;;  %12239 = vmatmul.mubr.bf16.gmra.mrb[136].mxu1 %v26063_v18  ;;  %v10044_v55 = vand.u32 15, %v26079_v30  ;;  %12625 = vmatmul.mubr.bf16.gmra.mrb[100].mxu0 %v26109_v14  ;;  %v26139_v34 = vadd.f32 %v9686_v12, %v24851_v9 }
 0x9de   : > { %v10959_v13 = vrot.slane %v10777_v19, 1  ;;  %v10479_v27 = vrot.slane %v9683_v1, 7  ;;  %10682 = vst [vmem:[#allocation2 + $0x5b8] sm:$0xff] %v9683_v1  ;;  %v10778_v38 = vsel %vm26103_vm13, 0.0, %v9683_v1  ;;  %12248 = vmatprep.mubr.bf16.mxu1 %v26126_v25  ;;  %v10297_v30 = vsel %vm26117_vm15, 0.0, %v26131_v8  ;;  %10683 = vst [vmem:[#allocation2 + $0x5e0] sm:$0xff] %v26131_v8 }
 0x9df   : > { %v10478_v26 = vsel %vm5935_vm11, %v10473_v39, %v10477_v24  ;;  %v10961_v2 = vrot.slane %v10778_v38, 1  ;;  %v10963_v60 = vrot.slane %v26131_v8, 1  ;;  %v10481_v12 = vrot.slane %v10297_v30, 7  ;;  %10684 = vst [vmem:[#allocation2 + $0x5e8] sm:$0xff] %v26139_v34 }
 0x9e0   : > { %10615 = vst [vmem:[#allocation2 + $0x5a0] sm:$0xff] %v10478_v26  ;;  %v10960_v23 = vsel %vm6058_vm14, %v10955_v3, %v10959_v13  ;;  %v10480_v19 = vsel %vm5935_vm11, %v10475_v15, %v10479_v27  ;;  %v10298_v14 = vsel %vm26117_vm15, 0.0, %v26139_v34  ;;  %v10965_v59 = vrot.slane %v26139_v34, 1  ;;  %v9690_v15 = vpop.f32.mrb[52].mxu1 }
 0x9e1   : > { %11097 = vst [vmem:[#allocation2 + $0x590] sm:$0xff] %v10960_v23  ;;  %10616 = vst [vmem:[#allocation2 + $0x5a8] sm:$0xff] %v10480_v19  ;;  %v10962_v39 = vsel %vm6058_vm14, %v10957_v20, %v10961_v2  ;;  %v10964_v38 = vsel %vm6058_vm14, %v10959_v13, %v10963_v60  ;;  %v10483_v61 = vrot.slane %v10298_v14, 7  ;;  %v10482_v3 = vsel %vm5935_vm11, %v10477_v24, %v10481_v12  ;;  %v9692_v33 = vpop.f32.mrb[53].mxu1 }
 0x9e2   : > { %11098 = vst [vmem:[#allocation2 + $0x598] sm:$0xff] %v10962_v39  ;;  %11099 = vst [vmem:[#allocation2 + $0x5c0] sm:$0xff] %v10964_v38  ;;  %vm26158_vm1 = vcmp.eq.s32.totalorder %v10044_v55, 15  ;;  %v26162_v46 = vpack.c.bf16 %v10962_v39, %v10958_v28  ;;  %v26164_v54 = vpack.c.bf16 %v10960_v23, %v10956_v22  ;;  %v10966_v14 = vsel %vm6058_vm14, %v10961_v2, %v10965_v59  ;;  %v9694_v28 = vpop.f32.mrb[54].mxu1 }
 0x9e3   : > { %10617 = vst [vmem:[#allocation2 + $0x5d0] sm:$0xff] %v10482_v3  ;;  %v10484_v20 = vsel %vm5935_vm11, %v10479_v27, %v10483_v61  ;;  %v26169_v13 = vadd.f32 %v9690_v15, %v24848_v45  ;;  %v26171_v24 = vpack.c.bf16 %v10482_v3, %v10478_v26  ;;  %11100 = vst [vmem:[#allocation2 + $0x5c8] sm:$0xff] %v10966_v14  ;;  %v9696_v39 = vpop.f32.mrb[55].mxu1 }
 0x9e4   : > { %10618 = vst [vmem:[#allocation2 + $0x5d8] sm:$0xff] %v10484_v20  ;;  %v26174_v55 = vadd.f32 %v9692_v33, %v24851_v9  ;;  %12634 = vmatprep.mubr.bf16.mxu0 %v26162_v46  ;;  %v26177_v22 = vpack.c.bf16 %v10484_v20, %v10480_v19  ;;  %v26180_v27 = vpack.c.bf16 %v26139_v34, %v9683_v1 }
 0x9e5   : > { %v26183_v2 = vpack.c.bf16 %v26131_v8, %v9681_v31  ;;  %v10485_v23 = vrot.slane %v26169_v13, 7  ;;  %10685 = vst [vmem:[#allocation2 + $0x610] sm:$0xff] %v26169_v13  ;;  %v10781_v33 = vsel %vm26121_vm0, 0.0, %v26169_v13  ;;  %v26191_v26 = vadd.f32 %v9694_v28, %v24848_v45  ;;  %12249 = vmatmul.mubr.bf16.gmra.mrb[140].mxu1 %v26114_v43  ;;  %12635 = vmatmul.mubr.bf16.gmra.mrb[104].mxu0 %v26164_v54 }
 0x9e6   : > { %v10967_v1 = vrot.slane %v10781_v33, 1  ;;  %v10487_v31 = vrot.slane %v26174_v55, 7  ;;  %10686 = vst [vmem:[#allocation2 + $0x618] sm:$0xff] %v26174_v55  ;;  %v10782_v8 = vsel %vm26121_vm0, 0.0, %v26174_v55  ;;  %v26201_v34 = vadd.f32 %v9696_v39, %v24851_v9  ;;  %12258 = vmatprep.mubr.bf16.mxu1 %v26177_v22 }
 0x9e7   : > { %v10486_v45 = vsel %vm5935_vm11, %v10481_v12, %v10485_v23  ;;  %v10969_v19 = vrot.slane %v10782_v8, 1  ;;  %v10301_v3 = vsel %vm26158_vm1, 0.0, %v26191_v26  ;;  %10687 = vst [vmem:[#allocation2 + $0x640] sm:$0xff] %v26191_v26  ;;  %v10971_v15 = vrot.slane %v26191_v26, 1 }
 0x9e8   : > { %10619 = vst [vmem:[#allocation2 + $0x600] sm:$0xff] %v10486_v45  ;;  %v10968_v58 = vsel %vm6058_vm14, %v10963_v60, %v10967_v1  ;;  %v10488_v20 = vsel %vm5935_vm11, %v10483_v61, %v10487_v31  ;;  %v10489_v9 = vrot.slane %v10301_v3, 7  ;;  %v10302_v28 = vsel %vm26158_vm1, 0.0, %v26201_v34  ;;  %10688 = vst [vmem:[#allocation2 + $0x648] sm:$0xff] %v26201_v34 }
 0x9e9   : > { %11101 = vst [vmem:[#allocation2 + $0x5f0] sm:$0xff] %v10968_v58  ;;  %10620 = vst [vmem:[#allocation2 + $0x608] sm:$0xff] %v10488_v20  ;;  %v10970_v12 = vsel %vm6058_vm14, %v10965_v59, %v10969_v19  ;;  %v10972_v33 = vsel %vm6058_vm14, %v10967_v1, %v10971_v15  ;;  %v10491_v39 = vrot.slane %v10302_v28, 7  ;;  %v10973_v8 = vrot.slane %v26201_v34, 1  ;;  %v26233_v28 = vld [vmem:[#allocation3] sm:$0xff] }
 0x9ea   : > { %11105 = vst [vmem:[#allocation2 + $0x650] sm:$0x7f] %v10971_v15  ;;  %11102 = vst [vmem:[#allocation2 + $0x5f8] sm:$0xff] %v10970_v12  ;;  %v10490_v61 = vsel %vm5935_vm11, %v10485_v23, %v10489_v9  ;;  %v26220_v60 = vpack.c.bf16 %v10970_v12, %v10966_v14  ;;  %v26222_v30 = vpack.c.bf16 %v10968_v58, %v10964_v38  ;;  %v11128_v14 = vld [vmem:[#allocation2 + $0xa8] sm:$0xff] }
 0x9eb   : > { %10623 = vst [vmem:[#allocation2 + $0x660] sm:$0x1] %v10489_v9  ;;  %11103 = vst [vmem:[#allocation2 + $0x620] sm:$0xff] %v10972_v33  ;;  %v11506_v3 = vpack.c.bf16 %v26201_v34, %v26174_v55  ;;  %v10492_v59 = vsel %vm5935_vm11, %v10487_v31, %v10491_v39  ;;  %v10974_v1 = vsel %vm6058_vm14, %v10969_v19, %v10973_v8  ;;  %v11122_v19 = vld [vmem:[#allocation2 + $0x78] sm:$0xff] }
 0x9ec   : > { %10621 = vst [vmem:[#allocation2 + $0x630] sm:$0xff] %v10490_v61  ;;  %10624 = vst [vmem:[#allocation2 + $0x668] sm:$0x1] %v10491_v39  ;;  %v11503_v15 = vpack.c.bf16 %v10490_v61, %v10486_v45  ;;  %v11505_v23 = vpack.c.bf16 %v26191_v26, %v26169_v13  ;;  %12644 = vmatprep.mubr.bf16.mxu0 %v26220_v60  ;;  %v11504_v38 = vpack.c.bf16 %v10492_v59, %v10488_v20  ;;  %v11127_v20 = vld [vmem:[#allocation2 + $0xa0] sm:$0xff]  ;;  %v11121_v61 = vld [vmem:[#allocation2 + $0x70] sm:$0xff] }
 0x9ed   : > { %11106 = vst [vmem:[#allocation2 + $0x658] sm:$0x7f] %v10973_v8  ;;  %10622 = vst [vmem:[#allocation2 + $0x638] sm:$0xff] %v10492_v59  ;;  %12259 = vmatmul.mubr.bf16.gmra.mrb[144].mxu1 %v26171_v24  ;;  %12645 = vmatmul.mubr.bf16.gmra.mrb[108].mxu0 %v26222_v30  ;;  %v26237_v45 = vpack.c.bf16 %v26233_v28, %v26233_v28  ;;  %v26239_v12 = vpack.c.bf16 %v11128_v14, %v11122_v19  ;;  %v11140_v8 = vld [vmem:[#allocation2 + $0x108] sm:$0xff]  ;;  %v11133_v19 = vld [vmem:[#allocation2 + $0xd0] sm:$0xff] }
 0x9ee   : > { %11104 = vst [vmem:[#allocation2 + $0x628] sm:$0xff] %v10974_v1  ;;  %12268 = vmatprep.mubr.bf16.mxu1 %v11504_v38  ;;  %v26243_v59 = vpack.c.bf16 %v11127_v20, %v11121_v61  ;;  %v20331_v38 = vld [vmem:[%s27346_s7 + $0x100] ss:$8 sps:$4 sm:$0xff]   ;;  %v11146_v20 = vld [vmem:[#allocation2 + $0x138] sm:$0xff] }
 0x9ef   : > { %v20342_v61 = vld [vmem:[%s27346_s7 + $0x134] ss:$8 sps:$4 sm:$0xff]   ;;  %v20391_v13 = vld [vmem:[%s27346_s7 + $0x240] ss:$8 sps:$4 sm:$0xff]   ;;  %v20394_v55 = vld [vmem:[%s27346_s7 + $0x250] ss:$8 sps:$4 sm:$0xff]  }
 0x9f0   : > { %v20397_v26 = vld [vmem:[%s27346_s7 + $0x260] ss:$8 sps:$4 sm:$0xff]   ;;  %v20402_v34 = vld [vmem:[%s27346_s7 + $0x274] ss:$8 sps:$4 sm:$0xff]  }
 0x9f1   : > { %v11501_v31 = vld [vmem:[#allocation2 + $0x650] sm:$0xff] }
 0x9f2   : > { %v11507_v39 = vpack.c.bf16 %v11501_v31, %v10972_v33  ;;  %v20336_v33 = vld [vmem:[%s27346_s7 + $0x114] ss:$8 sps:$4 sm:$0xff]   ;;  %v11139_v31 = vld [vmem:[#allocation2 + $0x100] sm:$0xff] }
 0x9f4   : > { %v11502_v58 = vld [vmem:[#allocation2 + $0x658] sm:$0xff] }
 0x9f5   : > { %v11508_v9 = vpack.c.bf16 %v11502_v58, %v10974_v1  ;;  %12269 = vmatmul.mubr.bf16.gmra.mrb[148].mxu1 %v11503_v15  ;;  %v11134_v1 = vld [vmem:[#allocation2 + $0xd8] sm:$0xff]  ;;  %v20339_v58 = vld [vmem:[%s27346_s7 + $0x124] ss:$8 sps:$4 sm:$0xff]  }
 0x9f6   : > { %12311 = vmatprep.mubr.bf16.mxu1 %v26239_v12  ;;  %v26248_v14 = vpack.c.bf16 %v11140_v8, %v11134_v1  ;;  %v20334_v15 = vld [vmem:[%s27346_s7 + $0x110] ss:$8 sps:$4 sm:$0xff]  }
 0x9f7   : > { %12654 = vmatprep.mubr.bf16.mxu0 %v11508_v9  ;;  %v11152_v9 = vld [vmem:[#allocation2 + $0x168] sm:$0xff]  ;;  %v20340_v1 = vld [vmem:[%s27346_s7 + $0x130] ss:$8 sps:$4 sm:$0xff]  }
 0x9f8   : > { %12655 = vmatmul.mubr.bf16.gmra.mrb[112].mxu0 %v11507_v39  ;;  %v26263_v39 = vpack.c.bf16 %v11139_v31, %v11133_v19  ;;  %v26268_v8 = vpack.c.bf16 %v11152_v9, %v11146_v20  ;;  %v11145_v31 = vld [vmem:[#allocation2 + $0x130] sm:$0xff]  ;;  %v11158_v9 = vld [vmem:[#allocation2 + $0x198] sm:$0xff] }
 0x9f9   : > { %13177 = vmatprep.mubr.bf16.mxu0 %v26237_v45  ;;  %v20348_v19 = vld [vmem:[%s27346_s7 + $0x154] ss:$8 sps:$4 sm:$0xff]   ;;  %v20346_v20 = vld [vmem:[%s27346_s7 + $0x150] ss:$8 sps:$4 sm:$0xff]  }
 0x9fd   : > { %12312 = vmatmul.mubr.bf16.vlgmr.msra.gmra.mrb[88].mxu1 %v26243_v59 }
 0x9fe   : > { %12321 = vmatprep.mubr.bf16.mxu1 %v26248_v14 }
 0xa00   : > { %13178 = vmatmul.mubr.bf16.vlgmr.msra.gmra.mrb[52].mxu0 %v26237_v45 }
 0xa01   : > { %13187 = vmatprep.mubr.bf16.mxu0 %v25065_v40  ;;  %13339 = vmatpush1.bf16.msra.mxu0 %v20331_v38  ;;  %v20337_v40 = vld [vmem:[%s27346_s7 + $0x120] ss:$8 sps:$4 sm:$0xff]  }
 0xa02   : > { %13340 = vmatprep.subr.bf16.mxu0 %v20336_v33  ;;  %v11151_v38 = vld [vmem:[#allocation2 + $0x160] sm:$0xff] }
 0xa03   : > { %v20345_v33 = vld [vmem:[%s27346_s7 + $0x144] ss:$8 sps:$4 sm:$0xff]  }
 0xa05   : > { %13341 = vmatpush1.bf16.msra.mxu0 %v20334_v15  ;;  %12322 = vmatmul.mubr.bf16.gmra.mrb[92].mxu1 %v26263_v39  ;;  %v11164_v15 = vld [vmem:[#allocation2 + $0x1c8] sm:$0xff] }
 0xa06   : > { %13342 = vmatprep.subr.bf16.mxu0 %v20339_v58  ;;  %12331 = vmatprep.mubr.bf16.mxu1 %v26268_v8  ;;  %v26283_v58 = vpack.c.bf16 %v11151_v38, %v11145_v31  ;;  %v11157_v38 = vld [vmem:[#allocation2 + $0x190] sm:$0xff] }
 0xa07   : > { %v20354_v31 = vld [vmem:[%s27346_s7 + $0x174] ss:$8 sps:$4 sm:$0xff]  }
 0xa08   : > { %13188 = vmatmul.mubr.bf16.gmra.mrb[56].mxu0 %v25067_v7  ;;  %v20343_v7 = vld [vmem:[%s27346_s7 + $0x140] ss:$8 sps:$4 sm:$0xff]  }
 0xa09   : > { %13197 = vmatprep.mubr.bf16.mxu0 %v25103_v57  ;;  %13343 = vmatpush1.bf16.msra.mxu0 %v20337_v40  ;;  %v26288_v57 = vpack.c.bf16 %v11164_v15, %v11158_v9  ;;  %v11163_v40 = vld [vmem:[#allocation2 + $0x1c0] sm:$0xff]  ;;  %v11170_v15 = vld [vmem:[#allocation2 + $0x1f8] sm:$0xff] }
 0xa0a   : > { %13344 = vmatprep.subr.bf16.mxu0 %v20342_v61  ;;  %v20351_v61 = vld [vmem:[%s27346_s7 + $0x164] ss:$8 sps:$4 sm:$0xff]   ;;  %v20352_v9 = vld [vmem:[%s27346_s7 + $0x170] ss:$8 sps:$4 sm:$0xff]  }
 0xa0d   : > { %13345 = vmatpush1.bf16.msra.mxu0 %v20340_v1  ;;  %12332 = vmatmul.mubr.bf16.gmra.mrb[96].mxu1 %v26283_v58  ;;  %v11176_v1 = vld [vmem:[#allocation2 + $0x228] sm:$0xff] }
 0xa0e   : > { %13346 = vmatprep.subr.bf16.mxu0 %v20345_v33  ;;  %12341 = vmatprep.mubr.bf16.mxu1 %v26288_v57  ;;  %v26303_v33 = vpack.c.bf16 %v11163_v40, %v11157_v38  ;;  %v11169_v40 = vld [vmem:[#allocation2 + $0x1f0] sm:$0xff] }
 0xa0f   : > { %v20360_v38 = vld [vmem:[%s27346_s7 + $0x194] ss:$8 sps:$4 sm:$0xff]  }
 0xa10   : > { %13198 = vmatmul.mubr.bf16.gmra.mrb[60].mxu0 %v25105_v63  ;;  %v20349_v63 = vld [vmem:[%s27346_s7 + $0x160] ss:$8 sps:$4 sm:$0xff]  }
 0xa11   : > { %13207 = vmatprep.mubr.bf16.mxu0 %v25203_v37  ;;  %13347 = vmatpush1.bf16.msra.mxu0 %v20343_v7  ;;  %v26308_v37 = vpack.c.bf16 %v11176_v1, %v11170_v15  ;;  %v11175_v7 = vld [vmem:[#allocation2 + $0x220] sm:$0xff]  ;;  %v11182_v1 = vld [vmem:[#allocation2 + $0x258] sm:$0xff] }
 0xa12   : > { %13348 = vmatprep.subr.bf16.mxu0 %v20348_v19  ;;  %v20357_v19 = vld [vmem:[%s27346_s7 + $0x184] ss:$8 sps:$4 sm:$0xff]   ;;  %v20358_v15 = vld [vmem:[%s27346_s7 + $0x190] ss:$8 sps:$4 sm:$0xff]  }
 0xa15   : > { %13349 = vmatpush1.bf16.msra.mxu0 %v20346_v20  ;;  %12342 = vmatmul.mubr.bf16.gmra.mrb[100].mxu1 %v26303_v33  ;;  %v11188_v20 = vld [vmem:[#allocation2 + $0x288] sm:$0xff] }
 0xa16   : > { %13350 = vmatprep.subr.bf16.mxu0 %v20351_v61  ;;  %12351 = vmatprep.mubr.bf16.mxu1 %v26308_v37  ;;  %v26323_v61 = vpack.c.bf16 %v11175_v7, %v11169_v40  ;;  %v11181_v7 = vld [vmem:[#allocation2 + $0x250] sm:$0xff] }
 0xa17   : > { %v20366_v40 = vld [vmem:[%s27346_s7 + $0x1b4] ss:$8 sps:$4 sm:$0xff]  }
 0xa18   : > { %13208 = vmatmul.mubr.bf16.gmra.mrb[64].mxu0 %v25186_v51  ;;  %v20355_v51 = vld [vmem:[%s27346_s7 + $0x180] ss:$8 sps:$4 sm:$0xff]  }
 0xa19   : > { %13217 = vmatprep.mubr.bf16.mxu0 %v25309_v5  ;;  %13351 = vmatpush1.bf16.msra.mxu0 %v20349_v63  ;;  %v26328_v5 = vpack.c.bf16 %v11188_v20, %v11182_v1  ;;  %v11187_v63 = vld [vmem:[#allocation2 + $0x280] sm:$0xff]  ;;  %v11194_v20 = vld [vmem:[#allocation2 + $0x2b8] sm:$0xff] }
 0xa1a   : > { %13352 = vmatprep.subr.bf16.mxu0 %v20354_v31  ;;  %v20363_v31 = vld [vmem:[%s27346_s7 + $0x1a4] ss:$8 sps:$4 sm:$0xff]   ;;  %v20364_v1 = vld [vmem:[%s27346_s7 + $0x1b0] ss:$8 sps:$4 sm:$0xff]  }
 0xa1d   : > { %13353 = vmatpush1.bf16.msra.mxu0 %v20352_v9  ;;  %12352 = vmatmul.mubr.bf16.gmra.mrb[104].mxu1 %v26323_v61  ;;  %v11200_v9 = vld [vmem:[#allocation2 + $0x2e8] sm:$0xff] }
 0xa1e   : > { %13354 = vmatprep.subr.bf16.mxu0 %v20357_v19  ;;  %12361 = vmatprep.mubr.bf16.mxu1 %v26328_v5  ;;  %v26343_v19 = vpack.c.bf16 %v11187_v63, %v11181_v7  ;;  %v11193_v63 = vld [vmem:[#allocation2 + $0x2b0] sm:$0xff] }
 0xa1f   : > { %v20372_v7 = vld [vmem:[%s27346_s7 + $0x1d4] ss:$8 sps:$4 sm:$0xff]  }
 0xa20   : > { %13218 = vmatmul.mubr.bf16.gmra.mrb[68].mxu0 %v25292_v16  ;;  %v20361_v16 = vld [vmem:[%s27346_s7 + $0x1a0] ss:$8 sps:$4 sm:$0xff]  }
 0xa21   : > { %13227 = vmatprep.mubr.bf16.mxu0 %v25412_v44  ;;  %13355 = vmatpush1.bf16.msra.mxu0 %v20355_v51  ;;  %v26348_v44 = vpack.c.bf16 %v11200_v9, %v11194_v20  ;;  %v11199_v51 = vld [vmem:[#allocation2 + $0x2e0] sm:$0xff]  ;;  %v11206_v9 = vld [vmem:[#allocation2 + $0x318] sm:$0xff] }
 0xa22   : > { %13356 = vmatprep.subr.bf16.mxu0 %v20360_v38  ;;  %v20369_v38 = vld [vmem:[%s27346_s7 + $0x1c4] ss:$8 sps:$4 sm:$0xff]   ;;  %v20370_v20 = vld [vmem:[%s27346_s7 + $0x1d0] ss:$8 sps:$4 sm:$0xff]  }
 0xa25   : > { %13357 = vmatpush1.bf16.msra.mxu0 %v20358_v15  ;;  %12362 = vmatmul.mubr.bf16.gmra.mrb[108].mxu1 %v26343_v19  ;;  %v11212_v15 = vld [vmem:[#allocation2 + $0x348] sm:$0xff] }
 0xa26   : > { %13358 = vmatprep.subr.bf16.mxu0 %v20363_v31  ;;  %12371 = vmatprep.mubr.bf16.mxu1 %v26348_v44  ;;  %v26363_v31 = vpack.c.bf16 %v11199_v51, %v11193_v63  ;;  %v11205_v51 = vld [vmem:[#allocation2 + $0x310] sm:$0xff] }
 0xa27   : > { %v20378_v63 = vld [vmem:[%s27346_s7 + $0x1f4] ss:$8 sps:$4 sm:$0xff]  }
 0xa28   : > { %13228 = vmatmul.mubr.bf16.gmra.mrb[72].mxu0 %v25395_v21  ;;  %v20367_v21 = vld [vmem:[%s27346_s7 + $0x1c0] ss:$8 sps:$4 sm:$0xff]  }
 0xa29   : > { %13237 = vmatprep.mubr.bf16.mxu0 %v25516_v50  ;;  %13359 = vmatpush1.bf16.msra.mxu0 %v20361_v16  ;;  %v26368_v50 = vpack.c.bf16 %v11212_v15, %v11206_v9  ;;  %v11211_v16 = vld [vmem:[#allocation2 + $0x340] sm:$0xff]  ;;  %v11218_v15 = vld [vmem:[#allocation2 + $0x378] sm:$0xff] }
 0xa2a   : > { %13360 = vmatprep.subr.bf16.mxu0 %v20366_v40  ;;  %v20375_v40 = vld [vmem:[%s27346_s7 + $0x1e4] ss:$8 sps:$4 sm:$0xff]   ;;  %v20376_v9 = vld [vmem:[%s27346_s7 + $0x1f0] ss:$8 sps:$4 sm:$0xff]  }
 0xa2d   : > { %13361 = vmatpush1.bf16.msra.mxu0 %v20364_v1  ;;  %12372 = vmatmul.mubr.bf16.gmra.mrb[112].mxu1 %v26363_v31  ;;  %v11224_v1 = vld [vmem:[#allocation2 + $0x3a8] sm:$0xff] }
 0xa2e   : > { %13362 = vmatprep.subr.bf16.mxu0 %v20369_v38  ;;  %12381 = vmatprep.mubr.bf16.mxu1 %v26368_v50  ;;  %v26383_v38 = vpack.c.bf16 %v11211_v16, %v11205_v51  ;;  %v11217_v16 = vld [vmem:[#allocation2 + $0x370] sm:$0xff]  ;;  %v11248_v51 = vld [vmem:[#allocation2 + $0x468] sm:$0xff] }
 0xa30   : > { %13238 = vmatmul.mubr.bf16.gmra.mrb[76].mxu0 %v25499_v53  ;;  %v20373_v53 = vld [vmem:[%s27346_s7 + $0x1e0] ss:$8 sps:$4 sm:$0xff]  }
 0xa31   : > { %13247 = vmatprep.mubr.bf16.mxu0 %v25616_v10  ;;  %13363 = vmatpush1.bf16.msra.mxu0 %v20367_v21  ;;  %v26388_v10 = vpack.c.bf16 %v11224_v1, %v11218_v15  ;;  %v11223_v21 = vld [vmem:[#allocation2 + $0x3a0] sm:$0xff]  ;;  %v11230_v1 = vld [vmem:[#allocation2 + $0x3d8] sm:$0xff]  ;;  %v11229_v15 = vld [vmem:[#allocation2 + $0x3d0] sm:$0xff] }
 0xa32   : > { %13364 = vmatprep.subr.bf16.mxu0 %v20372_v7  ;;  %v20381_v7 = vld [vmem:[%s27346_s7 + $0x204] ss:$8 sps:$4 sm:$0xff]  }
 0xa35   : > { %13365 = vmatpush1.bf16.msra.mxu0 %v20370_v20  ;;  %12382 = vmatmul.mubr.bf16.gmra.mrb[116].mxu1 %v26383_v38  ;;  %v11236_v20 = vld [vmem:[#allocation2 + $0x408] sm:$0xff] }
 0xa36   : > { %13366 = vmatprep.subr.bf16.mxu0 %v20375_v40  ;;  %12391 = vmatprep.mubr.bf16.mxu1 %v26388_v10  ;;  %v26403_v40 = vpack.c.bf16 %v11223_v21, %v11217_v16 }
 0xa38   : > { %13248 = vmatmul.mubr.bf16.gmra.mrb[80].mxu0 %v25599_v36  ;;  %v26405_v36 = vpack.c.bf16 %v11236_v20, %v11230_v1  ;;  %v11254_v20 = vld [vmem:[#allocation2 + $0x498] sm:$0xff]  ;;  %v11259_v1 = vld [vmem:[#allocation2 + $0x4c0] sm:$0xff] }
 0xa39   : > { %13257 = vmatprep.mubr.bf16.mxu0 %v25720_v29  ;;  %13367 = vmatpush1.bf16.msra.mxu0 %v20373_v53  ;;  %v11235_v29 = vld [vmem:[#allocation2 + $0x400] sm:$0xff] }
 0xa3a   : > { %13368 = vmatprep.subr.bf16.mxu0 %v20378_v63  ;;  %v26411_v53 = vpack.c.bf16 %v11235_v29, %v11229_v15  ;;  %v11242_v63 = vld [vmem:[#allocation2 + $0x438] sm:$0xff]  ;;  %v11253_v29 = vld [vmem:[#allocation2 + $0x490] sm:$0xff] }
 0xa3b   : > { %v26413_v21 = vpack.c.bf16 %v11248_v51, %v11242_v63  ;;  %v11266_v51 = vld [vmem:[#allocation2 + $0x4f8] sm:$0xff]  ;;  %v11271_v63 = vld [vmem:[#allocation2 + $0x520] sm:$0xff] }
 0xa3d   : > { %13369 = vmatpush1.bf16.msra.mxu0 %v20376_v9  ;;  %12392 = vmatmul.mubr.bf16.gmra.mrb[120].mxu1 %v26403_v40  ;;  %v11247_v9 = vld [vmem:[#allocation2 + $0x460] sm:$0xff] }
 0xa3e   : > { %13531 = vmatprep.subr.bf16.mxu0 %v20381_v7  ;;  %12401 = vmatprep.mubr.bf16.mxu1 %v26405_v36  ;;  %v11241_v7 = vld [vmem:[#allocation2 + $0x430] sm:$0xff] }
 0xa40   : > { %13258 = vmatmul.mubr.bf16.gmra.mrb[84].mxu0 %v25703_v6  ;;  %v11260_v6 = vld [vmem:[#allocation2 + $0x4c8] sm:$0xff] }
 0xa41   : > { %13267 = vmatprep.mubr.bf16.mxu0 %v25814_v56  ;;  %v26419_v56 = vpack.c.bf16 %v11247_v9, %v11241_v7  ;;  %v26421_v16 = vpack.c.bf16 %v11260_v6, %v11254_v20  ;;  %v11265_v9 = vld [vmem:[#allocation2 + $0x4f0] sm:$0xff]  ;;  %v20421_v20 = vld [vmem:[%s27346_s7 + $0x2e0] ss:$8 sps:$4 sm:$0xff]  }
 0xa42   : > { %v11277_v7 = vld [vmem:[#allocation2 + $0x550] sm:$0xff] }
 0xa45   : > { %12402 = vmatmul.mubr.bf16.gmra.mrb[124].mxu1 %v26411_v53 }
 0xa46   : > { %12411 = vmatprep.mubr.bf16.mxu1 %v26413_v21 }
 0xa48   : > { %13268 = vmatmul.mubr.bf16.gmra.mrb[88].mxu0 %v25801_v11  ;;  %v11272_v11 = vld [vmem:[#allocation2 + $0x528] sm:$0xff] }
 0xa49   : > { %13277 = vmatprep.mubr.bf16.mxu0 %v25903_v35  ;;  %v26427_v35 = vpack.c.bf16 %v11259_v1, %v11253_v29  ;;  %v26429_v15 = vpack.c.bf16 %v11272_v11, %v11266_v51  ;;  %v20429_v1 = vld [vmem:[%s27346_s7 + $0x604] ss:$8 sps:$4 sm:$0xff]  }
 0xa4d   : > { %12412 = vmatmul.mubr.bf16.gmra.mrb[128].mxu1 %v26419_v56 }
 0xa4e   : > { %12421 = vmatprep.mubr.bf16.mxu1 %v26421_v16 }
 0xa50   : > { %13278 = vmatmul.mubr.bf16.gmra.mrb[92].mxu0 %v25893_v32  ;;  %v11278_v32 = vld [vmem:[#allocation2 + $0x558] sm:$0xff] }
 0xa51   : > { %13287 = vmatprep.mubr.bf16.mxu0 %v25963_v52  ;;  %v26435_v52 = vpack.c.bf16 %v11271_v63, %v11265_v9  ;;  %v26438_v6 = vpack.c.bf16 %v26084_v62, %v11278_v32  ;;  %v20388_v62 = vld [vmem:[%s27346_s7 + $0x230] ss:$8 sps:$4 sm:$0xff]  }
 0xa55   : > { %12422 = vmatmul.mubr.bf16.gmra.mrb[132].mxu1 %v26427_v35 }
 0xa56   : > { %12431 = vmatprep.mubr.bf16.mxu1 %v26429_v15 }
 0xa58   : > { %13288 = vmatmul.mubr.bf16.gmra.mrb[96].mxu0 %v25955_v42  ;;  %v26445_v42 = vpack.c.bf16 %v26074_v41, %v11277_v7  ;;  %v20390_v41 = vld [vmem:[%s27346_s7 + $0x234] ss:$8 sps:$4 sm:$0xff]  }
 0xa59   : > { %13297 = vmatprep.mubr.bf16.mxu0 %v26015_v0  ;;  %v20384_v0 = vld [vmem:[%s27346_s7 + $0x214] ss:$8 sps:$4 sm:$0xff]  }
 0xa5d   : > { %12432 = vmatmul.mubr.bf16.gmra.mrb[136].mxu1 %v26435_v52 }
 0xa5e   : > { %12441 = vmatprep.mubr.bf16.mxu1 %v26438_v6 }
 0xa60   : > { %13298 = vmatmul.mubr.bf16.gmra.mrb[100].mxu0 %v26007_v48  ;;  %v20379_v48 = vld [vmem:[%s27346_s7 + $0x200] ss:$8 sps:$4 sm:$0xff]  }
 0xa61   : > { %13307 = vmatprep.mubr.bf16.mxu0 %v26068_v47  ;;  %v20385_v47 = vld [vmem:[%s27346_s7 + $0x220] ss:$8 sps:$4 sm:$0xff]  }
 0xa65   : > { %12442 = vmatmul.mubr.bf16.gmra.mrb[140].mxu1 %v26445_v42 }
 0xa66   : > { %12451 = vmatprep.mubr.bf16.mxu1 %v26180_v27 }
 0xa68   : > { %13308 = vmatmul.mubr.bf16.gmra.mrb[104].mxu0 %v26063_v18  ;;  %v20387_v18 = vld [vmem:[%s27346_s7 + $0x224] ss:$8 sps:$4 sm:$0xff]  }
 0xa69   : > { %13317 = vmatprep.mubr.bf16.mxu0 %v26126_v25  ;;  %v20393_v25 = vld [vmem:[%s27346_s7 + $0x244] ss:$8 sps:$4 sm:$0xff]  }
 0xa6d   : > { %12452 = vmatmul.mubr.bf16.gmra.mrb[144].mxu1 %v26183_v2 }
 0xa6e   : > { %12461 = vmatprep.mubr.bf16.mxu1 %v11506_v3  ;;  %v20400_v3 = vld [vmem:[%s27346_s7 + $0x270] ss:$8 sps:$4 sm:$0xff]  }
 0xa70   : > { %13318 = vmatmul.mubr.bf16.gmra.mrb[108].mxu0 %v26114_v43  ;;  %v20382_v43 = vld [vmem:[%s27346_s7 + $0x210] ss:$8 sps:$4 sm:$0xff]  }
 0xa71   : > { %13327 = vmatprep.mubr.bf16.mxu0 %v26177_v22  ;;  %v20399_v22 = vld [vmem:[%s27346_s7 + $0x264] ss:$8 sps:$4 sm:$0xff]  }
 0xa75   : > { %12462 = vmatmul.mubr.bf16.gmra.mrb[148].mxu1 %v11505_v23  ;;  %v20405_v23 = vld [vmem:[%s27346_s7 + $0x284] ss:$8 sps:$4 sm:$0xff]  }
 0xa78   : > { %13328 = vmatmul.mubr.bf16.gmra.mrb[112].mxu0 %v26171_v24  ;;  %v20396_v24 = vld [vmem:[%s27346_s7 + $0x254] ss:$8 sps:$4 sm:$0xff]  }
 0xa79   : > { %13370 = vmatprep.mubr.bf16.mxu0 %v26237_v45 }
 0xa80   : > { %13371 = vmatmul.mubr.bf16.vlgmr.msra.gmra.mrb[52].mxu0 %v26237_v45  ;;  %v20403_v45 = vld [vmem:[%s27346_s7 + $0x280] ss:$8 sps:$4 sm:$0xff]  }
 0xa81   : > { %13380 = vmatprep.mubr.bf16.mxu0 %v26239_v12  ;;  %13532 = vmatpush1.bf16.msra.mxu0 %v20379_v48  ;;  %v20408_v12 = vld [vmem:[%s27346_s7 + $0x294] ss:$8 sps:$4 sm:$0xff]  }
 0xa82   : > { %13533 = vmatprep.subr.bf16.mxu0 %v20384_v0 }
 0xa85   : > { %13534 = vmatpush1.bf16.msra.mxu0 %v20382_v43 }
 0xa86   : > { %13535 = vmatprep.subr.bf16.mxu0 %v20387_v18 }
 0xa88   : > { %13381 = vmatmul.mubr.bf16.gmra.mrb[56].mxu0 %v26243_v59  ;;  %v20406_v59 = vld [vmem:[%s27346_s7 + $0x290] ss:$8 sps:$4 sm:$0xff]  }
 0xa89   : > { %13390 = vmatprep.mubr.bf16.mxu0 %v26248_v14  ;;  %13536 = vmatpush1.bf16.msra.mxu0 %v20385_v47  ;;  %v20411_v14 = vld [vmem:[%s27346_s7 + $0x2a4] ss:$8 sps:$4 sm:$0xff]   ;;  %v20427_v47 = vld [vmem:[%s27346_s7 + $0x600] ss:$8 sps:$4 sm:$0xff]  }
 0xa8a   : > { %13537 = vmatprep.subr.bf16.mxu0 %v20390_v41 }
 0xa8d   : > { %13538 = vmatpush1.bf16.msra.mxu0 %v20388_v62  ;;  %v20430_v62 = vld [vmem:[%s27346_s7 + $0x610] ss:$8 sps:$4 sm:$0xff]  }
 0xa8e   : > { %13539 = vmatprep.subr.bf16.mxu0 %v20393_v25 }
 0xa90   : > { %13391 = vmatmul.mubr.bf16.gmra.mrb[60].mxu0 %v26263_v39  ;;  %v20409_v39 = vld [vmem:[%s27346_s7 + $0x2a0] ss:$8 sps:$4 sm:$0xff]  }
 0xa91   : > { %13400 = vmatprep.mubr.bf16.mxu0 %v26268_v8  ;;  %13540 = vmatpush1.bf16.msra.mxu0 %v20391_v13  ;;  %v20414_v8 = vld [vmem:[%s27346_s7 + $0x2b4] ss:$8 sps:$4 sm:$0xff]   ;;  %v20435_v13 = vld [vmem:[%s27346_s7 + $0x624] ss:$8 sps:$4 sm:$0xff]  }
 0xa92   : > { %13541 = vmatprep.subr.bf16.mxu0 %v20396_v24 }
 0xa95   : > { %13542 = vmatpush1.bf16.msra.mxu0 %v20394_v55 }
 0xa96   : > { %13543 = vmatprep.subr.bf16.mxu0 %v20399_v22  ;;  %v20438_v22 = vld [vmem:[%s27346_s7 + $0x634] ss:$8 sps:$4 sm:$0xff]  }
 0xa98   : > { %13401 = vmatmul.mubr.bf16.gmra.mrb[64].mxu0 %v26283_v58  ;;  %v20412_v58 = vld [vmem:[%s27346_s7 + $0x2b0] ss:$8 sps:$4 sm:$0xff]  }
 0xa99   : > { %13410 = vmatprep.mubr.bf16.mxu0 %v26288_v57  ;;  %13544 = vmatpush1.bf16.msra.mxu0 %v20397_v26  ;;  %v20417_v57 = vld [vmem:[%s27346_s7 + $0x2c4] ss:$8 sps:$4 sm:$0xff]   ;;  %v20436_v26 = vld [vmem:[%s27346_s7 + $0x630] ss:$8 sps:$4 sm:$0xff]  }
 0xa9a   : > { %13545 = vmatprep.subr.bf16.mxu0 %v20402_v34 }
 0xa9d   : > { %13546 = vmatpush1.bf16.msra.mxu0 %v20400_v3  ;;  %v20441_v3 = vld [vmem:[%s27346_s7 + $0x644] ss:$8 sps:$4 sm:$0xff]  }
 0xa9e   : > { %13547 = vmatprep.subr.bf16.mxu0 %v20405_v23 }
 0xaa0   : > { %13411 = vmatmul.mubr.bf16.gmra.mrb[68].mxu0 %v26303_v33  ;;  %v20415_v33 = vld [vmem:[%s27346_s7 + $0x2c0] ss:$8 sps:$4 sm:$0xff]  }
 0xaa1   : > { %13420 = vmatprep.mubr.bf16.mxu0 %v26308_v37  ;;  %13548 = vmatpush1.bf16.msra.mxu0 %v20403_v45  ;;  %v20420_v37 = vld [vmem:[%s27346_s7 + $0x2d4] ss:$8 sps:$4 sm:$0xff]  }
 0xaa2   : > { %13549 = vmatprep.subr.bf16.mxu0 %v20408_v12 }
 0xaa5   : > { %13550 = vmatpush1.bf16.msra.mxu0 %v20406_v59  ;;  %v27611_v59 = vld [vmem:[#allocation18_spill] sm:$0xff] }
 0xaa6   : > { %13551 = vmatprep.subr.bf16.mxu0 %v20411_v14  ;;  %v27612_v14 = vld [vmem:[#allocation20_spill] sm:$0xff] }
 0xaa8   : > { %13421 = vmatmul.mubr.bf16.gmra.mrb[72].mxu0 %v26323_v61  ;;  %v20418_v61 = vld [vmem:[%s27346_s7 + $0x2d0] ss:$8 sps:$4 sm:$0xff]  }
 0xaa9   : > { %13430 = vmatprep.mubr.bf16.mxu0 %v26328_v5  ;;  %13552 = vmatpush1.bf16.msra.mxu0 %v20409_v39  ;;  %v20423_v5 = vld [vmem:[%s27346_s7 + $0x2e4] ss:$8 sps:$4 sm:$0xff]   ;;  %v20442_v39 = vld [vmem:[%s27346_s7 + $0x650] ss:$8 sps:$4 sm:$0xff]  }
 0xaaa   : > { %13553 = vmatprep.subr.bf16.mxu0 %v20414_v8 }
 0xaad   : > { %13554 = vmatpush1.bf16.msra.mxu0 %v20412_v58  ;;  %v20447_v58 = vld [vmem:[%s27346_s7 + $0x664] ss:$8 sps:$4 sm:$0xff]  }
 0xaae   : > { %13555 = vmatprep.subr.bf16.mxu0 %v20417_v57 }
 0xab0   : > { %13431 = vmatmul.mubr.bf16.gmra.mrb[76].mxu0 %v26343_v19  ;;  %v20426_v19 = vld [vmem:[%s27346_s7 + $0x2f4] ss:$8 sps:$4 sm:$0xff]  }
 0xab1   : > { %13440 = vmatprep.mubr.bf16.mxu0 %v26348_v44  ;;  %13556 = vmatpush1.bf16.msra.mxu0 %v20415_v33  ;;  %v20424_v44 = vld [vmem:[%s27346_s7 + $0x2f0] ss:$8 sps:$4 sm:$0xff]  }
 0xab2   : > { %13557 = vmatprep.subr.bf16.mxu0 %v20420_v37 }
 0xab5   : > { %13558 = vmatpush1.bf16.msra.mxu0 %v20418_v61  ;;  %v20445_v61 = vld [vmem:[%s27346_s7 + $0x660] ss:$8 sps:$4 sm:$0xff]  }
 0xab6   : > { %13559 = vmatprep.subr.bf16.mxu0 %v20423_v5  ;;  %v20450_v5 = vld [vmem:[%s27346_s7 + $0x674] ss:$8 sps:$4 sm:$0xff]  }
 0xab8   : > { %13441 = vmatmul.mubr.bf16.gmra.mrb[80].mxu0 %v26363_v31 }
 0xab9   : > { %13450 = vmatprep.mubr.bf16.mxu0 %v26368_v50  ;;  %13560 = vmatpush1.bf16.msra.mxu0 %v20421_v20  ;;  %v27613_v20 = vld [vmem:[#allocation21_spill] sm:$0xff] }
 0xaba   : > { %13561 = vmatprep.subr.bf16.mxu0 %v20426_v19  ;;  %v27614_v19 = vld [vmem:[#allocation22_spill] sm:$0xff] }
 0xabd   : > { %13562 = vmatpush1.bf16.msra.mxu0 %v20424_v44  ;;  %v20448_v44 = vld [vmem:[%s27346_s7 + $0x670] ss:$8 sps:$4 sm:$0xff]  }
 0xabe   : > { %14589 = vmatprep.subr.bf16.mxu0 %v20429_v1 }
 0xac0   : > { %13451 = vmatmul.mubr.bf16.gmra.mrb[84].mxu0 %v26383_v38 }
 0xac1   : > { %13460 = vmatprep.mubr.bf16.mxu0 %v26388_v10 }
 0xac8   : > { %13461 = vmatmul.mubr.bf16.gmra.mrb[88].mxu0 %v26403_v40 }
 0xac9   : > { %13470 = vmatprep.mubr.bf16.mxu0 %v26405_v36 }
 0xad0   : > { %13471 = vmatmul.mubr.bf16.gmra.mrb[92].mxu0 %v26411_v53  ;;  %v26580_v31 = vpop.f32.mrb[88].mxu1 }
 0xad1   : > { %13480 = vmatprep.mubr.bf16.mxu0 %v26413_v21  ;;  %v26582_v50 = vpop.f32.mrb[89].mxu1 }
 0xad2   : > { %v26584_v11 = vpop.f32.mrb[90].mxu1 }
 0xad3   : > { %v26586_v29 = vpop.f32.mrb[91].mxu1 }
 0xad8   : > { %13481 = vmatmul.mubr.bf16.gmra.mrb[96].mxu0 %v26419_v56  ;;  %v26590_v38 = vpop.f32.mrb[92].mxu1 }
 0xad9   : > { %13490 = vmatprep.mubr.bf16.mxu0 %v26421_v16  ;;  %v26592_v10 = vpop.f32.mrb[93].mxu1 }
 0xada   : > { %v26594_v40 = vpop.f32.mrb[94].mxu1 }
 0xadb   : > { %v26596_v36 = vpop.f32.mrb[95].mxu1 }
 0xae0   : > { %13491 = vmatmul.mubr.bf16.gmra.mrb[100].mxu0 %v26427_v35  ;;  %v26600_v53 = vpop.f32.mrb[96].mxu1 }
 0xae1   : > { %13500 = vmatprep.mubr.bf16.mxu0 %v26429_v15  ;;  %v26602_v21 = vpop.f32.mrb[97].mxu1 }
 0xae2   : > { %v26604_v51 = vpop.f32.mrb[98].mxu1 }
 0xae3   : > { %v26606_v56 = vpop.f32.mrb[99].mxu1 }
 0xae8   : > { %13501 = vmatmul.mubr.bf16.gmra.mrb[104].mxu0 %v26435_v52  ;;  %v26610_v16 = vpop.f32.mrb[100].mxu1  ;;  %v11118_v52 = vld [vmem:[#allocation2 + $0x58] sm:$0xff] }
 0xae9   : > { %13510 = vmatprep.mubr.bf16.mxu0 %v26438_v6  ;;  %v26612_v63 = vpop.f32.mrb[101].mxu1  ;;  %v11304_v48 = vpack.c.bf16 %v11118_v52, %v26233_v28  ;;  %v20453_v52 = vld [vmem:[%s27346_s7 + $0x684] ss:$8 sps:$4 sm:$0xff]  }
 0xaea   : > { %v26614_v32 = vpop.f32.mrb[102].mxu1 }
 0xaeb   : > { %v26616_v35 = vpop.f32.mrb[103].mxu1 }
 0xaf0   : > { %13511 = vmatmul.mubr.bf16.gmra.mrb[108].mxu0 %v26445_v42  ;;  %v26620_v15 = vpop.f32.mrb[104].mxu1  ;;  %v11117_v42 = vld [vmem:[#allocation2 + $0x50] sm:$0xff] }
 0xaf1   : > { %13520 = vmatprep.mubr.bf16.mxu0 %v26180_v27  ;;  %v26622_v9 = vpop.f32.mrb[105].mxu1  ;;  %v11303_v41 = vpack.c.bf16 %v11117_v42, %v26233_v28 }
 0xaf2   : > { %v26624_v7 = vpop.f32.mrb[106].mxu1 }
 0xaf3   : > { %v26626_v6 = vpop.f32.mrb[107].mxu1 }
 0xaf8   : > { %13521 = vmatmul.mubr.bf16.gmra.mrb[112].mxu0 %v26183_v2  ;;  %v26630_v0 = vpop.f32.mrb[108].mxu1  ;;  %v20432_v2 = vld [vmem:[%s27346_s7 + $0x614] ss:$8 sps:$4 sm:$0xff]  }
 0xaf9   : > { %13563 = vmatprep.mubr.bf16.mxu0 %v11304_v48  ;;  %v26632_v43 = vpop.f32.mrb[109].mxu1 }
 0xafa   : > { %v26634_v27 = vpop.f32.mrb[110].mxu1 }
 0xafb   : > { %v26636_v18 = vpop.f32.mrb[111].mxu1 }
 0xb00   : > { %13564 = vmatmul.mubr.bf16.vlgmr.msra.gmra.mrb[52].mxu0 %v11303_v41  ;;  %v26649_v25 = vpop.f32.mrb[112].mxu1  ;;  %v20451_v41 = vld [vmem:[%s27346_s7 + $0x680] ss:$8 sps:$4 sm:$0xff]  }
 0xb01   : > { %13573 = vmatprep.mubr.bf16.mxu0 %v25075_v17  ;;  %14590 = vmatpush1.bf16.msra.mxu0 %v20427_v47  ;;  %v26654_v28 = vpop.f32.mrb[113].mxu1  ;;  %v20433_v17 = vld [vmem:[%s27346_s7 + $0x620] ss:$8 sps:$4 sm:$0xff]  }
 0xb02   : > { %14591 = vmatprep.subr.bf16.mxu0 %v20432_v2  ;;  %v26656_v24 = vpop.f32.mrb[114].mxu1  ;;  %v20456_v2 = vld [vmem:[%s27346_s7 + $0x694] ss:$8 sps:$4 sm:$0xff]  }
 0xb03   : > { %v26658_v55 = vpop.f32.mrb[115].mxu1 }
 0xb05   : > { %14592 = vmatpush1.bf16.msra.mxu0 %v20430_v62  ;;  %v27615_v62 = vld [vmem:[#allocation23_spill] sm:$0xff] }
 0xb06   : > { %14593 = vmatprep.subr.bf16.mxu0 %v20435_v13  ;;  %v27616_v13 = vld [vmem:[#allocation24_spill] sm:$0xff] }
 0xb08   : > { %13574 = vmatmul.mubr.bf16.gmra.mrb[56].mxu0 %v25086_v4  ;;  %v26671_v34 = vpop.f32.mrb[116].mxu1  ;;  %v20439_v4 = vld [vmem:[%s27346_s7 + $0x640] ss:$8 sps:$4 sm:$0xff]  }
 0xb09   : > { %13583 = vmatprep.mubr.bf16.mxu0 %v25167_v49  ;;  %14594 = vmatpush1.bf16.msra.mxu0 %v20433_v17  ;;  %v26676_v23 = vpop.f32.mrb[117].mxu1  ;;  %v20444_v49 = vld [vmem:[%s27346_s7 + $0x654] ss:$8 sps:$4 sm:$0xff]   ;;  %v20454_v17 = vld [vmem:[%s27346_s7 + $0x690] ss:$8 sps:$4 sm:$0xff]  }
 0xb0a   : > { %14595 = vmatprep.subr.bf16.mxu0 %v20438_v22  ;;  %v26678_v45 = vpop.f32.mrb[118].mxu1 }
 0xb0b   : > { %v26680_v12 = vpop.f32.mrb[119].mxu1 }
 0xb0d   : > { %14596 = vmatpush1.bf16.msra.mxu0 %v20436_v26  ;;  %v20459_v26 = vld [vmem:[%s27346_s7 + $0x6a4] ss:$8 sps:$4 sm:$0xff]  }
 0xb0e   : > { %14597 = vmatprep.subr.bf16.mxu0 %v20441_v3 }
 0xb10   : > { %13584 = vmatmul.mubr.bf16.gmra.mrb[60].mxu0 %v27611_v59  ;;  %v26693_v8 = vpop.f32.mrb[120].mxu1  ;;  %v20457_v59 = vld [vmem:[%s27346_s7 + $0x6a0] ss:$8 sps:$4 sm:$0xff]  }
 0xb11   : > { %13593 = vmatprep.mubr.bf16.mxu0 %v27612_v14  ;;  %14598 = vmatpush1.bf16.msra.mxu0 %v20439_v4  ;;  %v26698_v57 = vpop.f32.mrb[121].mxu1  ;;  %v20462_v14 = vld [vmem:[%s27346_s7 + $0x6b4] ss:$8 sps:$4 sm:$0xff]  }
 0xb12   : > { %14599 = vmatprep.subr.bf16.mxu0 %v20444_v49  ;;  %v26700_v33 = vpop.f32.mrb[122].mxu1 }
 0xb13   : > { %v26702_v37 = vpop.f32.mrb[123].mxu1 }
 0xb15   : > { %14600 = vmatpush1.bf16.msra.mxu0 %v20442_v39  ;;  %v27617_v39 = vld [vmem:[#allocation25_spill] sm:$0xff] }
 0xb16   : > { %14601 = vmatprep.subr.bf16.mxu0 %v20447_v58  ;;  %v27618_v58 = vld [vmem:[#allocation26_spill] sm:$0xff] }
 0xb18   : > { %13594 = vmatmul.mubr.bf16.gmra.mrb[64].mxu0 %v27613_v20  ;;  %v26715_v1 = vpop.f32.mrb[124].mxu1  ;;  %v20465_v20 = vld [vmem:[%s27346_s7 + $0x6c4] ss:$8 sps:$4 sm:$0xff]  }
 0xb19   : > { %13603 = vmatprep.mubr.bf16.mxu0 %v27614_v19  ;;  %14602 = vmatpush1.bf16.msra.mxu0 %v20445_v61  ;;  %v26720_v48 = vpop.f32.mrb[125].mxu1  ;;  %v20460_v61 = vld [vmem:[%s27346_s7 + $0x6b0] ss:$8 sps:$4 sm:$0xff]  }
 0xb1a   : > { %14603 = vmatprep.subr.bf16.mxu0 %v20450_v5  ;;  %v26722_v42 = vpop.f32.mrb[126].mxu1 }
 0xb1b   : > { %v26724_v47 = vpop.f32.mrb[127].mxu1 }
 0xb1d   : > { %14604 = vmatpush1.bf16.msra.mxu0 %v20448_v44 }
 0xb1e   : > { %14605 = vmatprep.subr.bf16.mxu0 %v20453_v52 }
 0xb20   : > { %13604 = vmatmul.mubr.bf16.gmra.mrb[68].mxu0 %v27615_v62  ;;  %v26737_v22 = vpop.f32.mrb[128].mxu1  ;;  %v27623_v62 = vld [vmem:[#allocation27_spill] sm:$0xff] }
 0xb21   : > { %13613 = vmatprep.mubr.bf16.mxu0 %v27616_v13  ;;  %14606 = vmatpush1.bf16.msra.mxu0 %v20451_v41  ;;  %v26742_v3 = vpop.f32.mrb[129].mxu1  ;;  %v20463_v41 = vld [vmem:[%s27346_s7 + $0x6c0] ss:$8 sps:$4 sm:$0xff]  }
 0xb22   : > { %14607 = vmatprep.subr.bf16.mxu0 %v20456_v2  ;;  %v26744_v4 = vpop.f32.mrb[130].mxu1  ;;  %v20468_v2 = vld [vmem:[%s27346_s7 + $0x6d4] ss:$8 sps:$4 sm:$0xff]   ;;  %v27624_v13 = vld [vmem:[#allocation28_spill] sm:$0xff] }
 0xb23   : > { %v26746_v49 = vpop.f32.mrb[131].mxu1 }
 0xb25   : > { %14608 = vmatpush1.bf16.msra.mxu0 %v20454_v17  ;;  %v20466_v17 = vld [vmem:[%s27346_s7 + $0x6d0] ss:$8 sps:$4 sm:$0xff]  }
 0xb26   : > { %14609 = vmatprep.subr.bf16.mxu0 %v20459_v26 }
 0xb28   : > { %13614 = vmatmul.mubr.bf16.gmra.mrb[72].mxu0 %v27617_v39  ;;  %v26759_v5 = vpop.f32.mrb[132].mxu1 }
 0xb29   : > { %13623 = vmatprep.mubr.bf16.mxu0 %v27618_v58  ;;  %14610 = vmatpush1.bf16.msra.mxu0 %v20457_v59  ;;  %27619 = vst [vmem:[#allocation18_spill] sm:$0xff] %v26759_v5  ;;  %v26764_v19 = vpop.f32.mrb[133].mxu1  ;;  %v20471_v59 = vld [vmem:[%s27346_s7 + $0x6e4] ss:$8 sps:$4 sm:$0xff]  }
 0xb2a   : > { %14611 = vmatprep.subr.bf16.mxu0 %v20462_v14  ;;  %27620 = vst [vmem:[#allocation20_spill] sm:$0xff] %v26764_v19  ;;  %v26766_v44 = vpop.f32.mrb[134].mxu1  ;;  %v13857_v19 = vld [vmem:[#allocation2 + $0x4e8] sm:$0xff] }
 0xb2b   : > { %27621 = vst [vmem:[#allocation21_spill] sm:$0xff] %v26766_v44  ;;  %v26768_v52 = vpop.f32.mrb[135].mxu1 }
 0xb2c   : > { %27622 = vst [vmem:[#allocation22_spill] sm:$0xff] %v26768_v52  ;;  %v13844_v52 = vld [vmem:[#allocation2 + $0x480] sm:$0xff] }
 0xb2d   : > { %14612 = vmatpush1.bf16.msra.mxu0 %v20460_v61  ;;  %v20469_v61 = vld [vmem:[%s27346_s7 + $0x6e0] ss:$8 sps:$4 sm:$0xff]  }
 0xb2e   : > { %14613 = vmatprep.subr.bf16.mxu0 %v20465_v20  ;;  %v20474_v20 = vld [vmem:[%s27346_s7 + $0x6f4] ss:$8 sps:$4 sm:$0xff]  }
 0xb30   : > { %13624 = vmatmul.mubr.bf16.gmra.mrb[76].mxu0 %v27623_v62  ;;  %v26781_v26 = vpop.f32.mrb[136].mxu1  ;;  %v20472_v62 = vld [vmem:[%s27346_s7 + $0x6f0] ss:$8 sps:$4 sm:$0xff]  }
 0xb31   : > { %13633 = vmatprep.mubr.bf16.mxu0 %v27624_v13  ;;  %14614 = vmatpush1.bf16.msra.mxu0 %v20463_v41  ;;  %27625 = vst [vmem:[#allocation23_spill] sm:$0xff] %v26781_v26  ;;  %v26786_v14 = vpop.f32.mrb[137].mxu1  ;;  %v27629_v41 = vld [vmem:[#allocation29_spill] sm:$0xff] }
 0xb32   : > { %14615 = vmatprep.subr.bf16.mxu0 %v20468_v2  ;;  %27626 = vst [vmem:[#allocation24_spill] sm:$0xff] %v26786_v14  ;;  %v26788_v39 = vpop.f32.mrb[138].mxu1  ;;  %v27630_v2 = vld [vmem:[#allocation30_spill] sm:$0xff]  ;;  %v27641_v26 = vld [vmem:[#allocation33_spill] sm:$0xff] }
 0xb33   : > { %27627 = vst [vmem:[#allocation25_spill] sm:$0xff] %v26788_v39  ;;  %v26790_v58 = vpop.f32.mrb[139].mxu1 }
 0xb34   : > { %27628 = vst [vmem:[#allocation26_spill] sm:$0xff] %v26790_v58 }
 0xb35   : > { %14616 = vmatpush1.bf16.msra.mxu0 %v20466_v17  ;;  %v20477_v17 = vld [vmem:[%s27346_s7 + $0x704] ss:$8 sps:$4 sm:$0xff]  }
 0xb36   : > { %14617 = vmatprep.subr.bf16.mxu0 %v20471_v59 }
 0xb38   : > { %13634 = vmatmul.mubr.bf16.gmra.mrb[80].mxu0 %v27629_v41  ;;  %v26803_v13 = vpop.f32.mrb[140].mxu1  ;;  %v27636_v41 = vld [vmem:[#allocation32_spill] sm:$0xff] }
 0xb39   : > { %13643 = vmatprep.mubr.bf16.mxu0 %v27630_v2  ;;  %14618 = vmatpush1.bf16.msra.mxu0 %v20469_v61  ;;  %27631 = vst [vmem:[#allocation27_spill] sm:$0xff] %v26803_v13  ;;  %v26808_v59 = vpop.f32.mrb[141].mxu1  ;;  %v27635_v61 = vld [vmem:[#allocation31_spill] sm:$0xff] }
 0xb3a   : > { %14619 = vmatprep.subr.bf16.mxu0 %v20474_v20  ;;  %27632 = vst [vmem:[#allocation28_spill] sm:$0xff] %v26808_v59  ;;  %v26810_v58 = vpop.f32.mrb[142].mxu1  ;;  %v27642_v59 = vld [vmem:[#allocation34_spill] sm:$0xff] }
 0xb3b   : > { %27633 = vst [vmem:[#allocation29_spill] sm:$0xff] %v26810_v58  ;;  %v26812_v39 = vpop.f32.mrb[143].mxu1 }
 0xb3c   : > { %27634 = vst [vmem:[#allocation30_spill] sm:$0xff] %v26812_v39  ;;  %v13863_v39 = vld [vmem:[#allocation2 + $0x518] sm:$0xff] }
 0xb3d   : > { %14620 = vmatpush1.bf16.msra.mxu0 %v20472_v62 }
 0xb3e   : > { %14782 = vmatprep.subr.bf16.mxu0 %v20477_v17 }
 0xb40   : > { %13644 = vmatmul.mubr.bf16.gmra.mrb[84].mxu0 %v27635_v61  ;;  %v26816_v2 = vpop.f32.mrb[144].mxu1 }
 0xb41   : > { %13653 = vmatprep.mubr.bf16.mxu0 %v27636_v41  ;;  %27637 = vst [vmem:[#allocation31_spill] sm:$0xff] %v26816_v2  ;;  %v26818_v13 = vpop.f32.mrb[145].mxu1  ;;  %v27647_v41 = vld [vmem:[#allocation35_spill] sm:$0xff]  ;;  %v27648_v2 = vld [vmem:[#allocation36_spill] sm:$0xff] }
 0xb42   : > { %27638 = vst [vmem:[#allocation32_spill] sm:$0xff] %v26818_v13  ;;  %v26820_v20 = vpop.f32.mrb[146].mxu1  ;;  %v27649_v13 = vld [vmem:[#allocation37_spill] sm:$0xff] }
 0xb43   : > { %27639 = vst [vmem:[#allocation42_spill] sm:$0xff] %v26820_v20  ;;  %v26822_v14 = vpop.f32.mrb[147].mxu1  ;;  %v27650_v20 = vld [vmem:[#allocation38_spill] sm:$0xff] }
 0xb44   : > { %27640 = vst [vmem:[#allocation43_spill] sm:$0xff] %v26822_v14  ;;  %v27651_v14 = vld [vmem:[#allocation39_spill] sm:$0xff] }
 0xb48   : > { %13654 = vmatmul.mubr.bf16.gmra.mrb[88].mxu0 %v27641_v26  ;;  %v26826_v58 = vpop.f32.mrb[148].mxu1  ;;  %v27652_v26 = vld [vmem:[#allocation40_spill] sm:$0xff] }
 0xb49   : > { %13663 = vmatprep.mubr.bf16.mxu0 %v27642_v59  ;;  %27643 = vst [vmem:[#allocation33_spill] sm:$0xff] %v26826_v58  ;;  %v26828_v62 = vpop.f32.mrb[149].mxu1  ;;  %v27653_v59 = vld [vmem:[#allocation41_spill] sm:$0xff] }
 0xb4a   : > { %27644 = vst [vmem:[#allocation34_spill] sm:$0xff] %v26828_v62  ;;  %v26830_v17 = vpop.f32.mrb[150].mxu1  ;;  %v13845_v62 = vld [vmem:[#allocation2 + $0x488] sm:$0xff]  ;;  %v13850_v58 = vld [vmem:[#allocation2 + $0x4b0] sm:$0xff] }
 0xb4b   : > { %27645 = vst [vmem:[#allocation44_spill] sm:$0xff] %v26830_v17  ;;  %v26832_v61 = vpop.f32.mrb[151].mxu1  ;;  %v13976_v44 = vpack.c.bf16 %v13850_v58, %v13844_v52  ;;  %v13886_v52 = vld [vmem:[#allocation2 + $0x5d0] sm:$0xff]  ;;  %v13893_v58 = vld [vmem:[#allocation2 + $0x608] sm:$0xff] }
 0xb4c   : > { %27646 = vst [vmem:[#allocation45_spill] sm:$0xff] %v26832_v61  ;;  %v13731_v61 = vld [vmem:[#allocation2 + $0xf8] sm:$0xff] }
 0xb50   : > { %13664 = vmatmul.mubr.bf16.gmra.mrb[92].mxu0 %v27647_v41  ;;  %v13725_v41 = vld [vmem:[#allocation2 + $0xc8] sm:$0xff] }
 0xb51   : > { %13673 = vmatprep.mubr.bf16.mxu0 %v27648_v2  ;;  %v13917_v17 = vpack.c.bf16 %v13731_v61, %v13725_v41  ;;  %v13743_v2 = vld [vmem:[#allocation2 + $0x158] sm:$0xff]  ;;  %v13736_v41 = vld [vmem:[#allocation2 + $0x120] sm:$0xff] }
 0xb52   : > { %v13755_v61 = vld [vmem:[#allocation2 + $0x1b8] sm:$0xff] }
 0xb58   : > { %13674 = vmatmul.mubr.bf16.gmra.mrb[96].mxu0 %v27649_v13  ;;  %v13730_v13 = vld [vmem:[#allocation2 + $0xf0] sm:$0xff] }
 0xb59   : > { %13683 = vmatprep.mubr.bf16.mxu0 %v27650_v20  ;;  %v13724_v20 = vld [vmem:[#allocation2 + $0xc0] sm:$0xff] }
 0xb60   : > { %13684 = vmatmul.mubr.bf16.gmra.mrb[100].mxu0 %v27651_v14  ;;  %v20475_v14 = vld [vmem:[%s27346_s7 + $0x700] ss:$8 sps:$4 sm:$0xff]  }
 0xb61   : > { %13693 = vmatprep.mubr.bf16.mxu0 %v27652_v26  ;;  %v13916_v26 = vpack.c.bf16 %v13730_v13, %v13724_v20  ;;  %v20481_v13 = vld [vmem:[%s27346_s7 + $0x720] ss:$8 sps:$4 sm:$0xff]  }
 0xb62   : > { %v13749_v20 = vld [vmem:[#allocation2 + $0x188] sm:$0xff] }
 0xb68   : > { %13694 = vmatmul.mubr.bf16.gmra.mrb[104].mxu0 %v27653_v59  ;;  %v13737_v59 = vld [vmem:[#allocation2 + $0x128] sm:$0xff] }
 0xb69   : > { %13703 = vmatprep.mubr.bf16.mxu0 %v26162_v46  ;;  %v13923_v46 = vpack.c.bf16 %v13743_v2, %v13737_v59  ;;  %v20484_v59 = vld [vmem:[%s27346_s7 + $0x730] ss:$8 sps:$4 sm:$0xff]  }
 0xb70   : > { %13704 = vmatmul.mubr.bf16.gmra.mrb[108].mxu0 %v26164_v54  ;;  %v20480_v54 = vld [vmem:[%s27346_s7 + $0x714] ss:$8 sps:$4 sm:$0xff]  }
 0xb71   : > { %13713 = vmatprep.mubr.bf16.mxu0 %v26220_v60  ;;  %v20478_v60 = vld [vmem:[%s27346_s7 + $0x710] ss:$8 sps:$4 sm:$0xff]  }
 0xb78   : > { %13714 = vmatmul.mubr.bf16.gmra.mrb[112].mxu0 %v26222_v30  ;;  %v20483_v30 = vld [vmem:[%s27346_s7 + $0x724] ss:$8 sps:$4 sm:$0xff]  }
 0xb79   : > { %14621 = vmatprep.mubr.bf16.mxu0 %v13917_v17  ;;  %v13742_v17 = vld [vmem:[#allocation2 + $0x150] sm:$0xff] }
 0xb7a   : > { %v13922_v2 = vpack.c.bf16 %v13742_v17, %v13736_v41  ;;  %v20487_v17 = vld [vmem:[%s27346_s7 + $0x740] ss:$8 sps:$4 sm:$0xff]  }
 0xb7b   : > { %v13761_v41 = vld [vmem:[#allocation2 + $0x1e8] sm:$0xff] }
 0xb80   : > { %14622 = vmatmul.mubr.bf16.vlgmr.msra.gmra.mrb[52].mxu0 %v13916_v26  ;;  %v13929_v26 = vpack.c.bf16 %v13755_v61, %v13749_v20  ;;  %v20490_v20 = vld [vmem:[%s27346_s7 + $0x750] ss:$8 sps:$4 sm:$0xff]  }
 0xb81   : > { %14631 = vmatprep.mubr.bf16.mxu0 %v13923_v46  ;;  %14783 = vmatpush1.bf16.msra.mxu0 %v20475_v14  ;;  %v20486_v14 = vld [vmem:[%s27346_s7 + $0x734] ss:$8 sps:$4 sm:$0xff]  }
 0xb82   : > { %14784 = vmatprep.subr.bf16.mxu0 %v20480_v54  ;;  %v20489_v54 = vld [vmem:[%s27346_s7 + $0x744] ss:$8 sps:$4 sm:$0xff]   ;;  %v13754_v46 = vld [vmem:[#allocation2 + $0x1b0] sm:$0xff] }
 0xb85   : > { %14785 = vmatpush1.bf16.msra.mxu0 %v20478_v60  ;;  %v13767_v60 = vld [vmem:[#allocation2 + $0x218] sm:$0xff] }
 0xb86   : > { %14786 = vmatprep.subr.bf16.mxu0 %v20483_v30  ;;  %v13748_v30 = vld [vmem:[#allocation2 + $0x180] sm:$0xff] }
 0xb87   : > { %v13928_v61 = vpack.c.bf16 %v13754_v46, %v13748_v30  ;;  %v20493_v46 = vld [vmem:[%s27346_s7 + $0x760] ss:$8 sps:$4 sm:$0xff]  }
 0xb88   : > { %14632 = vmatmul.mubr.bf16.gmra.mrb[56].mxu0 %v13922_v2  ;;  %v13935_v2 = vpack.c.bf16 %v13767_v60, %v13761_v41  ;;  %v13773_v30 = vld [vmem:[#allocation2 + $0x248] sm:$0xff]  ;;  %v20496_v41 = vld [vmem:[%s27346_s7 + $0x770] ss:$8 sps:$4 sm:$0xff]  }
 0xb89   : > { %14641 = vmatprep.mubr.bf16.mxu0 %v13929_v26  ;;  %14787 = vmatpush1.bf16.msra.mxu0 %v20481_v13  ;;  %v20492_v13 = vld [vmem:[%s27346_s7 + $0x754] ss:$8 sps:$4 sm:$0xff]  }
 0xb8a   : > { %14788 = vmatprep.subr.bf16.mxu0 %v20486_v14  ;;  %v20495_v14 = vld [vmem:[%s27346_s7 + $0x764] ss:$8 sps:$4 sm:$0xff]   ;;  %v13766_v26 = vld [vmem:[#allocation2 + $0x210] sm:$0xff] }
 0xb8d   : > { %14789 = vmatpush1.bf16.msra.mxu0 %v20484_v59  ;;  %v13779_v59 = vld [vmem:[#allocation2 + $0x278] sm:$0xff] }
 0xb8e   : > { %14790 = vmatprep.subr.bf16.mxu0 %v20489_v54  ;;  %v13760_v54 = vld [vmem:[#allocation2 + $0x1e0] sm:$0xff] }
 0xb8f   : > { %v13934_v60 = vpack.c.bf16 %v13766_v26, %v13760_v54  ;;  %v20499_v26 = vld [vmem:[%s27346_s7 + $0x780] ss:$8 sps:$4 sm:$0xff]  }
 0xb90   : > { %14642 = vmatmul.mubr.bf16.gmra.mrb[60].mxu0 %v13928_v61  ;;  %v13941_v61 = vpack.c.bf16 %v13779_v59, %v13773_v30  ;;  %v13785_v54 = vld [vmem:[#allocation2 + $0x2a8] sm:$0xff]  ;;  %v20502_v30 = vld [vmem:[%s27346_s7 + $0x790] ss:$8 sps:$4 sm:$0xff]  }
 0xb91   : > { %14651 = vmatprep.mubr.bf16.mxu0 %v13935_v2  ;;  %14791 = vmatpush1.bf16.msra.mxu0 %v20487_v17  ;;  %v20498_v17 = vld [vmem:[%s27346_s7 + $0x774] ss:$8 sps:$4 sm:$0xff]  }
 0xb92   : > { %14792 = vmatprep.subr.bf16.mxu0 %v20492_v13  ;;  %v20501_v13 = vld [vmem:[%s27346_s7 + $0x784] ss:$8 sps:$4 sm:$0xff]   ;;  %v13778_v2 = vld [vmem:[#allocation2 + $0x270] sm:$0xff] }
 0xb95   : > { %14793 = vmatpush1.bf16.msra.mxu0 %v20490_v20  ;;  %v13791_v20 = vld [vmem:[#allocation2 + $0x2d8] sm:$0xff] }
 0xb96   : > { %14794 = vmatprep.subr.bf16.mxu0 %v20495_v14  ;;  %v13772_v14 = vld [vmem:[#allocation2 + $0x240] sm:$0xff] }
 0xb97   : > { %v13940_v59 = vpack.c.bf16 %v13778_v2, %v13772_v14  ;;  %v20505_v2 = vld [vmem:[%s27346_s7 + $0x7a0] ss:$8 sps:$4 sm:$0xff]  }
 0xb98   : > { %14652 = vmatmul.mubr.bf16.gmra.mrb[64].mxu0 %v13934_v60  ;;  %v13947_v60 = vpack.c.bf16 %v13791_v20, %v13785_v54  ;;  %v13797_v14 = vld [vmem:[#allocation2 + $0x308] sm:$0xff]  ;;  %v20508_v54 = vld [vmem:[%s27346_s7 + $0x7b0] ss:$8 sps:$4 sm:$0xff]  }
 0xb99   : > { %14661 = vmatprep.mubr.bf16.mxu0 %v13941_v61  ;;  %14795 = vmatpush1.bf16.msra.mxu0 %v20493_v46  ;;  %v20504_v46 = vld [vmem:[%s27346_s7 + $0x794] ss:$8 sps:$4 sm:$0xff]  }
 0xb9a   : > { %14796 = vmatprep.subr.bf16.mxu0 %v20498_v17  ;;  %v20507_v17 = vld [vmem:[%s27346_s7 + $0x7a4] ss:$8 sps:$4 sm:$0xff]   ;;  %v13790_v61 = vld [vmem:[#allocation2 + $0x2d0] sm:$0xff] }
 0xb9d   : > { %14797 = vmatpush1.bf16.msra.mxu0 %v20496_v41  ;;  %v13803_v41 = vld [vmem:[#allocation2 + $0x338] sm:$0xff] }
 0xb9e   : > { %14798 = vmatprep.subr.bf16.mxu0 %v20501_v13  ;;  %v13784_v13 = vld [vmem:[#allocation2 + $0x2a0] sm:$0xff] }
 0xb9f   : > { %v13946_v20 = vpack.c.bf16 %v13790_v61, %v13784_v13  ;;  %v20511_v61 = vld [vmem:[%s27346_s7 + $0x7c0] ss:$8 sps:$4 sm:$0xff]  }
 0xba0   : > { %14662 = vmatmul.mubr.bf16.gmra.mrb[68].mxu0 %v13940_v59  ;;  %v13953_v59 = vpack.c.bf16 %v13803_v41, %v13797_v14  ;;  %v13809_v13 = vld [vmem:[#allocation2 + $0x368] sm:$0xff]  ;;  %v20514_v14 = vld [vmem:[%s27346_s7 + $0x7d0] ss:$8 sps:$4 sm:$0xff]  }
 0xba1   : > { %14671 = vmatprep.mubr.bf16.mxu0 %v13947_v60  ;;  %14799 = vmatpush1.bf16.msra.mxu0 %v20499_v26  ;;  %v20510_v26 = vld [vmem:[%s27346_s7 + $0x7b4] ss:$8 sps:$4 sm:$0xff]  }
 0xba2   : > { %14800 = vmatprep.subr.bf16.mxu0 %v20504_v46  ;;  %v20513_v46 = vld [vmem:[%s27346_s7 + $0x7c4] ss:$8 sps:$4 sm:$0xff]   ;;  %v13802_v60 = vld [vmem:[#allocation2 + $0x330] sm:$0xff] }
 0xba5   : > { %14801 = vmatpush1.bf16.msra.mxu0 %v20502_v30  ;;  %v13815_v30 = vld [vmem:[#allocation2 + $0x398] sm:$0xff] }
 0xba6   : > { %14802 = vmatprep.subr.bf16.mxu0 %v20507_v17  ;;  %v13796_v17 = vld [vmem:[#allocation2 + $0x300] sm:$0xff] }
 0xba7   : > { %v13952_v41 = vpack.c.bf16 %v13802_v60, %v13796_v17  ;;  %v20517_v60 = vld [vmem:[%s27346_s7 + $0x7e0] ss:$8 sps:$4 sm:$0xff]  }
 0xba8   : > { %14672 = vmatmul.mubr.bf16.gmra.mrb[72].mxu0 %v13946_v20  ;;  %v13959_v20 = vpack.c.bf16 %v13815_v30, %v13809_v13  ;;  %v13821_v17 = vld [vmem:[#allocation2 + $0x3c8] sm:$0xff]  ;;  %v20520_v13 = vld [vmem:[%s27346_s7 + $0x7f0] ss:$8 sps:$4 sm:$0xff]  }
 0xba9   : > { %14681 = vmatprep.mubr.bf16.mxu0 %v13953_v59  ;;  %14803 = vmatpush1.bf16.msra.mxu0 %v20505_v2  ;;  %v20516_v2 = vld [vmem:[%s27346_s7 + $0x7d4] ss:$8 sps:$4 sm:$0xff]  }
 0xbaa   : > { %14804 = vmatprep.subr.bf16.mxu0 %v20510_v26  ;;  %v20519_v26 = vld [vmem:[%s27346_s7 + $0x7e4] ss:$8 sps:$4 sm:$0xff]   ;;  %v13814_v59 = vld [vmem:[#allocation2 + $0x390] sm:$0xff] }
 0xbad   : > { %14805 = vmatpush1.bf16.msra.mxu0 %v20508_v54  ;;  %v13827_v54 = vld [vmem:[#allocation2 + $0x3f8] sm:$0xff] }
 0xbae   : > { %14806 = vmatprep.subr.bf16.mxu0 %v20513_v46  ;;  %v13808_v46 = vld [vmem:[#allocation2 + $0x360] sm:$0xff] }
 0xbaf   : > { %v13958_v30 = vpack.c.bf16 %v13814_v59, %v13808_v46  ;;  %v13833_v46 = vld [vmem:[#allocation2 + $0x428] sm:$0xff] }
 0xbb0   : > { %14682 = vmatmul.mubr.bf16.gmra.mrb[76].mxu0 %v13952_v41  ;;  %v13965_v41 = vpack.c.bf16 %v13827_v54, %v13821_v17  ;;  %v13832_v17 = vld [vmem:[#allocation2 + $0x420] sm:$0xff] }
 0xbb1   : > { %14691 = vmatprep.mubr.bf16.mxu0 %v13959_v20  ;;  %14807 = vmatpush1.bf16.msra.mxu0 %v20511_v61  ;;  %v20522_v61 = vld [vmem:[%s27346_s7 + $0x7f4] ss:$8 sps:$4 sm:$0xff]  }
 0xbb2   : > { %14808 = vmatprep.subr.bf16.mxu0 %v20516_v2  ;;  %v20525_v2 = vld [vmem:[%s27346_s7 + $0x804] ss:$8 sps:$4 sm:$0xff]   ;;  %v13826_v20 = vld [vmem:[#allocation2 + $0x3f0] sm:$0xff] }
 0xbb5   : > { %14809 = vmatpush1.bf16.msra.mxu0 %v20514_v14  ;;  %v13839_v14 = vld [vmem:[#allocation2 + $0x458] sm:$0xff] }
 0xbb6   : > { %14810 = vmatprep.subr.bf16.mxu0 %v20519_v26  ;;  %v13820_v26 = vld [vmem:[#allocation2 + $0x3c0] sm:$0xff]  ;;  %v13971_v54 = vpack.c.bf16 %v13839_v14, %v13833_v46 }
 0xbb7   : > { %v13964_v59 = vpack.c.bf16 %v13826_v20, %v13820_v26  ;;  %v13875_v20 = vld [vmem:[#allocation2 + $0x578] sm:$0xff]  ;;  %v13856_v14 = vld [vmem:[#allocation2 + $0x4e0] sm:$0xff] }
 0xbb8   : > { %14692 = vmatmul.mubr.bf16.gmra.mrb[80].mxu0 %v13958_v30  ;;  %v13851_v30 = vld [vmem:[#allocation2 + $0x4b8] sm:$0xff] }
 0xbb9   : > { %14701 = vmatprep.mubr.bf16.mxu0 %v13965_v41  ;;  %14811 = vmatpush1.bf16.msra.mxu0 %v20517_v60  ;;  %v13838_v60 = vld [vmem:[#allocation2 + $0x450] sm:$0xff] }
 0xbba   : > { %14812 = vmatprep.subr.bf16.mxu0 %v20522_v61  ;;  %v13970_v41 = vpack.c.bf16 %v13838_v60, %v13832_v17  ;;  %v13977_v61 = vpack.c.bf16 %v13851_v30, %v13845_v62  ;;  %v13887_v62 = vld [vmem:[#allocation2 + $0x5d8] sm:$0xff]  ;;  %v13868_v60 = vld [vmem:[#allocation2 + $0x540] sm:$0xff]  ;;  %v13881_v17 = vld [vmem:[#allocation2 + $0x5a8] sm:$0xff] }
 0xbbd   : > { %14813 = vmatpush1.bf16.msra.mxu0 %v20520_v13  ;;  %v13983_v13 = vpack.c.bf16 %v13863_v39, %v13857_v19  ;;  %v13899_v19 = vld [vmem:[#allocation2 + $0x638] sm:$0xff] }
 0xbbe   : > { %14975 = vmatprep.subr.bf16.mxu0 %v20525_v2  ;;  %v13862_v2 = vld [vmem:[#allocation2 + $0x510] sm:$0xff] }
 0xbbf   : > { %v13982_v26 = vpack.c.bf16 %v13862_v2, %v13856_v14  ;;  %v13905_v2 = vld [vmem:[#allocation2 + $0x668] sm:$0xff] }
 0xbc0   : > { %14702 = vmatmul.mubr.bf16.gmra.mrb[84].mxu0 %v13964_v59  ;;  %v13869_v59 = vld [vmem:[#allocation2 + $0x548] sm:$0xff] }
 0xbc1   : > { %14711 = vmatprep.mubr.bf16.mxu0 %v13971_v54  ;;  %v13989_v46 = vpack.c.bf16 %v13875_v20, %v13869_v59  ;;  %v13874_v54 = vld [vmem:[#allocation2 + $0x570] sm:$0xff]  ;;  %v13892_v20 = vld [vmem:[#allocation2 + $0x600] sm:$0xff] }
 0xbc2   : > { %v13988_v30 = vpack.c.bf16 %v13874_v54, %v13868_v60  ;;  %v13733_v54 = vld [vmem:[#allocation2 + $0x108] sm:$0xff]  ;;  %v13727_v60 = vld [vmem:[#allocation2 + $0xd8] sm:$0xff] }
 0xbc8   : > { %14712 = vmatmul.mubr.bf16.gmra.mrb[88].mxu0 %v13970_v41  ;;  %v13995_v41 = vpack.c.bf16 %v13887_v62, %v13881_v17  ;;  %v13732_v17 = vld [vmem:[#allocation2 + $0x100] sm:$0xff] }
 0xbc9   : > { %14721 = vmatprep.mubr.bf16.mxu0 %v13977_v61  ;;  %v14001_v61 = vpack.c.bf16 %v13899_v19, %v13893_v58  ;;  %v20523_v19 = vld [vmem:[%s27346_s7 + $0x800] ss:$8 sps:$4 sm:$0xff]   ;;  %v20528_v58 = vld [vmem:[%s27346_s7 + $0x814] ss:$8 sps:$4 sm:$0xff]  }
 0xbd0   : > { %14722 = vmatmul.mubr.bf16.gmra.mrb[92].mxu0 %v13976_v44  ;;  %v13880_v44 = vld [vmem:[#allocation2 + $0x5a0] sm:$0xff] }
 0xbd1   : > { %14731 = vmatprep.mubr.bf16.mxu0 %v13983_v13  ;;  %v13994_v39 = vpack.c.bf16 %v13886_v52, %v13880_v44  ;;  %v13898_v13 = vld [vmem:[#allocation2 + $0x630] sm:$0xff] }
 0xbd2   : > { %v14000_v14 = vpack.c.bf16 %v13898_v13, %v13892_v20  ;;  %v13726_v52 = vld [vmem:[#allocation2 + $0xd0] sm:$0xff]  ;;  %v13744_v20 = vld [vmem:[#allocation2 + $0x160] sm:$0xff] }
 0xbd3   : > { %v13918_v44 = vpack.c.bf16 %v13732_v17, %v13726_v52  ;;  %v20526_v13 = vld [vmem:[%s27346_s7 + $0x810] ss:$8 sps:$4 sm:$0xff]   ;;  %v13756_v52 = vld [vmem:[#allocation2 + $0x1c0] sm:$0xff] }
 0xbd4   : > { %v20532_v17 = vld [vmem:[%s27346_s7 + $0x830] ss:$8 sps:$4 sm:$0xff]  }
 0xbd8   : > { %14732 = vmatmul.mubr.bf16.gmra.mrb[96].mxu0 %v13982_v26  ;;  %v26941_v26 = vld [vmem:[#allocation3] sm:$0xff] }
 0xbd9   : > { %14741 = vmatprep.mubr.bf16.mxu0 %v13989_v46  ;;  %v14007_v59 = vpack.c.bf16 %v26941_v26, %v13905_v2  ;;  %v13904_v46 = vld [vmem:[#allocation2 + $0x660] sm:$0xff] }
 0xbda   : > { %v14006_v62 = vpack.c.bf16 %v26941_v26, %v13904_v46  ;;  %v20531_v2 = vld [vmem:[%s27346_s7 + $0x824] ss:$8 sps:$4 sm:$0xff]   ;;  %v20529_v46 = vld [vmem:[%s27346_s7 + $0x820] ss:$8 sps:$4 sm:$0xff]  }
 0xbe0   : > { %14742 = vmatmul.mubr.bf16.gmra.mrb[100].mxu0 %v13988_v30  ;;  %v13919_v30 = vpack.c.bf16 %v13733_v54, %v13727_v60  ;;  %v20534_v60 = vld [vmem:[%s27346_s7 + $0x834] ss:$8 sps:$4 sm:$0xff]  }
 0xbe1   : > { %14751 = vmatprep.mubr.bf16.mxu0 %v13995_v41  ;;  %v13745_v41 = vld [vmem:[#allocation2 + $0x168] sm:$0xff] }
 0xbe8   : > { %14752 = vmatmul.mubr.bf16.gmra.mrb[104].mxu0 %v13994_v39  ;;  %v13739_v39 = vld [vmem:[#allocation2 + $0x138] sm:$0xff] }
 0xbe9   : > { %14761 = vmatprep.mubr.bf16.mxu0 %v14001_v61  ;;  %v13925_v61 = vpack.c.bf16 %v13745_v41, %v13739_v39  ;;  %v20537_v41 = vld [vmem:[%s27346_s7 + $0x844] ss:$8 sps:$4 sm:$0xff]   ;;  %v20535_v39 = vld [vmem:[%s27346_s7 + $0x840] ss:$8 sps:$4 sm:$0xff]  }
 0xbf0   : > { %14762 = vmatmul.mubr.bf16.gmra.mrb[108].mxu0 %v14000_v14  ;;  %v13757_v14 = vld [vmem:[#allocation2 + $0x1c8] sm:$0xff] }
 0xbf1   : > { %14771 = vmatprep.mubr.bf16.mxu0 %v14007_v59  ;;  %v13738_v59 = vld [vmem:[#allocation2 + $0x130] sm:$0xff] }
 0xbf2   : > { %v13924_v54 = vpack.c.bf16 %v13744_v20, %v13738_v59  ;;  %v20538_v20 = vld [vmem:[%s27346_s7 + $0x850] ss:$8 sps:$4 sm:$0xff]   ;;  %v13768_v59 = vld [vmem:[#allocation2 + $0x220] sm:$0xff] }
 0xbf8   : > { %14772 = vmatmul.mubr.bf16.gmra.mrb[112].mxu0 %v14006_v62  ;;  %v13751_v62 = vld [vmem:[#allocation2 + $0x198] sm:$0xff] }
 0xbf9   : > { %14814 = vmatprep.mubr.bf16.mxu0 %v13919_v30  ;;  %v13931_v30 = vpack.c.bf16 %v13757_v14, %v13751_v62  ;;  %v20543_v14 = vld [vmem:[%s27346_s7 + $0x864] ss:$8 sps:$4 sm:$0xff]   ;;  %v20541_v62 = vld [vmem:[%s27346_s7 + $0x860] ss:$8 sps:$4 sm:$0xff]  }
 0xc00   : > { %14815 = vmatmul.mubr.bf16.vlgmr.msra.gmra.mrb[52].mxu0 %v13918_v44  ;;  %v13750_v44 = vld [vmem:[#allocation2 + $0x190] sm:$0xff] }
 0xc01   : > { %14824 = vmatprep.mubr.bf16.mxu0 %v13925_v61  ;;  %14976 = vmatpush1.bf16.msra.mxu0 %v20523_v19  ;;  %v13769_v19 = vld [vmem:[#allocation2 + $0x228] sm:$0xff]  ;;  %v13763_v61 = vld [vmem:[#allocation2 + $0x1f8] sm:$0xff] }
 0xc02   : > { %14977 = vmatprep.subr.bf16.mxu0 %v20528_v58  ;;  %v13930_v58 = vpack.c.bf16 %v13756_v52, %v13750_v44  ;;  %v20544_v52 = vld [vmem:[%s27346_s7 + $0x870] ss:$8 sps:$4 sm:$0xff]   ;;  %v13780_v44 = vld [vmem:[#allocation2 + $0x280] sm:$0xff] }
 0xc05   : > { %14978 = vmatpush1.bf16.msra.mxu0 %v20526_v13  ;;  %v20540_v13 = vld [vmem:[%s27346_s7 + $0x854] ss:$8 sps:$4 sm:$0xff]  }
 0xc06   : > { %14979 = vmatprep.subr.bf16.mxu0 %v20531_v2  ;;  %v13937_v2 = vpack.c.bf16 %v13769_v19, %v13763_v61  ;;  %v20549_v19 = vld [vmem:[%s27346_s7 + $0x884] ss:$8 sps:$4 sm:$0xff]   ;;  %v20547_v61 = vld [vmem:[%s27346_s7 + $0x880] ss:$8 sps:$4 sm:$0xff]  }
 0xc08   : > { %14825 = vmatmul.mubr.bf16.gmra.mrb[56].mxu0 %v13924_v54  ;;  %v13762_v54 = vld [vmem:[#allocation2 + $0x1f0] sm:$0xff] }
 0xc09   : > { %14834 = vmatprep.mubr.bf16.mxu0 %v13931_v30  ;;  %14980 = vmatpush1.bf16.msra.mxu0 %v20529_v46  ;;  %v13781_v46 = vld [vmem:[#allocation2 + $0x288] sm:$0xff]  ;;  %v13775_v30 = vld [vmem:[#allocation2 + $0x258] sm:$0xff] }
 0xc0a   : > { %14981 = vmatprep.subr.bf16.mxu0 %v20534_v60  ;;  %v13936_v60 = vpack.c.bf16 %v13768_v59, %v13762_v54  ;;  %v20550_v59 = vld [vmem:[%s27346_s7 + $0x890] ss:$8 sps:$4 sm:$0xff]   ;;  %v13792_v54 = vld [vmem:[#allocation2 + $0x2e0] sm:$0xff] }
 0xc0d   : > { %14982 = vmatpush1.bf16.msra.mxu0 %v20532_v17  ;;  %v20546_v17 = vld [vmem:[%s27346_s7 + $0x874] ss:$8 sps:$4 sm:$0xff]  }
 0xc0e   : > { %14983 = vmatprep.subr.bf16.mxu0 %v20537_v41  ;;  %v13943_v41 = vpack.c.bf16 %v13781_v46, %v13775_v30  ;;  %v20555_v46 = vld [vmem:[%s27346_s7 + $0x8a4] ss:$8 sps:$4 sm:$0xff]   ;;  %v20553_v30 = vld [vmem:[%s27346_s7 + $0x8a0] ss:$8 sps:$4 sm:$0xff]  }
 0xc10   : > { %14835 = vmatmul.mubr.bf16.gmra.mrb[60].mxu0 %v13930_v58  ;;  %v13774_v58 = vld [vmem:[#allocation2 + $0x250] sm:$0xff] }
 0xc11   : > { %14844 = vmatprep.mubr.bf16.mxu0 %v13937_v2  ;;  %14984 = vmatpush1.bf16.msra.mxu0 %v20535_v39  ;;  %v13793_v39 = vld [vmem:[#allocation2 + $0x2e8] sm:$0xff]  ;;  %v13787_v2 = vld [vmem:[#allocation2 + $0x2b8] sm:$0xff] }
 0xc12   : > { %14985 = vmatprep.subr.bf16.mxu0 %v20540_v13  ;;  %v13942_v13 = vpack.c.bf16 %v13780_v44, %v13774_v58  ;;  %v20556_v44 = vld [vmem:[%s27346_s7 + $0x8b0] ss:$8 sps:$4 sm:$0xff]   ;;  %v13804_v58 = vld [vmem:[#allocation2 + $0x340] sm:$0xff] }
 0xc15   : > { %14986 = vmatpush1.bf16.msra.mxu0 %v20538_v20  ;;  %v20552_v20 = vld [vmem:[%s27346_s7 + $0x894] ss:$8 sps:$4 sm:$0xff]  }
 0xc16   : > { %14987 = vmatprep.subr.bf16.mxu0 %v20543_v14  ;;  %v13949_v14 = vpack.c.bf16 %v13793_v39, %v13787_v2  ;;  %v20561_v39 = vld [vmem:[%s27346_s7 + $0x8c4] ss:$8 sps:$4 sm:$0xff]   ;;  %v20559_v2 = vld [vmem:[%s27346_s7 + $0x8c0] ss:$8 sps:$4 sm:$0xff]  }
 0xc18   : > { %14845 = vmatmul.mubr.bf16.gmra.mrb[64].mxu0 %v13936_v60  ;;  %v13786_v60 = vld [vmem:[#allocation2 + $0x2b0] sm:$0xff] }
 0xc19   : > { %14854 = vmatprep.mubr.bf16.mxu0 %v13943_v41  ;;  %14988 = vmatpush1.bf16.msra.mxu0 %v20541_v62  ;;  %v13805_v62 = vld [vmem:[#allocation2 + $0x348] sm:$0xff]  ;;  %v13799_v41 = vld [vmem:[#allocation2 + $0x318] sm:$0xff] }
 0xc1a   : > { %14989 = vmatprep.subr.bf16.mxu0 %v20546_v17  ;;  %v13948_v17 = vpack.c.bf16 %v13792_v54, %v13786_v60  ;;  %v20562_v54 = vld [vmem:[%s27346_s7 + $0x8d0] ss:$8 sps:$4 sm:$0xff]   ;;  %v13816_v60 = vld [vmem:[#allocation2 + $0x3a0] sm:$0xff] }
 0xc1d   : > { %14990 = vmatpush1.bf16.msra.mxu0 %v20544_v52  ;;  %v20558_v52 = vld [vmem:[%s27346_s7 + $0x8b4] ss:$8 sps:$4 sm:$0xff]  }
 0xc1e   : > { %14991 = vmatprep.subr.bf16.mxu0 %v20549_v19  ;;  %v13955_v19 = vpack.c.bf16 %v13805_v62, %v13799_v41  ;;  %v20567_v62 = vld [vmem:[%s27346_s7 + $0x8e4] ss:$8 sps:$4 sm:$0xff]   ;;  %v20565_v41 = vld [vmem:[%s27346_s7 + $0x8e0] ss:$8 sps:$4 sm:$0xff]  }
 0xc20   : > { %14855 = vmatmul.mubr.bf16.gmra.mrb[68].mxu0 %v13942_v13  ;;  %v13798_v13 = vld [vmem:[#allocation2 + $0x310] sm:$0xff] }
 0xc21   : > { %14864 = vmatprep.mubr.bf16.mxu0 %v13949_v14  ;;  %14992 = vmatpush1.bf16.msra.mxu0 %v20547_v61  ;;  %v13817_v61 = vld [vmem:[#allocation2 + $0x3a8] sm:$0xff]  ;;  %v13811_v14 = vld [vmem:[#allocation2 + $0x378] sm:$0xff] }
 0xc22   : > { %14993 = vmatprep.subr.bf16.mxu0 %v20552_v20  ;;  %v13954_v20 = vpack.c.bf16 %v13804_v58, %v13798_v13  ;;  %v20568_v58 = vld [vmem:[%s27346_s7 + $0x8f0] ss:$8 sps:$4 sm:$0xff]   ;;  %v13841_v13 = vld [vmem:[#allocation2 + $0x468] sm:$0xff] }
 0xc25   : > { %14994 = vmatpush1.bf16.msra.mxu0 %v20550_v59  ;;  %v20564_v59 = vld [vmem:[%s27346_s7 + $0x8d4] ss:$8 sps:$4 sm:$0xff]  }
 0xc26   : > { %14995 = vmatprep.subr.bf16.mxu0 %v20555_v46  ;;  %v13961_v46 = vpack.c.bf16 %v13817_v61, %v13811_v14  ;;  %v13828_v61 = vld [vmem:[#allocation2 + $0x400] sm:$0xff]  ;;  %v13835_v14 = vld [vmem:[#allocation2 + $0x438] sm:$0xff] }
 0xc28   : > { %14865 = vmatmul.mubr.bf16.gmra.mrb[72].mxu0 %v13948_v17  ;;  %v13810_v17 = vld [vmem:[#allocation2 + $0x370] sm:$0xff] }
 0xc29   : > { %14874 = vmatprep.mubr.bf16.mxu0 %v13955_v19  ;;  %14996 = vmatpush1.bf16.msra.mxu0 %v20553_v30  ;;  %v13829_v30 = vld [vmem:[#allocation2 + $0x408] sm:$0xff]  ;;  %v13823_v19 = vld [vmem:[#allocation2 + $0x3d8] sm:$0xff] }
 0xc2a   : > { %14997 = vmatprep.subr.bf16.mxu0 %v20558_v52  ;;  %v13960_v52 = vpack.c.bf16 %v13816_v60, %v13810_v17 }
 0xc2d   : > { %14998 = vmatpush1.bf16.msra.mxu0 %v20556_v44  ;;  %v20570_v44 = vld [vmem:[%s27346_s7 + $0x8f4] ss:$8 sps:$4 sm:$0xff]  }
 0xc2e   : > { %14999 = vmatprep.subr.bf16.mxu0 %v20561_v39  ;;  %v13967_v39 = vpack.c.bf16 %v13829_v30, %v13823_v19  ;;  %v13847_v30 = vld [vmem:[#allocation2 + $0x498] sm:$0xff]  ;;  %v13846_v19 = vld [vmem:[#allocation2 + $0x490] sm:$0xff] }
 0xc30   : > { %14875 = vmatmul.mubr.bf16.gmra.mrb[76].mxu0 %v13954_v20 }
 0xc31   : > { %14884 = vmatprep.mubr.bf16.mxu0 %v13961_v46  ;;  %15000 = vmatpush1.bf16.msra.mxu0 %v20559_v2  ;;  %v13822_v2 = vld [vmem:[#allocation2 + $0x3d0] sm:$0xff]  ;;  %v13840_v46 = vld [vmem:[#allocation2 + $0x460] sm:$0xff] }
 0xc32   : > { %15001 = vmatprep.subr.bf16.mxu0 %v20564_v59  ;;  %v13966_v20 = vpack.c.bf16 %v13828_v61, %v13822_v2  ;;  %v13973_v59 = vpack.c.bf16 %v13841_v13, %v13835_v14  ;;  %v13877_v61 = vld [vmem:[#allocation2 + $0x588] sm:$0xff]  ;;  %v13858_v13 = vld [vmem:[#allocation2 + $0x4f0] sm:$0xff] }
 0xc35   : > { %15002 = vmatpush1.bf16.msra.mxu0 %v20562_v54  ;;  %v13853_v54 = vld [vmem:[#allocation2 + $0x4c8] sm:$0xff] }
 0xc36   : > { %15003 = vmatprep.subr.bf16.mxu0 %v20567_v62  ;;  %v13834_v62 = vld [vmem:[#allocation2 + $0x430] sm:$0xff]  ;;  %v13979_v17 = vpack.c.bf16 %v13853_v54, %v13847_v30 }
 0xc37   : > { %v13972_v60 = vpack.c.bf16 %v13840_v46, %v13834_v62  ;;  %v13889_v46 = vld [vmem:[#allocation2 + $0x5e8] sm:$0xff]  ;;  %v13870_v54 = vld [vmem:[#allocation2 + $0x550] sm:$0xff] }
 0xc38   : > { %14885 = vmatmul.mubr.bf16.gmra.mrb[80].mxu0 %v13960_v52  ;;  %v13865_v52 = vld [vmem:[#allocation2 + $0x528] sm:$0xff] }
 0xc39   : > { %14894 = vmatprep.mubr.bf16.mxu0 %v13967_v39  ;;  %15004 = vmatpush1.bf16.msra.mxu0 %v20565_v41  ;;  %v13852_v41 = vld [vmem:[#allocation2 + $0x4c0] sm:$0xff]  ;;  %v13859_v39 = vld [vmem:[#allocation2 + $0x4f8] sm:$0xff] }
 0xc3a   : > { %15005 = vmatprep.subr.bf16.mxu0 %v20570_v44  ;;  %v13978_v44 = vpack.c.bf16 %v13852_v41, %v13846_v19  ;;  %v13985_v5 = vpack.c.bf16 %v13865_v52, %v13859_v39  ;;  %v13901_v41 = vld [vmem:[#allocation2 + $0x648] sm:$0xff]  ;;  %v13882_v52 = vld [vmem:[#allocation2 + $0x5b0] sm:$0xff]  ;;  %v13895_v19 = vld [vmem:[#allocation2 + $0x618] sm:$0xff] }
 0xc3b   : > { %v13900_v39 = vld [vmem:[#allocation2 + $0x640] sm:$0xff] }
 0xc3d   : > { %15006 = vmatpush1.bf16.msra.mxu0 %v20568_v58  ;;  %v13864_v58 = vld [vmem:[#allocation2 + $0x520] sm:$0xff] }
 0xc3e   : > { %v13984_v2 = vpack.c.bf16 %v13864_v58, %v13858_v13  ;;  %v13894_v58 = vld [vmem:[#allocation2 + $0x610] sm:$0xff] }
 0xc3f   : > { %v14002_v13 = vpack.c.bf16 %v13900_v39, %v13894_v58  ;;  %v13771_v39 = vld [vmem:[#allocation2 + $0x238] sm:$0xff]  ;;  %v13752_v58 = vld [vmem:[#allocation2 + $0x1a0] sm:$0xff] }
 0xc40   : > { %14895 = vmatmul.mubr.bf16.gmra.mrb[84].mxu0 %v13966_v20  ;;  %v13871_v20 = vld [vmem:[#allocation2 + $0x558] sm:$0xff] }
 0xc41   : > { %14904 = vmatprep.mubr.bf16.mxu0 %v13973_v59  ;;  %v13991_v14 = vpack.c.bf16 %v13877_v61, %v13871_v20  ;;  %v13876_v59 = vld [vmem:[#allocation2 + $0x580] sm:$0xff]  ;;  %v27040_v61 = vpack.c.bf16 %v26941_v26, %v26941_v26  ;;  %v13729_v20 = vld [vmem:[#allocation2 + $0xe8] sm:$0xff]  ;;  %v13746_v26 = vld [vmem:[#allocation2 + $0x170] sm:$0xff] }
 0xc42   : > { %v13990_v62 = vpack.c.bf16 %v13876_v59, %v13870_v54  ;;  %v13734_v59 = vld [vmem:[#allocation2 + $0x110] sm:$0xff]  ;;  %v13728_v54 = vld [vmem:[#allocation2 + $0xe0] sm:$0xff] }
 0xc48   : > { %14905 = vmatmul.mubr.bf16.gmra.mrb[88].mxu0 %v13972_v60  ;;  %v13883_v60 = vld [vmem:[#allocation2 + $0x5b8] sm:$0xff] }
 0xc49   : > { %14914 = vmatprep.mubr.bf16.mxu0 %v13979_v17  ;;  %v13997_v30 = vpack.c.bf16 %v13889_v46, %v13883_v60  ;;  %v13888_v17 = vld [vmem:[#allocation2 + $0x5e0] sm:$0xff]  ;;  %v13747_v46 = vld [vmem:[#allocation2 + $0x178] sm:$0xff]  ;;  %v13741_v60 = vld [vmem:[#allocation2 + $0x148] sm:$0xff] }
 0xc50   : > { %14915 = vmatmul.mubr.bf16.gmra.mrb[92].mxu0 %v13978_v44  ;;  %v14003_v44 = vpack.c.bf16 %v13901_v41, %v13895_v19  ;;  %v13740_v41 = vld [vmem:[#allocation2 + $0x140] sm:$0xff] }
 0xc51   : > { %14924 = vmatprep.mubr.bf16.mxu0 %v13985_v5  ;;  %v13996_v5 = vpack.c.bf16 %v13888_v17, %v13882_v52  ;;  %v13759_v17 = vld [vmem:[#allocation2 + $0x1d8] sm:$0xff]  ;;  %v13926_v52 = vpack.c.bf16 %v13746_v26, %v13740_v41 }
 0xc52   : > { %v13795_v26 = vld [vmem:[#allocation2 + $0x2f8] sm:$0xff] }
 0xc58   : > { %14925 = vmatmul.mubr.bf16.gmra.mrb[96].mxu0 %v13984_v2  ;;  %v13735_v2 = vld [vmem:[#allocation2 + $0x118] sm:$0xff] }
 0xc59   : > { %14934 = vmatprep.mubr.bf16.mxu0 %v13991_v14  ;;  %v13921_v14 = vpack.c.bf16 %v13735_v2, %v13729_v20  ;;  %v13765_v2 = vld [vmem:[#allocation2 + $0x208] sm:$0xff] }
 0xc5a   : > { %v13939_v20 = vpack.c.bf16 %v13771_v39, %v13765_v2  ;;  %v13788_v39 = vld [vmem:[#allocation2 + $0x2c0] sm:$0xff] }
 0xc60   : > { %14935 = vmatmul.mubr.bf16.gmra.mrb[100].mxu0 %v13990_v62  ;;  %v13920_v62 = vpack.c.bf16 %v13734_v59, %v13728_v54  ;;  %v13783_v59 = vld [vmem:[#allocation2 + $0x298] sm:$0xff] }
 0xc61   : > { %14944 = vmatprep.mubr.bf16.mxu0 %v13997_v30  ;;  %v13927_v30 = vpack.c.bf16 %v13747_v46, %v13741_v60  ;;  %v13764_v46 = vld [vmem:[#allocation2 + $0x200] sm:$0xff] }
 0xc68   : > { %14945 = vmatmul.mubr.bf16.gmra.mrb[104].mxu0 %v13996_v5  ;;  %v13753_v5 = vld [vmem:[#allocation2 + $0x1a8] sm:$0xff] }
 0xc69   : > { %14954 = vmatprep.mubr.bf16.mxu0 %v14003_v44  ;;  %v13933_v19 = vpack.c.bf16 %v13759_v17, %v13753_v5  ;;  %v13758_v44 = vld [vmem:[#allocation2 + $0x1d0] sm:$0xff]  ;;  %v13776_v17 = vld [vmem:[#allocation2 + $0x260] sm:$0xff] }
 0xc70   : > { %14955 = vmatmul.mubr.bf16.gmra.mrb[108].mxu0 %v14002_v13  ;;  %v13932_v13 = vpack.c.bf16 %v13758_v44, %v13752_v58  ;;  %v13807_v44 = vld [vmem:[#allocation2 + $0x358] sm:$0xff] }
 0xc71   : > { %14964 = vmatprep.mubr.bf16.mxu0 %v27040_v61 }
 0xc78   : > { %14965 = vmatmul.mubr.bf16.gmra.mrb[112].mxu0 %v27040_v61 }
 0xc79   : > { %15007 = vmatprep.mubr.bf16.mxu0 %v13921_v14  ;;  %v13770_v14 = vld [vmem:[#allocation2 + $0x230] sm:$0xff] }
 0xc7a   : > { %v13938_v54 = vpack.c.bf16 %v13770_v14, %v13764_v46  ;;  %v13819_v14 = vld [vmem:[#allocation2 + $0x3b8] sm:$0xff] }
 0xc80   : > { %15008 = vmatmul.mubr.bf16.vlgmr.msra.gmra.mrb[52].mxu0 %v13920_v62  ;;  %v13777_v62 = vld [vmem:[#allocation2 + $0x268] sm:$0xff] }
 0xc81   : > { %15017 = vmatprep.mubr.bf16.mxu0 %v13927_v30  ;;  %v13945_v60 = vpack.c.bf16 %v13783_v59, %v13777_v62  ;;  %v13782_v30 = vld [vmem:[#allocation2 + $0x290] sm:$0xff]  ;;  %v13800_v59 = vld [vmem:[#allocation2 + $0x320] sm:$0xff] }
 0xc82   : > { %v13944_v41 = vpack.c.bf16 %v13782_v30, %v13776_v17  ;;  %v13831_v30 = vld [vmem:[#allocation2 + $0x418] sm:$0xff] }
 0xc88   : > { %15018 = vmatmul.mubr.bf16.gmra.mrb[56].mxu0 %v13926_v52  ;;  %v13789_v52 = vld [vmem:[#allocation2 + $0x2c8] sm:$0xff] }
 0xc89   : > { %15027 = vmatprep.mubr.bf16.mxu0 %v13933_v19  ;;  %v13951_v5 = vpack.c.bf16 %v13795_v26, %v13789_v52  ;;  %v13794_v19 = vld [vmem:[#allocation2 + $0x2f0] sm:$0xff]  ;;  %v13812_v26 = vld [vmem:[#allocation2 + $0x380] sm:$0xff] }
 0xc8a   : > { %v13950_v58 = vpack.c.bf16 %v13794_v19, %v13788_v39  ;;  %v13843_v19 = vld [vmem:[#allocation2 + $0x478] sm:$0xff] }
 0xc90   : > { %15028 = vmatmul.mubr.bf16.gmra.mrb[60].mxu0 %v13932_v13  ;;  %v13801_v13 = vld [vmem:[#allocation2 + $0x328] sm:$0xff] }
 0xc91   : > { %15037 = vmatprep.mubr.bf16.mxu0 %v13939_v20  ;;  %v13957_v2 = vpack.c.bf16 %v13807_v44, %v13801_v13  ;;  %v13806_v20 = vld [vmem:[#allocation2 + $0x350] sm:$0xff]  ;;  %v13824_v44 = vld [vmem:[#allocation2 + $0x3e0] sm:$0xff] }
 0xc92   : > { %v13956_v46 = vpack.c.bf16 %v13806_v20, %v13800_v59  ;;  %v13855_v20 = vld [vmem:[#allocation2 + $0x4d8] sm:$0xff] }
 0xc98   : > { %15038 = vmatmul.mubr.bf16.gmra.mrb[64].mxu0 %v13938_v54  ;;  %v13813_v54 = vld [vmem:[#allocation2 + $0x388] sm:$0xff] }
 0xc99   : > { %15047 = vmatprep.mubr.bf16.mxu0 %v13945_v60  ;;  %v13963_v62 = vpack.c.bf16 %v13819_v14, %v13813_v54  ;;  %v13818_v60 = vld [vmem:[#allocation2 + $0x3b0] sm:$0xff]  ;;  %v13836_v14 = vld [vmem:[#allocation2 + $0x440] sm:$0xff] }
 0xc9a   : > { %v13962_v17 = vpack.c.bf16 %v13818_v60, %v13812_v26  ;;  %v13867_v60 = vld [vmem:[#allocation2 + $0x538] sm:$0xff] }
 0xca0   : > { %15048 = vmatmul.mubr.bf16.gmra.mrb[68].mxu0 %v13944_v41  ;;  %v13825_v41 = vld [vmem:[#allocation2 + $0x3e8] sm:$0xff] }
 0xca1   : > { %15057 = vmatprep.mubr.bf16.mxu0 %v13951_v5  ;;  %v13969_v52 = vpack.c.bf16 %v13831_v30, %v13825_v41  ;;  %v13830_v5 = vld [vmem:[#allocation2 + $0x410] sm:$0xff]  ;;  %v13848_v30 = vld [vmem:[#allocation2 + $0x4a0] sm:$0xff] }
 0xca2   : > { %v13968_v39 = vpack.c.bf16 %v13830_v5, %v13824_v44  ;;  %v13879_v5 = vld [vmem:[#allocation2 + $0x598] sm:$0xff] }
 0xca8   : > { %15058 = vmatmul.mubr.bf16.gmra.mrb[72].mxu0 %v13950_v58  ;;  %v13837_v58 = vld [vmem:[#allocation2 + $0x448] sm:$0xff] }
 0xca9   : > { %15067 = vmatprep.mubr.bf16.mxu0 %v13957_v2  ;;  %v13975_v13 = vpack.c.bf16 %v13843_v19, %v13837_v58  ;;  %v13842_v2 = vld [vmem:[#allocation2 + $0x470] sm:$0xff]  ;;  %v13860_v19 = vld [vmem:[#allocation2 + $0x500] sm:$0xff] }
 0xcaa   : > { %v13974_v59 = vpack.c.bf16 %v13842_v2, %v13836_v14  ;;  %v13891_v2 = vld [vmem:[#allocation2 + $0x5f8] sm:$0xff] }
 0xcb0   : > { %15068 = vmatmul.mubr.bf16.gmra.mrb[76].mxu0 %v13956_v46  ;;  %v13849_v46 = vld [vmem:[#allocation2 + $0x4a8] sm:$0xff] }
 0xcb1   : > { %15077 = vmatprep.mubr.bf16.mxu0 %v13963_v62  ;;  %v13981_v54 = vpack.c.bf16 %v13855_v20, %v13849_v46  ;;  %v13854_v62 = vld [vmem:[#allocation2 + $0x4d0] sm:$0xff]  ;;  %v13872_v20 = vld [vmem:[#allocation2 + $0x560] sm:$0xff] }
 0xcb2   : > { %v13980_v26 = vpack.c.bf16 %v13854_v62, %v13848_v30  ;;  %v13897_v62 = vld [vmem:[#allocation2 + $0x628] sm:$0xff]  ;;  %v13884_v30 = vld [vmem:[#allocation2 + $0x5c0] sm:$0xff] }
 0xcb8   : > { %15078 = vmatmul.mubr.bf16.gmra.mrb[80].mxu0 %v13962_v17  ;;  %v13861_v17 = vld [vmem:[#allocation2 + $0x508] sm:$0xff] }
 0xcb9   : > { %15087 = vmatprep.mubr.bf16.mxu0 %v13969_v52  ;;  %v13987_v41 = vpack.c.bf16 %v13867_v60, %v13861_v17  ;;  %v13866_v52 = vld [vmem:[#allocation2 + $0x530] sm:$0xff]  ;;  %v13903_v60 = vld [vmem:[#allocation2 + $0x658] sm:$0xff] }
 0xcba   : > { %v13986_v44 = vpack.c.bf16 %v13866_v52, %v13860_v19  ;;  %v14005_v17 = vpack.c.bf16 %v13903_v60, %v13897_v62  ;;  %v13902_v52 = vld [vmem:[#allocation2 + $0x650] sm:$0xff]  ;;  %v15232_v19 = vld [vmem:[%s27347_s8] sm:$0x3] }
 0xcc0   : > { %15088 = vmatmul.mubr.bf16.gmra.mrb[84].mxu0 %v13968_v39  ;;  %v13873_v39 = vld [vmem:[#allocation2 + $0x568] sm:$0xff] }
 0xcc1   : > { %15097 = vmatprep.mubr.bf16.mxu0 %v13975_v13  ;;  %v13993_v58 = vpack.c.bf16 %v13879_v5, %v13873_v39  ;;  %v13878_v13 = vld [vmem:[#allocation2 + $0x590] sm:$0xff] }
 0xcc2   : > { %v13992_v14 = vpack.c.bf16 %v13878_v13, %v13872_v20 }
 0xcc8   : > { %15098 = vmatmul.mubr.bf16.gmra.mrb[88].mxu0 %v13974_v59  ;;  %v13885_v59 = vld [vmem:[#allocation2 + $0x5c8] sm:$0xff] }
 0xcc9   : > { %15107 = vmatprep.mubr.bf16.mxu0 %v13981_v54  ;;  %v13999_v46 = vpack.c.bf16 %v13891_v2, %v13885_v59  ;;  %v13890_v54 = vld [vmem:[#allocation2 + $0x5f0] sm:$0xff] }
 0xcd0   : > { %15108 = vmatmul.mubr.bf16.gmra.mrb[92].mxu0 %v13980_v26  ;;  %v13998_v26 = vpack.c.bf16 %v13890_v54, %v13884_v30 }
 0xcd1   : > { %15117 = vmatprep.mubr.bf16.mxu0 %v13987_v41  ;;  %v13896_v41 = vld [vmem:[#allocation2 + $0x620] sm:$0xff] }
 0xcd2   : > { %v14004_v5 = vpack.c.bf16 %v13902_v52, %v13896_v41 }
 0xcd8   : > { %15118 = vmatmul.mubr.bf16.gmra.mrb[96].mxu0 %v13986_v44  ;;  %v27654_v44 = vld [vmem:[#allocation17_spill] sm:$0xff] }
 0xcd9   : > { %15127 = vmatprep.mubr.bf16.mxu0 %v13993_v58  ;;  %v27051_v39 = vrot.slane %v15232_v19, %v27654_v44  ;;  %v27655_v58 = vld [vmem:[#allocation19_spill] sm:$0xff] }
 0xcda   : > { %v27054_v13 = vrot.slane %v15232_v19, %v27655_v58 }
 0xce0   : > { %15128 = vmatmul.mubr.bf16.gmra.mrb[100].mxu0 %v13992_v14 }
 0xce1   : > { %15137 = vmatprep.mubr.bf16.mxu0 %v13999_v46 }
 0xce8   : > { %15138 = vmatmul.mubr.bf16.gmra.mrb[104].mxu0 %v13998_v26 }
 0xce9   : > { %15147 = vmatprep.mubr.bf16.mxu0 %v14005_v17 }
 0xcf0   : > { %15148 = vmatmul.mubr.bf16.gmra.mrb[108].mxu0 %v14004_v5 }
 0xcf1   : > { %15157 = vmatprep.mubr.bf16.mxu0 %v27040_v61 }
 0xcf8   : > { %15158 = vmatmul.mubr.bf16.gmra.mrb[112].mxu0 %v27040_v61 }
 0xd53   : > { %v15009_v2 = vpop.f32.mrb[52].mxu0 }
 0xd54   : > { %v17843_v20 = vadd.f32 %v15009_v2, %v26580_v31  ;;  %v15011_v14 = vpop.f32.mrb[53].mxu0 }
 0xd55   : > { %v17844_v59 = vadd.f32 %v15011_v14, %v26582_v50  ;;  %v15013_v46 = vpop.f32.mrb[54].mxu0 }
 0xd56   : > { %v15244_v61 = vadd.f32 %v17843_v20, %v27051_v39  ;;  %v17845_v54 = vadd.f32 %v15013_v46, %v26584_v11  ;;  %v15015_v62 = vpop.f32.mrb[55].mxu0 }
 0xd57   : > { %v15245_v60 = vadd.f32 %v17844_v59, %v27054_v13  ;;  %v17846_v30 = vadd.f32 %v15015_v62, %v26586_v29 }
 0xd58   : > { %15308 = vst [vmem:[%s27071_s23] sm:$0xff] %v15244_v61  ;;  %v15246_v31 = vadd.f32 %v17845_v54, %v27051_v39 }
 0xd59   : > { %20598 = shalt.err (!%p20595_p3)
}
 0xd5a   : > { %s20599_s2 = scalar_lea.hbm %s27067_s20, 2048  ;;  %s20603_s26 = scalar_lea.hbm %s27352_s13, 4096 }
 0xd5b   : > { %p20600_p4 = scmp.ne.s32.totalorder %s27067_s20, %s20599_s2  ;;  %p20604_p9 = scmp.lt.u32.totalorder %s27067_s20, %s27352_s13 }
 0xd5c   : > { %p20605_p10 = scmp.lt.u32.totalorder %s20603_s26, %s20599_s2  ;;  %p20607_p12 = scmp.lt.u32.totalorder %s20599_s2, %s27067_s20 }
 0xd5d   : > { %p20601_p7 = pnand %p20600_p4, %p20805_p5 }
 0xd5e   : > { %p20606_p11 = por %p20605_p10, %p20604_p9 }
 0xd5f   : > { %p20602_p8 = pneg %p20601_p7 }
 0xd60   : > { %p20608_p13 = por %p20607_p12, %p20606_p11 }
 0xd62   : > { %p20609_p0 = pnand %p20608_p13, %p20602_p8 }
 0xd64   : > { %20612 = shalt.err (!%p20609_p0)
}
 0xd65   : > { %s20684_s27 = smov 256   ;;  %s20685_s29 = smov 16   ;;  %15309 = vst [vmem:[%s27071_s23 + $0x8] sm:$0xff] %v15245_v60  ;;  %v15247_v50 = vadd.f32 %v17846_v30, %v27054_v13  ;;  %15310 = vst [vmem:[%s27071_s23 + $0x10] sm:$0xff] %v15246_v31  ;;  %v15019_v11 = vpop.f32.mrb[56].mxu0 }
 0xd66   : > { %18608 = dma.vmem_to_hbm [thread:$0]  (%p20805_p5), %s27069_s30, 2048, %s27067_s20, %s15378_s21, %s20684_s27, %s20684_s27, %s20685_s29   ;;  %v17847_v29 = vadd.f32 %v15019_v11, %v26590_v38  ;;  %v15021_v26 = vpop.f32.mrb[57].mxu0 }
 0xd67   : > { %15311 = vst [vmem:[%s27071_s23 + $0x18] sm:$0xff] %v15247_v50  ;;  %v17848_v17 = vadd.f32 %v15021_v26, %v26592_v10  ;;  %v15023_v41 = vpop.f32.mrb[58].mxu0  ;;  %s17713_s30 = sshll.u32 %s20788_s22, 13  ;;  %s15401_s20 = sshll.u32 %s27071_s23, 4  ;;  %s27291_s20 = int_to_ptr.vmem [resolvable:$true] %s15401_s20 }
 0xd68   : > { %v15248_v52 = vadd.f32 %v17847_v29, %v27051_v39  ;;  %v17849_v5 = vadd.f32 %v15023_v41, %v26594_v40  ;;  %v15025_v19 = vpop.f32.mrb[59].mxu0  ;;  %s27676_s25 = sld [smem:[#allocation48_spill]]  ;;  %s15373_s22 = scalar_lea.sflag [#allocation6], %s24754_s24 }
 0xd69   : > { %v15249_v44 = vadd.f32 %v17848_v17, %v27054_v13  ;;  %v17850_v58 = vadd.f32 %v15025_v19, %v26596_v36  ;;  %v15029_v10 = vpop.f32.mrb[60].mxu0  ;;  %s20613_s1 = scalar_lea.vmem %s27291_s20, 8192  ;;  %s20686_s12 = smov [#allocation5]  }
 0xd6a   : > { %15312 = vst [vmem:[%s27071_s23 + $0x20] sm:$0xff] %v15248_v52  ;;  %v15250_v2 = vadd.f32 %v17849_v5, %v27051_v39  ;;  %v17851_v40 = vadd.f32 %v15029_v10, %v26600_v53  ;;  %v15031_v20 = vpop.f32.mrb[61].mxu0  ;;  %p20614_p1 = scmp.ne.s32.totalorder %s27291_s20, %s20613_s1  ;;  %s20617_s26 = sshll.u32 %s20686_s12, 4  ;;  %s20618_s26 = int_to_ptr.vmem [resolvable:$false] %s20617_s26 }
 0xd6b   : > { %15313 = vst [vmem:[%s27071_s23 + $0x28] sm:$0xff] %v15249_v44  ;;  %v15251_v38 = vadd.f32 %v17850_v58, %v27054_v13  ;;  %v17852_v14 = vadd.f32 %v15031_v20, %v26602_v21  ;;  %v15033_v59 = vpop.f32.mrb[62].mxu0  ;;  %s20619_s16 = scalar_lea.vmem %s20618_s26, 16384  ;;  %p20620_p4 = scmp.lt.s32.totalorder %s27291_s20, %s20618_s26 }
 0xd6c   : > { %15314 = vst [vmem:[%s27071_s23 + $0x30] sm:$0xff] %v15250_v2  ;;  %v15252_v36 = vadd.f32 %v17851_v40, %v27051_v39  ;;  %v17853_v46 = vadd.f32 %v15033_v59, %v26604_v51  ;;  %v15035_v61 = vpop.f32.mrb[63].mxu0  ;;  %p20615_p2 = pnand %p20614_p1, %p20805_p5  ;;  %p20621_p7 = scmp.lt.s32.totalorder %s20619_s16, %s20613_s1 }
 0xd6d   : > { %15315 = vst [vmem:[%s27071_s23 + $0x38] sm:$0xff] %v15251_v38  ;;  %v15253_v54 = vadd.f32 %v17852_v14, %v27054_v13  ;;  %v17854_v62 = vadd.f32 %v15035_v61, %v26606_v56  ;;  %v15039_v21 = vpop.f32.mrb[64].mxu0 }
 0xd6e   : > { %15316 = vst [vmem:[%s27071_s23 + $0x40] sm:$0xff] %v15252_v36  ;;  %v15254_v60 = vadd.f32 %v17853_v46, %v27051_v39  ;;  %v17855_v51 = vadd.f32 %v15039_v21, %v26610_v16  ;;  %v15041_v30 = vpop.f32.mrb[65].mxu0  ;;  %s27289_s2 = scalar_lea.hbm %s27676_s25, %s17713_s30  ;;  %p20616_p3 = pneg %p20615_p2 }
 0xd6f   : > { %15317 = vst [vmem:[%s27071_s23 + $0x48] sm:$0xff] %v15253_v54  ;;  %v15255_v53 = vadd.f32 %v17854_v62, %v27054_v13  ;;  %v17856_v31 = vadd.f32 %v15041_v30, %v26612_v63  ;;  %v15043_v50 = vpop.f32.mrb[66].mxu0  ;;  %p20622_p8 = por %p20621_p7, %p20620_p4 }
 0xd70   : > { %15318 = vst [vmem:[%s27071_s23 + $0x50] sm:$0xff] %v15254_v60  ;;  %v15256_v56 = vadd.f32 %v17855_v51, %v27051_v39  ;;  %v17857_v11 = vadd.f32 %v15043_v50, %v26614_v32  ;;  %v15045_v29 = vpop.f32.mrb[67].mxu0 }
 0xd71   : > { %15319 = vst [vmem:[%s27071_s23 + $0x58] sm:$0xff] %v15255_v53  ;;  %v15257_v26 = vadd.f32 %v17856_v31, %v27054_v13  ;;  %v17858_v17 = vadd.f32 %v15045_v29, %v26616_v35  ;;  %p20623_p9 = pnand %p20622_p8, %p20616_p3 }
 0xd72   : > { %15320 = vst [vmem:[%s27071_s23 + $0x60] sm:$0xff] %v15256_v56  ;;  %v15258_v41 = vadd.f32 %v17857_v11, %v27051_v39 }
 0xd73   : > { %15321 = vst [vmem:[%s27071_s23 + $0x68] sm:$0xff] %v15257_v26  ;;  %v15259_v16 = vadd.f32 %v17858_v17, %v27054_v13  ;;  %v15049_v63 = vpop.f32.mrb[68].mxu0 }
 0xd74   : > { %15322 = vst [vmem:[%s27071_s23 + $0x70] sm:$0xff] %v15258_v41  ;;  %v17859_v32 = vadd.f32 %v15049_v63, %v26620_v15  ;;  %v15051_v52 = vpop.f32.mrb[69].mxu0 }
 0xd75   : > { %15323 = vst [vmem:[%s27071_s23 + $0x78] sm:$0xff] %v15259_v16  ;;  %v17860_v5 = vadd.f32 %v15051_v52, %v26622_v9  ;;  %v15053_v19 = vpop.f32.mrb[70].mxu0 }
 0xd76   : > { %v15260_v35 = vadd.f32 %v17859_v32, %v27051_v39  ;;  %v17861_v44 = vadd.f32 %v15053_v19, %v26624_v7  ;;  %v15055_v58 = vpop.f32.mrb[71].mxu0 }
 0xd77   : > { %v15261_v2 = vadd.f32 %v17860_v5, %v27054_v13  ;;  %v17862_v38 = vadd.f32 %v15055_v58, %v26626_v6 }
 0xd78   : > { %15324 = vst [vmem:[%s27071_s23 + $0x80] sm:$0xff] %v15260_v35  ;;  %v15262_v10 = vadd.f32 %v17861_v44, %v27051_v39 }
 0xd79   : > { %15325 = vst [vmem:[%s27071_s23 + $0x88] sm:$0xff] %v15261_v2  ;;  %v15263_v15 = vadd.f32 %v17862_v38, %v27054_v13 }
 0xd7a   : > { %15326 = vst [vmem:[%s27071_s23 + $0x90] sm:$0xff] %v15262_v10 }
 0xd7b   : > { %15327 = vst [vmem:[%s27071_s23 + $0x98] sm:$0xff] %v15263_v15  ;;  %v15059_v9 = vpop.f32.mrb[72].mxu0 }
 0xd7c   : > { %v17863_v7 = vadd.f32 %v15059_v9, %v26630_v0  ;;  %v15061_v40 = vpop.f32.mrb[73].mxu0 }
 0xd7d   : > { %v17864_v20 = vadd.f32 %v15061_v40, %v26632_v43  ;;  %v15063_v14 = vpop.f32.mrb[74].mxu0 }
 0xd7e   : > { %v15264_v6 = vadd.f32 %v17863_v7, %v27051_v39  ;;  %v17865_v59 = vadd.f32 %v15063_v14, %v26634_v27  ;;  %v15065_v36 = vpop.f32.mrb[75].mxu0 }
 0xd7f   : > { %v15265_v46 = vadd.f32 %v17864_v20, %v27054_v13  ;;  %v17866_v61 = vadd.f32 %v15065_v36, %v26636_v18 }
 0xd80   : > { %15328 = vst [vmem:[%s27071_s23 + $0xa0] sm:$0xff] %v15264_v6  ;;  %v15266_v54 = vadd.f32 %v17865_v59, %v27051_v39 }
 0xd81   : > { %15329 = vst [vmem:[%s27071_s23 + $0xa8] sm:$0xff] %v15265_v46  ;;  %v15267_v0 = vadd.f32 %v17866_v61, %v27054_v13 }
 0xd82   : > { %15330 = vst [vmem:[%s27071_s23 + $0xb0] sm:$0xff] %v15266_v54 }
 0xd83   : > { %15331 = vst [vmem:[%s27071_s23 + $0xb8] sm:$0xff] %v15267_v0  ;;  %v15069_v43 = vpop.f32.mrb[76].mxu0 }
 0xd84   : > { %v17867_v27 = vadd.f32 %v15069_v43, %v26649_v25  ;;  %v15071_v62 = vpop.f32.mrb[77].mxu0 }
 0xd85   : > { %v17868_v60 = vadd.f32 %v15071_v62, %v26654_v28  ;;  %v15073_v53 = vpop.f32.mrb[78].mxu0 }
 0xd86   : > { %v15268_v18 = vadd.f32 %v17867_v27, %v27051_v39  ;;  %v17869_v21 = vadd.f32 %v15073_v53, %v26656_v24  ;;  %v15075_v51 = vpop.f32.mrb[79].mxu0  ;;  %v27656_v27 = vld [vmem:[#allocation18_spill] sm:$0xff] }
 0xd87   : > { %v15269_v30 = vadd.f32 %v17868_v60, %v27054_v13  ;;  %v17870_v31 = vadd.f32 %v15075_v51, %v26658_v55  ;;  %v27657_v60 = vld [vmem:[#allocation20_spill] sm:$0xff] }
 0xd88   : > { %15332 = vst [vmem:[%s27071_s23 + $0xc0] sm:$0xff] %v15268_v18  ;;  %v15270_v50 = vadd.f32 %v17869_v21, %v27051_v39  ;;  %v27658_v21 = vld [vmem:[#allocation21_spill] sm:$0xff] }
 0xd89   : > { %15333 = vst [vmem:[%s27071_s23 + $0xc8] sm:$0xff] %v15269_v30  ;;  %v15271_v25 = vadd.f32 %v17870_v31, %v27054_v13 }
 0xd8a   : > { %15334 = vst [vmem:[%s27071_s23 + $0xd0] sm:$0xff] %v15270_v50  ;;  %v27659_v50 = vld [vmem:[#allocation22_spill] sm:$0xff] }
 0xd8b   : > { %15335 = vst [vmem:[%s27071_s23 + $0xd8] sm:$0xff] %v15271_v25  ;;  %v15079_v28 = vpop.f32.mrb[80].mxu0 }
 0xd8c   : > { %v17871_v24 = vadd.f32 %v15079_v28, %v26671_v34  ;;  %v15081_v56 = vpop.f32.mrb[81].mxu0 }
 0xd8d   : > { %v17872_v11 = vadd.f32 %v15081_v56, %v26676_v23  ;;  %v15083_v29 = vpop.f32.mrb[82].mxu0 }
 0xd8e   : > { %v15272_v55 = vadd.f32 %v17871_v24, %v27051_v39  ;;  %v17873_v26 = vadd.f32 %v15083_v29, %v26678_v45  ;;  %v15085_v17 = vpop.f32.mrb[83].mxu0 }
 0xd8f   : > { %v15273_v41 = vadd.f32 %v17872_v11, %v27054_v13  ;;  %v17874_v16 = vadd.f32 %v15085_v17, %v26680_v12  ;;  %v27660_v11 = vld [vmem:[#allocation23_spill] sm:$0xff] }
 0xd90   : > { %15336 = vst [vmem:[%s27071_s23 + $0xe0] sm:$0xff] %v15272_v55  ;;  %v15274_v63 = vadd.f32 %v17873_v26, %v27051_v39  ;;  %v27661_v26 = vld [vmem:[#allocation24_spill] sm:$0xff] }
 0xd91   : > { %15337 = vst [vmem:[%s27071_s23 + $0xe8] sm:$0xff] %v15273_v41  ;;  %v15275_v34 = vadd.f32 %v17874_v16, %v27054_v13 }
 0xd92   : > { %15338 = vst [vmem:[%s27071_s23 + $0xf0] sm:$0xff] %v15274_v63  ;;  %v27662_v63 = vld [vmem:[#allocation25_spill] sm:$0xff] }
 0xd93   : > { %15339 = vst [vmem:[%s27071_s23 + $0xf8] sm:$0xff] %v15275_v34  ;;  %v15089_v23 = vpop.f32.mrb[84].mxu0 }
 0xd94   : > { %v17875_v45 = vadd.f32 %v15089_v23, %v26693_v8  ;;  %v15091_v32 = vpop.f32.mrb[85].mxu0 }
 0xd95   : > { %v17876_v52 = vadd.f32 %v15091_v32, %v26698_v57  ;;  %v15093_v5 = vpop.f32.mrb[86].mxu0  ;;  %v27663_v32 = vld [vmem:[#allocation26_spill] sm:$0xff] }
 0xd96   : > { %v15276_v12 = vadd.f32 %v17875_v45, %v27051_v39  ;;  %v17877_v19 = vadd.f32 %v15093_v5, %v26700_v33  ;;  %v15095_v35 = vpop.f32.mrb[87].mxu0 }
 0xd97   : > { %v15277_v44 = vadd.f32 %v17876_v52, %v27054_v13  ;;  %v17878_v58 = vadd.f32 %v15095_v35, %v26702_v37  ;;  %v27664_v35 = vld [vmem:[#allocation27_spill] sm:$0xff] }
 0xd98   : > { %15340 = vst [vmem:[%s27071_s23 + $0x100] sm:$0xff] %v15276_v12  ;;  %v15278_v2 = vadd.f32 %v17877_v19, %v27051_v39 }
 0xd99   : > { %15341 = vst [vmem:[%s27071_s23 + $0x108] sm:$0xff] %v15277_v44  ;;  %v15279_v8 = vadd.f32 %v17878_v58, %v27054_v13 }
 0xd9a   : > { %15342 = vst [vmem:[%s27071_s23 + $0x110] sm:$0xff] %v15278_v2  ;;  %v27665_v2 = vld [vmem:[#allocation28_spill] sm:$0xff] }
 0xd9b   : > { %15343 = vst [vmem:[%s27071_s23 + $0x118] sm:$0xff] %v15279_v8  ;;  %v15099_v57 = vpop.f32.mrb[88].mxu0 }
 0xd9c   : > { %v17879_v33 = vadd.f32 %v15099_v57, %v26715_v1  ;;  %v15101_v38 = vpop.f32.mrb[89].mxu0 }
 0xd9d   : > { %v17880_v10 = vadd.f32 %v15101_v38, %v26720_v48  ;;  %v15103_v15 = vpop.f32.mrb[90].mxu0  ;;  %v27666_v38 = vld [vmem:[#allocation29_spill] sm:$0xff] }
 0xd9e   : > { %v15280_v37 = vadd.f32 %v17879_v33, %v27051_v39  ;;  %v17881_v9 = vadd.f32 %v15103_v15, %v26722_v42  ;;  %v15105_v7 = vpop.f32.mrb[91].mxu0 }
 0xd9f   : > { %v15281_v40 = vadd.f32 %v17880_v10, %v27054_v13  ;;  %v17882_v20 = vadd.f32 %v15105_v7, %v26724_v47 }
 0xda0   : > { %15344 = vst [vmem:[%s27071_s23 + $0x120] sm:$0xff] %v15280_v37  ;;  %v15282_v14 = vadd.f32 %v17881_v9, %v27051_v39  ;;  %v27667_v9 = vld [vmem:[#allocation30_spill] sm:$0xff] }
 0xda1   : > { %15345 = vst [vmem:[%s27071_s23 + $0x128] sm:$0xff] %v15281_v40  ;;  %v15283_v1 = vadd.f32 %v17882_v20, %v27054_v13 }
 0xda2   : > { %15346 = vst [vmem:[%s27071_s23 + $0x130] sm:$0xff] %v15282_v14 }
 0xda3   : > { %15347 = vst [vmem:[%s27071_s23 + $0x138] sm:$0xff] %v15283_v1  ;;  %v15109_v48 = vpop.f32.mrb[92].mxu0  ;;  %v27668_v1 = vld [vmem:[#allocation31_spill] sm:$0xff] }
 0xda4   : > { %v17883_v42 = vadd.f32 %v15109_v48, %v26737_v22  ;;  %v15111_v6 = vpop.f32.mrb[93].mxu0 }
 0xda5   : > { %v17884_v59 = vadd.f32 %v15111_v6, %v26742_v3  ;;  %v15113_v36 = vpop.f32.mrb[94].mxu0  ;;  %v27669_v6 = vld [vmem:[#allocation32_spill] sm:$0xff] }
 0xda6   : > { %v15284_v47 = vadd.f32 %v17883_v42, %v27051_v39  ;;  %v17885_v46 = vadd.f32 %v15113_v36, %v26744_v4  ;;  %v15115_v61 = vpop.f32.mrb[95].mxu0 }
 0xda7   : > { %v15285_v54 = vadd.f32 %v17884_v59, %v27054_v13  ;;  %v17886_v0 = vadd.f32 %v15115_v61, %v26746_v49 }
 0xda8   : > { %15348 = vst [vmem:[%s27071_s23 + $0x140] sm:$0xff] %v15284_v47  ;;  %v15286_v43 = vadd.f32 %v17885_v46, %v27051_v39  ;;  %v27670_v46 = vld [vmem:[#allocation42_spill] sm:$0xff] }
 0xda9   : > { %15349 = vst [vmem:[%s27071_s23 + $0x148] sm:$0xff] %v15285_v54  ;;  %v15287_v22 = vadd.f32 %v17886_v0, %v27054_v13 }
 0xdaa   : > { %15350 = vst [vmem:[%s27071_s23 + $0x150] sm:$0xff] %v15286_v43  ;;  %v27671_v43 = vld [vmem:[#allocation43_spill] sm:$0xff] }
 0xdab   : > { %15351 = vst [vmem:[%s27071_s23 + $0x158] sm:$0xff] %v15287_v22  ;;  %v15119_v3 = vpop.f32.mrb[96].mxu0 }
 0xdac   : > { %v17887_v4 = vadd.f32 %v15119_v3, %v27656_v27  ;;  %v15121_v62 = vpop.f32.mrb[97].mxu0 }
 0xdad   : > { %v17888_v53 = vadd.f32 %v15121_v62, %v27657_v60  ;;  %v15123_v18 = vpop.f32.mrb[98].mxu0  ;;  %v27672_v62 = vld [vmem:[#allocation33_spill] sm:$0xff] }
 0xdae   : > { %v15288_v49 = vadd.f32 %v17887_v4, %v27051_v39  ;;  %v17889_v51 = vadd.f32 %v15123_v18, %v27658_v21  ;;  %v15125_v30 = vpop.f32.mrb[99].mxu0  ;;  %v27673_v18 = vld [vmem:[#allocation34_spill] sm:$0xff] }
 0xdaf   : > { %v15289_v31 = vadd.f32 %v17888_v53, %v27054_v13  ;;  %v17890_v25 = vadd.f32 %v15125_v30, %v27659_v50  ;;  %v27674_v30 = vld [vmem:[#allocation44_spill] sm:$0xff] }
 0xdb0   : > { %15352 = vst [vmem:[%s27071_s23 + $0x160] sm:$0xff] %v15288_v49  ;;  %v15290_v28 = vadd.f32 %v17889_v51, %v27051_v39 }
 0xdb1   : > { %15353 = vst [vmem:[%s27071_s23 + $0x168] sm:$0xff] %v15289_v31  ;;  %v15291_v24 = vadd.f32 %v17890_v25, %v27054_v13 }
 0xdb2   : > { %15354 = vst [vmem:[%s27071_s23 + $0x170] sm:$0xff] %v15290_v28  ;;  %v27675_v28 = vld [vmem:[#allocation45_spill] sm:$0xff] }
 0xdb3   : > { %15355 = vst [vmem:[%s27071_s23 + $0x178] sm:$0xff] %v15291_v24  ;;  %v15129_v56 = vpop.f32.mrb[100].mxu0 }
 0xdb4   : > { %v17891_v29 = vadd.f32 %v15129_v56, %v27660_v11  ;;  %v15131_v55 = vpop.f32.mrb[101].mxu0 }
 0xdb5   : > { %v17892_v17 = vadd.f32 %v15131_v55, %v27661_v26  ;;  %v15133_v41 = vpop.f32.mrb[102].mxu0 }
 0xdb6   : > { %v15292_v16 = vadd.f32 %v17891_v29, %v27051_v39  ;;  %v17893_v34 = vadd.f32 %v15133_v41, %v27662_v63  ;;  %v15135_v23 = vpop.f32.mrb[103].mxu0 }
 0xdb7   : > { %v15293_v45 = vadd.f32 %v17892_v17, %v27054_v13  ;;  %v17894_v52 = vadd.f32 %v15135_v23, %v27663_v32 }
 0xdb8   : > { %15356 = vst [vmem:[%s27071_s23 + $0x180] sm:$0xff] %v15292_v16  ;;  %v15294_v5 = vadd.f32 %v17893_v34, %v27051_v39 }
 0xdb9   : > { %15357 = vst [vmem:[%s27071_s23 + $0x188] sm:$0xff] %v15293_v45  ;;  %v15295_v12 = vadd.f32 %v17894_v52, %v27054_v13 }
 0xdba   : > { %15358 = vst [vmem:[%s27071_s23 + $0x190] sm:$0xff] %v15294_v5 }
 0xdbb   : > { %15359 = vst [vmem:[%s27071_s23 + $0x198] sm:$0xff] %v15295_v12  ;;  %v15139_v19 = vpop.f32.mrb[104].mxu0 }
 0xdbc   : > { %v17895_v44 = vadd.f32 %v15139_v19, %v27664_v35  ;;  %v15141_v58 = vpop.f32.mrb[105].mxu0 }
 0xdbd   : > { %v17896_v8 = vadd.f32 %v15141_v58, %v27665_v2  ;;  %v15143_v57 = vpop.f32.mrb[106].mxu0 }
 0xdbe   : > { %v15296_v33 = vadd.f32 %v17895_v44, %v27051_v39  ;;  %v17897_v10 = vadd.f32 %v15143_v57, %v27666_v38  ;;  %v15145_v15 = vpop.f32.mrb[107].mxu0 }
 0xdbf   : > { %v15297_v37 = vadd.f32 %v17896_v8, %v27054_v13  ;;  %v17898_v7 = vadd.f32 %v15145_v15, %v27667_v9 }
 0xdc0   : > { %15360 = vst [vmem:[%s27071_s23 + $0x1a0] sm:$0xff] %v15296_v33  ;;  %v15298_v40 = vadd.f32 %v17897_v10, %v27051_v39 }
 0xdc1   : > { %15361 = vst [vmem:[%s27071_s23 + $0x1a8] sm:$0xff] %v15297_v37  ;;  %v15299_v20 = vadd.f32 %v17898_v7, %v27054_v13 }
 0xdc2   : > { %15362 = vst [vmem:[%s27071_s23 + $0x1b0] sm:$0xff] %v15298_v40 }
 0xdc3   : > { %15363 = vst [vmem:[%s27071_s23 + $0x1b8] sm:$0xff] %v15299_v20  ;;  %v15149_v14 = vpop.f32.mrb[108].mxu0 }
 0xdc4   : > { %v17899_v48 = vadd.f32 %v15149_v14, %v27668_v1  ;;  %v15151_v42 = vpop.f32.mrb[109].mxu0 }
 0xdc5   : > { %v17900_v59 = vadd.f32 %v15151_v42, %v27669_v6  ;;  %v15153_v36 = vpop.f32.mrb[110].mxu0 }
 0xdc6   : > { %v15300_v47 = vadd.f32 %v17899_v48, %v27051_v39  ;;  %v17901_v61 = vadd.f32 %v15153_v36, %v27670_v46  ;;  %v15155_v54 = vpop.f32.mrb[111].mxu0 }
 0xdc7   : > { %v15301_v0 = vadd.f32 %v17900_v59, %v27054_v13  ;;  %v17902_v22 = vadd.f32 %v15155_v54, %v27671_v43 }
 0xdc8   : > { %15364 = vst [vmem:[%s27071_s23 + $0x1c0] sm:$0xff] %v15300_v47  ;;  %v15302_v3 = vadd.f32 %v17901_v61, %v27051_v39 }
 0xdc9   : > { %15365 = vst [vmem:[%s27071_s23 + $0x1c8] sm:$0xff] %v15301_v0  ;;  %v15303_v27 = vadd.f32 %v17902_v22, %v27054_v13 }
 0xdca   : > { %15366 = vst [vmem:[%s27071_s23 + $0x1d0] sm:$0xff] %v15302_v3 }
 0xdcb   : > { %15367 = vst [vmem:[%s27071_s23 + $0x1d8] sm:$0xff] %v15303_v27  ;;  %v15159_v4 = vpop.f32.mrb[112].mxu0 }
 0xdcc   : > { %v17903_v60 = vadd.f32 %v15159_v4, %v27672_v62  ;;  %v15161_v53 = vpop.f32.mrb[113].mxu0 }
 0xdcd   : > { %v17904_v49 = vadd.f32 %v15161_v53, %v27673_v18  ;;  %v15163_v21 = vpop.f32.mrb[114].mxu0 }
 0xdce   : > { %v15304_v51 = vadd.f32 %v17903_v60, %v27051_v39  ;;  %v17905_v31 = vadd.f32 %v15163_v21, %v27674_v30  ;;  %v15165_v50 = vpop.f32.mrb[115].mxu0 }
 0xdcf   : > { %v15305_v25 = vadd.f32 %v17904_v49, %v27054_v13  ;;  %v17906_v24 = vadd.f32 %v15165_v50, %v27675_v28 }
 0xdd0   : > { %15368 = vst [vmem:[%s27071_s23 + $0x1e0] sm:$0xff] %v15304_v51  ;;  %v15306_v56 = vadd.f32 %v17905_v31, %v27051_v39 }
 0xdd1   : > { %15369 = vst [vmem:[%s27071_s23 + $0x1e8] sm:$0xff] %v15305_v25  ;;  %v15307_v11 = vadd.f32 %v17906_v24, %v27054_v13 }
 0xdd2   : > { %15370 = vst [vmem:[%s27071_s23 + $0x1f0] sm:$0xff] %v15306_v56 }
 0xdd3   : > { %15371 = vst [vmem:[%s27071_s23 + $0x1f8] sm:$0xff] %v15307_v11 }
 0xdd4   : > { %20626 = shalt.err (!%p20623_p9)
}
 0xdd5   : > { %s20627_s23 = scalar_lea.hbm %s27289_s2, 8192  ;;  %s20631_s21 = scalar_lea.hbm %s27676_s25, 16384 }
 0xdd6   : > { %p20628_p10 = scmp.ne.s32.totalorder %s27289_s2, %s20627_s23  ;;  %p20632_p13 = scmp.lt.u32.totalorder %s27289_s2, %s27676_s25 }
 0xdd7   : > { %p20633_p0 = scmp.lt.u32.totalorder %s20631_s21, %s20627_s23  ;;  %p20635_p2 = scmp.lt.u32.totalorder %s20627_s23, %s27289_s2 }
 0xdd8   : > { %p20629_p11 = pnand %p20628_p10, %p20805_p5 }
 0xdd9   : > { %p20634_p1 = por %p20633_p0, %p20632_p13 }
 0xdda   : > { %p20630_p12 = pneg %p20629_p11 }
 0xddb   : > { %p20636_p3 = por %p20635_p2, %p20634_p1 }
 0xddd   : > { %p20637_p4 = pnand %p20636_p3, %p20630_p12 }
 0xddf   : > { %20640 = shalt.err (!%p20637_p4)
}
 0xde0   : > { %18607 = dma.vmem_to_hbm [thread:$0]  (%p20805_p5), %s27291_s20, 8192, %s27289_s2, %s15373_s22, %s20684_s27, %s20684_s27, %s20685_s29  }
 0xde1 PF: > { %s27677_s1 = sld [smem:[#allocation13_spill]]  ;;  %s27678_s26 = sld [smem:[#allocation11_spill]] }
 0xde7   : > { %p18618_p7 = scmp.ge.s32.totalorder %s27677_s1, 2  ;;  %s15438_s17 = sand.u32 1, %s27678_s26  }
 0xde8   : > { %s15439_s23 = scalar_lea.sflag [#allocation6], %s15438_s17 }
 0xde9   : > { %p18612_p8 = pnand %p18618_p7, %p20809_p6 }
 0xdeb   : > { %20658 = dma.done.wait (!%p18612_p8), %s15439_s23, 8192  }
 0xdec   : > { %20660 = vsyncadd (!%p18612_p8), %s15439_s23, 4294959104  ;;  %s15448_s28 = scalar_lea.sflag [#allocation8], %s15438_s17 }
 0xded   : > { %20662 = dma.done.wait (!%p18612_p8), %s15448_s28, 2048  }
 0xdee   : > { %20664 = vsyncadd (!%p18612_p8), %s15448_s28, 4294965248  ;;  %s27680_s21 = sld [smem:[#allocation14_spill]]  ;;  %s27681_s24 = sld [smem:[#allocation12_spill]] }
 0xdef   : > { %s27682_s20 = sld [smem:[#allocation15_spill]]  ;;  %s27683_s18 = smov %s20671_s19 }
 0xdf4   : > { %p29_p5 = scmp.ge.s32.totalorder %s27680_s21, 4   ;;  %s27684_s19 = smov %s27681_s24 }
 0xdf6   :  { %31 = sbr.rel (!%p29_p5) target bundleno = 9 (0x9), region = 162 }
 0xdfd   :  { %15469 = vsyncpa [#allocation6], 1 }
 0xdfe   :  { %15471 = vsyncpa [#allocation6 + $0x1], 1 }
 0xdff   :  { %15472 = vsyncpa [#allocation8], 1 }
 0xe00   :  { %15474 = vsyncpa [#allocation8 + $0x1], 1 }

</bundles_post_ra>
